<compile_context>
chip_gen: v7x
topology: tpu7x:2x2x1
jax: 0.10.0
libtpu: 0.0.40
codegen_flags: <defaults>
</compile_context>

<pallas_src>
import math

import jax
import jax.numpy as jnp
from jax.experimental import pallas as pl
from jax.experimental.pallas import tpu as pltpu


# ----------------------------------------------------------------------------
# Pallas kernels (each network layer is exactly ONE fused pallas_call)
# ----------------------------------------------------------------------------
def _conv3x3_bn_relu_kernel(p_ref, w_ref, b_ref, g_ref, bb_ref, o_ref):
    """Fused 3x3 conv (matmul over im2col patches) + bias + BN(train) + ReLU.

    p_ref : (9*Cin, M) bf16   im2col patches, M = N*H*W on the lane axis
    w_ref : (Cout, 9*Cin) bf16
    b/g/bb: (Cout, 1) f32     conv bias, BN gamma, BN beta
    o_ref : (Cout, M) f32     lane-dense output
    """
    y = jnp.dot(w_ref[...], p_ref[...], preferred_element_type=jnp.float32)
    y = y + b_ref[...]
    inv_m = 1.0 / y.shape[1]
    mean = jnp.sum(y, axis=1, keepdims=True) * inv_m
    d = y - mean
    var = jnp.sum(d * d, axis=1, keepdims=True) * inv_m
    o_ref[...] = jnp.maximum(
        d * jax.lax.rsqrt(var + 1e-5) * g_ref[...] + bb_ref[...], 0.0)


def _deconv2x2_bn_relu_kernel(x_ref, w_ref, b_ref, g_ref, bb_ref, o_ref):
    """Fused ConvTranspose2d(k=2, s=2) + bias + BN(train) + ReLU.

    A non-overlapping stride-2 transpose conv is 4 independent 1x1 convs (one
    per output quadrant).  BN statistics are pooled across the 4 quadrants so
    they equal the statistics of the upsampled output.

    x_ref : (Cin, M) f32
    w_ref : (4, Cout, Cin) bf16
    b/g/bb: (Cout, 1) f32
    o_ref : (4, Cout, M) f32  (quadrant-major; pixel-shuffled in glue)
    """
    x = x_ref[...].astype(jnp.bfloat16)
    inv_cnt = 1.0 / (4.0 * x.shape[1])
    ys, s = [], None
    for q in range(4):
        y = jnp.dot(w_ref[q], x, preferred_element_type=jnp.float32) + b_ref[...]
        ys.append(y)
        sq = jnp.sum(y, axis=1, keepdims=True)
        s = sq if s is None else s + sq
    mean = s * inv_cnt
    v = None
    for q in range(4):
        d = ys[q] - mean
        vq = jnp.sum(d * d, axis=1, keepdims=True)
        v = vq if v is None else v + vq
    scale = jax.lax.rsqrt(v * inv_cnt + 1e-5) * g_ref[...]
    for q in range(4):
        o_ref[q] = jnp.maximum((ys[q] - mean) * scale + bb_ref[...], 0.0)


def _maxpool2x2_kernel(x_ref, o_ref):
    """MaxPool2d(2, 2): x_ref (C*N*Hs, 2, Ws, 2) -> o_ref (C*N*Hs, Ws, 1)."""
    x = x_ref[...]
    m = jnp.maximum(x[:, 0], x[:, 1])                  # vertical pair max
    o_ref[...] = jnp.max(m, axis=-1, keepdims=True)    # horizontal pair max


def _conv1x1_kernel(x_ref, w_ref, b_ref, o_ref):
    """Final 1x1 conv: (classes, M) = W (classes, Cin) @ x (Cin, M) + b."""
    x = x_ref[...].astype(jnp.bfloat16)
    o_ref[...] = (jnp.dot(w_ref[...], x, preferred_element_type=jnp.float32)
                  + b_ref[...])


# ----------------------------------------------------------------------------
# pallas_call helper: single-block call with full-array BlockSpecs
# ----------------------------------------------------------------------------
def _single_block_call(kernel, out_shape, *inputs):
    def full(shape):
        nd = len(shape)
        return pl.BlockSpec(shape, lambda i, _nd=nd: (0,) * _nd)

    return pl.pallas_call(
        kernel,
        out_shape=out_shape,
        grid=(1,),
        in_specs=[full(x.shape) for x in inputs],
        out_specs=full(out_shape.shape),
        compiler_params=pltpu.CompilerParams(
            dimension_semantics=("arbitrary",)),
    )(*inputs)


# ----------------------------------------------------------------------------
# Layer wrappers (glue is only free reshapes, channel concat, pad, tiny perms)
# ----------------------------------------------------------------------------
def _im2col3x3(x_cm, dims):
    """(C, N*H*W) f32 -> (9*C, N*H*W) bf16 patch matrix for a 3x3/pad=1 conv."""
    N, H, W = dims
    C = x_cm.shape[0]
    xp = jnp.pad(x_cm.reshape(C, N, H, W), ((0, 0), (0, 0), (1, 1), (1, 1)))
    taps = [xp[:, :, ky:ky + H, kx:kx + W]
            for ky in range(3) for kx in range(3)]
    return (jnp.concatenate(taps, axis=0)
            .reshape(9 * C, N * H * W).astype(jnp.bfloat16))


def conv3x3_bn_relu(x_cm, dims, p):
    patches = _im2col3x3(x_cm, dims)
    cout = p["w"].shape[0]
    return _single_block_call(
        _conv3x3_bn_relu_kernel,
        jax.ShapeDtypeStruct((cout, x_cm.shape[1]), jnp.float32),
        patches, p["w"], p["b"], p["g"], p["beta"])


def deconv2x2_bn_relu(x_cm, dims, p):
    N, H, W = dims
    cout = p["w"].shape[1]
    M = x_cm.shape[1]
    y = _single_block_call(
        _deconv2x2_bn_relu_kernel,
        jax.ShapeDtypeStruct((4, cout, M), jnp.float32),
        x_cm, p["w"], p["b"], p["g"], p["beta"])
    # 2x2 pixel shuffle on the already-normalized activation (tiny permute).
    # TODO(synk): fold the shuffle into the kernel's output store layout.
    y = (y.reshape(2, 2, cout, N, H, W)
          .transpose(2, 3, 4, 0, 5, 1)
          .reshape(cout, N * 2 * H * 2 * W))
    return y, (N, 2 * H, 2 * W)


def max_pool_2x2(x_cm, dims):
    N, H, W = dims
    C = x_cm.shape[0]
    Hs, Ws = H // 2, W // 2
    xr = x_cm.reshape(C * N * Hs, 2, Ws, 2)      # free, contiguous reshape
    y = _single_block_call(
        _maxpool2x2_kernel,
        jax.ShapeDtypeStruct((C * N * Hs, Ws, 1), jnp.float32),
        xr)
    return y.reshape(C, N * Hs * Ws), (N, Hs, Ws)


def conv1x1(x_cm, p):
    ncls = p["w"].shape[0]
    return _single_block_call(
        _conv1x1_kernel,
        jax.ShapeDtypeStruct((ncls, x_cm.shape[1]), jnp.float32),
        x_cm, p["w"], p["b"])


# ----------------------------------------------------------------------------
# Parameter construction (deterministic, matches module shapes / init std)
# ----------------------------------------------------------------------------
def init_params(key, num_channels, num_classes):
    keys = iter(jax.random.split(key, 64))

    def conv3(cin, cout):
        std = math.sqrt(2.0 / (9.0 * cout))
        w = std * jax.random.normal(next(keys), (cout, 3, 3, cin), jnp.float32)
        return {"w": w.reshape(cout, 9 * cin).astype(jnp.bfloat16),
                "b": jnp.zeros((cout, 1), jnp.float32),
                "g": jnp.ones((cout, 1), jnp.float32),
                "beta": jnp.zeros((cout, 1), jnp.float32)}

    def deconv(cin, cout):
        # ConvTranspose2d keeps default init in the reference; deterministic
        # synthetic normal with matching fan-in scale.
        std = math.sqrt(1.0 / (4.0 * cin))
        w = std * jax.random.normal(next(keys), (4, cout, cin), jnp.float32)
        return {"w": w.astype(jnp.bfloat16),
                "b": jnp.zeros((cout, 1), jnp.float32),
                "g": jnp.ones((cout, 1), jnp.float32),
                "beta": jnp.zeros((cout, 1), jnp.float32)}

    def double(cin, cout):
        return [conv3(cin, cout), conv3(cout, cout)]

    def up(cin, feat, cout):
        return {"c1": conv3(cin, feat), "c2": conv3(feat, feat),
                "ct": deconv(feat, cout)}

    params = {
        "first": double(num_channels, 4),
        "dec2": double(4, 8),
        "dec3": double(8, 16),
        "dec4": double(16, 32),
        "center": {"c1": conv3(32, 64), "c2": conv3(64, 64),
                   "ct": deconv(64, 32)},
        "enc4": up(64, 32, 16),
        "enc3": up(32, 16, 8),
        "enc2": up(16, 8, 4),
        "enc1": double(8, 4),
        "final": {"w": (math.sqrt(2.0 / num_classes) *
                        jax.random.normal(next(keys), (num_classes, 4),
                                          jnp.float32)).astype(jnp.bfloat16),
                  "b": jnp.zeros((num_classes, 1), jnp.float32)},
    }
    return params


# ----------------------------------------------------------------------------
# Forward pass (composition; all per-layer compute is inside the fused kernels)
# ----------------------------------------------------------------------------
def double_conv(x_cm, dims, ps):
    x_cm = conv3x3_bn_relu(x_cm, dims, ps[0])
    return conv3x3_bn_relu(x_cm, dims, ps[1])


def unet_down(x_cm, dims, ps):
    x_cm, dims = max_pool_2x2(x_cm, dims)
    return double_conv(x_cm, dims, ps), dims


def unet_up(x_cm, dims, p):
    x_cm = conv3x3_bn_relu(x_cm, dims, p["c1"])
    x_cm = conv3x3_bn_relu(x_cm, dims, p["c2"])
    return deconv2x2_bn_relu(x_cm, dims, p["ct"])


def unet_forward(params, x_nchw):
    N, C, H, W = x_nchw.shape
    x_cm = jnp.transpose(x_nchw, (1, 0, 2, 3)).reshape(C, N * H * W)
    dims1 = (N, H, W)

    dec1 = double_conv(x_cm, dims1, params["first"])
    dec2, dims2 = unet_down(dec1, dims1, params["dec2"])
    dec3, dims3 = unet_down(dec2, dims2, params["dec3"])
    dec4, dims4 = unet_down(dec3, dims3, params["dec4"])

    cp = params["center"]
    c, dimsc = max_pool_2x2(dec4, dims4)
    c = conv3x3_bn_relu(c, dimsc, cp["c1"])
    c = conv3x3_bn_relu(c, dimsc, cp["c2"])
    center10, _ = deconv2x2_bn_relu(c, dimsc, cp["ct"])      # back at dims4

    enc4, _ = unet_up(jnp.concatenate([center10, dec4], axis=0), dims4,
                      params["enc4"])
    enc3, _ = unet_up(jnp.concatenate([enc4, dec3], axis=0), dims3,
                      params["enc3"])
    enc2, _ = unet_up(jnp.concatenate([enc3, dec2], axis=0), dims2,
                      params["enc2"])
    enc1 = double_conv(jnp.concatenate([enc2, dec1], axis=0), dims1,
                       params["enc1"])

    out = conv1x1(enc1, params["final"])                     # (classes, N*H*W)
    ncls = out.shape[0]
    return jnp.transpose(out.reshape(ncls, N, H, W), (1, 0, 2, 3))  # NCHW


if __name__ == "__main__":
    num_channels = 4
    num_classes = 3
    N, H, W = 2, 16, 16

    key = jax.random.PRNGKey(0)
    k_params, k_x = jax.random.split(key)
    params = init_params(k_params, num_channels, num_classes)
    x = jax.random.normal(k_x, (N, num_channels, H, W), jnp.float32)

    fwd = jax.jit(unet_forward)
    y = fwd(params, x)
    jax.block_until_ready(y)

    assert y.shape == (N, num_classes, H, W), y.shape
    assert bool(jnp.all(jnp.isfinite(y)))
    print("KERNEL_OK")
</pallas_src>

<mosaic_0001>
module attributes {stable_mosaic.version = 11 : i64} {
  func.func @_conv3x3_bn_relu_kernel(%arg0: i32, %arg1: memref<36x512xbf16, #tpu.memory_space<vmem>>, %arg2: memref<4x36xbf16, #tpu.memory_space<vmem>>, %arg3: memref<4x1xf32, #tpu.memory_space<vmem>>, %arg4: memref<4x1xf32, #tpu.memory_space<vmem>>, %arg5: memref<4x1xf32, #tpu.memory_space<vmem>>, %arg6: memref<4x512xf32, #tpu.memory_space<vmem>>) attributes {dimension_semantics = [#tpu.dimension_semantics<arbitrary>], iteration_bounds = array<i64: 1>, scalar_prefetch = 0 : i64, scratch_operands = 0 : i64, tpu.core_type = #tpu.core_type<tc>, window_params = [{pipeline_mode = #tpu.pipeline_mode<synchronous>, transform_indices = @transform_0, window_bounds = array<i64: 36, 512>}, {pipeline_mode = #tpu.pipeline_mode<synchronous>, transform_indices = @transform_1, window_bounds = array<i64: 4, 36>}, {pipeline_mode = #tpu.pipeline_mode<synchronous>, transform_indices = @transform_2, window_bounds = array<i64: 4, 1>}, {pipeline_mode = #tpu.pipeline_mode<synchronous>, transform_indices = @transform_3, window_bounds = array<i64: 4, 1>}, {pipeline_mode = #tpu.pipeline_mode<synchronous>, transform_indices = @transform_4, window_bounds = array<i64: 4, 1>}, {pipeline_mode = #tpu.pipeline_mode<synchronous>, transform_indices = @transform_5, window_bounds = array<i64: 4, 512>}]} {
    %c0 = arith.constant 0 : index
    %c0_0 = arith.constant 0 : index
    %0 = vector.load %arg2[%c0, %c0_0] : memref<4x36xbf16, #tpu.memory_space<vmem>>, vector<4x36xbf16>
    %c0_1 = arith.constant 0 : index
    %c0_2 = arith.constant 0 : index
    %1 = vector.load %arg1[%c0_1, %c0_2] : memref<36x512xbf16, #tpu.memory_space<vmem>>, vector<36x512xbf16>
    %cst = arith.constant dense<0.000000e+00> : vector<4x512xf32>
    %2 = tpu.matmul %0, %1, %cst {dimension_numbers = #tpu.dot_dimension_numbers<[1], [0], [0], [1], [0, 0, 1, 1], [], []>} : vector<4x36xbf16>, vector<36x512xbf16>, vector<4x512xf32> -> vector<4x512xf32>
    %c0_3 = arith.constant 0 : index
    %c0_4 = arith.constant 0 : index
    %3 = vector.load %arg3[%c0_3, %c0_4] : memref<4x1xf32, #tpu.memory_space<vmem>>, vector<4x1xf32>
    %4 = vector.broadcast %3 : vector<4x1xf32> to vector<4x512xf32>
    %5 = arith.addf %2, %4 : vector<4x512xf32>
    %cst_5 = arith.constant dense<0.000000e+00> : vector<4xf32>
    %6 = vector.multi_reduction <add>, %5, %cst_5 [1] : vector<4x512xf32> to vector<4xf32>
    %7 = vector.shape_cast %6 : vector<4xf32> to vector<4x1xf32>
    %cst_6 = arith.constant 0.001953125 : f32
    %8 = vector.broadcast %cst_6 : f32 to vector<4x1xf32>
    %9 = arith.mulf %7, %8 : vector<4x1xf32>
    %10 = vector.broadcast %9 : vector<4x1xf32> to vector<4x512xf32>
    %11 = arith.subf %5, %10 : vector<4x512xf32>
    %12 = arith.mulf %11, %11 : vector<4x512xf32>
    %cst_7 = arith.constant dense<0.000000e+00> : vector<4xf32>
    %13 = vector.multi_reduction <add>, %12, %cst_7 [1] : vector<4x512xf32> to vector<4xf32>
    %14 = vector.shape_cast %13 : vector<4xf32> to vector<4x1xf32>
    %cst_8 = arith.constant 0.001953125 : f32
    %15 = vector.broadcast %cst_8 : f32 to vector<4x1xf32>
    %16 = arith.mulf %14, %15 : vector<4x1xf32>
    %cst_9 = arith.constant 9.99999974E-6 : f32
    %17 = vector.broadcast %cst_9 : f32 to vector<4x1xf32>
    %18 = arith.addf %16, %17 : vector<4x1xf32>
    %19 = math.rsqrt %18 : vector<4x1xf32>
    %20 = vector.broadcast %19 : vector<4x1xf32> to vector<4x512xf32>
    %21 = arith.mulf %11, %20 : vector<4x512xf32>
    %c0_10 = arith.constant 0 : index
    %c0_11 = arith.constant 0 : index
    %22 = vector.load %arg4[%c0_10, %c0_11] : memref<4x1xf32, #tpu.memory_space<vmem>>, vector<4x1xf32>
    %23 = vector.broadcast %22 : vector<4x1xf32> to vector<4x512xf32>
    %24 = arith.mulf %21, %23 : vector<4x512xf32>
    %c0_12 = arith.constant 0 : index
    %c0_13 = arith.constant 0 : index
    %25 = vector.load %arg5[%c0_12, %c0_13] : memref<4x1xf32, #tpu.memory_space<vmem>>, vector<4x1xf32>
    %26 = vector.broadcast %25 : vector<4x1xf32> to vector<4x512xf32>
    %27 = arith.addf %24, %26 : vector<4x512xf32>
    %cst_14 = arith.constant 0.000000e+00 : f32
    %28 = vector.broadcast %cst_14 : f32 to vector<4x512xf32>
    %29 = arith.maximumf %27, %28 : vector<4x512xf32>
    %c0_15 = arith.constant 0 : index
    %c0_16 = arith.constant 0 : index
    %30 = vector.load %arg6[%c0_15, %c0_16] : memref<4x512xf32, #tpu.memory_space<vmem>>, vector<4x512xf32>
    tpu.vector_store %arg6[%c0_15, %c0_16], %29 {strides = array<i32>} : memref<4x512xf32, #tpu.memory_space<vmem>>, vector<4x512xf32>,
    return
  }
  func.func @transform_0(%arg0: i32) -> (i32, i32) {
    %c0_i32 = arith.constant 0 : i32
    %c0_i32_0 = arith.constant 0 : i32
    %c0_i32_1 = arith.constant 0 : i32
    return %c0_i32, %c0_i32_0 : i32, i32
  }
  func.func @transform_1(%arg0: i32) -> (i32, i32) {
    %c0_i32 = arith.constant 0 : i32
    %c0_i32_0 = arith.constant 0 : i32
    %c0_i32_1 = arith.constant 0 : i32
    return %c0_i32, %c0_i32_0 : i32, i32
  }
  func.func @transform_2(%arg0: i32) -> (i32, i32) {
    %c0_i32 = arith.constant 0 : i32
    %c0_i32_0 = arith.constant 0 : i32
    %c0_i32_1 = arith.constant 0 : i32
    return %c0_i32, %c0_i32_0 : i32, i32
  }
  func.func @transform_3(%arg0: i32) -> (i32, i32) {
    %c0_i32 = arith.constant 0 : i32
    %c0_i32_0 = arith.constant 0 : i32
    %c0_i32_1 = arith.constant 0 : i32
    return %c0_i32, %c0_i32_0 : i32, i32
  }
  func.func @transform_4(%arg0: i32) -> (i32, i32) {
    %c0_i32 = arith.constant 0 : i32
    %c0_i32_0 = arith.constant 0 : i32
    %c0_i32_1 = arith.constant 0 : i32
    return %c0_i32, %c0_i32_0 : i32, i32
  }
  func.func @transform_5(%arg0: i32) -> (i32, i32) {
    %c0_i32 = arith.constant 0 : i32
    %c0_i32_0 = arith.constant 0 : i32
    %c0_i32_1 = arith.constant 0 : i32
    return %c0_i32, %c0_i32_0 : i32, i32
  }
}

module attributes {stable_mosaic.version = 11 : i64} {
  func.func @_maxpool2x2_kernel(%arg0: i32, %arg1: memref<64x2x8x2xf32, #tpu.memory_space<vmem>>, %arg2: memref<64x8x1xf32, #tpu.memory_space<vmem>>) attributes {dimension_semantics = [#tpu.dimension_semantics<arbitrary>], iteration_bounds = array<i64: 1>, scalar_prefetch = 0 : i64, scratch_operands = 0 : i64, tpu.core_type = #tpu.core_type<tc>, window_params = [{pipeline_mode = #tpu.pipeline_mode<synchronous>, transform_indices = @transform_0, window_bounds = array<i64: 64, 2, 8, 2>}, {pipeline_mode = #tpu.pipeline_mode<synchronous>, transform_indices = @transform_1, window_bounds = array<i64: 64, 8, 1>}]} {
    %c0 = arith.constant 0 : index
    %c0_0 = arith.constant 0 : index
    %c0_1 = arith.constant 0 : index
    %c0_2 = arith.constant 0 : index
    %0 = vector.load %arg1[%c0, %c0_0, %c0_1, %c0_2] : memref<64x2x8x2xf32, #tpu.memory_space<vmem>>, vector<64x2x8x2xf32>
    %1 = vector.extract_strided_slice %0 {offsets = [0, 0, 0, 0], sizes = [64, 1, 8, 2], strides = [1, 1, 1, 1]} : vector<64x2x8x2xf32> to vector<64x1x8x2xf32>
    %2 = vector.shape_cast %1 : vector<64x1x8x2xf32> to vector<64x8x2xf32>
    %3 = vector.extract_strided_slice %0 {offsets = [0, 1, 0, 0], sizes = [64, 1, 8, 2], strides = [1, 1, 1, 1]} : vector<64x2x8x2xf32> to vector<64x1x8x2xf32>
    %4 = vector.shape_cast %3 : vector<64x1x8x2xf32> to vector<64x8x2xf32>
    %5 = arith.maximumf %2, %4 : vector<64x8x2xf32>
    %cst = arith.constant dense<0xFF800000> : vector<64x8xf32>
    %6 = vector.multi_reduction <maximumf>, %5, %cst [2] : vector<64x8x2xf32> to vector<64x8xf32>
    %7 = vector.shape_cast %6 : vector<64x8xf32> to vector<64x8x1xf32>
    %c0_3 = arith.constant 0 : index
    %c0_4 = arith.constant 0 : index
    %c0_5 = arith.constant 0 : index
    %8 = vector.load %arg2[%c0_3, %c0_4, %c0_5] : memref<64x8x1xf32, #tpu.memory_space<vmem>>, vector<64x8x1xf32>
    tpu.vector_store %arg2[%c0_3, %c0_4, %c0_5], %7 {strides = array<i32>} : memref<64x8x1xf32, #tpu.memory_space<vmem>>, vector<64x8x1xf32>,
    return
  }
  func.func @transform_0(%arg0: i32) -> (i32, i32, i32, i32) {
    %c0_i32 = arith.constant 0 : i32
    %c0_i32_0 = arith.constant 0 : i32
    %c0_i32_1 = arith.constant 0 : i32
    %c0_i32_2 = arith.constant 0 : i32
    %c0_i32_3 = arith.constant 0 : i32
    return %c0_i32, %c0_i32_0, %c0_i32_1, %c0_i32_2 : i32, i32, i32, i32
  }
  func.func @transform_1(%arg0: i32) -> (i32, i32, i32) {
    %c0_i32 = arith.constant 0 : i32
    %c0_i32_0 = arith.constant 0 : i32
    %c0_i32_1 = arith.constant 0 : i32
    %c0_i32_2 = arith.constant 0 : i32
    return %c0_i32, %c0_i32_0, %c0_i32_1 : i32, i32, i32
  }
}

module attributes {stable_mosaic.version = 11 : i64} {
  func.func @_conv3x3_bn_relu_kernel(%arg0: i32, %arg1: memref<36x128xbf16, #tpu.memory_space<vmem>>, %arg2: memref<8x36xbf16, #tpu.memory_space<vmem>>, %arg3: memref<8x1xf32, #tpu.memory_space<vmem>>, %arg4: memref<8x1xf32, #tpu.memory_space<vmem>>, %arg5: memref<8x1xf32, #tpu.memory_space<vmem>>, %arg6: memref<8x128xf32, #tpu.memory_space<vmem>>) attributes {dimension_semantics = [#tpu.dimension_semantics<arbitrary>], iteration_bounds = array<i64: 1>, scalar_prefetch = 0 : i64, scratch_operands = 0 : i64, tpu.core_type = #tpu.core_type<tc>, window_params = [{pipeline_mode = #tpu.pipeline_mode<synchronous>, transform_indices = @transform_0, window_bounds = array<i64: 36, 128>}, {pipeline_mode = #tpu.pipeline_mode<synchronous>, transform_indices = @transform_1, window_bounds = array<i64: 8, 36>}, {pipeline_mode = #tpu.pipeline_mode<synchronous>, transform_indices = @transform_2, window_bounds = array<i64: 8, 1>}, {pipeline_mode = #tpu.pipeline_mode<synchronous>, transform_indices = @transform_3, window_bounds = array<i64: 8, 1>}, {pipeline_mode = #tpu.pipeline_mode<synchronous>, transform_indices = @transform_4, window_bounds = array<i64: 8, 1>}, {pipeline_mode = #tpu.pipeline_mode<synchronous>, transform_indices = @transform_5, window_bounds = array<i64: 8, 128>}]} {
    %c0 = arith.constant 0 : index
    %c0_0 = arith.constant 0 : index
    %0 = vector.load %arg2[%c0, %c0_0] : memref<8x36xbf16, #tpu.memory_space<vmem>>, vector<8x36xbf16>
    %c0_1 = arith.constant 0 : index
    %c0_2 = arith.constant 0 : index
    %1 = vector.load %arg1[%c0_1, %c0_2] : memref<36x128xbf16, #tpu.memory_space<vmem>>, vector<36x128xbf16>
    %cst = arith.constant dense<0.000000e+00> : vector<8x128xf32>
    %2 = tpu.matmul %0, %1, %cst {dimension_numbers = #tpu.dot_dimension_numbers<[1], [0], [0], [1], [0, 0, 1, 1], [], []>} : vector<8x36xbf16>, vector<36x128xbf16>, vector<8x128xf32> -> vector<8x128xf32>
    %c0_3 = arith.constant 0 : index
    %c0_4 = arith.constant 0 : index
    %3 = vector.load %arg3[%c0_3, %c0_4] : memref<8x1xf32, #tpu.memory_space<vmem>>, vector<8x1xf32>
    %4 = vector.broadcast %3 : vector<8x1xf32> to vector<8x128xf32>
    %5 = arith.addf %2, %4 : vector<8x128xf32>
    %cst_5 = arith.constant dense<0.000000e+00> : vector<8xf32>
    %6 = vector.multi_reduction <add>, %5, %cst_5 [1] : vector<8x128xf32> to vector<8xf32>
    %7 = vector.shape_cast %6 : vector<8xf32> to vector<8x1xf32>
    %cst_6 = arith.constant 7.812500e-03 : f32
    %8 = vector.broadcast %cst_6 : f32 to vector<8x1xf32>
    %9 = arith.mulf %7, %8 : vector<8x1xf32>
    %10 = vector.broadcast %9 : vector<8x1xf32> to vector<8x128xf32>
    %11 = arith.subf %5, %10 : vector<8x128xf32>
    %12 = arith.mulf %11, %11 : vector<8x128xf32>
    %cst_7 = arith.constant dense<0.000000e+00> : vector<8xf32>
    %13 = vector.multi_reduction <add>, %12, %cst_7 [1] : vector<8x128xf32> to vector<8xf32>
    %14 = vector.shape_cast %13 : vector<8xf32> to vector<8x1xf32>
    %cst_8 = arith.constant 7.812500e-03 : f32
    %15 = vector.broadcast %cst_8 : f32 to vector<8x1xf32>
    %16 = arith.mulf %14, %15 : vector<8x1xf32>
    %cst_9 = arith.constant 9.99999974E-6 : f32
    %17 = vector.broadcast %cst_9 : f32 to vector<8x1xf32>
    %18 = arith.addf %16, %17 : vector<8x1xf32>
    %19 = math.rsqrt %18 : vector<8x1xf32>
    %20 = vector.broadcast %19 : vector<8x1xf32> to vector<8x128xf32>
    %21 = arith.mulf %11, %20 : vector<8x128xf32>
    %c0_10 = arith.constant 0 : index
    %c0_11 = arith.constant 0 : index
    %22 = vector.load %arg4[%c0_10, %c0_11] : memref<8x1xf32, #tpu.memory_space<vmem>>, vector<8x1xf32>
    %23 = vector.broadcast %22 : vector<8x1xf32> to vector<8x128xf32>
    %24 = arith.mulf %21, %23 : vector<8x128xf32>
    %c0_12 = arith.constant 0 : index
    %c0_13 = arith.constant 0 : index
    %25 = vector.load %arg5[%c0_12, %c0_13] : memref<8x1xf32, #tpu.memory_space<vmem>>, vector<8x1xf32>
    %26 = vector.broadcast %25 : vector<8x1xf32> to vector<8x128xf32>
    %27 = arith.addf %24, %26 : vector<8x128xf32>
    %cst_14 = arith.constant 0.000000e+00 : f32
    %28 = vector.broadcast %cst_14 : f32 to vector<8x128xf32>
    %29 = arith.maximumf %27, %28 : vector<8x128xf32>
    %c0_15 = arith.constant 0 : index
    %c0_16 = arith.constant 0 : index
    %30 = vector.load %arg6[%c0_15, %c0_16] : memref<8x128xf32, #tpu.memory_space<vmem>>, vector<8x128xf32>
    tpu.vector_store %arg6[%c0_15, %c0_16], %29 {strides = array<i32>} : memref<8x128xf32, #tpu.memory_space<vmem>>, vector<8x128xf32>,
    return
  }
  func.func @transform_0(%arg0: i32) -> (i32, i32) {
    %c0_i32 = arith.constant 0 : i32
    %c0_i32_0 = arith.constant 0 : i32
    %c0_i32_1 = arith.constant 0 : i32
    return %c0_i32, %c0_i32_0 : i32, i32
  }
  func.func @transform_1(%arg0: i32) -> (i32, i32) {
    %c0_i32 = arith.constant 0 : i32
    %c0_i32_0 = arith.constant 0 : i32
    %c0_i32_1 = arith.constant 0 : i32
    return %c0_i32, %c0_i32_0 : i32, i32
  }
  func.func @transform_2(%arg0: i32) -> (i32, i32) {
    %c0_i32 = arith.constant 0 : i32
    %c0_i32_0 = arith.constant 0 : i32
    %c0_i32_1 = arith.constant 0 : i32
    return %c0_i32, %c0_i32_0 : i32, i32
  }
  func.func @transform_3(%arg0: i32) -> (i32, i32) {
    %c0_i32 = arith.constant 0 : i32
    %c0_i32_0 = arith.constant 0 : i32
    %c0_i32_1 = arith.constant 0 : i32
    return %c0_i32, %c0_i32_0 : i32, i32
  }
  func.func @transform_4(%arg0: i32) -> (i32, i32) {
    %c0_i32 = arith.constant 0 : i32
    %c0_i32_0 = arith.constant 0 : i32
    %c0_i32_1 = arith.constant 0 : i32
    return %c0_i32, %c0_i32_0 : i32, i32
  }
  func.func @transform_5(%arg0: i32) -> (i32, i32) {
    %c0_i32 = arith.constant 0 : i32
    %c0_i32_0 = arith.constant 0 : i32
    %c0_i32_1 = arith.constant 0 : i32
    return %c0_i32, %c0_i32_0 : i32, i32
  }
}

module attributes {stable_mosaic.version = 11 : i64} {
  func.func @_conv3x3_bn_relu_kernel(%arg0: i32, %arg1: memref<72x128xbf16, #tpu.memory_space<vmem>>, %arg2: memref<8x72xbf16, #tpu.memory_space<vmem>>, %arg3: memref<8x1xf32, #tpu.memory_space<vmem>>, %arg4: memref<8x1xf32, #tpu.memory_space<vmem>>, %arg5: memref<8x1xf32, #tpu.memory_space<vmem>>, %arg6: memref<8x128xf32, #tpu.memory_space<vmem>>) attributes {dimension_semantics = [#tpu.dimension_semantics<arbitrary>], iteration_bounds = array<i64: 1>, scalar_prefetch = 0 : i64, scratch_operands = 0 : i64, tpu.core_type = #tpu.core_type<tc>, window_params = [{pipeline_mode = #tpu.pipeline_mode<synchronous>, transform_indices = @transform_0, window_bounds = array<i64: 72, 128>}, {pipeline_mode = #tpu.pipeline_mode<synchronous>, transform_indices = @transform_1, window_bounds = array<i64: 8, 72>}, {pipeline_mode = #tpu.pipeline_mode<synchronous>, transform_indices = @transform_2, window_bounds = array<i64: 8, 1>}, {pipeline_mode = #tpu.pipeline_mode<synchronous>, transform_indices = @transform_3, window_bounds = array<i64: 8, 1>}, {pipeline_mode = #tpu.pipeline_mode<synchronous>, transform_indices = @transform_4, window_bounds = array<i64: 8, 1>}, {pipeline_mode = #tpu.pipeline_mode<synchronous>, transform_indices = @transform_5, window_bounds = array<i64: 8, 128>}]} {
    %c0 = arith.constant 0 : index
    %c0_0 = arith.constant 0 : index
    %0 = vector.load %arg2[%c0, %c0_0] : memref<8x72xbf16, #tpu.memory_space<vmem>>, vector<8x72xbf16>
    %c0_1 = arith.constant 0 : index
    %c0_2 = arith.constant 0 : index
    %1 = vector.load %arg1[%c0_1, %c0_2] : memref<72x128xbf16, #tpu.memory_space<vmem>>, vector<72x128xbf16>
    %cst = arith.constant dense<0.000000e+00> : vector<8x128xf32>
    %2 = tpu.matmul %0, %1, %cst {dimension_numbers = #tpu.dot_dimension_numbers<[1], [0], [0], [1], [0, 0, 1, 1], [], []>} : vector<8x72xbf16>, vector<72x128xbf16>, vector<8x128xf32> -> vector<8x128xf32>
    %c0_3 = arith.constant 0 : index
    %c0_4 = arith.constant 0 : index
    %3 = vector.load %arg3[%c0_3, %c0_4] : memref<8x1xf32, #tpu.memory_space<vmem>>, vector<8x1xf32>
    %4 = vector.broadcast %3 : vector<8x1xf32> to vector<8x128xf32>
    %5 = arith.addf %2, %4 : vector<8x128xf32>
    %cst_5 = arith.constant dense<0.000000e+00> : vector<8xf32>
    %6 = vector.multi_reduction <add>, %5, %cst_5 [1] : vector<8x128xf32> to vector<8xf32>
    %7 = vector.shape_cast %6 : vector<8xf32> to vector<8x1xf32>
    %cst_6 = arith.constant 7.812500e-03 : f32
    %8 = vector.broadcast %cst_6 : f32 to vector<8x1xf32>
    %9 = arith.mulf %7, %8 : vector<8x1xf32>
    %10 = vector.broadcast %9 : vector<8x1xf32> to vector<8x128xf32>
    %11 = arith.subf %5, %10 : vector<8x128xf32>
    %12 = arith.mulf %11, %11 : vector<8x128xf32>
    %cst_7 = arith.constant dense<0.000000e+00> : vector<8xf32>
    %13 = vector.multi_reduction <add>, %12, %cst_7 [1] : vector<8x128xf32> to vector<8xf32>
    %14 = vector.shape_cast %13 : vector<8xf32> to vector<8x1xf32>
    %cst_8 = arith.constant 7.812500e-03 : f32
    %15 = vector.broadcast %cst_8 : f32 to vector<8x1xf32>
    %16 = arith.mulf %14, %15 : vector<8x1xf32>
    %cst_9 = arith.constant 9.99999974E-6 : f32
    %17 = vector.broadcast %cst_9 : f32 to vector<8x1xf32>
    %18 = arith.addf %16, %17 : vector<8x1xf32>
    %19 = math.rsqrt %18 : vector<8x1xf32>
    %20 = vector.broadcast %19 : vector<8x1xf32> to vector<8x128xf32>
    %21 = arith.mulf %11, %20 : vector<8x128xf32>
    %c0_10 = arith.constant 0 : index
    %c0_11 = arith.constant 0 : index
    %22 = vector.load %arg4[%c0_10, %c0_11] : memref<8x1xf32, #tpu.memory_space<vmem>>, vector<8x1xf32>
    %23 = vector.broadcast %22 : vector<8x1xf32> to vector<8x128xf32>
    %24 = arith.mulf %21, %23 : vector<8x128xf32>
    %c0_12 = arith.constant 0 : index
    %c0_13 = arith.constant 0 : index
    %25 = vector.load %arg5[%c0_12, %c0_13] : memref<8x1xf32, #tpu.memory_space<vmem>>, vector<8x1xf32>
    %26 = vector.broadcast %25 : vector<8x1xf32> to vector<8x128xf32>
    %27 = arith.addf %24, %26 : vector<8x128xf32>
    %cst_14 = arith.constant 0.000000e+00 : f32
    %28 = vector.broadcast %cst_14 : f32 to vector<8x128xf32>
    %29 = arith.maximumf %27, %28 : vector<8x128xf32>
    %c0_15 = arith.constant 0 : index
    %c0_16 = arith.constant 0 : index
    %30 = vector.load %arg6[%c0_15, %c0_16] : memref<8x128xf32, #tpu.memory_space<vmem>>, vector<8x128xf32>
    tpu.vector_store %arg6[%c0_15, %c0_16], %29 {strides = array<i32>} : memref<8x128xf32, #tpu.memory_space<vmem>>, vector<8x128xf32>,
    return
  }
  func.func @transform_0(%arg0: i32) -> (i32, i32) {
    %c0_i32 = arith.constant 0 : i32
    %c0_i32_0 = arith.constant 0 : i32
    %c0_i32_1 = arith.constant 0 : i32
    return %c0_i32, %c0_i32_0 : i32, i32
  }
  func.func @transform_1(%arg0: i32) -> (i32, i32) {
    %c0_i32 = arith.constant 0 : i32
    %c0_i32_0 = arith.constant 0 : i32
    %c0_i32_1 = arith.constant 0 : i32
    return %c0_i32, %c0_i32_0 : i32, i32
  }
  func.func @transform_2(%arg0: i32) -> (i32, i32) {
    %c0_i32 = arith.constant 0 : i32
    %c0_i32_0 = arith.constant 0 : i32
    %c0_i32_1 = arith.constant 0 : i32
    return %c0_i32, %c0_i32_0 : i32, i32
  }
  func.func @transform_3(%arg0: i32) -> (i32, i32) {
    %c0_i32 = arith.constant 0 : i32
    %c0_i32_0 = arith.constant 0 : i32
    %c0_i32_1 = arith.constant 0 : i32
    return %c0_i32, %c0_i32_0 : i32, i32
  }
  func.func @transform_4(%arg0: i32) -> (i32, i32) {
    %c0_i32 = arith.constant 0 : i32
    %c0_i32_0 = arith.constant 0 : i32
    %c0_i32_1 = arith.constant 0 : i32
    return %c0_i32, %c0_i32_0 : i32, i32
  }
  func.func @transform_5(%arg0: i32) -> (i32, i32) {
    %c0_i32 = arith.constant 0 : i32
    %c0_i32_0 = arith.constant 0 : i32
    %c0_i32_1 = arith.constant 0 : i32
    return %c0_i32, %c0_i32_0 : i32, i32
  }
}

module attributes {stable_mosaic.version = 11 : i64} {
  func.func @_maxpool2x2_kernel(%arg0: i32, %arg1: memref<64x2x4x2xf32, #tpu.memory_space<vmem>>, %arg2: memref<64x4x1xf32, #tpu.memory_space<vmem>>) attributes {dimension_semantics = [#tpu.dimension_semantics<arbitrary>], iteration_bounds = array<i64: 1>, scalar_prefetch = 0 : i64, scratch_operands = 0 : i64, tpu.core_type = #tpu.core_type<tc>, window_params = [{pipeline_mode = #tpu.pipeline_mode<synchronous>, transform_indices = @transform_0, window_bounds = array<i64: 64, 2, 4, 2>}, {pipeline_mode = #tpu.pipeline_mode<synchronous>, transform_indices = @transform_1, window_bounds = array<i64: 64, 4, 1>}]} {
    %c0 = arith.constant 0 : index
    %c0_0 = arith.constant 0 : index
    %c0_1 = arith.constant 0 : index
    %c0_2 = arith.constant 0 : index
    %0 = vector.load %arg1[%c0, %c0_0, %c0_1, %c0_2] : memref<64x2x4x2xf32, #tpu.memory_space<vmem>>, vector<64x2x4x2xf32>
    %1 = vector.extract_strided_slice %0 {offsets = [0, 0, 0, 0], sizes = [64, 1, 4, 2], strides = [1, 1, 1, 1]} : vector<64x2x4x2xf32> to vector<64x1x4x2xf32>
    %2 = vector.shape_cast %1 : vector<64x1x4x2xf32> to vector<64x4x2xf32>
    %3 = vector.extract_strided_slice %0 {offsets = [0, 1, 0, 0], sizes = [64, 1, 4, 2], strides = [1, 1, 1, 1]} : vector<64x2x4x2xf32> to vector<64x1x4x2xf32>
    %4 = vector.shape_cast %3 : vector<64x1x4x2xf32> to vector<64x4x2xf32>
    %5 = arith.maximumf %2, %4 : vector<64x4x2xf32>
    %cst = arith.constant dense<0xFF800000> : vector<64x4xf32>
    %6 = vector.multi_reduction <maximumf>, %5, %cst [2] : vector<64x4x2xf32> to vector<64x4xf32>
    %7 = vector.shape_cast %6 : vector<64x4xf32> to vector<64x4x1xf32>
    %c0_3 = arith.constant 0 : index
    %c0_4 = arith.constant 0 : index
    %c0_5 = arith.constant 0 : index
    %8 = vector.load %arg2[%c0_3, %c0_4, %c0_5] : memref<64x4x1xf32, #tpu.memory_space<vmem>>, vector<64x4x1xf32>
    tpu.vector_store %arg2[%c0_3, %c0_4, %c0_5], %7 {strides = array<i32>} : memref<64x4x1xf32, #tpu.memory_space<vmem>>, vector<64x4x1xf32>,
    return
  }
  func.func @transform_0(%arg0: i32) -> (i32, i32, i32, i32) {
    %c0_i32 = arith.constant 0 : i32
    %c0_i32_0 = arith.constant 0 : i32
    %c0_i32_1 = arith.constant 0 : i32
    %c0_i32_2 = arith.constant 0 : i32
    %c0_i32_3 = arith.constant 0 : i32
    return %c0_i32, %c0_i32_0, %c0_i32_1, %c0_i32_2 : i32, i32, i32, i32
  }
  func.func @transform_1(%arg0: i32) -> (i32, i32, i32) {
    %c0_i32 = arith.constant 0 : i32
    %c0_i32_0 = arith.constant 0 : i32
    %c0_i32_1 = arith.constant 0 : i32
    %c0_i32_2 = arith.constant 0 : i32
    return %c0_i32, %c0_i32_0, %c0_i32_1 : i32, i32, i32
  }
}

module attributes {stable_mosaic.version = 11 : i64} {
  func.func @_conv3x3_bn_relu_kernel(%arg0: i32, %arg1: memref<72x32xbf16, #tpu.memory_space<vmem>>, %arg2: memref<16x72xbf16, #tpu.memory_space<vmem>>, %arg3: memref<16x1xf32, #tpu.memory_space<vmem>>, %arg4: memref<16x1xf32, #tpu.memory_space<vmem>>, %arg5: memref<16x1xf32, #tpu.memory_space<vmem>>, %arg6: memref<16x32xf32, #tpu.memory_space<vmem>>) attributes {dimension_semantics = [#tpu.dimension_semantics<arbitrary>], iteration_bounds = array<i64: 1>, scalar_prefetch = 0 : i64, scratch_operands = 0 : i64, tpu.core_type = #tpu.core_type<tc>, window_params = [{pipeline_mode = #tpu.pipeline_mode<synchronous>, transform_indices = @transform_0, window_bounds = array<i64: 72, 32>}, {pipeline_mode = #tpu.pipeline_mode<synchronous>, transform_indices = @transform_1, window_bounds = array<i64: 16, 72>}, {pipeline_mode = #tpu.pipeline_mode<synchronous>, transform_indices = @transform_2, window_bounds = array<i64: 16, 1>}, {pipeline_mode = #tpu.pipeline_mode<synchronous>, transform_indices = @transform_3, window_bounds = array<i64: 16, 1>}, {pipeline_mode = #tpu.pipeline_mode<synchronous>, transform_indices = @transform_4, window_bounds = array<i64: 16, 1>}, {pipeline_mode = #tpu.pipeline_mode<synchronous>, transform_indices = @transform_5, window_bounds = array<i64: 16, 32>}]} {
    %c0 = arith.constant 0 : index
    %c0_0 = arith.constant 0 : index
    %0 = vector.load %arg2[%c0, %c0_0] : memref<16x72xbf16, #tpu.memory_space<vmem>>, vector<16x72xbf16>
    %c0_1 = arith.constant 0 : index
    %c0_2 = arith.constant 0 : index
    %1 = vector.load %arg1[%c0_1, %c0_2] : memref<72x32xbf16, #tpu.memory_space<vmem>>, vector<72x32xbf16>
    %cst = arith.constant dense<0.000000e+00> : vector<16x32xf32>
    %2 = tpu.matmul %0, %1, %cst {dimension_numbers = #tpu.dot_dimension_numbers<[1], [0], [0], [1], [0, 0, 1, 1], [], []>} : vector<16x72xbf16>, vector<72x32xbf16>, vector<16x32xf32> -> vector<16x32xf32>
    %c0_3 = arith.constant 0 : index
    %c0_4 = arith.constant 0 : index
    %3 = vector.load %arg3[%c0_3, %c0_4] : memref<16x1xf32, #tpu.memory_space<vmem>>, vector<16x1xf32>
    %4 = vector.broadcast %3 : vector<16x1xf32> to vector<16x32xf32>
    %5 = arith.addf %2, %4 : vector<16x32xf32>
    %cst_5 = arith.constant dense<0.000000e+00> : vector<16xf32>
    %6 = vector.multi_reduction <add>, %5, %cst_5 [1] : vector<16x32xf32> to vector<16xf32>
    %7 = vector.shape_cast %6 : vector<16xf32> to vector<16x1xf32>
    %cst_6 = arith.constant 3.125000e-02 : f32
    %8 = vector.broadcast %cst_6 : f32 to vector<16x1xf32>
    %9 = arith.mulf %7, %8 : vector<16x1xf32>
    %10 = vector.broadcast %9 : vector<16x1xf32> to vector<16x32xf32>
    %11 = arith.subf %5, %10 : vector<16x32xf32>
    %12 = arith.mulf %11, %11 : vector<16x32xf32>
    %cst_7 = arith.constant dense<0.000000e+00> : vector<16xf32>
    %13 = vector.multi_reduction <add>, %12, %cst_7 [1] : vector<16x32xf32> to vector<16xf32>
    %14 = vector.shape_cast %13 : vector<16xf32> to vector<16x1xf32>
    %cst_8 = arith.constant 3.125000e-02 : f32
    %15 = vector.broadcast %cst_8 : f32 to vector<16x1xf32>
    %16 = arith.mulf %14, %15 : vector<16x1xf32>
    %cst_9 = arith.constant 9.99999974E-6 : f32
    %17 = vector.broadcast %cst_9 : f32 to vector<16x1xf32>
    %18 = arith.addf %16, %17 : vector<16x1xf32>
    %19 = math.rsqrt %18 : vector<16x1xf32>
    %20 = vector.broadcast %19 : vector<16x1xf32> to vector<16x32xf32>
    %21 = arith.mulf %11, %20 : vector<16x32xf32>
    %c0_10 = arith.constant 0 : index
    %c0_11 = arith.constant 0 : index
    %22 = vector.load %arg4[%c0_10, %c0_11] : memref<16x1xf32, #tpu.memory_space<vmem>>, vector<16x1xf32>
    %23 = vector.broadcast %22 : vector<16x1xf32> to vector<16x32xf32>
    %24 = arith.mulf %21, %23 : vector<16x32xf32>
    %c0_12 = arith.constant 0 : index
    %c0_13 = arith.constant 0 : index
    %25 = vector.load %arg5[%c0_12, %c0_13] : memref<16x1xf32, #tpu.memory_space<vmem>>, vector<16x1xf32>
    %26 = vector.broadcast %25 : vector<16x1xf32> to vector<16x32xf32>
    %27 = arith.addf %24, %26 : vector<16x32xf32>
    %cst_14 = arith.constant 0.000000e+00 : f32
    %28 = vector.broadcast %cst_14 : f32 to vector<16x32xf32>
    %29 = arith.maximumf %27, %28 : vector<16x32xf32>
    %c0_15 = arith.constant 0 : index
    %c0_16 = arith.constant 0 : index
    %30 = vector.load %arg6[%c0_15, %c0_16] : memref<16x32xf32, #tpu.memory_space<vmem>>, vector<16x32xf32>
    tpu.vector_store %arg6[%c0_15, %c0_16], %29 {strides = array<i32>} : memref<16x32xf32, #tpu.memory_space<vmem>>, vector<16x32xf32>,
    return
  }
  func.func @transform_0(%arg0: i32) -> (i32, i32) {
    %c0_i32 = arith.constant 0 : i32
    %c0_i32_0 = arith.constant 0 : i32
    %c0_i32_1 = arith.constant 0 : i32
    return %c0_i32, %c0_i32_0 : i32, i32
  }
  func.func @transform_1(%arg0: i32) -> (i32, i32) {
    %c0_i32 = arith.constant 0 : i32
    %c0_i32_0 = arith.constant 0 : i32
    %c0_i32_1 = arith.constant 0 : i32
    return %c0_i32, %c0_i32_0 : i32, i32
  }
  func.func @transform_2(%arg0: i32) -> (i32, i32) {
    %c0_i32 = arith.constant 0 : i32
    %c0_i32_0 = arith.constant 0 : i32
    %c0_i32_1 = arith.constant 0 : i32
    return %c0_i32, %c0_i32_0 : i32, i32
  }
  func.func @transform_3(%arg0: i32) -> (i32, i32) {
    %c0_i32 = arith.constant 0 : i32
    %c0_i32_0 = arith.constant 0 : i32
    %c0_i32_1 = arith.constant 0 : i32
    return %c0_i32, %c0_i32_0 : i32, i32
  }
  func.func @transform_4(%arg0: i32) -> (i32, i32) {
    %c0_i32 = arith.constant 0 : i32
    %c0_i32_0 = arith.constant 0 : i32
    %c0_i32_1 = arith.constant 0 : i32
    return %c0_i32, %c0_i32_0 : i32, i32
  }
  func.func @transform_5(%arg0: i32) -> (i32, i32) {
    %c0_i32 = arith.constant 0 : i32
    %c0_i32_0 = arith.constant 0 : i32
    %c0_i32_1 = arith.constant 0 : i32
    return %c0_i32, %c0_i32_0 : i32, i32
  }
}

module attributes {stable_mosaic.version = 11 : i64} {
  func.func @_conv3x3_bn_relu_kernel(%arg0: i32, %arg1: memref<144x32xbf16, #tpu.memory_space<vmem>>, %arg2: memref<16x144xbf16, #tpu.memory_space<vmem>>, %arg3: memref<16x1xf32, #tpu.memory_space<vmem>>, %arg4: memref<16x1xf32, #tpu.memory_space<vmem>>, %arg5: memref<16x1xf32, #tpu.memory_space<vmem>>, %arg6: memref<16x32xf32, #tpu.memory_space<vmem>>) attributes {dimension_semantics = [#tpu.dimension_semantics<arbitrary>], iteration_bounds = array<i64: 1>, scalar_prefetch = 0 : i64, scratch_operands = 0 : i64, tpu.core_type = #tpu.core_type<tc>, window_params = [{pipeline_mode = #tpu.pipeline_mode<synchronous>, transform_indices = @transform_0, window_bounds = array<i64: 144, 32>}, {pipeline_mode = #tpu.pipeline_mode<synchronous>, transform_indices = @transform_1, window_bounds = array<i64: 16, 144>}, {pipeline_mode = #tpu.pipeline_mode<synchronous>, transform_indices = @transform_2, window_bounds = array<i64: 16, 1>}, {pipeline_mode = #tpu.pipeline_mode<synchronous>, transform_indices = @transform_3, window_bounds = array<i64: 16, 1>}, {pipeline_mode = #tpu.pipeline_mode<synchronous>, transform_indices = @transform_4, window_bounds = array<i64: 16, 1>}, {pipeline_mode = #tpu.pipeline_mode<synchronous>, transform_indices = @transform_5, window_bounds = array<i64: 16, 32>}]} {
    %c0 = arith.constant 0 : index
    %c0_0 = arith.constant 0 : index
    %0 = vector.load %arg2[%c0, %c0_0] : memref<16x144xbf16, #tpu.memory_space<vmem>>, vector<16x144xbf16>
    %c0_1 = arith.constant 0 : index
    %c0_2 = arith.constant 0 : index
    %1 = vector.load %arg1[%c0_1, %c0_2] : memref<144x32xbf16, #tpu.memory_space<vmem>>, vector<144x32xbf16>
    %cst = arith.constant dense<0.000000e+00> : vector<16x32xf32>
    %2 = tpu.matmul %0, %1, %cst {dimension_numbers = #tpu.dot_dimension_numbers<[1], [0], [0], [1], [0, 0, 1, 1], [], []>} : vector<16x144xbf16>, vector<144x32xbf16>, vector<16x32xf32> -> vector<16x32xf32>
    %c0_3 = arith.constant 0 : index
    %c0_4 = arith.constant 0 : index
    %3 = vector.load %arg3[%c0_3, %c0_4] : memref<16x1xf32, #tpu.memory_space<vmem>>, vector<16x1xf32>
    %4 = vector.broadcast %3 : vector<16x1xf32> to vector<16x32xf32>
    %5 = arith.addf %2, %4 : vector<16x32xf32>
    %cst_5 = arith.constant dense<0.000000e+00> : vector<16xf32>
    %6 = vector.multi_reduction <add>, %5, %cst_5 [1] : vector<16x32xf32> to vector<16xf32>
    %7 = vector.shape_cast %6 : vector<16xf32> to vector<16x1xf32>
    %cst_6 = arith.constant 3.125000e-02 : f32
    %8 = vector.broadcast %cst_6 : f32 to vector<16x1xf32>
    %9 = arith.mulf %7, %8 : vector<16x1xf32>
    %10 = vector.broadcast %9 : vector<16x1xf32> to vector<16x32xf32>
    %11 = arith.subf %5, %10 : vector<16x32xf32>
    %12 = arith.mulf %11, %11 : vector<16x32xf32>
    %cst_7 = arith.constant dense<0.000000e+00> : vector<16xf32>
    %13 = vector.multi_reduction <add>, %12, %cst_7 [1] : vector<16x32xf32> to vector<16xf32>
    %14 = vector.shape_cast %13 : vector<16xf32> to vector<16x1xf32>
    %cst_8 = arith.constant 3.125000e-02 : f32
    %15 = vector.broadcast %cst_8 : f32 to vector<16x1xf32>
    %16 = arith.mulf %14, %15 : vector<16x1xf32>
    %cst_9 = arith.constant 9.99999974E-6 : f32
    %17 = vector.broadcast %cst_9 : f32 to vector<16x1xf32>
    %18 = arith.addf %16, %17 : vector<16x1xf32>
    %19 = math.rsqrt %18 : vector<16x1xf32>
    %20 = vector.broadcast %19 : vector<16x1xf32> to vector<16x32xf32>
    %21 = arith.mulf %11, %20 : vector<16x32xf32>
    %c0_10 = arith.constant 0 : index
    %c0_11 = arith.constant 0 : index
    %22 = vector.load %arg4[%c0_10, %c0_11] : memref<16x1xf32, #tpu.memory_space<vmem>>, vector<16x1xf32>
    %23 = vector.broadcast %22 : vector<16x1xf32> to vector<16x32xf32>
    %24 = arith.mulf %21, %23 : vector<16x32xf32>
    %c0_12 = arith.constant 0 : index
    %c0_13 = arith.constant 0 : index
    %25 = vector.load %arg5[%c0_12, %c0_13] : memref<16x1xf32, #tpu.memory_space<vmem>>, vector<16x1xf32>
    %26 = vector.broadcast %25 : vector<16x1xf32> to vector<16x32xf32>
    %27 = arith.addf %24, %26 : vector<16x32xf32>
    %cst_14 = arith.constant 0.000000e+00 : f32
    %28 = vector.broadcast %cst_14 : f32 to vector<16x32xf32>
    %29 = arith.maximumf %27, %28 : vector<16x32xf32>
    %c0_15 = arith.constant 0 : index
    %c0_16 = arith.constant 0 : index
    %30 = vector.load %arg6[%c0_15, %c0_16] : memref<16x32xf32, #tpu.memory_space<vmem>>, vector<16x32xf32>
    tpu.vector_store %arg6[%c0_15, %c0_16], %29 {strides = array<i32>} : memref<16x32xf32, #tpu.memory_space<vmem>>, vector<16x32xf32>,
    return
  }
  func.func @transform_0(%arg0: i32) -> (i32, i32) {
    %c0_i32 = arith.constant 0 : i32
    %c0_i32_0 = arith.constant 0 : i32
    %c0_i32_1 = arith.constant 0 : i32
    return %c0_i32, %c0_i32_0 : i32, i32
  }
  func.func @transform_1(%arg0: i32) -> (i32, i32) {
    %c0_i32 = arith.constant 0 : i32
    %c0_i32_0 = arith.constant 0 : i32
    %c0_i32_1 = arith.constant 0 : i32
    return %c0_i32, %c0_i32_0 : i32, i32
  }
  func.func @transform_2(%arg0: i32) -> (i32, i32) {
    %c0_i32 = arith.constant 0 : i32
    %c0_i32_0 = arith.constant 0 : i32
    %c0_i32_1 = arith.constant 0 : i32
    return %c0_i32, %c0_i32_0 : i32, i32
  }
  func.func @transform_3(%arg0: i32) -> (i32, i32) {
    %c0_i32 = arith.constant 0 : i32
    %c0_i32_0 = arith.constant 0 : i32
    %c0_i32_1 = arith.constant 0 : i32
    return %c0_i32, %c0_i32_0 : i32, i32
  }
  func.func @transform_4(%arg0: i32) -> (i32, i32) {
    %c0_i32 = arith.constant 0 : i32
    %c0_i32_0 = arith.constant 0 : i32
    %c0_i32_1 = arith.constant 0 : i32
    return %c0_i32, %c0_i32_0 : i32, i32
  }
  func.func @transform_5(%arg0: i32) -> (i32, i32) {
    %c0_i32 = arith.constant 0 : i32
    %c0_i32_0 = arith.constant 0 : i32
    %c0_i32_1 = arith.constant 0 : i32
    return %c0_i32, %c0_i32_0 : i32, i32
  }
}

module attributes {stable_mosaic.version = 11 : i64} {
  func.func @_maxpool2x2_kernel(%arg0: i32, %arg1: memref<64x2x2x2xf32, #tpu.memory_space<vmem>>, %arg2: memref<64x2x1xf32, #tpu.memory_space<vmem>>) attributes {dimension_semantics = [#tpu.dimension_semantics<arbitrary>], iteration_bounds = array<i64: 1>, scalar_prefetch = 0 : i64, scratch_operands = 0 : i64, tpu.core_type = #tpu.core_type<tc>, window_params = [{pipeline_mode = #tpu.pipeline_mode<synchronous>, transform_indices = @transform_0, window_bounds = array<i64: 64, 2, 2, 2>}, {pipeline_mode = #tpu.pipeline_mode<synchronous>, transform_indices = @transform_1, window_bounds = array<i64: 64, 2, 1>}]} {
    %c0 = arith.constant 0 : index
    %c0_0 = arith.constant 0 : index
    %c0_1 = arith.constant 0 : index
    %c0_2 = arith.constant 0 : index
    %0 = vector.load %arg1[%c0, %c0_0, %c0_1, %c0_2] : memref<64x2x2x2xf32, #tpu.memory_space<vmem>>, vector<64x2x2x2xf32>
    %1 = vector.extract_strided_slice %0 {offsets = [0, 0, 0, 0], sizes = [64, 1, 2, 2], strides = [1, 1, 1, 1]} : vector<64x2x2x2xf32> to vector<64x1x2x2xf32>
    %2 = vector.shape_cast %1 : vector<64x1x2x2xf32> to vector<64x2x2xf32>
    %3 = vector.extract_strided_slice %0 {offsets = [0, 1, 0, 0], sizes = [64, 1, 2, 2], strides = [1, 1, 1, 1]} : vector<64x2x2x2xf32> to vector<64x1x2x2xf32>
    %4 = vector.shape_cast %3 : vector<64x1x2x2xf32> to vector<64x2x2xf32>
    %5 = arith.maximumf %2, %4 : vector<64x2x2xf32>
    %cst = arith.constant dense<0xFF800000> : vector<64x2xf32>
    %6 = vector.multi_reduction <maximumf>, %5, %cst [2] : vector<64x2x2xf32> to vector<64x2xf32>
    %7 = vector.shape_cast %6 : vector<64x2xf32> to vector<64x2x1xf32>
    %c0_3 = arith.constant 0 : index
    %c0_4 = arith.constant 0 : index
    %c0_5 = arith.constant 0 : index
    %8 = vector.load %arg2[%c0_3, %c0_4, %c0_5] : memref<64x2x1xf32, #tpu.memory_space<vmem>>, vector<64x2x1xf32>
    tpu.vector_store %arg2[%c0_3, %c0_4, %c0_5], %7 {strides = array<i32>} : memref<64x2x1xf32, #tpu.memory_space<vmem>>, vector<64x2x1xf32>,
    return
  }
  func.func @transform_0(%arg0: i32) -> (i32, i32, i32, i32) {
    %c0_i32 = arith.constant 0 : i32
    %c0_i32_0 = arith.constant 0 : i32
    %c0_i32_1 = arith.constant 0 : i32
    %c0_i32_2 = arith.constant 0 : i32
    %c0_i32_3 = arith.constant 0 : i32
    return %c0_i32, %c0_i32_0, %c0_i32_1, %c0_i32_2 : i32, i32, i32, i32
  }
  func.func @transform_1(%arg0: i32) -> (i32, i32, i32) {
    %c0_i32 = arith.constant 0 : i32
    %c0_i32_0 = arith.constant 0 : i32
    %c0_i32_1 = arith.constant 0 : i32
    %c0_i32_2 = arith.constant 0 : i32
    return %c0_i32, %c0_i32_0, %c0_i32_1 : i32, i32, i32
  }
}

module attributes {stable_mosaic.version = 11 : i64} {
  func.func @_conv3x3_bn_relu_kernel(%arg0: i32, %arg1: memref<144x8xbf16, #tpu.memory_space<vmem>>, %arg2: memref<32x144xbf16, #tpu.memory_space<vmem>>, %arg3: memref<32x1xf32, #tpu.memory_space<vmem>>, %arg4: memref<32x1xf32, #tpu.memory_space<vmem>>, %arg5: memref<32x1xf32, #tpu.memory_space<vmem>>, %arg6: memref<32x8xf32, #tpu.memory_space<vmem>>) attributes {dimension_semantics = [#tpu.dimension_semantics<arbitrary>], iteration_bounds = array<i64: 1>, scalar_prefetch = 0 : i64, scratch_operands = 0 : i64, tpu.core_type = #tpu.core_type<tc>, window_params = [{pipeline_mode = #tpu.pipeline_mode<synchronous>, transform_indices = @transform_0, window_bounds = array<i64: 144, 8>}, {pipeline_mode = #tpu.pipeline_mode<synchronous>, transform_indices = @transform_1, window_bounds = array<i64: 32, 144>}, {pipeline_mode = #tpu.pipeline_mode<synchronous>, transform_indices = @transform_2, window_bounds = array<i64: 32, 1>}, {pipeline_mode = #tpu.pipeline_mode<synchronous>, transform_indices = @transform_3, window_bounds = array<i64: 32, 1>}, {pipeline_mode = #tpu.pipeline_mode<synchronous>, transform_indices = @transform_4, window_bounds = array<i64: 32, 1>}, {pipeline_mode = #tpu.pipeline_mode<synchronous>, transform_indices = @transform_5, window_bounds = array<i64: 32, 8>}]} {
    %c0 = arith.constant 0 : index
    %c0_0 = arith.constant 0 : index
    %0 = vector.load %arg2[%c0, %c0_0] : memref<32x144xbf16, #tpu.memory_space<vmem>>, vector<32x144xbf16>
    %c0_1 = arith.constant 0 : index
    %c0_2 = arith.constant 0 : index
    %1 = vector.load %arg1[%c0_1, %c0_2] : memref<144x8xbf16, #tpu.memory_space<vmem>>, vector<144x8xbf16>
    %cst = arith.constant dense<0.000000e+00> : vector<32x8xf32>
    %2 = tpu.matmul %0, %1, %cst {dimension_numbers = #tpu.dot_dimension_numbers<[1], [0], [0], [1], [0, 0, 1, 1], [], []>} : vector<32x144xbf16>, vector<144x8xbf16>, vector<32x8xf32> -> vector<32x8xf32>
    %c0_3 = arith.constant 0 : index
    %c0_4 = arith.constant 0 : index
    %3 = vector.load %arg3[%c0_3, %c0_4] : memref<32x1xf32, #tpu.memory_space<vmem>>, vector<32x1xf32>
    %4 = vector.broadcast %3 : vector<32x1xf32> to vector<32x8xf32>
    %5 = arith.addf %2, %4 : vector<32x8xf32>
    %cst_5 = arith.constant dense<0.000000e+00> : vector<32xf32>
    %6 = vector.multi_reduction <add>, %5, %cst_5 [1] : vector<32x8xf32> to vector<32xf32>
    %7 = vector.shape_cast %6 : vector<32xf32> to vector<32x1xf32>
    %cst_6 = arith.constant 1.250000e-01 : f32
    %8 = vector.broadcast %cst_6 : f32 to vector<32x1xf32>
    %9 = arith.mulf %7, %8 : vector<32x1xf32>
    %10 = vector.broadcast %9 : vector<32x1xf32> to vector<32x8xf32>
    %11 = arith.subf %5, %10 : vector<32x8xf32>
    %12 = arith.mulf %11, %11 : vector<32x8xf32>
    %cst_7 = arith.constant dense<0.000000e+00> : vector<32xf32>
    %13 = vector.multi_reduction <add>, %12, %cst_7 [1] : vector<32x8xf32> to vector<32xf32>
    %14 = vector.shape_cast %13 : vector<32xf32> to vector<32x1xf32>
    %cst_8 = arith.constant 1.250000e-01 : f32
    %15 = vector.broadcast %cst_8 : f32 to vector<32x1xf32>
    %16 = arith.mulf %14, %15 : vector<32x1xf32>
    %cst_9 = arith.constant 9.99999974E-6 : f32
    %17 = vector.broadcast %cst_9 : f32 to vector<32x1xf32>
    %18 = arith.addf %16, %17 : vector<32x1xf32>
    %19 = math.rsqrt %18 : vector<32x1xf32>
    %20 = vector.broadcast %19 : vector<32x1xf32> to vector<32x8xf32>
    %21 = arith.mulf %11, %20 : vector<32x8xf32>
    %c0_10 = arith.constant 0 : index
    %c0_11 = arith.constant 0 : index
    %22 = vector.load %arg4[%c0_10, %c0_11] : memref<32x1xf32, #tpu.memory_space<vmem>>, vector<32x1xf32>
    %23 = vector.broadcast %22 : vector<32x1xf32> to vector<32x8xf32>
    %24 = arith.mulf %21, %23 : vector<32x8xf32>
    %c0_12 = arith.constant 0 : index
    %c0_13 = arith.constant 0 : index
    %25 = vector.load %arg5[%c0_12, %c0_13] : memref<32x1xf32, #tpu.memory_space<vmem>>, vector<32x1xf32>
    %26 = vector.broadcast %25 : vector<32x1xf32> to vector<32x8xf32>
    %27 = arith.addf %24, %26 : vector<32x8xf32>
    %cst_14 = arith.constant 0.000000e+00 : f32
    %28 = vector.broadcast %cst_14 : f32 to vector<32x8xf32>
    %29 = arith.maximumf %27, %28 : vector<32x8xf32>
    %c0_15 = arith.constant 0 : index
    %c0_16 = arith.constant 0 : index
    %30 = vector.load %arg6[%c0_15, %c0_16] : memref<32x8xf32, #tpu.memory_space<vmem>>, vector<32x8xf32>
    tpu.vector_store %arg6[%c0_15, %c0_16], %29 {strides = array<i32>} : memref<32x8xf32, #tpu.memory_space<vmem>>, vector<32x8xf32>,
    return
  }
  func.func @transform_0(%arg0: i32) -> (i32, i32) {
    %c0_i32 = arith.constant 0 : i32
    %c0_i32_0 = arith.constant 0 : i32
    %c0_i32_1 = arith.constant 0 : i32
    return %c0_i32, %c0_i32_0 : i32, i32
  }
  func.func @transform_1(%arg0: i32) -> (i32, i32) {
    %c0_i32 = arith.constant 0 : i32
    %c0_i32_0 = arith.constant 0 : i32
    %c0_i32_1 = arith.constant 0 : i32
    return %c0_i32, %c0_i32_0 : i32, i32
  }
  func.func @transform_2(%arg0: i32) -> (i32, i32) {
    %c0_i32 = arith.constant 0 : i32
    %c0_i32_0 = arith.constant 0 : i32
    %c0_i32_1 = arith.constant 0 : i32
    return %c0_i32, %c0_i32_0 : i32, i32
  }
  func.func @transform_3(%arg0: i32) -> (i32, i32) {
    %c0_i32 = arith.constant 0 : i32
    %c0_i32_0 = arith.constant 0 : i32
    %c0_i32_1 = arith.constant 0 : i32
    return %c0_i32, %c0_i32_0 : i32, i32
  }
  func.func @transform_4(%arg0: i32) -> (i32, i32) {
    %c0_i32 = arith.constant 0 : i32
    %c0_i32_0 = arith.constant 0 : i32
    %c0_i32_1 = arith.constant 0 : i32
    return %c0_i32, %c0_i32_0 : i32, i32
  }
  func.func @transform_5(%arg0: i32) -> (i32, i32) {
    %c0_i32 = arith.constant 0 : i32
    %c0_i32_0 = arith.constant 0 : i32
    %c0_i32_1 = arith.constant 0 : i32
    return %c0_i32, %c0_i32_0 : i32, i32
  }
}

module attributes {stable_mosaic.version = 11 : i64} {
  func.func @_conv3x3_bn_relu_kernel(%arg0: i32, %arg1: memref<288x8xbf16, #tpu.memory_space<vmem>>, %arg2: memref<32x288xbf16, #tpu.memory_space<vmem>>, %arg3: memref<32x1xf32, #tpu.memory_space<vmem>>, %arg4: memref<32x1xf32, #tpu.memory_space<vmem>>, %arg5: memref<32x1xf32, #tpu.memory_space<vmem>>, %arg6: memref<32x8xf32, #tpu.memory_space<vmem>>) attributes {dimension_semantics = [#tpu.dimension_semantics<arbitrary>], iteration_bounds = array<i64: 1>, scalar_prefetch = 0 : i64, scratch_operands = 0 : i64, tpu.core_type = #tpu.core_type<tc>, window_params = [{pipeline_mode = #tpu.pipeline_mode<synchronous>, transform_indices = @transform_0, window_bounds = array<i64: 288, 8>}, {pipeline_mode = #tpu.pipeline_mode<synchronous>, transform_indices = @transform_1, window_bounds = array<i64: 32, 288>}, {pipeline_mode = #tpu.pipeline_mode<synchronous>, transform_indices = @transform_2, window_bounds = array<i64: 32, 1>}, {pipeline_mode = #tpu.pipeline_mode<synchronous>, transform_indices = @transform_3, window_bounds = array<i64: 32, 1>}, {pipeline_mode = #tpu.pipeline_mode<synchronous>, transform_indices = @transform_4, window_bounds = array<i64: 32, 1>}, {pipeline_mode = #tpu.pipeline_mode<synchronous>, transform_indices = @transform_5, window_bounds = array<i64: 32, 8>}]} {
    %c0 = arith.constant 0 : index
    %c0_0 = arith.constant 0 : index
    %0 = vector.load %arg2[%c0, %c0_0] : memref<32x288xbf16, #tpu.memory_space<vmem>>, vector<32x288xbf16>
    %c0_1 = arith.constant 0 : index
    %c0_2 = arith.constant 0 : index
    %1 = vector.load %arg1[%c0_1, %c0_2] : memref<288x8xbf16, #tpu.memory_space<vmem>>, vector<288x8xbf16>
    %cst = arith.constant dense<0.000000e+00> : vector<32x8xf32>
    %2 = tpu.matmul %0, %1, %cst {dimension_numbers = #tpu.dot_dimension_numbers<[1], [0], [0], [1], [0, 0, 1, 1], [], []>} : vector<32x288xbf16>, vector<288x8xbf16>, vector<32x8xf32> -> vector<32x8xf32>
    %c0_3 = arith.constant 0 : index
    %c0_4 = arith.constant 0 : index
    %3 = vector.load %arg3[%c0_3, %c0_4] : memref<32x1xf32, #tpu.memory_space<vmem>>, vector<32x1xf32>
    %4 = vector.broadcast %3 : vector<32x1xf32> to vector<32x8xf32>
    %5 = arith.addf %2, %4 : vector<32x8xf32>
    %cst_5 = arith.constant dense<0.000000e+00> : vector<32xf32>
    %6 = vector.multi_reduction <add>, %5, %cst_5 [1] : vector<32x8xf32> to vector<32xf32>
    %7 = vector.shape_cast %6 : vector<32xf32> to vector<32x1xf32>
    %cst_6 = arith.constant 1.250000e-01 : f32
    %8 = vector.broadcast %cst_6 : f32 to vector<32x1xf32>
    %9 = arith.mulf %7, %8 : vector<32x1xf32>
    %10 = vector.broadcast %9 : vector<32x1xf32> to vector<32x8xf32>
    %11 = arith.subf %5, %10 : vector<32x8xf32>
    %12 = arith.mulf %11, %11 : vector<32x8xf32>
    %cst_7 = arith.constant dense<0.000000e+00> : vector<32xf32>
    %13 = vector.multi_reduction <add>, %12, %cst_7 [1] : vector<32x8xf32> to vector<32xf32>
    %14 = vector.shape_cast %13 : vector<32xf32> to vector<32x1xf32>
    %cst_8 = arith.constant 1.250000e-01 : f32
    %15 = vector.broadcast %cst_8 : f32 to vector<32x1xf32>
    %16 = arith.mulf %14, %15 : vector<32x1xf32>
    %cst_9 = arith.constant 9.99999974E-6 : f32
    %17 = vector.broadcast %cst_9 : f32 to vector<32x1xf32>
    %18 = arith.addf %16, %17 : vector<32x1xf32>
    %19 = math.rsqrt %18 : vector<32x1xf32>
    %20 = vector.broadcast %19 : vector<32x1xf32> to vector<32x8xf32>
    %21 = arith.mulf %11, %20 : vector<32x8xf32>
    %c0_10 = arith.constant 0 : index
    %c0_11 = arith.constant 0 : index
    %22 = vector.load %arg4[%c0_10, %c0_11] : memref<32x1xf32, #tpu.memory_space<vmem>>, vector<32x1xf32>
    %23 = vector.broadcast %22 : vector<32x1xf32> to vector<32x8xf32>
    %24 = arith.mulf %21, %23 : vector<32x8xf32>
    %c0_12 = arith.constant 0 : index
    %c0_13 = arith.constant 0 : index
    %25 = vector.load %arg5[%c0_12, %c0_13] : memref<32x1xf32, #tpu.memory_space<vmem>>, vector<32x1xf32>
    %26 = vector.broadcast %25 : vector<32x1xf32> to vector<32x8xf32>
    %27 = arith.addf %24, %26 : vector<32x8xf32>
    %cst_14 = arith.constant 0.000000e+00 : f32
    %28 = vector.broadcast %cst_14 : f32 to vector<32x8xf32>
    %29 = arith.maximumf %27, %28 : vector<32x8xf32>
    %c0_15 = arith.constant 0 : index
    %c0_16 = arith.constant 0 : index
    %30 = vector.load %arg6[%c0_15, %c0_16] : memref<32x8xf32, #tpu.memory_space<vmem>>, vector<32x8xf32>
    tpu.vector_store %arg6[%c0_15, %c0_16], %29 {strides = array<i32>} : memref<32x8xf32, #tpu.memory_space<vmem>>, vector<32x8xf32>,
    return
  }
  func.func @transform_0(%arg0: i32) -> (i32, i32) {
    %c0_i32 = arith.constant 0 : i32
    %c0_i32_0 = arith.constant 0 : i32
    %c0_i32_1 = arith.constant 0 : i32
    return %c0_i32, %c0_i32_0 : i32, i32
  }
  func.func @transform_1(%arg0: i32) -> (i32, i32) {
    %c0_i32 = arith.constant 0 : i32
    %c0_i32_0 = arith.constant 0 : i32
    %c0_i32_1 = arith.constant 0 : i32
    return %c0_i32, %c0_i32_0 : i32, i32
  }
  func.func @transform_2(%arg0: i32) -> (i32, i32) {
    %c0_i32 = arith.constant 0 : i32
    %c0_i32_0 = arith.constant 0 : i32
    %c0_i32_1 = arith.constant 0 : i32
    return %c0_i32, %c0_i32_0 : i32, i32
  }
  func.func @transform_3(%arg0: i32) -> (i32, i32) {
    %c0_i32 = arith.constant 0 : i32
    %c0_i32_0 = arith.constant 0 : i32
    %c0_i32_1 = arith.constant 0 : i32
    return %c0_i32, %c0_i32_0 : i32, i32
  }
  func.func @transform_4(%arg0: i32) -> (i32, i32) {
    %c0_i32 = arith.constant 0 : i32
    %c0_i32_0 = arith.constant 0 : i32
    %c0_i32_1 = arith.constant 0 : i32
    return %c0_i32, %c0_i32_0 : i32, i32
  }
  func.func @transform_5(%arg0: i32) -> (i32, i32) {
    %c0_i32 = arith.constant 0 : i32
    %c0_i32_0 = arith.constant 0 : i32
    %c0_i32_1 = arith.constant 0 : i32
    return %c0_i32, %c0_i32_0 : i32, i32
  }
}

module attributes {stable_mosaic.version = 11 : i64} {
  func.func @_maxpool2x2_kernel(%arg0: i32, %arg1: memref<64x2x1x2xf32, #tpu.memory_space<vmem>>, %arg2: memref<64x1x1xf32, #tpu.memory_space<vmem>>) attributes {dimension_semantics = [#tpu.dimension_semantics<arbitrary>], iteration_bounds = array<i64: 1>, scalar_prefetch = 0 : i64, scratch_operands = 0 : i64, tpu.core_type = #tpu.core_type<tc>, window_params = [{pipeline_mode = #tpu.pipeline_mode<synchronous>, transform_indices = @transform_0, window_bounds = array<i64: 64, 2, 1, 2>}, {pipeline_mode = #tpu.pipeline_mode<synchronous>, transform_indices = @transform_1, window_bounds = array<i64: 64, 1, 1>}]} {
    %c0 = arith.constant 0 : index
    %c0_0 = arith.constant 0 : index
    %c0_1 = arith.constant 0 : index
    %c0_2 = arith.constant 0 : index
    %0 = vector.load %arg1[%c0, %c0_0, %c0_1, %c0_2] : memref<64x2x1x2xf32, #tpu.memory_space<vmem>>, vector<64x2x1x2xf32>
    %1 = vector.extract_strided_slice %0 {offsets = [0, 0, 0, 0], sizes = [64, 1, 1, 2], strides = [1, 1, 1, 1]} : vector<64x2x1x2xf32> to vector<64x1x1x2xf32>
    %2 = vector.shape_cast %1 : vector<64x1x1x2xf32> to vector<64x1x2xf32>
    %3 = vector.extract_strided_slice %0 {offsets = [0, 1, 0, 0], sizes = [64, 1, 1, 2], strides = [1, 1, 1, 1]} : vector<64x2x1x2xf32> to vector<64x1x1x2xf32>
    %4 = vector.shape_cast %3 : vector<64x1x1x2xf32> to vector<64x1x2xf32>
    %5 = arith.maximumf %2, %4 : vector<64x1x2xf32>
    %cst = arith.constant dense<0xFF800000> : vector<64x1xf32>
    %6 = vector.multi_reduction <maximumf>, %5, %cst [2] : vector<64x1x2xf32> to vector<64x1xf32>
    %7 = vector.shape_cast %6 : vector<64x1xf32> to vector<64x1x1xf32>
    %c0_3 = arith.constant 0 : index
    %c0_4 = arith.constant 0 : index
    %c0_5 = arith.constant 0 : index
    %8 = vector.load %arg2[%c0_3, %c0_4, %c0_5] : memref<64x1x1xf32, #tpu.memory_space<vmem>>, vector<64x1x1xf32>
    tpu.vector_store %arg2[%c0_3, %c0_4, %c0_5], %7 {strides = array<i32>} : memref<64x1x1xf32, #tpu.memory_space<vmem>>, vector<64x1x1xf32>,
    return
  }
  func.func @transform_0(%arg0: i32) -> (i32, i32, i32, i32) {
    %c0_i32 = arith.constant 0 : i32
    %c0_i32_0 = arith.constant 0 : i32
    %c0_i32_1 = arith.constant 0 : i32
    %c0_i32_2 = arith.constant 0 : i32
    %c0_i32_3 = arith.constant 0 : i32
    return %c0_i32, %c0_i32_0, %c0_i32_1, %c0_i32_2 : i32, i32, i32, i32
  }
  func.func @transform_1(%arg0: i32) -> (i32, i32, i32) {
    %c0_i32 = arith.constant 0 : i32
    %c0_i32_0 = arith.constant 0 : i32
    %c0_i32_1 = arith.constant 0 : i32
    %c0_i32_2 = arith.constant 0 : i32
    return %c0_i32, %c0_i32_0, %c0_i32_1 : i32, i32, i32
  }
}

module attributes {stable_mosaic.version = 11 : i64} {
  func.func @_conv3x3_bn_relu_kernel(%arg0: i32, %arg1: memref<288x2xbf16, #tpu.memory_space<vmem>>, %arg2: memref<64x288xbf16, #tpu.memory_space<vmem>>, %arg3: memref<64x1xf32, #tpu.memory_space<vmem>>, %arg4: memref<64x1xf32, #tpu.memory_space<vmem>>, %arg5: memref<64x1xf32, #tpu.memory_space<vmem>>, %arg6: memref<64x2xf32, #tpu.memory_space<vmem>>) attributes {dimension_semantics = [#tpu.dimension_semantics<arbitrary>], iteration_bounds = array<i64: 1>, scalar_prefetch = 0 : i64, scratch_operands = 0 : i64, tpu.core_type = #tpu.core_type<tc>, window_params = [{pipeline_mode = #tpu.pipeline_mode<synchronous>, transform_indices = @transform_0, window_bounds = array<i64: 288, 2>}, {pipeline_mode = #tpu.pipeline_mode<synchronous>, transform_indices = @transform_1, window_bounds = array<i64: 64, 288>}, {pipeline_mode = #tpu.pipeline_mode<synchronous>, transform_indices = @transform_2, window_bounds = array<i64: 64, 1>}, {pipeline_mode = #tpu.pipeline_mode<synchronous>, transform_indices = @transform_3, window_bounds = array<i64: 64, 1>}, {pipeline_mode = #tpu.pipeline_mode<synchronous>, transform_indices = @transform_4, window_bounds = array<i64: 64, 1>}, {pipeline_mode = #tpu.pipeline_mode<synchronous>, transform_indices = @transform_5, window_bounds = array<i64: 64, 2>}]} {
    %c0 = arith.constant 0 : index
    %c0_0 = arith.constant 0 : index
    %0 = vector.load %arg2[%c0, %c0_0] : memref<64x288xbf16, #tpu.memory_space<vmem>>, vector<64x288xbf16>
    %c0_1 = arith.constant 0 : index
    %c0_2 = arith.constant 0 : index
    %1 = vector.load %arg1[%c0_1, %c0_2] : memref<288x2xbf16, #tpu.memory_space<vmem>>, vector<288x2xbf16>
    %cst = arith.constant dense<0.000000e+00> : vector<64x2xf32>
    %2 = tpu.matmul %0, %1, %cst {dimension_numbers = #tpu.dot_dimension_numbers<[1], [0], [0], [1], [0, 0, 1, 1], [], []>} : vector<64x288xbf16>, vector<288x2xbf16>, vector<64x2xf32> -> vector<64x2xf32>
    %c0_3 = arith.constant 0 : index
    %c0_4 = arith.constant 0 : index
    %3 = vector.load %arg3[%c0_3, %c0_4] : memref<64x1xf32, #tpu.memory_space<vmem>>, vector<64x1xf32>
    %4 = vector.broadcast %3 : vector<64x1xf32> to vector<64x2xf32>
    %5 = arith.addf %2, %4 : vector<64x2xf32>
    %cst_5 = arith.constant dense<0.000000e+00> : vector<64xf32>
    %6 = vector.multi_reduction <add>, %5, %cst_5 [1] : vector<64x2xf32> to vector<64xf32>
    %7 = vector.shape_cast %6 : vector<64xf32> to vector<64x1xf32>
    %cst_6 = arith.constant 5.000000e-01 : f32
    %8 = vector.broadcast %cst_6 : f32 to vector<64x1xf32>
    %9 = arith.mulf %7, %8 : vector<64x1xf32>
    %10 = vector.broadcast %9 : vector<64x1xf32> to vector<64x2xf32>
    %11 = arith.subf %5, %10 : vector<64x2xf32>
    %12 = arith.mulf %11, %11 : vector<64x2xf32>
    %cst_7 = arith.constant dense<0.000000e+00> : vector<64xf32>
    %13 = vector.multi_reduction <add>, %12, %cst_7 [1] : vector<64x2xf32> to vector<64xf32>
    %14 = vector.shape_cast %13 : vector<64xf32> to vector<64x1xf32>
    %cst_8 = arith.constant 5.000000e-01 : f32
    %15 = vector.broadcast %cst_8 : f32 to vector<64x1xf32>
    %16 = arith.mulf %14, %15 : vector<64x1xf32>
    %cst_9 = arith.constant 9.99999974E-6 : f32
    %17 = vector.broadcast %cst_9 : f32 to vector<64x1xf32>
    %18 = arith.addf %16, %17 : vector<64x1xf32>
    %19 = math.rsqrt %18 : vector<64x1xf32>
    %20 = vector.broadcast %19 : vector<64x1xf32> to vector<64x2xf32>
    %21 = arith.mulf %11, %20 : vector<64x2xf32>
    %c0_10 = arith.constant 0 : index
    %c0_11 = arith.constant 0 : index
    %22 = vector.load %arg4[%c0_10, %c0_11] : memref<64x1xf32, #tpu.memory_space<vmem>>, vector<64x1xf32>
    %23 = vector.broadcast %22 : vector<64x1xf32> to vector<64x2xf32>
    %24 = arith.mulf %21, %23 : vector<64x2xf32>
    %c0_12 = arith.constant 0 : index
    %c0_13 = arith.constant 0 : index
    %25 = vector.load %arg5[%c0_12, %c0_13] : memref<64x1xf32, #tpu.memory_space<vmem>>, vector<64x1xf32>
    %26 = vector.broadcast %25 : vector<64x1xf32> to vector<64x2xf32>
    %27 = arith.addf %24, %26 : vector<64x2xf32>
    %cst_14 = arith.constant 0.000000e+00 : f32
    %28 = vector.broadcast %cst_14 : f32 to vector<64x2xf32>
    %29 = arith.maximumf %27, %28 : vector<64x2xf32>
    %c0_15 = arith.constant 0 : index
    %c0_16 = arith.constant 0 : index
    %30 = vector.load %arg6[%c0_15, %c0_16] : memref<64x2xf32, #tpu.memory_space<vmem>>, vector<64x2xf32>
    tpu.vector_store %arg6[%c0_15, %c0_16], %29 {strides = array<i32>} : memref<64x2xf32, #tpu.memory_space<vmem>>, vector<64x2xf32>,
    return
  }
  func.func @transform_0(%arg0: i32) -> (i32, i32) {
    %c0_i32 = arith.constant 0 : i32
    %c0_i32_0 = arith.constant 0 : i32
    %c0_i32_1 = arith.constant 0 : i32
    return %c0_i32, %c0_i32_0 : i32, i32
  }
  func.func @transform_1(%arg0: i32) -> (i32, i32) {
    %c0_i32 = arith.constant 0 : i32
    %c0_i32_0 = arith.constant 0 : i32
    %c0_i32_1 = arith.constant 0 : i32
    return %c0_i32, %c0_i32_0 : i32, i32
  }
  func.func @transform_2(%arg0: i32) -> (i32, i32) {
    %c0_i32 = arith.constant 0 : i32
    %c0_i32_0 = arith.constant 0 : i32
    %c0_i32_1 = arith.constant 0 : i32
    return %c0_i32, %c0_i32_0 : i32, i32
  }
  func.func @transform_3(%arg0: i32) -> (i32, i32) {
    %c0_i32 = arith.constant 0 : i32
    %c0_i32_0 = arith.constant 0 : i32
    %c0_i32_1 = arith.constant 0 : i32
    return %c0_i32, %c0_i32_0 : i32, i32
  }
  func.func @transform_4(%arg0: i32) -> (i32, i32) {
    %c0_i32 = arith.constant 0 : i32
    %c0_i32_0 = arith.constant 0 : i32
    %c0_i32_1 = arith.constant 0 : i32
    return %c0_i32, %c0_i32_0 : i32, i32
  }
  func.func @transform_5(%arg0: i32) -> (i32, i32) {
    %c0_i32 = arith.constant 0 : i32
    %c0_i32_0 = arith.constant 0 : i32
    %c0_i32_1 = arith.constant 0 : i32
    return %c0_i32, %c0_i32_0 : i32, i32
  }
}

module attributes {stable_mosaic.version = 11 : i64} {
  func.func @_conv3x3_bn_relu_kernel(%arg0: i32, %arg1: memref<576x2xbf16, #tpu.memory_space<vmem>>, %arg2: memref<64x576xbf16, #tpu.memory_space<vmem>>, %arg3: memref<64x1xf32, #tpu.memory_space<vmem>>, %arg4: memref<64x1xf32, #tpu.memory_space<vmem>>, %arg5: memref<64x1xf32, #tpu.memory_space<vmem>>, %arg6: memref<64x2xf32, #tpu.memory_space<vmem>>) attributes {dimension_semantics = [#tpu.dimension_semantics<arbitrary>], iteration_bounds = array<i64: 1>, scalar_prefetch = 0 : i64, scratch_operands = 0 : i64, tpu.core_type = #tpu.core_type<tc>, window_params = [{pipeline_mode = #tpu.pipeline_mode<synchronous>, transform_indices = @transform_0, window_bounds = array<i64: 576, 2>}, {pipeline_mode = #tpu.pipeline_mode<synchronous>, transform_indices = @transform_1, window_bounds = array<i64: 64, 576>}, {pipeline_mode = #tpu.pipeline_mode<synchronous>, transform_indices = @transform_2, window_bounds = array<i64: 64, 1>}, {pipeline_mode = #tpu.pipeline_mode<synchronous>, transform_indices = @transform_3, window_bounds = array<i64: 64, 1>}, {pipeline_mode = #tpu.pipeline_mode<synchronous>, transform_indices = @transform_4, window_bounds = array<i64: 64, 1>}, {pipeline_mode = #tpu.pipeline_mode<synchronous>, transform_indices = @transform_5, window_bounds = array<i64: 64, 2>}]} {
    %c0 = arith.constant 0 : index
    %c0_0 = arith.constant 0 : index
    %0 = vector.load %arg2[%c0, %c0_0] : memref<64x576xbf16, #tpu.memory_space<vmem>>, vector<64x576xbf16>
    %c0_1 = arith.constant 0 : index
    %c0_2 = arith.constant 0 : index
    %1 = vector.load %arg1[%c0_1, %c0_2] : memref<576x2xbf16, #tpu.memory_space<vmem>>, vector<576x2xbf16>
    %cst = arith.constant dense<0.000000e+00> : vector<64x2xf32>
    %2 = tpu.matmul %0, %1, %cst {dimension_numbers = #tpu.dot_dimension_numbers<[1], [0], [0], [1], [0, 0, 1, 1], [], []>} : vector<64x576xbf16>, vector<576x2xbf16>, vector<64x2xf32> -> vector<64x2xf32>
    %c0_3 = arith.constant 0 : index
    %c0_4 = arith.constant 0 : index
    %3 = vector.load %arg3[%c0_3, %c0_4] : memref<64x1xf32, #tpu.memory_space<vmem>>, vector<64x1xf32>
    %4 = vector.broadcast %3 : vector<64x1xf32> to vector<64x2xf32>
    %5 = arith.addf %2, %4 : vector<64x2xf32>
    %cst_5 = arith.constant dense<0.000000e+00> : vector<64xf32>
    %6 = vector.multi_reduction <add>, %5, %cst_5 [1] : vector<64x2xf32> to vector<64xf32>
    %7 = vector.shape_cast %6 : vector<64xf32> to vector<64x1xf32>
    %cst_6 = arith.constant 5.000000e-01 : f32
    %8 = vector.broadcast %cst_6 : f32 to vector<64x1xf32>
    %9 = arith.mulf %7, %8 : vector<64x1xf32>
    %10 = vector.broadcast %9 : vector<64x1xf32> to vector<64x2xf32>
    %11 = arith.subf %5, %10 : vector<64x2xf32>
    %12 = arith.mulf %11, %11 : vector<64x2xf32>
    %cst_7 = arith.constant dense<0.000000e+00> : vector<64xf32>
    %13 = vector.multi_reduction <add>, %12, %cst_7 [1] : vector<64x2xf32> to vector<64xf32>
    %14 = vector.shape_cast %13 : vector<64xf32> to vector<64x1xf32>
    %cst_8 = arith.constant 5.000000e-01 : f32
    %15 = vector.broadcast %cst_8 : f32 to vector<64x1xf32>
    %16 = arith.mulf %14, %15 : vector<64x1xf32>
    %cst_9 = arith.constant 9.99999974E-6 : f32
    %17 = vector.broadcast %cst_9 : f32 to vector<64x1xf32>
    %18 = arith.addf %16, %17 : vector<64x1xf32>
    %19 = math.rsqrt %18 : vector<64x1xf32>
    %20 = vector.broadcast %19 : vector<64x1xf32> to vector<64x2xf32>
    %21 = arith.mulf %11, %20 : vector<64x2xf32>
    %c0_10 = arith.constant 0 : index
    %c0_11 = arith.constant 0 : index
    %22 = vector.load %arg4[%c0_10, %c0_11] : memref<64x1xf32, #tpu.memory_space<vmem>>, vector<64x1xf32>
    %23 = vector.broadcast %22 : vector<64x1xf32> to vector<64x2xf32>
    %24 = arith.mulf %21, %23 : vector<64x2xf32>
    %c0_12 = arith.constant 0 : index
    %c0_13 = arith.constant 0 : index
    %25 = vector.load %arg5[%c0_12, %c0_13] : memref<64x1xf32, #tpu.memory_space<vmem>>, vector<64x1xf32>
    %26 = vector.broadcast %25 : vector<64x1xf32> to vector<64x2xf32>
    %27 = arith.addf %24, %26 : vector<64x2xf32>
    %cst_14 = arith.constant 0.000000e+00 : f32
    %28 = vector.broadcast %cst_14 : f32 to vector<64x2xf32>
    %29 = arith.maximumf %27, %28 : vector<64x2xf32>
    %c0_15 = arith.constant 0 : index
    %c0_16 = arith.constant 0 : index
    %30 = vector.load %arg6[%c0_15, %c0_16] : memref<64x2xf32, #tpu.memory_space<vmem>>, vector<64x2xf32>
    tpu.vector_store %arg6[%c0_15, %c0_16], %29 {strides = array<i32>} : memref<64x2xf32, #tpu.memory_space<vmem>>, vector<64x2xf32>,
    return
  }
  func.func @transform_0(%arg0: i32) -> (i32, i32) {
    %c0_i32 = arith.constant 0 : i32
    %c0_i32_0 = arith.constant 0 : i32
    %c0_i32_1 = arith.constant 0 : i32
    return %c0_i32, %c0_i32_0 : i32, i32
  }
  func.func @transform_1(%arg0: i32) -> (i32, i32) {
    %c0_i32 = arith.constant 0 : i32
    %c0_i32_0 = arith.constant 0 : i32
    %c0_i32_1 = arith.constant 0 : i32
    return %c0_i32, %c0_i32_0 : i32, i32
  }
  func.func @transform_2(%arg0: i32) -> (i32, i32) {
    %c0_i32 = arith.constant 0 : i32
    %c0_i32_0 = arith.constant 0 : i32
    %c0_i32_1 = arith.constant 0 : i32
    return %c0_i32, %c0_i32_0 : i32, i32
  }
  func.func @transform_3(%arg0: i32) -> (i32, i32) {
    %c0_i32 = arith.constant 0 : i32
    %c0_i32_0 = arith.constant 0 : i32
    %c0_i32_1 = arith.constant 0 : i32
    return %c0_i32, %c0_i32_0 : i32, i32
  }
  func.func @transform_4(%arg0: i32) -> (i32, i32) {
    %c0_i32 = arith.constant 0 : i32
    %c0_i32_0 = arith.constant 0 : i32
    %c0_i32_1 = arith.constant 0 : i32
    return %c0_i32, %c0_i32_0 : i32, i32
  }
  func.func @transform_5(%arg0: i32) -> (i32, i32) {
    %c0_i32 = arith.constant 0 : i32
    %c0_i32_0 = arith.constant 0 : i32
    %c0_i32_1 = arith.constant 0 : i32
    return %c0_i32, %c0_i32_0 : i32, i32
  }
}

module attributes {stable_mosaic.version = 11 : i64} {
  func.func @_deconv2x2_bn_relu_kernel(%arg0: i32, %arg1: memref<64x2xf32, #tpu.memory_space<vmem>>, %arg2: memref<4x32x64xbf16, #tpu.memory_space<vmem>>, %arg3: memref<32x1xf32, #tpu.memory_space<vmem>>, %arg4: memref<32x1xf32, #tpu.memory_space<vmem>>, %arg5: memref<32x1xf32, #tpu.memory_space<vmem>>, %arg6: memref<4x32x2xf32, #tpu.memory_space<vmem>>) attributes {dimension_semantics = [#tpu.dimension_semantics<arbitrary>], iteration_bounds = array<i64: 1>, scalar_prefetch = 0 : i64, scratch_operands = 0 : i64, tpu.core_type = #tpu.core_type<tc>, window_params = [{pipeline_mode = #tpu.pipeline_mode<synchronous>, transform_indices = @transform_0, window_bounds = array<i64: 64, 2>}, {pipeline_mode = #tpu.pipeline_mode<synchronous>, transform_indices = @transform_1, window_bounds = array<i64: 4, 32, 64>}, {pipeline_mode = #tpu.pipeline_mode<synchronous>, transform_indices = @transform_2, window_bounds = array<i64: 32, 1>}, {pipeline_mode = #tpu.pipeline_mode<synchronous>, transform_indices = @transform_3, window_bounds = array<i64: 32, 1>}, {pipeline_mode = #tpu.pipeline_mode<synchronous>, transform_indices = @transform_4, window_bounds = array<i64: 32, 1>}, {pipeline_mode = #tpu.pipeline_mode<synchronous>, transform_indices = @transform_5, window_bounds = array<i64: 4, 32, 2>}]} {
    %c0 = arith.constant 0 : index
    %c0_0 = arith.constant 0 : index
    %0 = vector.load %arg1[%c0, %c0_0] : memref<64x2xf32, #tpu.memory_space<vmem>>, vector<64x2xf32>
    %1 = arith.truncf %0 : vector<64x2xf32> to vector<64x2xbf16>
    %c0_1 = arith.constant 0 : index
    %c0_2 = arith.constant 0 : index
    %c0_3 = arith.constant 0 : index
    %2 = vector.load %arg2[%c0_1, %c0_2, %c0_3] : memref<4x32x64xbf16, #tpu.memory_space<vmem>>, vector<1x32x64xbf16>
    %3 = vector.shape_cast %2 : vector<1x32x64xbf16> to vector<32x64xbf16>
    %cst = arith.constant dense<0.000000e+00> : vector<32x2xf32>
    %4 = tpu.matmul %3, %1, %cst {dimension_numbers = #tpu.dot_dimension_numbers<[1], [0], [0], [1], [0, 0, 1, 1], [], []>} : vector<32x64xbf16>, vector<64x2xbf16>, vector<32x2xf32> -> vector<32x2xf32>
    %c0_4 = arith.constant 0 : index
    %c0_5 = arith.constant 0 : index
    %5 = vector.load %arg3[%c0_4, %c0_5] : memref<32x1xf32, #tpu.memory_space<vmem>>, vector<32x1xf32>
    %6 = vector.broadcast %5 : vector<32x1xf32> to vector<32x2xf32>
    %7 = arith.addf %4, %6 : vector<32x2xf32>
    %cst_6 = arith.constant dense<0.000000e+00> : vector<32xf32>
    %8 = vector.multi_reduction <add>, %7, %cst_6 [1] : vector<32x2xf32> to vector<32xf32>
    %9 = vector.shape_cast %8 : vector<32xf32> to vector<32x1xf32>
    %c1 = arith.constant 1 : index
    %c0_7 = arith.constant 0 : index
    %c0_8 = arith.constant 0 : index
    %10 = vector.load %arg2[%c1, %c0_7, %c0_8] : memref<4x32x64xbf16, #tpu.memory_space<vmem>>, vector<1x32x64xbf16>
    %11 = vector.shape_cast %10 : vector<1x32x64xbf16> to vector<32x64xbf16>
    %cst_9 = arith.constant dense<0.000000e+00> : vector<32x2xf32>
    %12 = tpu.matmul %11, %1, %cst_9 {dimension_numbers = #tpu.dot_dimension_numbers<[1], [0], [0], [1], [0, 0, 1, 1], [], []>} : vector<32x64xbf16>, vector<64x2xbf16>, vector<32x2xf32> -> vector<32x2xf32>
    %c0_10 = arith.constant 0 : index
    %c0_11 = arith.constant 0 : index
    %13 = vector.load %arg3[%c0_10, %c0_11] : memref<32x1xf32, #tpu.memory_space<vmem>>, vector<32x1xf32>
    %14 = vector.broadcast %13 : vector<32x1xf32> to vector<32x2xf32>
    %15 = arith.addf %12, %14 : vector<32x2xf32>
    %cst_12 = arith.constant dense<0.000000e+00> : vector<32xf32>
    %16 = vector.multi_reduction <add>, %15, %cst_12 [1] : vector<32x2xf32> to vector<32xf32>
    %17 = vector.shape_cast %16 : vector<32xf32> to vector<32x1xf32>
    %18 = arith.addf %9, %17 : vector<32x1xf32>
    %c2 = arith.constant 2 : index
    %c0_13 = arith.constant 0 : index
    %c0_14 = arith.constant 0 : index
    %19 = vector.load %arg2[%c2, %c0_13, %c0_14] : memref<4x32x64xbf16, #tpu.memory_space<vmem>>, vector<1x32x64xbf16>
    %20 = vector.shape_cast %19 : vector<1x32x64xbf16> to vector<32x64xbf16>
    %cst_15 = arith.constant dense<0.000000e+00> : vector<32x2xf32>
    %21 = tpu.matmul %20, %1, %cst_15 {dimension_numbers = #tpu.dot_dimension_numbers<[1], [0], [0], [1], [0, 0, 1, 1], [], []>} : vector<32x64xbf16>, vector<64x2xbf16>, vector<32x2xf32> -> vector<32x2xf32>
    %c0_16 = arith.constant 0 : index
    %c0_17 = arith.constant 0 : index
    %22 = vector.load %arg3[%c0_16, %c0_17] : memref<32x1xf32, #tpu.memory_space<vmem>>, vector<32x1xf32>
    %23 = vector.broadcast %22 : vector<32x1xf32> to vector<32x2xf32>
    %24 = arith.addf %21, %23 : vector<32x2xf32>
    %cst_18 = arith.constant dense<0.000000e+00> : vector<32xf32>
    %25 = vector.multi_reduction <add>, %24, %cst_18 [1] : vector<32x2xf32> to vector<32xf32>
    %26 = vector.shape_cast %25 : vector<32xf32> to vector<32x1xf32>
    %27 = arith.addf %18, %26 : vector<32x1xf32>
    %c3 = arith.constant 3 : index
    %c0_19 = arith.constant 0 : index
    %c0_20 = arith.constant 0 : index
    %28 = vector.load %arg2[%c3, %c0_19, %c0_20] : memref<4x32x64xbf16, #tpu.memory_space<vmem>>, vector<1x32x64xbf16>
    %29 = vector.shape_cast %28 : vector<1x32x64xbf16> to vector<32x64xbf16>
    %cst_21 = arith.constant dense<0.000000e+00> : vector<32x2xf32>
    %30 = tpu.matmul %29, %1, %cst_21 {dimension_numbers = #tpu.dot_dimension_numbers<[1], [0], [0], [1], [0, 0, 1, 1], [], []>} : vector<32x64xbf16>, vector<64x2xbf16>, vector<32x2xf32> -> vector<32x2xf32>
    %c0_22 = arith.constant 0 : index
    %c0_23 = arith.constant 0 : index
    %31 = vector.load %arg3[%c0_22, %c0_23] : memref<32x1xf32, #tpu.memory_space<vmem>>, vector<32x1xf32>
    %32 = vector.broadcast %31 : vector<32x1xf32> to vector<32x2xf32>
    %33 = arith.addf %30, %32 : vector<32x2xf32>
    %cst_24 = arith.constant dense<0.000000e+00> : vector<32xf32>
    %34 = vector.multi_reduction <add>, %33, %cst_24 [1] : vector<32x2xf32> to vector<32xf32>
    %35 = vector.shape_cast %34 : vector<32xf32> to vector<32x1xf32>
    %36 = arith.addf %27, %35 : vector<32x1xf32>
    %cst_25 = arith.constant 1.250000e-01 : f32
    %37 = vector.broadcast %cst_25 : f32 to vector<32x1xf32>
    %38 = arith.mulf %36, %37 : vector<32x1xf32>
    %39 = vector.broadcast %38 : vector<32x1xf32> to vector<32x2xf32>
    %40 = arith.subf %7, %39 : vector<32x2xf32>
    %41 = arith.mulf %40, %40 : vector<32x2xf32>
    %cst_26 = arith.constant dense<0.000000e+00> : vector<32xf32>
    %42 = vector.multi_reduction <add>, %41, %cst_26 [1] : vector<32x2xf32> to vector<32xf32>
    %43 = vector.shape_cast %42 : vector<32xf32> to vector<32x1xf32>
    %44 = vector.broadcast %38 : vector<32x1xf32> to vector<32x2xf32>
    %45 = arith.subf %15, %44 : vector<32x2xf32>
    %46 = arith.mulf %45, %45 : vector<32x2xf32>
    %cst_27 = arith.constant dense<0.000000e+00> : vector<32xf32>
    %47 = vector.multi_reduction <add>, %46, %cst_27 [1] : vector<32x2xf32> to vector<32xf32>
    %48 = vector.shape_cast %47 : vector<32xf32> to vector<32x1xf32>
    %49 = arith.addf %43, %48 : vector<32x1xf32>
    %50 = vector.broadcast %38 : vector<32x1xf32> to vector<32x2xf32>
    %51 = arith.subf %24, %50 : vector<32x2xf32>
    %52 = arith.mulf %51, %51 : vector<32x2xf32>
    %cst_28 = arith.constant dense<0.000000e+00> : vector<32xf32>
    %53 = vector.multi_reduction <add>, %52, %cst_28 [1] : vector<32x2xf32> to vector<32xf32>
    %54 = vector.shape_cast %53 : vector<32xf32> to vector<32x1xf32>
    %55 = arith.addf %49, %54 : vector<32x1xf32>
    %56 = vector.broadcast %38 : vector<32x1xf32> to vector<32x2xf32>
    %57 = arith.subf %33, %56 : vector<32x2xf32>
    %58 = arith.mulf %57, %57 : vector<32x2xf32>
    %cst_29 = arith.constant dense<0.000000e+00> : vector<32xf32>
    %59 = vector.multi_reduction <add>, %58, %cst_29 [1] : vector<32x2xf32> to vector<32xf32>
    %60 = vector.shape_cast %59 : vector<32xf32> to vector<32x1xf32>
    %61 = arith.addf %55, %60 : vector<32x1xf32>
    %cst_30 = arith.constant 1.250000e-01 : f32
    %62 = vector.broadcast %cst_30 : f32 to vector<32x1xf32>
    %63 = arith.mulf %61, %62 : vector<32x1xf32>
    %cst_31 = arith.constant 9.99999974E-6 : f32
    %64 = vector.broadcast %cst_31 : f32 to vector<32x1xf32>
    %65 = arith.addf %63, %64 : vector<32x1xf32>
    %66 = math.rsqrt %65 : vector<32x1xf32>
    %c0_32 = arith.constant 0 : index
    %c0_33 = arith.constant 0 : index
    %67 = vector.load %arg4[%c0_32, %c0_33] : memref<32x1xf32, #tpu.memory_space<vmem>>, vector<32x1xf32>
    %68 = arith.mulf %66, %67 : vector<32x1xf32>
    %69 = vector.broadcast %38 : vector<32x1xf32> to vector<32x2xf32>
    %70 = arith.subf %7, %69 : vector<32x2xf32>
    %71 = vector.broadcast %68 : vector<32x1xf32> to vector<32x2xf32>
    %72 = arith.mulf %70, %71 : vector<32x2xf32>
    %c0_34 = arith.constant 0 : index
    %c0_35 = arith.constant 0 : index
    %73 = vector.load %arg5[%c0_34, %c0_35] : memref<32x1xf32, #tpu.memory_space<vmem>>, vector<32x1xf32>
    %74 = vector.broadcast %73 : vector<32x1xf32> to vector<32x2xf32>
    %75 = arith.addf %72, %74 : vector<32x2xf32>
    %cst_36 = arith.constant 0.000000e+00 : f32
    %76 = vector.broadcast %cst_36 : f32 to vector<32x2xf32>
    %77 = arith.maximumf %75, %76 : vector<32x2xf32>
    %c0_37 = arith.constant 0 : index
    %c0_38 = arith.constant 0 : index
    %c0_39 = arith.constant 0 : index
    %78 = vector.load %arg6[%c0_37, %c0_38, %c0_39] : memref<4x32x2xf32, #tpu.memory_space<vmem>>, vector<1x32x2xf32>
    %79 = vector.shape_cast %78 : vector<1x32x2xf32> to vector<32x2xf32>
    %80 = vector.shape_cast %77 : vector<32x2xf32> to vector<1x32x2xf32>
    tpu.vector_store %arg6[%c0_37, %c0_38, %c0_39], %80 {strides = array<i32>} : memref<4x32x2xf32, #tpu.memory_space<vmem>>, vector<1x32x2xf32>,
    %81 = vector.broadcast %38 : vector<32x1xf32> to vector<32x2xf32>
    %82 = arith.subf %15, %81 : vector<32x2xf32>
    %83 = vector.broadcast %68 : vector<32x1xf32> to vector<32x2xf32>
    %84 = arith.mulf %82, %83 : vector<32x2xf32>
    %c0_40 = arith.constant 0 : index
    %c0_41 = arith.constant 0 : index
    %85 = vector.load %arg5[%c0_40, %c0_41] : memref<32x1xf32, #tpu.memory_space<vmem>>, vector<32x1xf32>
    %86 = vector.broadcast %85 : vector<32x1xf32> to vector<32x2xf32>
    %87 = arith.addf %84, %86 : vector<32x2xf32>
    %cst_42 = arith.constant 0.000000e+00 : f32
    %88 = vector.broadcast %cst_42 : f32 to vector<32x2xf32>
    %89 = arith.maximumf %87, %88 : vector<32x2xf32>
    %c1_43 = arith.constant 1 : index
    %c0_44 = arith.constant 0 : index
    %c0_45 = arith.constant 0 : index
    %90 = vector.load %arg6[%c1_43, %c0_44, %c0_45] : memref<4x32x2xf32, #tpu.memory_space<vmem>>, vector<1x32x2xf32>
    %91 = vector.shape_cast %90 : vector<1x32x2xf32> to vector<32x2xf32>
    %92 = vector.shape_cast %89 : vector<32x2xf32> to vector<1x32x2xf32>
    tpu.vector_store %arg6[%c1_43, %c0_44, %c0_45], %92 {strides = array<i32>} : memref<4x32x2xf32, #tpu.memory_space<vmem>>, vector<1x32x2xf32>,
    %93 = vector.broadcast %38 : vector<32x1xf32> to vector<32x2xf32>
    %94 = arith.subf %24, %93 : vector<32x2xf32>
    %95 = vector.broadcast %68 : vector<32x1xf32> to vector<32x2xf32>
    %96 = arith.mulf %94, %95 : vector<32x2xf32>
    %c0_46 = arith.constant 0 : index
    %c0_47 = arith.constant 0 : index
    %97 = vector.load %arg5[%c0_46, %c0_47] : memref<32x1xf32, #tpu.memory_space<vmem>>, vector<32x1xf32>
    %98 = vector.broadcast %97 : vector<32x1xf32> to vector<32x2xf32>
    %99 = arith.addf %96, %98 : vector<32x2xf32>
    %cst_48 = arith.constant 0.000000e+00 : f32
    %100 = vector.broadcast %cst_48 : f32 to vector<32x2xf32>
    %101 = arith.maximumf %99, %100 : vector<32x2xf32>
    %c2_49 = arith.constant 2 : index
    %c0_50 = arith.constant 0 : index
    %c0_51 = arith.constant 0 : index
    %102 = vector.load %arg6[%c2_49, %c0_50, %c0_51] : memref<4x32x2xf32, #tpu.memory_space<vmem>>, vector<1x32x2xf32>
    %103 = vector.shape_cast %102 : vector<1x32x2xf32> to vector<32x2xf32>
    %104 = vector.shape_cast %101 : vector<32x2xf32> to vector<1x32x2xf32>
    tpu.vector_store %arg6[%c2_49, %c0_50, %c0_51], %104 {strides = array<i32>} : memref<4x32x2xf32, #tpu.memory_space<vmem>>, vector<1x32x2xf32>,
    %105 = vector.broadcast %38 : vector<32x1xf32> to vector<32x2xf32>
    %106 = arith.subf %33, %105 : vector<32x2xf32>
    %107 = vector.broadcast %68 : vector<32x1xf32> to vector<32x2xf32>
    %108 = arith.mulf %106, %107 : vector<32x2xf32>
    %c0_52 = arith.constant 0 : index
    %c0_53 = arith.constant 0 : index
    %109 = vector.load %arg5[%c0_52, %c0_53] : memref<32x1xf32, #tpu.memory_space<vmem>>, vector<32x1xf32>
    %110 = vector.broadcast %109 : vector<32x1xf32> to vector<32x2xf32>
    %111 = arith.addf %108, %110 : vector<32x2xf32>
    %cst_54 = arith.constant 0.000000e+00 : f32
    %112 = vector.broadcast %cst_54 : f32 to vector<32x2xf32>
    %113 = arith.maximumf %111, %112 : vector<32x2xf32>
    %c3_55 = arith.constant 3 : index
    %c0_56 = arith.constant 0 : index
    %c0_57 = arith.constant 0 : index
    %114 = vector.load %arg6[%c3_55, %c0_56, %c0_57] : memref<4x32x2xf32, #tpu.memory_space<vmem>>, vector<1x32x2xf32>
    %115 = vector.shape_cast %114 : vector<1x32x2xf32> to vector<32x2xf32>
    %116 = vector.shape_cast %113 : vector<32x2xf32> to vector<1x32x2xf32>
    tpu.vector_store %arg6[%c3_55, %c0_56, %c0_57], %116 {strides = array<i32>} : memref<4x32x2xf32, #tpu.memory_space<vmem>>, vector<1x32x2xf32>,
    return
  }
  func.func @transform_0(%arg0: i32) -> (i32, i32) {
    %c0_i32 = arith.constant 0 : i32
    %c0_i32_0 = arith.constant 0 : i32
    %c0_i32_1 = arith.constant 0 : i32
    return %c0_i32, %c0_i32_0 : i32, i32
  }
  func.func @transform_1(%arg0: i32) -> (i32, i32, i32) {
    %c0_i32 = arith.constant 0 : i32
    %c0_i32_0 = arith.constant 0 : i32
    %c0_i32_1 = arith.constant 0 : i32
    %c0_i32_2 = arith.constant 0 : i32
    return %c0_i32, %c0_i32_0, %c0_i32_1 : i32, i32, i32
  }
  func.func @transform_2(%arg0: i32) -> (i32, i32) {
    %c0_i32 = arith.constant 0 : i32
    %c0_i32_0 = arith.constant 0 : i32
    %c0_i32_1 = arith.constant 0 : i32
    return %c0_i32, %c0_i32_0 : i32, i32
  }
  func.func @transform_3(%arg0: i32) -> (i32, i32) {
    %c0_i32 = arith.constant 0 : i32
    %c0_i32_0 = arith.constant 0 : i32
    %c0_i32_1 = arith.constant 0 : i32
    return %c0_i32, %c0_i32_0 : i32, i32
  }
  func.func @transform_4(%arg0: i32) -> (i32, i32) {
    %c0_i32 = arith.constant 0 : i32
    %c0_i32_0 = arith.constant 0 : i32
    %c0_i32_1 = arith.constant 0 : i32
    return %c0_i32, %c0_i32_0 : i32, i32
  }
  func.func @transform_5(%arg0: i32) -> (i32, i32, i32) {
    %c0_i32 = arith.constant 0 : i32
    %c0_i32_0 = arith.constant 0 : i32
    %c0_i32_1 = arith.constant 0 : i32
    %c0_i32_2 = arith.constant 0 : i32
    return %c0_i32, %c0_i32_0, %c0_i32_1 : i32, i32, i32
  }
}

module attributes {stable_mosaic.version = 11 : i64} {
  func.func @_conv3x3_bn_relu_kernel(%arg0: i32, %arg1: memref<576x8xbf16, #tpu.memory_space<vmem>>, %arg2: memref<32x576xbf16, #tpu.memory_space<vmem>>, %arg3: memref<32x1xf32, #tpu.memory_space<vmem>>, %arg4: memref<32x1xf32, #tpu.memory_space<vmem>>, %arg5: memref<32x1xf32, #tpu.memory_space<vmem>>, %arg6: memref<32x8xf32, #tpu.memory_space<vmem>>) attributes {dimension_semantics = [#tpu.dimension_semantics<arbitrary>], iteration_bounds = array<i64: 1>, scalar_prefetch = 0 : i64, scratch_operands = 0 : i64, tpu.core_type = #tpu.core_type<tc>, window_params = [{pipeline_mode = #tpu.pipeline_mode<synchronous>, transform_indices = @transform_0, window_bounds = array<i64: 576, 8>}, {pipeline_mode = #tpu.pipeline_mode<synchronous>, transform_indices = @transform_1, window_bounds = array<i64: 32, 576>}, {pipeline_mode = #tpu.pipeline_mode<synchronous>, transform_indices = @transform_2, window_bounds = array<i64: 32, 1>}, {pipeline_mode = #tpu.pipeline_mode<synchronous>, transform_indices = @transform_3, window_bounds = array<i64: 32, 1>}, {pipeline_mode = #tpu.pipeline_mode<synchronous>, transform_indices = @transform_4, window_bounds = array<i64: 32, 1>}, {pipeline_mode = #tpu.pipeline_mode<synchronous>, transform_indices = @transform_5, window_bounds = array<i64: 32, 8>}]} {
    %c0 = arith.constant 0 : index
    %c0_0 = arith.constant 0 : index
    %0 = vector.load %arg2[%c0, %c0_0] : memref<32x576xbf16, #tpu.memory_space<vmem>>, vector<32x576xbf16>
    %c0_1 = arith.constant 0 : index
    %c0_2 = arith.constant 0 : index
    %1 = vector.load %arg1[%c0_1, %c0_2] : memref<576x8xbf16, #tpu.memory_space<vmem>>, vector<576x8xbf16>
    %cst = arith.constant dense<0.000000e+00> : vector<32x8xf32>
    %2 = tpu.matmul %0, %1, %cst {dimension_numbers = #tpu.dot_dimension_numbers<[1], [0], [0], [1], [0, 0, 1, 1], [], []>} : vector<32x576xbf16>, vector<576x8xbf16>, vector<32x8xf32> -> vector<32x8xf32>
    %c0_3 = arith.constant 0 : index
    %c0_4 = arith.constant 0 : index
    %3 = vector.load %arg3[%c0_3, %c0_4] : memref<32x1xf32, #tpu.memory_space<vmem>>, vector<32x1xf32>
    %4 = vector.broadcast %3 : vector<32x1xf32> to vector<32x8xf32>
    %5 = arith.addf %2, %4 : vector<32x8xf32>
    %cst_5 = arith.constant dense<0.000000e+00> : vector<32xf32>
    %6 = vector.multi_reduction <add>, %5, %cst_5 [1] : vector<32x8xf32> to vector<32xf32>
    %7 = vector.shape_cast %6 : vector<32xf32> to vector<32x1xf32>
    %cst_6 = arith.constant 1.250000e-01 : f32
    %8 = vector.broadcast %cst_6 : f32 to vector<32x1xf32>
    %9 = arith.mulf %7, %8 : vector<32x1xf32>
    %10 = vector.broadcast %9 : vector<32x1xf32> to vector<32x8xf32>
    %11 = arith.subf %5, %10 : vector<32x8xf32>
    %12 = arith.mulf %11, %11 : vector<32x8xf32>
    %cst_7 = arith.constant dense<0.000000e+00> : vector<32xf32>
    %13 = vector.multi_reduction <add>, %12, %cst_7 [1] : vector<32x8xf32> to vector<32xf32>
    %14 = vector.shape_cast %13 : vector<32xf32> to vector<32x1xf32>
    %cst_8 = arith.constant 1.250000e-01 : f32
    %15 = vector.broadcast %cst_8 : f32 to vector<32x1xf32>
    %16 = arith.mulf %14, %15 : vector<32x1xf32>
    %cst_9 = arith.constant 9.99999974E-6 : f32
    %17 = vector.broadcast %cst_9 : f32 to vector<32x1xf32>
    %18 = arith.addf %16, %17 : vector<32x1xf32>
    %19 = math.rsqrt %18 : vector<32x1xf32>
    %20 = vector.broadcast %19 : vector<32x1xf32> to vector<32x8xf32>
    %21 = arith.mulf %11, %20 : vector<32x8xf32>
    %c0_10 = arith.constant 0 : index
    %c0_11 = arith.constant 0 : index
    %22 = vector.load %arg4[%c0_10, %c0_11] : memref<32x1xf32, #tpu.memory_space<vmem>>, vector<32x1xf32>
    %23 = vector.broadcast %22 : vector<32x1xf32> to vector<32x8xf32>
    %24 = arith.mulf %21, %23 : vector<32x8xf32>
    %c0_12 = arith.constant 0 : index
    %c0_13 = arith.constant 0 : index
    %25 = vector.load %arg5[%c0_12, %c0_13] : memref<32x1xf32, #tpu.memory_space<vmem>>, vector<32x1xf32>
    %26 = vector.broadcast %25 : vector<32x1xf32> to vector<32x8xf32>
    %27 = arith.addf %24, %26 : vector<32x8xf32>
    %cst_14 = arith.constant 0.000000e+00 : f32
    %28 = vector.broadcast %cst_14 : f32 to vector<32x8xf32>
    %29 = arith.maximumf %27, %28 : vector<32x8xf32>
    %c0_15 = arith.constant 0 : index
    %c0_16 = arith.constant 0 : index
    %30 = vector.load %arg6[%c0_15, %c0_16] : memref<32x8xf32, #tpu.memory_space<vmem>>, vector<32x8xf32>
    tpu.vector_store %arg6[%c0_15, %c0_16], %29 {strides = array<i32>} : memref<32x8xf32, #tpu.memory_space<vmem>>, vector<32x8xf32>,
    return
  }
  func.func @transform_0(%arg0: i32) -> (i32, i32) {
    %c0_i32 = arith.constant 0 : i32
    %c0_i32_0 = arith.constant 0 : i32
    %c0_i32_1 = arith.constant 0 : i32
    return %c0_i32, %c0_i32_0 : i32, i32
  }
  func.func @transform_1(%arg0: i32) -> (i32, i32) {
    %c0_i32 = arith.constant 0 : i32
    %c0_i32_0 = arith.constant 0 : i32
    %c0_i32_1 = arith.constant 0 : i32
    return %c0_i32, %c0_i32_0 : i32, i32
  }
  func.func @transform_2(%arg0: i32) -> (i32, i32) {
    %c0_i32 = arith.constant 0 : i32
    %c0_i32_0 = arith.constant 0 : i32
    %c0_i32_1 = arith.constant 0 : i32
    return %c0_i32, %c0_i32_0 : i32, i32
  }
  func.func @transform_3(%arg0: i32) -> (i32, i32) {
    %c0_i32 = arith.constant 0 : i32
    %c0_i32_0 = arith.constant 0 : i32
    %c0_i32_1 = arith.constant 0 : i32
    return %c0_i32, %c0_i32_0 : i32, i32
  }
  func.func @transform_4(%arg0: i32) -> (i32, i32) {
    %c0_i32 = arith.constant 0 : i32
    %c0_i32_0 = arith.constant 0 : i32
    %c0_i32_1 = arith.constant 0 : i32
    return %c0_i32, %c0_i32_0 : i32, i32
  }
  func.func @transform_5(%arg0: i32) -> (i32, i32) {
    %c0_i32 = arith.constant 0 : i32
    %c0_i32_0 = arith.constant 0 : i32
    %c0_i32_1 = arith.constant 0 : i32
    return %c0_i32, %c0_i32_0 : i32, i32
  }
}

module attributes {stable_mosaic.version = 11 : i64} {
  func.func @_deconv2x2_bn_relu_kernel(%arg0: i32, %arg1: memref<32x8xf32, #tpu.memory_space<vmem>>, %arg2: memref<4x16x32xbf16, #tpu.memory_space<vmem>>, %arg3: memref<16x1xf32, #tpu.memory_space<vmem>>, %arg4: memref<16x1xf32, #tpu.memory_space<vmem>>, %arg5: memref<16x1xf32, #tpu.memory_space<vmem>>, %arg6: memref<4x16x8xf32, #tpu.memory_space<vmem>>) attributes {dimension_semantics = [#tpu.dimension_semantics<arbitrary>], iteration_bounds = array<i64: 1>, scalar_prefetch = 0 : i64, scratch_operands = 0 : i64, tpu.core_type = #tpu.core_type<tc>, window_params = [{pipeline_mode = #tpu.pipeline_mode<synchronous>, transform_indices = @transform_0, window_bounds = array<i64: 32, 8>}, {pipeline_mode = #tpu.pipeline_mode<synchronous>, transform_indices = @transform_1, window_bounds = array<i64: 4, 16, 32>}, {pipeline_mode = #tpu.pipeline_mode<synchronous>, transform_indices = @transform_2, window_bounds = array<i64: 16, 1>}, {pipeline_mode = #tpu.pipeline_mode<synchronous>, transform_indices = @transform_3, window_bounds = array<i64: 16, 1>}, {pipeline_mode = #tpu.pipeline_mode<synchronous>, transform_indices = @transform_4, window_bounds = array<i64: 16, 1>}, {pipeline_mode = #tpu.pipeline_mode<synchronous>, transform_indices = @transform_5, window_bounds = array<i64: 4, 16, 8>}]} {
    %c0 = arith.constant 0 : index
    %c0_0 = arith.constant 0 : index
    %0 = vector.load %arg1[%c0, %c0_0] : memref<32x8xf32, #tpu.memory_space<vmem>>, vector<32x8xf32>
    %1 = arith.truncf %0 : vector<32x8xf32> to vector<32x8xbf16>
    %c0_1 = arith.constant 0 : index
    %c0_2 = arith.constant 0 : index
    %c0_3 = arith.constant 0 : index
    %2 = vector.load %arg2[%c0_1, %c0_2, %c0_3] : memref<4x16x32xbf16, #tpu.memory_space<vmem>>, vector<1x16x32xbf16>
    %3 = vector.shape_cast %2 : vector<1x16x32xbf16> to vector<16x32xbf16>
    %cst = arith.constant dense<0.000000e+00> : vector<16x8xf32>
    %4 = tpu.matmul %3, %1, %cst {dimension_numbers = #tpu.dot_dimension_numbers<[1], [0], [0], [1], [0, 0, 1, 1], [], []>} : vector<16x32xbf16>, vector<32x8xbf16>, vector<16x8xf32> -> vector<16x8xf32>
    %c0_4 = arith.constant 0 : index
    %c0_5 = arith.constant 0 : index
    %5 = vector.load %arg3[%c0_4, %c0_5] : memref<16x1xf32, #tpu.memory_space<vmem>>, vector<16x1xf32>
    %6 = vector.broadcast %5 : vector<16x1xf32> to vector<16x8xf32>
    %7 = arith.addf %4, %6 : vector<16x8xf32>
    %cst_6 = arith.constant dense<0.000000e+00> : vector<16xf32>
    %8 = vector.multi_reduction <add>, %7, %cst_6 [1] : vector<16x8xf32> to vector<16xf32>
    %9 = vector.shape_cast %8 : vector<16xf32> to vector<16x1xf32>
    %c1 = arith.constant 1 : index
    %c0_7 = arith.constant 0 : index
    %c0_8 = arith.constant 0 : index
    %10 = vector.load %arg2[%c1, %c0_7, %c0_8] : memref<4x16x32xbf16, #tpu.memory_space<vmem>>, vector<1x16x32xbf16>
    %11 = vector.shape_cast %10 : vector<1x16x32xbf16> to vector<16x32xbf16>
    %cst_9 = arith.constant dense<0.000000e+00> : vector<16x8xf32>
    %12 = tpu.matmul %11, %1, %cst_9 {dimension_numbers = #tpu.dot_dimension_numbers<[1], [0], [0], [1], [0, 0, 1, 1], [], []>} : vector<16x32xbf16>, vector<32x8xbf16>, vector<16x8xf32> -> vector<16x8xf32>
    %c0_10 = arith.constant 0 : index
    %c0_11 = arith.constant 0 : index
    %13 = vector.load %arg3[%c0_10, %c0_11] : memref<16x1xf32, #tpu.memory_space<vmem>>, vector<16x1xf32>
    %14 = vector.broadcast %13 : vector<16x1xf32> to vector<16x8xf32>
    %15 = arith.addf %12, %14 : vector<16x8xf32>
    %cst_12 = arith.constant dense<0.000000e+00> : vector<16xf32>
    %16 = vector.multi_reduction <add>, %15, %cst_12 [1] : vector<16x8xf32> to vector<16xf32>
    %17 = vector.shape_cast %16 : vector<16xf32> to vector<16x1xf32>
    %18 = arith.addf %9, %17 : vector<16x1xf32>
    %c2 = arith.constant 2 : index
    %c0_13 = arith.constant 0 : index
    %c0_14 = arith.constant 0 : index
    %19 = vector.load %arg2[%c2, %c0_13, %c0_14] : memref<4x16x32xbf16, #tpu.memory_space<vmem>>, vector<1x16x32xbf16>
    %20 = vector.shape_cast %19 : vector<1x16x32xbf16> to vector<16x32xbf16>
    %cst_15 = arith.constant dense<0.000000e+00> : vector<16x8xf32>
    %21 = tpu.matmul %20, %1, %cst_15 {dimension_numbers = #tpu.dot_dimension_numbers<[1], [0], [0], [1], [0, 0, 1, 1], [], []>} : vector<16x32xbf16>, vector<32x8xbf16>, vector<16x8xf32> -> vector<16x8xf32>
    %c0_16 = arith.constant 0 : index
    %c0_17 = arith.constant 0 : index
    %22 = vector.load %arg3[%c0_16, %c0_17] : memref<16x1xf32, #tpu.memory_space<vmem>>, vector<16x1xf32>
    %23 = vector.broadcast %22 : vector<16x1xf32> to vector<16x8xf32>
    %24 = arith.addf %21, %23 : vector<16x8xf32>
    %cst_18 = arith.constant dense<0.000000e+00> : vector<16xf32>
    %25 = vector.multi_reduction <add>, %24, %cst_18 [1] : vector<16x8xf32> to vector<16xf32>
    %26 = vector.shape_cast %25 : vector<16xf32> to vector<16x1xf32>
    %27 = arith.addf %18, %26 : vector<16x1xf32>
    %c3 = arith.constant 3 : index
    %c0_19 = arith.constant 0 : index
    %c0_20 = arith.constant 0 : index
    %28 = vector.load %arg2[%c3, %c0_19, %c0_20] : memref<4x16x32xbf16, #tpu.memory_space<vmem>>, vector<1x16x32xbf16>
    %29 = vector.shape_cast %28 : vector<1x16x32xbf16> to vector<16x32xbf16>
    %cst_21 = arith.constant dense<0.000000e+00> : vector<16x8xf32>
    %30 = tpu.matmul %29, %1, %cst_21 {dimension_numbers = #tpu.dot_dimension_numbers<[1], [0], [0], [1], [0, 0, 1, 1], [], []>} : vector<16x32xbf16>, vector<32x8xbf16>, vector<16x8xf32> -> vector<16x8xf32>
    %c0_22 = arith.constant 0 : index
    %c0_23 = arith.constant 0 : index
    %31 = vector.load %arg3[%c0_22, %c0_23] : memref<16x1xf32, #tpu.memory_space<vmem>>, vector<16x1xf32>
    %32 = vector.broadcast %31 : vector<16x1xf32> to vector<16x8xf32>
    %33 = arith.addf %30, %32 : vector<16x8xf32>
    %cst_24 = arith.constant dense<0.000000e+00> : vector<16xf32>
    %34 = vector.multi_reduction <add>, %33, %cst_24 [1] : vector<16x8xf32> to vector<16xf32>
    %35 = vector.shape_cast %34 : vector<16xf32> to vector<16x1xf32>
    %36 = arith.addf %27, %35 : vector<16x1xf32>
    %cst_25 = arith.constant 3.125000e-02 : f32
    %37 = vector.broadcast %cst_25 : f32 to vector<16x1xf32>
    %38 = arith.mulf %36, %37 : vector<16x1xf32>
    %39 = vector.broadcast %38 : vector<16x1xf32> to vector<16x8xf32>
    %40 = arith.subf %7, %39 : vector<16x8xf32>
    %41 = arith.mulf %40, %40 : vector<16x8xf32>
    %cst_26 = arith.constant dense<0.000000e+00> : vector<16xf32>
    %42 = vector.multi_reduction <add>, %41, %cst_26 [1] : vector<16x8xf32> to vector<16xf32>
    %43 = vector.shape_cast %42 : vector<16xf32> to vector<16x1xf32>
    %44 = vector.broadcast %38 : vector<16x1xf32> to vector<16x8xf32>
    %45 = arith.subf %15, %44 : vector<16x8xf32>
    %46 = arith.mulf %45, %45 : vector<16x8xf32>
    %cst_27 = arith.constant dense<0.000000e+00> : vector<16xf32>
    %47 = vector.multi_reduction <add>, %46, %cst_27 [1] : vector<16x8xf32> to vector<16xf32>
    %48 = vector.shape_cast %47 : vector<16xf32> to vector<16x1xf32>
    %49 = arith.addf %43, %48 : vector<16x1xf32>
    %50 = vector.broadcast %38 : vector<16x1xf32> to vector<16x8xf32>
    %51 = arith.subf %24, %50 : vector<16x8xf32>
    %52 = arith.mulf %51, %51 : vector<16x8xf32>
    %cst_28 = arith.constant dense<0.000000e+00> : vector<16xf32>
    %53 = vector.multi_reduction <add>, %52, %cst_28 [1] : vector<16x8xf32> to vector<16xf32>
    %54 = vector.shape_cast %53 : vector<16xf32> to vector<16x1xf32>
    %55 = arith.addf %49, %54 : vector<16x1xf32>
    %56 = vector.broadcast %38 : vector<16x1xf32> to vector<16x8xf32>
    %57 = arith.subf %33, %56 : vector<16x8xf32>
    %58 = arith.mulf %57, %57 : vector<16x8xf32>
    %cst_29 = arith.constant dense<0.000000e+00> : vector<16xf32>
    %59 = vector.multi_reduction <add>, %58, %cst_29 [1] : vector<16x8xf32> to vector<16xf32>
    %60 = vector.shape_cast %59 : vector<16xf32> to vector<16x1xf32>
    %61 = arith.addf %55, %60 : vector<16x1xf32>
    %cst_30 = arith.constant 3.125000e-02 : f32
    %62 = vector.broadcast %cst_30 : f32 to vector<16x1xf32>
    %63 = arith.mulf %61, %62 : vector<16x1xf32>
    %cst_31 = arith.constant 9.99999974E-6 : f32
    %64 = vector.broadcast %cst_31 : f32 to vector<16x1xf32>
    %65 = arith.addf %63, %64 : vector<16x1xf32>
    %66 = math.rsqrt %65 : vector<16x1xf32>
    %c0_32 = arith.constant 0 : index
    %c0_33 = arith.constant 0 : index
    %67 = vector.load %arg4[%c0_32, %c0_33] : memref<16x1xf32, #tpu.memory_space<vmem>>, vector<16x1xf32>
    %68 = arith.mulf %66, %67 : vector<16x1xf32>
    %69 = vector.broadcast %38 : vector<16x1xf32> to vector<16x8xf32>
    %70 = arith.subf %7, %69 : vector<16x8xf32>
    %71 = vector.broadcast %68 : vector<16x1xf32> to vector<16x8xf32>
    %72 = arith.mulf %70, %71 : vector<16x8xf32>
    %c0_34 = arith.constant 0 : index
    %c0_35 = arith.constant 0 : index
    %73 = vector.load %arg5[%c0_34, %c0_35] : memref<16x1xf32, #tpu.memory_space<vmem>>, vector<16x1xf32>
    %74 = vector.broadcast %73 : vector<16x1xf32> to vector<16x8xf32>
    %75 = arith.addf %72, %74 : vector<16x8xf32>
    %cst_36 = arith.constant 0.000000e+00 : f32
    %76 = vector.broadcast %cst_36 : f32 to vector<16x8xf32>
    %77 = arith.maximumf %75, %76 : vector<16x8xf32>
    %c0_37 = arith.constant 0 : index
    %c0_38 = arith.constant 0 : index
    %c0_39 = arith.constant 0 : index
    %78 = vector.load %arg6[%c0_37, %c0_38, %c0_39] : memref<4x16x8xf32, #tpu.memory_space<vmem>>, vector<1x16x8xf32>
    %79 = vector.shape_cast %78 : vector<1x16x8xf32> to vector<16x8xf32>
    %80 = vector.shape_cast %77 : vector<16x8xf32> to vector<1x16x8xf32>
    tpu.vector_store %arg6[%c0_37, %c0_38, %c0_39], %80 {strides = array<i32>} : memref<4x16x8xf32, #tpu.memory_space<vmem>>, vector<1x16x8xf32>,
    %81 = vector.broadcast %38 : vector<16x1xf32> to vector<16x8xf32>
    %82 = arith.subf %15, %81 : vector<16x8xf32>
    %83 = vector.broadcast %68 : vector<16x1xf32> to vector<16x8xf32>
    %84 = arith.mulf %82, %83 : vector<16x8xf32>
    %c0_40 = arith.constant 0 : index
    %c0_41 = arith.constant 0 : index
    %85 = vector.load %arg5[%c0_40, %c0_41] : memref<16x1xf32, #tpu.memory_space<vmem>>, vector<16x1xf32>
    %86 = vector.broadcast %85 : vector<16x1xf32> to vector<16x8xf32>
    %87 = arith.addf %84, %86 : vector<16x8xf32>
    %cst_42 = arith.constant 0.000000e+00 : f32
    %88 = vector.broadcast %cst_42 : f32 to vector<16x8xf32>
    %89 = arith.maximumf %87, %88 : vector<16x8xf32>
    %c1_43 = arith.constant 1 : index
    %c0_44 = arith.constant 0 : index
    %c0_45 = arith.constant 0 : index
    %90 = vector.load %arg6[%c1_43, %c0_44, %c0_45] : memref<4x16x8xf32, #tpu.memory_space<vmem>>, vector<1x16x8xf32>
    %91 = vector.shape_cast %90 : vector<1x16x8xf32> to vector<16x8xf32>
    %92 = vector.shape_cast %89 : vector<16x8xf32> to vector<1x16x8xf32>
    tpu.vector_store %arg6[%c1_43, %c0_44, %c0_45], %92 {strides = array<i32>} : memref<4x16x8xf32, #tpu.memory_space<vmem>>, vector<1x16x8xf32>,
    %93 = vector.broadcast %38 : vector<16x1xf32> to vector<16x8xf32>
    %94 = arith.subf %24, %93 : vector<16x8xf32>
    %95 = vector.broadcast %68 : vector<16x1xf32> to vector<16x8xf32>
    %96 = arith.mulf %94, %95 : vector<16x8xf32>
    %c0_46 = arith.constant 0 : index
    %c0_47 = arith.constant 0 : index
    %97 = vector.load %arg5[%c0_46, %c0_47] : memref<16x1xf32, #tpu.memory_space<vmem>>, vector<16x1xf32>
    %98 = vector.broadcast %97 : vector<16x1xf32> to vector<16x8xf32>
    %99 = arith.addf %96, %98 : vector<16x8xf32>
    %cst_48 = arith.constant 0.000000e+00 : f32
    %100 = vector.broadcast %cst_48 : f32 to vector<16x8xf32>
    %101 = arith.maximumf %99, %100 : vector<16x8xf32>
    %c2_49 = arith.constant 2 : index
    %c0_50 = arith.constant 0 : index
    %c0_51 = arith.constant 0 : index
    %102 = vector.load %arg6[%c2_49, %c0_50, %c0_51] : memref<4x16x8xf32, #tpu.memory_space<vmem>>, vector<1x16x8xf32>
    %103 = vector.shape_cast %102 : vector<1x16x8xf32> to vector<16x8xf32>
    %104 = vector.shape_cast %101 : vector<16x8xf32> to vector<1x16x8xf32>
    tpu.vector_store %arg6[%c2_49, %c0_50, %c0_51], %104 {strides = array<i32>} : memref<4x16x8xf32, #tpu.memory_space<vmem>>, vector<1x16x8xf32>,
    %105 = vector.broadcast %38 : vector<16x1xf32> to vector<16x8xf32>
    %106 = arith.subf %33, %105 : vector<16x8xf32>
    %107 = vector.broadcast %68 : vector<16x1xf32> to vector<16x8xf32>
    %108 = arith.mulf %106, %107 : vector<16x8xf32>
    %c0_52 = arith.constant 0 : index
    %c0_53 = arith.constant 0 : index
    %109 = vector.load %arg5[%c0_52, %c0_53] : memref<16x1xf32, #tpu.memory_space<vmem>>, vector<16x1xf32>
    %110 = vector.broadcast %109 : vector<16x1xf32> to vector<16x8xf32>
    %111 = arith.addf %108, %110 : vector<16x8xf32>
    %cst_54 = arith.constant 0.000000e+00 : f32
    %112 = vector.broadcast %cst_54 : f32 to vector<16x8xf32>
    %113 = arith.maximumf %111, %112 : vector<16x8xf32>
    %c3_55 = arith.constant 3 : index
    %c0_56 = arith.constant 0 : index
    %c0_57 = arith.constant 0 : index
    %114 = vector.load %arg6[%c3_55, %c0_56, %c0_57] : memref<4x16x8xf32, #tpu.memory_space<vmem>>, vector<1x16x8xf32>
    %115 = vector.shape_cast %114 : vector<1x16x8xf32> to vector<16x8xf32>
    %116 = vector.shape_cast %113 : vector<16x8xf32> to vector<1x16x8xf32>
    tpu.vector_store %arg6[%c3_55, %c0_56, %c0_57], %116 {strides = array<i32>} : memref<4x16x8xf32, #tpu.memory_space<vmem>>, vector<1x16x8xf32>,
    return
  }
  func.func @transform_0(%arg0: i32) -> (i32, i32) {
    %c0_i32 = arith.constant 0 : i32
    %c0_i32_0 = arith.constant 0 : i32
    %c0_i32_1 = arith.constant 0 : i32
    return %c0_i32, %c0_i32_0 : i32, i32
  }
  func.func @transform_1(%arg0: i32) -> (i32, i32, i32) {
    %c0_i32 = arith.constant 0 : i32
    %c0_i32_0 = arith.constant 0 : i32
    %c0_i32_1 = arith.constant 0 : i32
    %c0_i32_2 = arith.constant 0 : i32
    return %c0_i32, %c0_i32_0, %c0_i32_1 : i32, i32, i32
  }
  func.func @transform_2(%arg0: i32) -> (i32, i32) {
    %c0_i32 = arith.constant 0 : i32
    %c0_i32_0 = arith.constant 0 : i32
    %c0_i32_1 = arith.constant 0 : i32
    return %c0_i32, %c0_i32_0 : i32, i32
  }
  func.func @transform_3(%arg0: i32) -> (i32, i32) {
    %c0_i32 = arith.constant 0 : i32
    %c0_i32_0 = arith.constant 0 : i32
    %c0_i32_1 = arith.constant 0 : i32
    return %c0_i32, %c0_i32_0 : i32, i32
  }
  func.func @transform_4(%arg0: i32) -> (i32, i32) {
    %c0_i32 = arith.constant 0 : i32
    %c0_i32_0 = arith.constant 0 : i32
    %c0_i32_1 = arith.constant 0 : i32
    return %c0_i32, %c0_i32_0 : i32, i32
  }
  func.func @transform_5(%arg0: i32) -> (i32, i32, i32) {
    %c0_i32 = arith.constant 0 : i32
    %c0_i32_0 = arith.constant 0 : i32
    %c0_i32_1 = arith.constant 0 : i32
    %c0_i32_2 = arith.constant 0 : i32
    return %c0_i32, %c0_i32_0, %c0_i32_1 : i32, i32, i32
  }
}

module attributes {stable_mosaic.version = 11 : i64} {
  func.func @_conv3x3_bn_relu_kernel(%arg0: i32, %arg1: memref<288x32xbf16, #tpu.memory_space<vmem>>, %arg2: memref<16x288xbf16, #tpu.memory_space<vmem>>, %arg3: memref<16x1xf32, #tpu.memory_space<vmem>>, %arg4: memref<16x1xf32, #tpu.memory_space<vmem>>, %arg5: memref<16x1xf32, #tpu.memory_space<vmem>>, %arg6: memref<16x32xf32, #tpu.memory_space<vmem>>) attributes {dimension_semantics = [#tpu.dimension_semantics<arbitrary>], iteration_bounds = array<i64: 1>, scalar_prefetch = 0 : i64, scratch_operands = 0 : i64, tpu.core_type = #tpu.core_type<tc>, window_params = [{pipeline_mode = #tpu.pipeline_mode<synchronous>, transform_indices = @transform_0, window_bounds = array<i64: 288, 32>}, {pipeline_mode = #tpu.pipeline_mode<synchronous>, transform_indices = @transform_1, window_bounds = array<i64: 16, 288>}, {pipeline_mode = #tpu.pipeline_mode<synchronous>, transform_indices = @transform_2, window_bounds = array<i64: 16, 1>}, {pipeline_mode = #tpu.pipeline_mode<synchronous>, transform_indices = @transform_3, window_bounds = array<i64: 16, 1>}, {pipeline_mode = #tpu.pipeline_mode<synchronous>, transform_indices = @transform_4, window_bounds = array<i64: 16, 1>}, {pipeline_mode = #tpu.pipeline_mode<synchronous>, transform_indices = @transform_5, window_bounds = array<i64: 16, 32>}]} {
    %c0 = arith.constant 0 : index
    %c0_0 = arith.constant 0 : index
    %0 = vector.load %arg2[%c0, %c0_0] : memref<16x288xbf16, #tpu.memory_space<vmem>>, vector<16x288xbf16>
    %c0_1 = arith.constant 0 : index
    %c0_2 = arith.constant 0 : index
    %1 = vector.load %arg1[%c0_1, %c0_2] : memref<288x32xbf16, #tpu.memory_space<vmem>>, vector<288x32xbf16>
    %cst = arith.constant dense<0.000000e+00> : vector<16x32xf32>
    %2 = tpu.matmul %0, %1, %cst {dimension_numbers = #tpu.dot_dimension_numbers<[1], [0], [0], [1], [0, 0, 1, 1], [], []>} : vector<16x288xbf16>, vector<288x32xbf16>, vector<16x32xf32> -> vector<16x32xf32>
    %c0_3 = arith.constant 0 : index
    %c0_4 = arith.constant 0 : index
    %3 = vector.load %arg3[%c0_3, %c0_4] : memref<16x1xf32, #tpu.memory_space<vmem>>, vector<16x1xf32>
    %4 = vector.broadcast %3 : vector<16x1xf32> to vector<16x32xf32>
    %5 = arith.addf %2, %4 : vector<16x32xf32>
    %cst_5 = arith.constant dense<0.000000e+00> : vector<16xf32>
    %6 = vector.multi_reduction <add>, %5, %cst_5 [1] : vector<16x32xf32> to vector<16xf32>
    %7 = vector.shape_cast %6 : vector<16xf32> to vector<16x1xf32>
    %cst_6 = arith.constant 3.125000e-02 : f32
    %8 = vector.broadcast %cst_6 : f32 to vector<16x1xf32>
    %9 = arith.mulf %7, %8 : vector<16x1xf32>
    %10 = vector.broadcast %9 : vector<16x1xf32> to vector<16x32xf32>
    %11 = arith.subf %5, %10 : vector<16x32xf32>
    %12 = arith.mulf %11, %11 : vector<16x32xf32>
    %cst_7 = arith.constant dense<0.000000e+00> : vector<16xf32>
    %13 = vector.multi_reduction <add>, %12, %cst_7 [1] : vector<16x32xf32> to vector<16xf32>
    %14 = vector.shape_cast %13 : vector<16xf32> to vector<16x1xf32>
    %cst_8 = arith.constant 3.125000e-02 : f32
    %15 = vector.broadcast %cst_8 : f32 to vector<16x1xf32>
    %16 = arith.mulf %14, %15 : vector<16x1xf32>
    %cst_9 = arith.constant 9.99999974E-6 : f32
    %17 = vector.broadcast %cst_9 : f32 to vector<16x1xf32>
    %18 = arith.addf %16, %17 : vector<16x1xf32>
    %19 = math.rsqrt %18 : vector<16x1xf32>
    %20 = vector.broadcast %19 : vector<16x1xf32> to vector<16x32xf32>
    %21 = arith.mulf %11, %20 : vector<16x32xf32>
    %c0_10 = arith.constant 0 : index
    %c0_11 = arith.constant 0 : index
    %22 = vector.load %arg4[%c0_10, %c0_11] : memref<16x1xf32, #tpu.memory_space<vmem>>, vector<16x1xf32>
    %23 = vector.broadcast %22 : vector<16x1xf32> to vector<16x32xf32>
    %24 = arith.mulf %21, %23 : vector<16x32xf32>
    %c0_12 = arith.constant 0 : index
    %c0_13 = arith.constant 0 : index
    %25 = vector.load %arg5[%c0_12, %c0_13] : memref<16x1xf32, #tpu.memory_space<vmem>>, vector<16x1xf32>
    %26 = vector.broadcast %25 : vector<16x1xf32> to vector<16x32xf32>
    %27 = arith.addf %24, %26 : vector<16x32xf32>
    %cst_14 = arith.constant 0.000000e+00 : f32
    %28 = vector.broadcast %cst_14 : f32 to vector<16x32xf32>
    %29 = arith.maximumf %27, %28 : vector<16x32xf32>
    %c0_15 = arith.constant 0 : index
    %c0_16 = arith.constant 0 : index
    %30 = vector.load %arg6[%c0_15, %c0_16] : memref<16x32xf32, #tpu.memory_space<vmem>>, vector<16x32xf32>
    tpu.vector_store %arg6[%c0_15, %c0_16], %29 {strides = array<i32>} : memref<16x32xf32, #tpu.memory_space<vmem>>, vector<16x32xf32>,
    return
  }
  func.func @transform_0(%arg0: i32) -> (i32, i32) {
    %c0_i32 = arith.constant 0 : i32
    %c0_i32_0 = arith.constant 0 : i32
    %c0_i32_1 = arith.constant 0 : i32
    return %c0_i32, %c0_i32_0 : i32, i32
  }
  func.func @transform_1(%arg0: i32) -> (i32, i32) {
    %c0_i32 = arith.constant 0 : i32
    %c0_i32_0 = arith.constant 0 : i32
    %c0_i32_1 = arith.constant 0 : i32
    return %c0_i32, %c0_i32_0 : i32, i32
  }
  func.func @transform_2(%arg0: i32) -> (i32, i32) {
    %c0_i32 = arith.constant 0 : i32
    %c0_i32_0 = arith.constant 0 : i32
    %c0_i32_1 = arith.constant 0 : i32
    return %c0_i32, %c0_i32_0 : i32, i32
  }
  func.func @transform_3(%arg0: i32) -> (i32, i32) {
    %c0_i32 = arith.constant 0 : i32
    %c0_i32_0 = arith.constant 0 : i32
    %c0_i32_1 = arith.constant 0 : i32
    return %c0_i32, %c0_i32_0 : i32, i32
  }
  func.func @transform_4(%arg0: i32) -> (i32, i32) {
    %c0_i32 = arith.constant 0 : i32
    %c0_i32_0 = arith.constant 0 : i32
    %c0_i32_1 = arith.constant 0 : i32
    return %c0_i32, %c0_i32_0 : i32, i32
  }
  func.func @transform_5(%arg0: i32) -> (i32, i32) {
    %c0_i32 = arith.constant 0 : i32
    %c0_i32_0 = arith.constant 0 : i32
    %c0_i32_1 = arith.constant 0 : i32
    return %c0_i32, %c0_i32_0 : i32, i32
  }
}

module attributes {stable_mosaic.version = 11 : i64} {
  func.func @_deconv2x2_bn_relu_kernel(%arg0: i32, %arg1: memref<16x32xf32, #tpu.memory_space<vmem>>, %arg2: memref<4x8x16xbf16, #tpu.memory_space<vmem>>, %arg3: memref<8x1xf32, #tpu.memory_space<vmem>>, %arg4: memref<8x1xf32, #tpu.memory_space<vmem>>, %arg5: memref<8x1xf32, #tpu.memory_space<vmem>>, %arg6: memref<4x8x32xf32, #tpu.memory_space<vmem>>) attributes {dimension_semantics = [#tpu.dimension_semantics<arbitrary>], iteration_bounds = array<i64: 1>, scalar_prefetch = 0 : i64, scratch_operands = 0 : i64, tpu.core_type = #tpu.core_type<tc>, window_params = [{pipeline_mode = #tpu.pipeline_mode<synchronous>, transform_indices = @transform_0, window_bounds = array<i64: 16, 32>}, {pipeline_mode = #tpu.pipeline_mode<synchronous>, transform_indices = @transform_1, window_bounds = array<i64: 4, 8, 16>}, {pipeline_mode = #tpu.pipeline_mode<synchronous>, transform_indices = @transform_2, window_bounds = array<i64: 8, 1>}, {pipeline_mode = #tpu.pipeline_mode<synchronous>, transform_indices = @transform_3, window_bounds = array<i64: 8, 1>}, {pipeline_mode = #tpu.pipeline_mode<synchronous>, transform_indices = @transform_4, window_bounds = array<i64: 8, 1>}, {pipeline_mode = #tpu.pipeline_mode<synchronous>, transform_indices = @transform_5, window_bounds = array<i64: 4, 8, 32>}]} {
    %c0 = arith.constant 0 : index
    %c0_0 = arith.constant 0 : index
    %0 = vector.load %arg1[%c0, %c0_0] : memref<16x32xf32, #tpu.memory_space<vmem>>, vector<16x32xf32>
    %1 = arith.truncf %0 : vector<16x32xf32> to vector<16x32xbf16>
    %c0_1 = arith.constant 0 : index
    %c0_2 = arith.constant 0 : index
    %c0_3 = arith.constant 0 : index
    %2 = vector.load %arg2[%c0_1, %c0_2, %c0_3] : memref<4x8x16xbf16, #tpu.memory_space<vmem>>, vector<1x8x16xbf16>
    %3 = vector.shape_cast %2 : vector<1x8x16xbf16> to vector<8x16xbf16>
    %cst = arith.constant dense<0.000000e+00> : vector<8x32xf32>
    %4 = tpu.matmul %3, %1, %cst {dimension_numbers = #tpu.dot_dimension_numbers<[1], [0], [0], [1], [0, 0, 1, 1], [], []>} : vector<8x16xbf16>, vector<16x32xbf16>, vector<8x32xf32> -> vector<8x32xf32>
    %c0_4 = arith.constant 0 : index
    %c0_5 = arith.constant 0 : index
    %5 = vector.load %arg3[%c0_4, %c0_5] : memref<8x1xf32, #tpu.memory_space<vmem>>, vector<8x1xf32>
    %6 = vector.broadcast %5 : vector<8x1xf32> to vector<8x32xf32>
    %7 = arith.addf %4, %6 : vector<8x32xf32>
    %cst_6 = arith.constant dense<0.000000e+00> : vector<8xf32>
    %8 = vector.multi_reduction <add>, %7, %cst_6 [1] : vector<8x32xf32> to vector<8xf32>
    %9 = vector.shape_cast %8 : vector<8xf32> to vector<8x1xf32>
    %c1 = arith.constant 1 : index
    %c0_7 = arith.constant 0 : index
    %c0_8 = arith.constant 0 : index
    %10 = vector.load %arg2[%c1, %c0_7, %c0_8] : memref<4x8x16xbf16, #tpu.memory_space<vmem>>, vector<1x8x16xbf16>
    %11 = vector.shape_cast %10 : vector<1x8x16xbf16> to vector<8x16xbf16>
    %cst_9 = arith.constant dense<0.000000e+00> : vector<8x32xf32>
    %12 = tpu.matmul %11, %1, %cst_9 {dimension_numbers = #tpu.dot_dimension_numbers<[1], [0], [0], [1], [0, 0, 1, 1], [], []>} : vector<8x16xbf16>, vector<16x32xbf16>, vector<8x32xf32> -> vector<8x32xf32>
    %c0_10 = arith.constant 0 : index
    %c0_11 = arith.constant 0 : index
    %13 = vector.load %arg3[%c0_10, %c0_11] : memref<8x1xf32, #tpu.memory_space<vmem>>, vector<8x1xf32>
    %14 = vector.broadcast %13 : vector<8x1xf32> to vector<8x32xf32>
    %15 = arith.addf %12, %14 : vector<8x32xf32>
    %cst_12 = arith.constant dense<0.000000e+00> : vector<8xf32>
    %16 = vector.multi_reduction <add>, %15, %cst_12 [1] : vector<8x32xf32> to vector<8xf32>
    %17 = vector.shape_cast %16 : vector<8xf32> to vector<8x1xf32>
    %18 = arith.addf %9, %17 : vector<8x1xf32>
    %c2 = arith.constant 2 : index
    %c0_13 = arith.constant 0 : index
    %c0_14 = arith.constant 0 : index
    %19 = vector.load %arg2[%c2, %c0_13, %c0_14] : memref<4x8x16xbf16, #tpu.memory_space<vmem>>, vector<1x8x16xbf16>
    %20 = vector.shape_cast %19 : vector<1x8x16xbf16> to vector<8x16xbf16>
    %cst_15 = arith.constant dense<0.000000e+00> : vector<8x32xf32>
    %21 = tpu.matmul %20, %1, %cst_15 {dimension_numbers = #tpu.dot_dimension_numbers<[1], [0], [0], [1], [0, 0, 1, 1], [], []>} : vector<8x16xbf16>, vector<16x32xbf16>, vector<8x32xf32> -> vector<8x32xf32>
    %c0_16 = arith.constant 0 : index
    %c0_17 = arith.constant 0 : index
    %22 = vector.load %arg3[%c0_16, %c0_17] : memref<8x1xf32, #tpu.memory_space<vmem>>, vector<8x1xf32>
    %23 = vector.broadcast %22 : vector<8x1xf32> to vector<8x32xf32>
    %24 = arith.addf %21, %23 : vector<8x32xf32>
    %cst_18 = arith.constant dense<0.000000e+00> : vector<8xf32>
    %25 = vector.multi_reduction <add>, %24, %cst_18 [1] : vector<8x32xf32> to vector<8xf32>
    %26 = vector.shape_cast %25 : vector<8xf32> to vector<8x1xf32>
    %27 = arith.addf %18, %26 : vector<8x1xf32>
    %c3 = arith.constant 3 : index
    %c0_19 = arith.constant 0 : index
    %c0_20 = arith.constant 0 : index
    %28 = vector.load %arg2[%c3, %c0_19, %c0_20] : memref<4x8x16xbf16, #tpu.memory_space<vmem>>, vector<1x8x16xbf16>
    %29 = vector.shape_cast %28 : vector<1x8x16xbf16> to vector<8x16xbf16>
    %cst_21 = arith.constant dense<0.000000e+00> : vector<8x32xf32>
    %30 = tpu.matmul %29, %1, %cst_21 {dimension_numbers = #tpu.dot_dimension_numbers<[1], [0], [0], [1], [0, 0, 1, 1], [], []>} : vector<8x16xbf16>, vector<16x32xbf16>, vector<8x32xf32> -> vector<8x32xf32>
    %c0_22 = arith.constant 0 : index
    %c0_23 = arith.constant 0 : index
    %31 = vector.load %arg3[%c0_22, %c0_23] : memref<8x1xf32, #tpu.memory_space<vmem>>, vector<8x1xf32>
    %32 = vector.broadcast %31 : vector<8x1xf32> to vector<8x32xf32>
    %33 = arith.addf %30, %32 : vector<8x32xf32>
    %cst_24 = arith.constant dense<0.000000e+00> : vector<8xf32>
    %34 = vector.multi_reduction <add>, %33, %cst_24 [1] : vector<8x32xf32> to vector<8xf32>
    %35 = vector.shape_cast %34 : vector<8xf32> to vector<8x1xf32>
    %36 = arith.addf %27, %35 : vector<8x1xf32>
    %cst_25 = arith.constant 7.812500e-03 : f32
    %37 = vector.broadcast %cst_25 : f32 to vector<8x1xf32>
    %38 = arith.mulf %36, %37 : vector<8x1xf32>
    %39 = vector.broadcast %38 : vector<8x1xf32> to vector<8x32xf32>
    %40 = arith.subf %7, %39 : vector<8x32xf32>
    %41 = arith.mulf %40, %40 : vector<8x32xf32>
    %cst_26 = arith.constant dense<0.000000e+00> : vector<8xf32>
    %42 = vector.multi_reduction <add>, %41, %cst_26 [1] : vector<8x32xf32> to vector<8xf32>
    %43 = vector.shape_cast %42 : vector<8xf32> to vector<8x1xf32>
    %44 = vector.broadcast %38 : vector<8x1xf32> to vector<8x32xf32>
    %45 = arith.subf %15, %44 : vector<8x32xf32>
    %46 = arith.mulf %45, %45 : vector<8x32xf32>
    %cst_27 = arith.constant dense<0.000000e+00> : vector<8xf32>
    %47 = vector.multi_reduction <add>, %46, %cst_27 [1] : vector<8x32xf32> to vector<8xf32>
    %48 = vector.shape_cast %47 : vector<8xf32> to vector<8x1xf32>
    %49 = arith.addf %43, %48 : vector<8x1xf32>
    %50 = vector.broadcast %38 : vector<8x1xf32> to vector<8x32xf32>
    %51 = arith.subf %24, %50 : vector<8x32xf32>
    %52 = arith.mulf %51, %51 : vector<8x32xf32>
    %cst_28 = arith.constant dense<0.000000e+00> : vector<8xf32>
    %53 = vector.multi_reduction <add>, %52, %cst_28 [1] : vector<8x32xf32> to vector<8xf32>
    %54 = vector.shape_cast %53 : vector<8xf32> to vector<8x1xf32>
    %55 = arith.addf %49, %54 : vector<8x1xf32>
    %56 = vector.broadcast %38 : vector<8x1xf32> to vector<8x32xf32>
    %57 = arith.subf %33, %56 : vector<8x32xf32>
    %58 = arith.mulf %57, %57 : vector<8x32xf32>
    %cst_29 = arith.constant dense<0.000000e+00> : vector<8xf32>
    %59 = vector.multi_reduction <add>, %58, %cst_29 [1] : vector<8x32xf32> to vector<8xf32>
    %60 = vector.shape_cast %59 : vector<8xf32> to vector<8x1xf32>
    %61 = arith.addf %55, %60 : vector<8x1xf32>
    %cst_30 = arith.constant 7.812500e-03 : f32
    %62 = vector.broadcast %cst_30 : f32 to vector<8x1xf32>
    %63 = arith.mulf %61, %62 : vector<8x1xf32>
    %cst_31 = arith.constant 9.99999974E-6 : f32
    %64 = vector.broadcast %cst_31 : f32 to vector<8x1xf32>
    %65 = arith.addf %63, %64 : vector<8x1xf32>
    %66 = math.rsqrt %65 : vector<8x1xf32>
    %c0_32 = arith.constant 0 : index
    %c0_33 = arith.constant 0 : index
    %67 = vector.load %arg4[%c0_32, %c0_33] : memref<8x1xf32, #tpu.memory_space<vmem>>, vector<8x1xf32>
    %68 = arith.mulf %66, %67 : vector<8x1xf32>
    %69 = vector.broadcast %38 : vector<8x1xf32> to vector<8x32xf32>
    %70 = arith.subf %7, %69 : vector<8x32xf32>
    %71 = vector.broadcast %68 : vector<8x1xf32> to vector<8x32xf32>
    %72 = arith.mulf %70, %71 : vector<8x32xf32>
    %c0_34 = arith.constant 0 : index
    %c0_35 = arith.constant 0 : index
    %73 = vector.load %arg5[%c0_34, %c0_35] : memref<8x1xf32, #tpu.memory_space<vmem>>, vector<8x1xf32>
    %74 = vector.broadcast %73 : vector<8x1xf32> to vector<8x32xf32>
    %75 = arith.addf %72, %74 : vector<8x32xf32>
    %cst_36 = arith.constant 0.000000e+00 : f32
    %76 = vector.broadcast %cst_36 : f32 to vector<8x32xf32>
    %77 = arith.maximumf %75, %76 : vector<8x32xf32>
    %c0_37 = arith.constant 0 : index
    %c0_38 = arith.constant 0 : index
    %c0_39 = arith.constant 0 : index
    %78 = vector.load %arg6[%c0_37, %c0_38, %c0_39] : memref<4x8x32xf32, #tpu.memory_space<vmem>>, vector<1x8x32xf32>
    %79 = vector.shape_cast %78 : vector<1x8x32xf32> to vector<8x32xf32>
    %80 = vector.shape_cast %77 : vector<8x32xf32> to vector<1x8x32xf32>
    tpu.vector_store %arg6[%c0_37, %c0_38, %c0_39], %80 {strides = array<i32>} : memref<4x8x32xf32, #tpu.memory_space<vmem>>, vector<1x8x32xf32>,
    %81 = vector.broadcast %38 : vector<8x1xf32> to vector<8x32xf32>
    %82 = arith.subf %15, %81 : vector<8x32xf32>
    %83 = vector.broadcast %68 : vector<8x1xf32> to vector<8x32xf32>
    %84 = arith.mulf %82, %83 : vector<8x32xf32>
    %c0_40 = arith.constant 0 : index
    %c0_41 = arith.constant 0 : index
    %85 = vector.load %arg5[%c0_40, %c0_41] : memref<8x1xf32, #tpu.memory_space<vmem>>, vector<8x1xf32>
    %86 = vector.broadcast %85 : vector<8x1xf32> to vector<8x32xf32>
    %87 = arith.addf %84, %86 : vector<8x32xf32>
    %cst_42 = arith.constant 0.000000e+00 : f32
    %88 = vector.broadcast %cst_42 : f32 to vector<8x32xf32>
    %89 = arith.maximumf %87, %88 : vector<8x32xf32>
    %c1_43 = arith.constant 1 : index
    %c0_44 = arith.constant 0 : index
    %c0_45 = arith.constant 0 : index
    %90 = vector.load %arg6[%c1_43, %c0_44, %c0_45] : memref<4x8x32xf32, #tpu.memory_space<vmem>>, vector<1x8x32xf32>
    %91 = vector.shape_cast %90 : vector<1x8x32xf32> to vector<8x32xf32>
    %92 = vector.shape_cast %89 : vector<8x32xf32> to vector<1x8x32xf32>
    tpu.vector_store %arg6[%c1_43, %c0_44, %c0_45], %92 {strides = array<i32>} : memref<4x8x32xf32, #tpu.memory_space<vmem>>, vector<1x8x32xf32>,
    %93 = vector.broadcast %38 : vector<8x1xf32> to vector<8x32xf32>
    %94 = arith.subf %24, %93 : vector<8x32xf32>
    %95 = vector.broadcast %68 : vector<8x1xf32> to vector<8x32xf32>
    %96 = arith.mulf %94, %95 : vector<8x32xf32>
    %c0_46 = arith.constant 0 : index
    %c0_47 = arith.constant 0 : index
    %97 = vector.load %arg5[%c0_46, %c0_47] : memref<8x1xf32, #tpu.memory_space<vmem>>, vector<8x1xf32>
    %98 = vector.broadcast %97 : vector<8x1xf32> to vector<8x32xf32>
    %99 = arith.addf %96, %98 : vector<8x32xf32>
    %cst_48 = arith.constant 0.000000e+00 : f32
    %100 = vector.broadcast %cst_48 : f32 to vector<8x32xf32>
    %101 = arith.maximumf %99, %100 : vector<8x32xf32>
    %c2_49 = arith.constant 2 : index
    %c0_50 = arith.constant 0 : index
    %c0_51 = arith.constant 0 : index
    %102 = vector.load %arg6[%c2_49, %c0_50, %c0_51] : memref<4x8x32xf32, #tpu.memory_space<vmem>>, vector<1x8x32xf32>
    %103 = vector.shape_cast %102 : vector<1x8x32xf32> to vector<8x32xf32>
    %104 = vector.shape_cast %101 : vector<8x32xf32> to vector<1x8x32xf32>
    tpu.vector_store %arg6[%c2_49, %c0_50, %c0_51], %104 {strides = array<i32>} : memref<4x8x32xf32, #tpu.memory_space<vmem>>, vector<1x8x32xf32>,
    %105 = vector.broadcast %38 : vector<8x1xf32> to vector<8x32xf32>
    %106 = arith.subf %33, %105 : vector<8x32xf32>
    %107 = vector.broadcast %68 : vector<8x1xf32> to vector<8x32xf32>
    %108 = arith.mulf %106, %107 : vector<8x32xf32>
    %c0_52 = arith.constant 0 : index
    %c0_53 = arith.constant 0 : index
    %109 = vector.load %arg5[%c0_52, %c0_53] : memref<8x1xf32, #tpu.memory_space<vmem>>, vector<8x1xf32>
    %110 = vector.broadcast %109 : vector<8x1xf32> to vector<8x32xf32>
    %111 = arith.addf %108, %110 : vector<8x32xf32>
    %cst_54 = arith.constant 0.000000e+00 : f32
    %112 = vector.broadcast %cst_54 : f32 to vector<8x32xf32>
    %113 = arith.maximumf %111, %112 : vector<8x32xf32>
    %c3_55 = arith.constant 3 : index
    %c0_56 = arith.constant 0 : index
    %c0_57 = arith.constant 0 : index
    %114 = vector.load %arg6[%c3_55, %c0_56, %c0_57] : memref<4x8x32xf32, #tpu.memory_space<vmem>>, vector<1x8x32xf32>
    %115 = vector.shape_cast %114 : vector<1x8x32xf32> to vector<8x32xf32>
    %116 = vector.shape_cast %113 : vector<8x32xf32> to vector<1x8x32xf32>
    tpu.vector_store %arg6[%c3_55, %c0_56, %c0_57], %116 {strides = array<i32>} : memref<4x8x32xf32, #tpu.memory_space<vmem>>, vector<1x8x32xf32>,
    return
  }
  func.func @transform_0(%arg0: i32) -> (i32, i32) {
    %c0_i32 = arith.constant 0 : i32
    %c0_i32_0 = arith.constant 0 : i32
    %c0_i32_1 = arith.constant 0 : i32
    return %c0_i32, %c0_i32_0 : i32, i32
  }
  func.func @transform_1(%arg0: i32) -> (i32, i32, i32) {
    %c0_i32 = arith.constant 0 : i32
    %c0_i32_0 = arith.constant 0 : i32
    %c0_i32_1 = arith.constant 0 : i32
    %c0_i32_2 = arith.constant 0 : i32
    return %c0_i32, %c0_i32_0, %c0_i32_1 : i32, i32, i32
  }
  func.func @transform_2(%arg0: i32) -> (i32, i32) {
    %c0_i32 = arith.constant 0 : i32
    %c0_i32_0 = arith.constant 0 : i32
    %c0_i32_1 = arith.constant 0 : i32
    return %c0_i32, %c0_i32_0 : i32, i32
  }
  func.func @transform_3(%arg0: i32) -> (i32, i32) {
    %c0_i32 = arith.constant 0 : i32
    %c0_i32_0 = arith.constant 0 : i32
    %c0_i32_1 = arith.constant 0 : i32
    return %c0_i32, %c0_i32_0 : i32, i32
  }
  func.func @transform_4(%arg0: i32) -> (i32, i32) {
    %c0_i32 = arith.constant 0 : i32
    %c0_i32_0 = arith.constant 0 : i32
    %c0_i32_1 = arith.constant 0 : i32
    return %c0_i32, %c0_i32_0 : i32, i32
  }
  func.func @transform_5(%arg0: i32) -> (i32, i32, i32) {
    %c0_i32 = arith.constant 0 : i32
    %c0_i32_0 = arith.constant 0 : i32
    %c0_i32_1 = arith.constant 0 : i32
    %c0_i32_2 = arith.constant 0 : i32
    return %c0_i32, %c0_i32_0, %c0_i32_1 : i32, i32, i32
  }
}

module attributes {stable_mosaic.version = 11 : i64} {
  func.func @_conv3x3_bn_relu_kernel(%arg0: i32, %arg1: memref<144x128xbf16, #tpu.memory_space<vmem>>, %arg2: memref<8x144xbf16, #tpu.memory_space<vmem>>, %arg3: memref<8x1xf32, #tpu.memory_space<vmem>>, %arg4: memref<8x1xf32, #tpu.memory_space<vmem>>, %arg5: memref<8x1xf32, #tpu.memory_space<vmem>>, %arg6: memref<8x128xf32, #tpu.memory_space<vmem>>) attributes {dimension_semantics = [#tpu.dimension_semantics<arbitrary>], iteration_bounds = array<i64: 1>, scalar_prefetch = 0 : i64, scratch_operands = 0 : i64, tpu.core_type = #tpu.core_type<tc>, window_params = [{pipeline_mode = #tpu.pipeline_mode<synchronous>, transform_indices = @transform_0, window_bounds = array<i64: 144, 128>}, {pipeline_mode = #tpu.pipeline_mode<synchronous>, transform_indices = @transform_1, window_bounds = array<i64: 8, 144>}, {pipeline_mode = #tpu.pipeline_mode<synchronous>, transform_indices = @transform_2, window_bounds = array<i64: 8, 1>}, {pipeline_mode = #tpu.pipeline_mode<synchronous>, transform_indices = @transform_3, window_bounds = array<i64: 8, 1>}, {pipeline_mode = #tpu.pipeline_mode<synchronous>, transform_indices = @transform_4, window_bounds = array<i64: 8, 1>}, {pipeline_mode = #tpu.pipeline_mode<synchronous>, transform_indices = @transform_5, window_bounds = array<i64: 8, 128>}]} {
    %c0 = arith.constant 0 : index
    %c0_0 = arith.constant 0 : index
    %0 = vector.load %arg2[%c0, %c0_0] : memref<8x144xbf16, #tpu.memory_space<vmem>>, vector<8x144xbf16>
    %c0_1 = arith.constant 0 : index
    %c0_2 = arith.constant 0 : index
    %1 = vector.load %arg1[%c0_1, %c0_2] : memref<144x128xbf16, #tpu.memory_space<vmem>>, vector<144x128xbf16>
    %cst = arith.constant dense<0.000000e+00> : vector<8x128xf32>
    %2 = tpu.matmul %0, %1, %cst {dimension_numbers = #tpu.dot_dimension_numbers<[1], [0], [0], [1], [0, 0, 1, 1], [], []>} : vector<8x144xbf16>, vector<144x128xbf16>, vector<8x128xf32> -> vector<8x128xf32>
    %c0_3 = arith.constant 0 : index
    %c0_4 = arith.constant 0 : index
    %3 = vector.load %arg3[%c0_3, %c0_4] : memref<8x1xf32, #tpu.memory_space<vmem>>, vector<8x1xf32>
    %4 = vector.broadcast %3 : vector<8x1xf32> to vector<8x128xf32>
    %5 = arith.addf %2, %4 : vector<8x128xf32>
    %cst_5 = arith.constant dense<0.000000e+00> : vector<8xf32>
    %6 = vector.multi_reduction <add>, %5, %cst_5 [1] : vector<8x128xf32> to vector<8xf32>
    %7 = vector.shape_cast %6 : vector<8xf32> to vector<8x1xf32>
    %cst_6 = arith.constant 7.812500e-03 : f32
    %8 = vector.broadcast %cst_6 : f32 to vector<8x1xf32>
    %9 = arith.mulf %7, %8 : vector<8x1xf32>
    %10 = vector.broadcast %9 : vector<8x1xf32> to vector<8x128xf32>
    %11 = arith.subf %5, %10 : vector<8x128xf32>
    %12 = arith.mulf %11, %11 : vector<8x128xf32>
    %cst_7 = arith.constant dense<0.000000e+00> : vector<8xf32>
    %13 = vector.multi_reduction <add>, %12, %cst_7 [1] : vector<8x128xf32> to vector<8xf32>
    %14 = vector.shape_cast %13 : vector<8xf32> to vector<8x1xf32>
    %cst_8 = arith.constant 7.812500e-03 : f32
    %15 = vector.broadcast %cst_8 : f32 to vector<8x1xf32>
    %16 = arith.mulf %14, %15 : vector<8x1xf32>
    %cst_9 = arith.constant 9.99999974E-6 : f32
    %17 = vector.broadcast %cst_9 : f32 to vector<8x1xf32>
    %18 = arith.addf %16, %17 : vector<8x1xf32>
    %19 = math.rsqrt %18 : vector<8x1xf32>
    %20 = vector.broadcast %19 : vector<8x1xf32> to vector<8x128xf32>
    %21 = arith.mulf %11, %20 : vector<8x128xf32>
    %c0_10 = arith.constant 0 : index
    %c0_11 = arith.constant 0 : index
    %22 = vector.load %arg4[%c0_10, %c0_11] : memref<8x1xf32, #tpu.memory_space<vmem>>, vector<8x1xf32>
    %23 = vector.broadcast %22 : vector<8x1xf32> to vector<8x128xf32>
    %24 = arith.mulf %21, %23 : vector<8x128xf32>
    %c0_12 = arith.constant 0 : index
    %c0_13 = arith.constant 0 : index
    %25 = vector.load %arg5[%c0_12, %c0_13] : memref<8x1xf32, #tpu.memory_space<vmem>>, vector<8x1xf32>
    %26 = vector.broadcast %25 : vector<8x1xf32> to vector<8x128xf32>
    %27 = arith.addf %24, %26 : vector<8x128xf32>
    %cst_14 = arith.constant 0.000000e+00 : f32
    %28 = vector.broadcast %cst_14 : f32 to vector<8x128xf32>
    %29 = arith.maximumf %27, %28 : vector<8x128xf32>
    %c0_15 = arith.constant 0 : index
    %c0_16 = arith.constant 0 : index
    %30 = vector.load %arg6[%c0_15, %c0_16] : memref<8x128xf32, #tpu.memory_space<vmem>>, vector<8x128xf32>
    tpu.vector_store %arg6[%c0_15, %c0_16], %29 {strides = array<i32>} : memref<8x128xf32, #tpu.memory_space<vmem>>, vector<8x128xf32>,
    return
  }
  func.func @transform_0(%arg0: i32) -> (i32, i32) {
    %c0_i32 = arith.constant 0 : i32
    %c0_i32_0 = arith.constant 0 : i32
    %c0_i32_1 = arith.constant 0 : i32
    return %c0_i32, %c0_i32_0 : i32, i32
  }
  func.func @transform_1(%arg0: i32) -> (i32, i32) {
    %c0_i32 = arith.constant 0 : i32
    %c0_i32_0 = arith.constant 0 : i32
    %c0_i32_1 = arith.constant 0 : i32
    return %c0_i32, %c0_i32_0 : i32, i32
  }
  func.func @transform_2(%arg0: i32) -> (i32, i32) {
    %c0_i32 = arith.constant 0 : i32
    %c0_i32_0 = arith.constant 0 : i32
    %c0_i32_1 = arith.constant 0 : i32
    return %c0_i32, %c0_i32_0 : i32, i32
  }
  func.func @transform_3(%arg0: i32) -> (i32, i32) {
    %c0_i32 = arith.constant 0 : i32
    %c0_i32_0 = arith.constant 0 : i32
    %c0_i32_1 = arith.constant 0 : i32
    return %c0_i32, %c0_i32_0 : i32, i32
  }
  func.func @transform_4(%arg0: i32) -> (i32, i32) {
    %c0_i32 = arith.constant 0 : i32
    %c0_i32_0 = arith.constant 0 : i32
    %c0_i32_1 = arith.constant 0 : i32
    return %c0_i32, %c0_i32_0 : i32, i32
  }
  func.func @transform_5(%arg0: i32) -> (i32, i32) {
    %c0_i32 = arith.constant 0 : i32
    %c0_i32_0 = arith.constant 0 : i32
    %c0_i32_1 = arith.constant 0 : i32
    return %c0_i32, %c0_i32_0 : i32, i32
  }
}

module attributes {stable_mosaic.version = 11 : i64} {
  func.func @_deconv2x2_bn_relu_kernel(%arg0: i32, %arg1: memref<8x128xf32, #tpu.memory_space<vmem>>, %arg2: memref<4x4x8xbf16, #tpu.memory_space<vmem>>, %arg3: memref<4x1xf32, #tpu.memory_space<vmem>>, %arg4: memref<4x1xf32, #tpu.memory_space<vmem>>, %arg5: memref<4x1xf32, #tpu.memory_space<vmem>>, %arg6: memref<4x4x128xf32, #tpu.memory_space<vmem>>) attributes {dimension_semantics = [#tpu.dimension_semantics<arbitrary>], iteration_bounds = array<i64: 1>, scalar_prefetch = 0 : i64, scratch_operands = 0 : i64, tpu.core_type = #tpu.core_type<tc>, window_params = [{pipeline_mode = #tpu.pipeline_mode<synchronous>, transform_indices = @transform_0, window_bounds = array<i64: 8, 128>}, {pipeline_mode = #tpu.pipeline_mode<synchronous>, transform_indices = @transform_1, window_bounds = array<i64: 4, 4, 8>}, {pipeline_mode = #tpu.pipeline_mode<synchronous>, transform_indices = @transform_2, window_bounds = array<i64: 4, 1>}, {pipeline_mode = #tpu.pipeline_mode<synchronous>, transform_indices = @transform_3, window_bounds = array<i64: 4, 1>}, {pipeline_mode = #tpu.pipeline_mode<synchronous>, transform_indices = @transform_4, window_bounds = array<i64: 4, 1>}, {pipeline_mode = #tpu.pipeline_mode<synchronous>, transform_indices = @transform_5, window_bounds = array<i64: 4, 4, 128>}]} {
    %c0 = arith.constant 0 : index
    %c0_0 = arith.constant 0 : index
    %0 = vector.load %arg1[%c0, %c0_0] : memref<8x128xf32, #tpu.memory_space<vmem>>, vector<8x128xf32>
    %1 = arith.truncf %0 : vector<8x128xf32> to vector<8x128xbf16>
    %c0_1 = arith.constant 0 : index
    %c0_2 = arith.constant 0 : index
    %c0_3 = arith.constant 0 : index
    %2 = vector.load %arg2[%c0_1, %c0_2, %c0_3] : memref<4x4x8xbf16, #tpu.memory_space<vmem>>, vector<1x4x8xbf16>
    %3 = vector.shape_cast %2 : vector<1x4x8xbf16> to vector<4x8xbf16>
    %cst = arith.constant dense<0.000000e+00> : vector<4x128xf32>
    %4 = tpu.matmul %3, %1, %cst {dimension_numbers = #tpu.dot_dimension_numbers<[1], [0], [0], [1], [0, 0, 1, 1], [], []>} : vector<4x8xbf16>, vector<8x128xbf16>, vector<4x128xf32> -> vector<4x128xf32>
    %c0_4 = arith.constant 0 : index
    %c0_5 = arith.constant 0 : index
    %5 = vector.load %arg3[%c0_4, %c0_5] : memref<4x1xf32, #tpu.memory_space<vmem>>, vector<4x1xf32>
    %6 = vector.broadcast %5 : vector<4x1xf32> to vector<4x128xf32>
    %7 = arith.addf %4, %6 : vector<4x128xf32>
    %cst_6 = arith.constant dense<0.000000e+00> : vector<4xf32>
    %8 = vector.multi_reduction <add>, %7, %cst_6 [1] : vector<4x128xf32> to vector<4xf32>
    %9 = vector.shape_cast %8 : vector<4xf32> to vector<4x1xf32>
    %c1 = arith.constant 1 : index
    %c0_7 = arith.constant 0 : index
    %c0_8 = arith.constant 0 : index
    %10 = vector.load %arg2[%c1, %c0_7, %c0_8] : memref<4x4x8xbf16, #tpu.memory_space<vmem>>, vector<1x4x8xbf16>
    %11 = vector.shape_cast %10 : vector<1x4x8xbf16> to vector<4x8xbf16>
    %cst_9 = arith.constant dense<0.000000e+00> : vector<4x128xf32>
    %12 = tpu.matmul %11, %1, %cst_9 {dimension_numbers = #tpu.dot_dimension_numbers<[1], [0], [0], [1], [0, 0, 1, 1], [], []>} : vector<4x8xbf16>, vector<8x128xbf16>, vector<4x128xf32> -> vector<4x128xf32>
    %c0_10 = arith.constant 0 : index
    %c0_11 = arith.constant 0 : index
    %13 = vector.load %arg3[%c0_10, %c0_11] : memref<4x1xf32, #tpu.memory_space<vmem>>, vector<4x1xf32>
    %14 = vector.broadcast %13 : vector<4x1xf32> to vector<4x128xf32>
    %15 = arith.addf %12, %14 : vector<4x128xf32>
    %cst_12 = arith.constant dense<0.000000e+00> : vector<4xf32>
    %16 = vector.multi_reduction <add>, %15, %cst_12 [1] : vector<4x128xf32> to vector<4xf32>
    %17 = vector.shape_cast %16 : vector<4xf32> to vector<4x1xf32>
    %18 = arith.addf %9, %17 : vector<4x1xf32>
    %c2 = arith.constant 2 : index
    %c0_13 = arith.constant 0 : index
    %c0_14 = arith.constant 0 : index
    %19 = vector.load %arg2[%c2, %c0_13, %c0_14] : memref<4x4x8xbf16, #tpu.memory_space<vmem>>, vector<1x4x8xbf16>
    %20 = vector.shape_cast %19 : vector<1x4x8xbf16> to vector<4x8xbf16>
    %cst_15 = arith.constant dense<0.000000e+00> : vector<4x128xf32>
    %21 = tpu.matmul %20, %1, %cst_15 {dimension_numbers = #tpu.dot_dimension_numbers<[1], [0], [0], [1], [0, 0, 1, 1], [], []>} : vector<4x8xbf16>, vector<8x128xbf16>, vector<4x128xf32> -> vector<4x128xf32>
    %c0_16 = arith.constant 0 : index
    %c0_17 = arith.constant 0 : index
    %22 = vector.load %arg3[%c0_16, %c0_17] : memref<4x1xf32, #tpu.memory_space<vmem>>, vector<4x1xf32>
    %23 = vector.broadcast %22 : vector<4x1xf32> to vector<4x128xf32>
    %24 = arith.addf %21, %23 : vector<4x128xf32>
    %cst_18 = arith.constant dense<0.000000e+00> : vector<4xf32>
    %25 = vector.multi_reduction <add>, %24, %cst_18 [1] : vector<4x128xf32> to vector<4xf32>
    %26 = vector.shape_cast %25 : vector<4xf32> to vector<4x1xf32>
    %27 = arith.addf %18, %26 : vector<4x1xf32>
    %c3 = arith.constant 3 : index
    %c0_19 = arith.constant 0 : index
    %c0_20 = arith.constant 0 : index
    %28 = vector.load %arg2[%c3, %c0_19, %c0_20] : memref<4x4x8xbf16, #tpu.memory_space<vmem>>, vector<1x4x8xbf16>
    %29 = vector.shape_cast %28 : vector<1x4x8xbf16> to vector<4x8xbf16>
    %cst_21 = arith.constant dense<0.000000e+00> : vector<4x128xf32>
    %30 = tpu.matmul %29, %1, %cst_21 {dimension_numbers = #tpu.dot_dimension_numbers<[1], [0], [0], [1], [0, 0, 1, 1], [], []>} : vector<4x8xbf16>, vector<8x128xbf16>, vector<4x128xf32> -> vector<4x128xf32>
    %c0_22 = arith.constant 0 : index
    %c0_23 = arith.constant 0 : index
    %31 = vector.load %arg3[%c0_22, %c0_23] : memref<4x1xf32, #tpu.memory_space<vmem>>, vector<4x1xf32>
    %32 = vector.broadcast %31 : vector<4x1xf32> to vector<4x128xf32>
    %33 = arith.addf %30, %32 : vector<4x128xf32>
    %cst_24 = arith.constant dense<0.000000e+00> : vector<4xf32>
    %34 = vector.multi_reduction <add>, %33, %cst_24 [1] : vector<4x128xf32> to vector<4xf32>
    %35 = vector.shape_cast %34 : vector<4xf32> to vector<4x1xf32>
    %36 = arith.addf %27, %35 : vector<4x1xf32>
    %cst_25 = arith.constant 0.001953125 : f32
    %37 = vector.broadcast %cst_25 : f32 to vector<4x1xf32>
    %38 = arith.mulf %36, %37 : vector<4x1xf32>
    %39 = vector.broadcast %38 : vector<4x1xf32> to vector<4x128xf32>
    %40 = arith.subf %7, %39 : vector<4x128xf32>
    %41 = arith.mulf %40, %40 : vector<4x128xf32>
    %cst_26 = arith.constant dense<0.000000e+00> : vector<4xf32>
    %42 = vector.multi_reduction <add>, %41, %cst_26 [1] : vector<4x128xf32> to vector<4xf32>
    %43 = vector.shape_cast %42 : vector<4xf32> to vector<4x1xf32>
    %44 = vector.broadcast %38 : vector<4x1xf32> to vector<4x128xf32>
    %45 = arith.subf %15, %44 : vector<4x128xf32>
    %46 = arith.mulf %45, %45 : vector<4x128xf32>
    %cst_27 = arith.constant dense<0.000000e+00> : vector<4xf32>
    %47 = vector.multi_reduction <add>, %46, %cst_27 [1] : vector<4x128xf32> to vector<4xf32>
    %48 = vector.shape_cast %47 : vector<4xf32> to vector<4x1xf32>
    %49 = arith.addf %43, %48 : vector<4x1xf32>
    %50 = vector.broadcast %38 : vector<4x1xf32> to vector<4x128xf32>
    %51 = arith.subf %24, %50 : vector<4x128xf32>
    %52 = arith.mulf %51, %51 : vector<4x128xf32>
    %cst_28 = arith.constant dense<0.000000e+00> : vector<4xf32>
    %53 = vector.multi_reduction <add>, %52, %cst_28 [1] : vector<4x128xf32> to vector<4xf32>
    %54 = vector.shape_cast %53 : vector<4xf32> to vector<4x1xf32>
    %55 = arith.addf %49, %54 : vector<4x1xf32>
    %56 = vector.broadcast %38 : vector<4x1xf32> to vector<4x128xf32>
    %57 = arith.subf %33, %56 : vector<4x128xf32>
    %58 = arith.mulf %57, %57 : vector<4x128xf32>
    %cst_29 = arith.constant dense<0.000000e+00> : vector<4xf32>
    %59 = vector.multi_reduction <add>, %58, %cst_29 [1] : vector<4x128xf32> to vector<4xf32>
    %60 = vector.shape_cast %59 : vector<4xf32> to vector<4x1xf32>
    %61 = arith.addf %55, %60 : vector<4x1xf32>
    %cst_30 = arith.constant 0.001953125 : f32
    %62 = vector.broadcast %cst_30 : f32 to vector<4x1xf32>
    %63 = arith.mulf %61, %62 : vector<4x1xf32>
    %cst_31 = arith.constant 9.99999974E-6 : f32
    %64 = vector.broadcast %cst_31 : f32 to vector<4x1xf32>
    %65 = arith.addf %63, %64 : vector<4x1xf32>
    %66 = math.rsqrt %65 : vector<4x1xf32>
    %c0_32 = arith.constant 0 : index
    %c0_33 = arith.constant 0 : index
    %67 = vector.load %arg4[%c0_32, %c0_33] : memref<4x1xf32, #tpu.memory_space<vmem>>, vector<4x1xf32>
    %68 = arith.mulf %66, %67 : vector<4x1xf32>
    %69 = vector.broadcast %38 : vector<4x1xf32> to vector<4x128xf32>
    %70 = arith.subf %7, %69 : vector<4x128xf32>
    %71 = vector.broadcast %68 : vector<4x1xf32> to vector<4x128xf32>
    %72 = arith.mulf %70, %71 : vector<4x128xf32>
    %c0_34 = arith.constant 0 : index
    %c0_35 = arith.constant 0 : index
    %73 = vector.load %arg5[%c0_34, %c0_35] : memref<4x1xf32, #tpu.memory_space<vmem>>, vector<4x1xf32>
    %74 = vector.broadcast %73 : vector<4x1xf32> to vector<4x128xf32>
    %75 = arith.addf %72, %74 : vector<4x128xf32>
    %cst_36 = arith.constant 0.000000e+00 : f32
    %76 = vector.broadcast %cst_36 : f32 to vector<4x128xf32>
    %77 = arith.maximumf %75, %76 : vector<4x128xf32>
    %c0_37 = arith.constant 0 : index
    %c0_38 = arith.constant 0 : index
    %c0_39 = arith.constant 0 : index
    %78 = vector.load %arg6[%c0_37, %c0_38, %c0_39] : memref<4x4x128xf32, #tpu.memory_space<vmem>>, vector<1x4x128xf32>
    %79 = vector.shape_cast %78 : vector<1x4x128xf32> to vector<4x128xf32>
    %80 = vector.shape_cast %77 : vector<4x128xf32> to vector<1x4x128xf32>
    tpu.vector_store %arg6[%c0_37, %c0_38, %c0_39], %80 {strides = array<i32>} : memref<4x4x128xf32, #tpu.memory_space<vmem>>, vector<1x4x128xf32>,
    %81 = vector.broadcast %38 : vector<4x1xf32> to vector<4x128xf32>
    %82 = arith.subf %15, %81 : vector<4x128xf32>
    %83 = vector.broadcast %68 : vector<4x1xf32> to vector<4x128xf32>
    %84 = arith.mulf %82, %83 : vector<4x128xf32>
    %c0_40 = arith.constant 0 : index
    %c0_41 = arith.constant 0 : index
    %85 = vector.load %arg5[%c0_40, %c0_41] : memref<4x1xf32, #tpu.memory_space<vmem>>, vector<4x1xf32>
    %86 = vector.broadcast %85 : vector<4x1xf32> to vector<4x128xf32>
    %87 = arith.addf %84, %86 : vector<4x128xf32>
    %cst_42 = arith.constant 0.000000e+00 : f32
    %88 = vector.broadcast %cst_42 : f32 to vector<4x128xf32>
    %89 = arith.maximumf %87, %88 : vector<4x128xf32>
    %c1_43 = arith.constant 1 : index
    %c0_44 = arith.constant 0 : index
    %c0_45 = arith.constant 0 : index
    %90 = vector.load %arg6[%c1_43, %c0_44, %c0_45] : memref<4x4x128xf32, #tpu.memory_space<vmem>>, vector<1x4x128xf32>
    %91 = vector.shape_cast %90 : vector<1x4x128xf32> to vector<4x128xf32>
    %92 = vector.shape_cast %89 : vector<4x128xf32> to vector<1x4x128xf32>
    tpu.vector_store %arg6[%c1_43, %c0_44, %c0_45], %92 {strides = array<i32>} : memref<4x4x128xf32, #tpu.memory_space<vmem>>, vector<1x4x128xf32>,
    %93 = vector.broadcast %38 : vector<4x1xf32> to vector<4x128xf32>
    %94 = arith.subf %24, %93 : vector<4x128xf32>
    %95 = vector.broadcast %68 : vector<4x1xf32> to vector<4x128xf32>
    %96 = arith.mulf %94, %95 : vector<4x128xf32>
    %c0_46 = arith.constant 0 : index
    %c0_47 = arith.constant 0 : index
    %97 = vector.load %arg5[%c0_46, %c0_47] : memref<4x1xf32, #tpu.memory_space<vmem>>, vector<4x1xf32>
    %98 = vector.broadcast %97 : vector<4x1xf32> to vector<4x128xf32>
    %99 = arith.addf %96, %98 : vector<4x128xf32>
    %cst_48 = arith.constant 0.000000e+00 : f32
    %100 = vector.broadcast %cst_48 : f32 to vector<4x128xf32>
    %101 = arith.maximumf %99, %100 : vector<4x128xf32>
    %c2_49 = arith.constant 2 : index
    %c0_50 = arith.constant 0 : index
    %c0_51 = arith.constant 0 : index
    %102 = vector.load %arg6[%c2_49, %c0_50, %c0_51] : memref<4x4x128xf32, #tpu.memory_space<vmem>>, vector<1x4x128xf32>
    %103 = vector.shape_cast %102 : vector<1x4x128xf32> to vector<4x128xf32>
    %104 = vector.shape_cast %101 : vector<4x128xf32> to vector<1x4x128xf32>
    tpu.vector_store %arg6[%c2_49, %c0_50, %c0_51], %104 {strides = array<i32>} : memref<4x4x128xf32, #tpu.memory_space<vmem>>, vector<1x4x128xf32>,
    %105 = vector.broadcast %38 : vector<4x1xf32> to vector<4x128xf32>
    %106 = arith.subf %33, %105 : vector<4x128xf32>
    %107 = vector.broadcast %68 : vector<4x1xf32> to vector<4x128xf32>
    %108 = arith.mulf %106, %107 : vector<4x128xf32>
    %c0_52 = arith.constant 0 : index
    %c0_53 = arith.constant 0 : index
    %109 = vector.load %arg5[%c0_52, %c0_53] : memref<4x1xf32, #tpu.memory_space<vmem>>, vector<4x1xf32>
    %110 = vector.broadcast %109 : vector<4x1xf32> to vector<4x128xf32>
    %111 = arith.addf %108, %110 : vector<4x128xf32>
    %cst_54 = arith.constant 0.000000e+00 : f32
    %112 = vector.broadcast %cst_54 : f32 to vector<4x128xf32>
    %113 = arith.maximumf %111, %112 : vector<4x128xf32>
    %c3_55 = arith.constant 3 : index
    %c0_56 = arith.constant 0 : index
    %c0_57 = arith.constant 0 : index
    %114 = vector.load %arg6[%c3_55, %c0_56, %c0_57] : memref<4x4x128xf32, #tpu.memory_space<vmem>>, vector<1x4x128xf32>
    %115 = vector.shape_cast %114 : vector<1x4x128xf32> to vector<4x128xf32>
    %116 = vector.shape_cast %113 : vector<4x128xf32> to vector<1x4x128xf32>
    tpu.vector_store %arg6[%c3_55, %c0_56, %c0_57], %116 {strides = array<i32>} : memref<4x4x128xf32, #tpu.memory_space<vmem>>, vector<1x4x128xf32>,
    return
  }
  func.func @transform_0(%arg0: i32) -> (i32, i32) {
    %c0_i32 = arith.constant 0 : i32
    %c0_i32_0 = arith.constant 0 : i32
    %c0_i32_1 = arith.constant 0 : i32
    return %c0_i32, %c0_i32_0 : i32, i32
  }
  func.func @transform_1(%arg0: i32) -> (i32, i32, i32) {
    %c0_i32 = arith.constant 0 : i32
    %c0_i32_0 = arith.constant 0 : i32
    %c0_i32_1 = arith.constant 0 : i32
    %c0_i32_2 = arith.constant 0 : i32
    return %c0_i32, %c0_i32_0, %c0_i32_1 : i32, i32, i32
  }
  func.func @transform_2(%arg0: i32) -> (i32, i32) {
    %c0_i32 = arith.constant 0 : i32
    %c0_i32_0 = arith.constant 0 : i32
    %c0_i32_1 = arith.constant 0 : i32
    return %c0_i32, %c0_i32_0 : i32, i32
  }
  func.func @transform_3(%arg0: i32) -> (i32, i32) {
    %c0_i32 = arith.constant 0 : i32
    %c0_i32_0 = arith.constant 0 : i32
    %c0_i32_1 = arith.constant 0 : i32
    return %c0_i32, %c0_i32_0 : i32, i32
  }
  func.func @transform_4(%arg0: i32) -> (i32, i32) {
    %c0_i32 = arith.constant 0 : i32
    %c0_i32_0 = arith.constant 0 : i32
    %c0_i32_1 = arith.constant 0 : i32
    return %c0_i32, %c0_i32_0 : i32, i32
  }
  func.func @transform_5(%arg0: i32) -> (i32, i32, i32) {
    %c0_i32 = arith.constant 0 : i32
    %c0_i32_0 = arith.constant 0 : i32
    %c0_i32_1 = arith.constant 0 : i32
    %c0_i32_2 = arith.constant 0 : i32
    return %c0_i32, %c0_i32_0, %c0_i32_1 : i32, i32, i32
  }
}

module attributes {stable_mosaic.version = 11 : i64} {
  func.func @_conv3x3_bn_relu_kernel(%arg0: i32, %arg1: memref<72x512xbf16, #tpu.memory_space<vmem>>, %arg2: memref<4x72xbf16, #tpu.memory_space<vmem>>, %arg3: memref<4x1xf32, #tpu.memory_space<vmem>>, %arg4: memref<4x1xf32, #tpu.memory_space<vmem>>, %arg5: memref<4x1xf32, #tpu.memory_space<vmem>>, %arg6: memref<4x512xf32, #tpu.memory_space<vmem>>) attributes {dimension_semantics = [#tpu.dimension_semantics<arbitrary>], iteration_bounds = array<i64: 1>, scalar_prefetch = 0 : i64, scratch_operands = 0 : i64, tpu.core_type = #tpu.core_type<tc>, window_params = [{pipeline_mode = #tpu.pipeline_mode<synchronous>, transform_indices = @transform_0, window_bounds = array<i64: 72, 512>}, {pipeline_mode = #tpu.pipeline_mode<synchronous>, transform_indices = @transform_1, window_bounds = array<i64: 4, 72>}, {pipeline_mode = #tpu.pipeline_mode<synchronous>, transform_indices = @transform_2, window_bounds = array<i64: 4, 1>}, {pipeline_mode = #tpu.pipeline_mode<synchronous>, transform_indices = @transform_3, window_bounds = array<i64: 4, 1>}, {pipeline_mode = #tpu.pipeline_mode<synchronous>, transform_indices = @transform_4, window_bounds = array<i64: 4, 1>}, {pipeline_mode = #tpu.pipeline_mode<synchronous>, transform_indices = @transform_5, window_bounds = array<i64: 4, 512>}]} {
    %c0 = arith.constant 0 : index
    %c0_0 = arith.constant 0 : index
    %0 = vector.load %arg2[%c0, %c0_0] : memref<4x72xbf16, #tpu.memory_space<vmem>>, vector<4x72xbf16>
    %c0_1 = arith.constant 0 : index
    %c0_2 = arith.constant 0 : index
    %1 = vector.load %arg1[%c0_1, %c0_2] : memref<72x512xbf16, #tpu.memory_space<vmem>>, vector<72x512xbf16>
    %cst = arith.constant dense<0.000000e+00> : vector<4x512xf32>
    %2 = tpu.matmul %0, %1, %cst {dimension_numbers = #tpu.dot_dimension_numbers<[1], [0], [0], [1], [0, 0, 1, 1], [], []>} : vector<4x72xbf16>, vector<72x512xbf16>, vector<4x512xf32> -> vector<4x512xf32>
    %c0_3 = arith.constant 0 : index
    %c0_4 = arith.constant 0 : index
    %3 = vector.load %arg3[%c0_3, %c0_4] : memref<4x1xf32, #tpu.memory_space<vmem>>, vector<4x1xf32>
    %4 = vector.broadcast %3 : vector<4x1xf32> to vector<4x512xf32>
    %5 = arith.addf %2, %4 : vector<4x512xf32>
    %cst_5 = arith.constant dense<0.000000e+00> : vector<4xf32>
    %6 = vector.multi_reduction <add>, %5, %cst_5 [1] : vector<4x512xf32> to vector<4xf32>
    %7 = vector.shape_cast %6 : vector<4xf32> to vector<4x1xf32>
    %cst_6 = arith.constant 0.001953125 : f32
    %8 = vector.broadcast %cst_6 : f32 to vector<4x1xf32>
    %9 = arith.mulf %7, %8 : vector<4x1xf32>
    %10 = vector.broadcast %9 : vector<4x1xf32> to vector<4x512xf32>
    %11 = arith.subf %5, %10 : vector<4x512xf32>
    %12 = arith.mulf %11, %11 : vector<4x512xf32>
    %cst_7 = arith.constant dense<0.000000e+00> : vector<4xf32>
    %13 = vector.multi_reduction <add>, %12, %cst_7 [1] : vector<4x512xf32> to vector<4xf32>
    %14 = vector.shape_cast %13 : vector<4xf32> to vector<4x1xf32>
    %cst_8 = arith.constant 0.001953125 : f32
    %15 = vector.broadcast %cst_8 : f32 to vector<4x1xf32>
    %16 = arith.mulf %14, %15 : vector<4x1xf32>
    %cst_9 = arith.constant 9.99999974E-6 : f32
    %17 = vector.broadcast %cst_9 : f32 to vector<4x1xf32>
    %18 = arith.addf %16, %17 : vector<4x1xf32>
    %19 = math.rsqrt %18 : vector<4x1xf32>
    %20 = vector.broadcast %19 : vector<4x1xf32> to vector<4x512xf32>
    %21 = arith.mulf %11, %20 : vector<4x512xf32>
    %c0_10 = arith.constant 0 : index
    %c0_11 = arith.constant 0 : index
    %22 = vector.load %arg4[%c0_10, %c0_11] : memref<4x1xf32, #tpu.memory_space<vmem>>, vector<4x1xf32>
    %23 = vector.broadcast %22 : vector<4x1xf32> to vector<4x512xf32>
    %24 = arith.mulf %21, %23 : vector<4x512xf32>
    %c0_12 = arith.constant 0 : index
    %c0_13 = arith.constant 0 : index
    %25 = vector.load %arg5[%c0_12, %c0_13] : memref<4x1xf32, #tpu.memory_space<vmem>>, vector<4x1xf32>
    %26 = vector.broadcast %25 : vector<4x1xf32> to vector<4x512xf32>
    %27 = arith.addf %24, %26 : vector<4x512xf32>
    %cst_14 = arith.constant 0.000000e+00 : f32
    %28 = vector.broadcast %cst_14 : f32 to vector<4x512xf32>
    %29 = arith.maximumf %27, %28 : vector<4x512xf32>
    %c0_15 = arith.constant 0 : index
    %c0_16 = arith.constant 0 : index
    %30 = vector.load %arg6[%c0_15, %c0_16] : memref<4x512xf32, #tpu.memory_space<vmem>>, vector<4x512xf32>
    tpu.vector_store %arg6[%c0_15, %c0_16], %29 {strides = array<i32>} : memref<4x512xf32, #tpu.memory_space<vmem>>, vector<4x512xf32>,
    return
  }
  func.func @transform_0(%arg0: i32) -> (i32, i32) {
    %c0_i32 = arith.constant 0 : i32
    %c0_i32_0 = arith.constant 0 : i32
    %c0_i32_1 = arith.constant 0 : i32
    return %c0_i32, %c0_i32_0 : i32, i32
  }
  func.func @transform_1(%arg0: i32) -> (i32, i32) {
    %c0_i32 = arith.constant 0 : i32
    %c0_i32_0 = arith.constant 0 : i32
    %c0_i32_1 = arith.constant 0 : i32
    return %c0_i32, %c0_i32_0 : i32, i32
  }
  func.func @transform_2(%arg0: i32) -> (i32, i32) {
    %c0_i32 = arith.constant 0 : i32
    %c0_i32_0 = arith.constant 0 : i32
    %c0_i32_1 = arith.constant 0 : i32
    return %c0_i32, %c0_i32_0 : i32, i32
  }
  func.func @transform_3(%arg0: i32) -> (i32, i32) {
    %c0_i32 = arith.constant 0 : i32
    %c0_i32_0 = arith.constant 0 : i32
    %c0_i32_1 = arith.constant 0 : i32
    return %c0_i32, %c0_i32_0 : i32, i32
  }
  func.func @transform_4(%arg0: i32) -> (i32, i32) {
    %c0_i32 = arith.constant 0 : i32
    %c0_i32_0 = arith.constant 0 : i32
    %c0_i32_1 = arith.constant 0 : i32
    return %c0_i32, %c0_i32_0 : i32, i32
  }
  func.func @transform_5(%arg0: i32) -> (i32, i32) {
    %c0_i32 = arith.constant 0 : i32
    %c0_i32_0 = arith.constant 0 : i32
    %c0_i32_1 = arith.constant 0 : i32
    return %c0_i32, %c0_i32_0 : i32, i32
  }
}

module attributes {stable_mosaic.version = 11 : i64} {
  func.func @_conv1x1_kernel(%arg0: i32, %arg1: memref<4x512xf32, #tpu.memory_space<vmem>>, %arg2: memref<3x4xbf16, #tpu.memory_space<vmem>>, %arg3: memref<3x1xf32, #tpu.memory_space<vmem>>, %arg4: memref<3x512xf32, #tpu.memory_space<vmem>>) attributes {dimension_semantics = [#tpu.dimension_semantics<arbitrary>], iteration_bounds = array<i64: 1>, scalar_prefetch = 0 : i64, scratch_operands = 0 : i64, tpu.core_type = #tpu.core_type<tc>, window_params = [{pipeline_mode = #tpu.pipeline_mode<synchronous>, transform_indices = @transform_0, window_bounds = array<i64: 4, 512>}, {pipeline_mode = #tpu.pipeline_mode<synchronous>, transform_indices = @transform_1, window_bounds = array<i64: 3, 4>}, {pipeline_mode = #tpu.pipeline_mode<synchronous>, transform_indices = @transform_2, window_bounds = array<i64: 3, 1>}, {pipeline_mode = #tpu.pipeline_mode<synchronous>, transform_indices = @transform_3, window_bounds = array<i64: 3, 512>}]} {
    %c0 = arith.constant 0 : index
    %c0_0 = arith.constant 0 : index
    %0 = vector.load %arg1[%c0, %c0_0] : memref<4x512xf32, #tpu.memory_space<vmem>>, vector<4x512xf32>
    %1 = arith.truncf %0 : vector<4x512xf32> to vector<4x512xbf16>
    %c0_1 = arith.constant 0 : index
    %c0_2 = arith.constant 0 : index
    %2 = vector.load %arg2[%c0_1, %c0_2] : memref<3x4xbf16, #tpu.memory_space<vmem>>, vector<3x4xbf16>
    %cst = arith.constant dense<0.000000e+00> : vector<3x512xf32>
    %3 = tpu.matmul %2, %1, %cst {dimension_numbers = #tpu.dot_dimension_numbers<[1], [0], [0], [1], [0, 0, 1, 1], [], []>} : vector<3x4xbf16>, vector<4x512xbf16>, vector<3x512xf32> -> vector<3x512xf32>
    %c0_3 = arith.constant 0 : index
    %c0_4 = arith.constant 0 : index
    %4 = vector.load %arg3[%c0_3, %c0_4] : memref<3x1xf32, #tpu.memory_space<vmem>>, vector<3x1xf32>
    %5 = vector.broadcast %4 : vector<3x1xf32> to vector<3x512xf32>
    %6 = arith.addf %3, %5 : vector<3x512xf32>
    %c0_5 = arith.constant 0 : index
    %c0_6 = arith.constant 0 : index
    %7 = vector.load %arg4[%c0_5, %c0_6] : memref<3x512xf32, #tpu.memory_space<vmem>>, vector<3x512xf32>
    tpu.vector_store %arg4[%c0_5, %c0_6], %6 {strides = array<i32>} : memref<3x512xf32, #tpu.memory_space<vmem>>, vector<3x512xf32>,
    return
  }
  func.func @transform_0(%arg0: i32) -> (i32, i32) {
    %c0_i32 = arith.constant 0 : i32
    %c0_i32_0 = arith.constant 0 : i32
    %c0_i32_1 = arith.constant 0 : i32
    return %c0_i32, %c0_i32_0 : i32, i32
  }
  func.func @transform_1(%arg0: i32) -> (i32, i32) {
    %c0_i32 = arith.constant 0 : i32
    %c0_i32_0 = arith.constant 0 : i32
    %c0_i32_1 = arith.constant 0 : i32
    return %c0_i32, %c0_i32_0 : i32, i32
  }
  func.func @transform_2(%arg0: i32) -> (i32, i32) {
    %c0_i32 = arith.constant 0 : i32
    %c0_i32_0 = arith.constant 0 : i32
    %c0_i32_1 = arith.constant 0 : i32
    return %c0_i32, %c0_i32_0 : i32, i32
  }
  func.func @transform_3(%arg0: i32) -> (i32, i32) {
    %c0_i32 = arith.constant 0 : i32
    %c0_i32_0 = arith.constant 0 : i32
    %c0_i32_1 = arith.constant 0 : i32
    return %c0_i32, %c0_i32_0 : i32, i32
  }
}

</mosaic_0001>

<bundles_post_ra>
// kernel: unet_forward.27
= control target key start
LH: loop header
LB: loop body
LE: loop exit
PB: predicated region body
PF: predicated region fallthrough
CT: control target
= control target key end

     0   :  { %v297_v1 = vmov 0   ;;  %vm92_vm0 = vcmask 1041408   ;;  %vm88_vm1 = vcmask 293888   ;;  %vm187_vm2 = vcmask 1043456   ;;  %s388_s0 = inlined_call_operand.vmem [shape: bf16[36,512], index: 0, kind: input, shape index: {}]   ;;  %s389_s2 = inlined_call_operand.vmem [shape: f32[4,1], index: 2, kind: input, shape index: {}]   ;;  %s390_s1 = inlined_call_operand.vmem [shape: bf16[4,36], index: 1, kind: input, shape index: {}]   ;;  %s391_s3 = inlined_call_operand.vmem [shape: f32[4,1], index: 3, kind: input, shape index: {}]   ;;  %s392_s4 = inlined_call_operand.vmem [shape: f32[4,1], index: 4, kind: input, shape index: {}]   ;;  %s393_s5 = inlined_call_operand.vmem [shape: f32[4,512], index: 5, kind: output, shape index: {}]  }
   0x1   :  { %v279_v0 = vld [vmem:[%s388_s0 + $0x4] ss:$16 sps:$4 sm:$0xff]   ;;  %137 = vmatprep.mubr.bf16.mxu0 %v297_v1  ;;  %178 = vmatprep.mubr.bf16.mxu1 %v297_v1  ;;  %v281_v2 = vld [vmem:[%s388_s0 + $0xc] ss:$16 sps:$4 sm:$0xff]   ;;  %v283_v3 = vld [vmem:[%s388_s0] ss:$16 sps:$4 sm:$0xff]  }
   0x2   :  { %277 = vset.pattern.permute.xlu0 %v297_v1  ;;  %278 = vset.pattern.permute.xlu1 %v297_v1  ;;  %v284_v4 = vld [vmem:[%s388_s0 + $0x8] ss:$16 sps:$4 sm:$0xff]   ;;  %v285_v5 = vld [vmem:[%s388_s0 + $0x24] ss:$16 sps:$4 sm:$0xff]   ;;  %v287_v6 = vld [vmem:[%s388_s0 + $0x2c] ss:$16 sps:$4 sm:$0xff]  }
   0x3   :  { %105 = vmatprep.subr.bf16.mxu0 %v279_v0  ;;  %146 = vmatprep.subr.bf16.mxu1 %v281_v2  ;;  %v289_v7 = vld [vmem:[%s388_s0 + $0x20] ss:$16 sps:$4 sm:$0xff]   ;;  %v290_v8 = vld [vmem:[%s388_s0 + $0x28] ss:$16 sps:$4 sm:$0xff]  }
   0x4   :  { %106 = vmatpush1.bf16.msra.mxu0 %v283_v3  ;;  %147 = vmatpush1.bf16.msra.mxu1 %v284_v4  ;;  %v30_v9 = vld [vmem:[%s388_s0 + $0x40] sm:$0x33]  ;;  %v31_v10 = vld [vmem:[%s388_s0 + $0x48] sm:$0x33] }
   0x5   :  { %107 = vmatprep.subr.bf16.mxu0 %v285_v5  ;;  %148 = vmatprep.subr.bf16.mxu1 %v287_v6  ;;  %v269_v11 = vcombine.high %v30_v9, %v30_v9  ;;  %v271_v12 = vcombine.high %v31_v10, %v31_v10  ;;  %v268_v13 = vcombine.low %v30_v9, %v30_v9  ;;  %v32_v15 = vld [vmem:[%s389_s2] sm:$0xf] }
   0x6   :  { %v270_v14 = vcombine.low %v31_v10, %v31_v10  ;;  %35 = vperm.xlu0 %277, %v32_v15   ;;  %v21_v18 = vld [vmem:[%s390_s1] sm:$0x3] }
   0x7   :  { %v94_v16 = vsel %vm92_vm0, %v268_v13, 0  ;;  %v222_v19 = vld [vmem:[%s391_s3] sm:$0xf] }
   0x8   :  { %108 = vmatpush1.bf16.msra.mxu0 %v289_v7  ;;  %149 = vmatpush1.bf16.msra.mxu1 %v290_v8  ;;  %v100_v17 = vsel %vm92_vm0, %v270_v14, 0  ;;  %v232_v57 = vld [vmem:[%s392_s4] sm:$0xf] }
   0x9   :  { %272 = vmatprep.subr.msk.bf16.mxu0 %vm92_vm0, %v269_v11  ;;  %274 = vmatprep.subr.msk.bf16.mxu1 %vm92_vm0, %v271_v12 }
   0xa   :  { %225 = vperm.xlu1 %278, %v222_v19  }
   0xc   :  { %110 = vmatpush1.bf16.msra.mxu0 %v94_v16  ;;  %151 = vmatpush1.bf16.msra.mxu1 %v100_v17 }
   0xf   :  { %273 = vmatmul.mubr.msk.bf16.vlgmr.msra.gmra.mrb[0].mxu0 %vm88_vm1, %v21_v18  ;;  %275 = vmatmul.mubr.msk.bf16.vlgmr.msra.gmra.mrb[0].mxu1 %vm88_vm1, %v21_v18 }
  0x85   :  { %v36_v20 = vpop.permute.xlu0 %35 }
  0x89   :  { %v226_v58 = vpop.permute.xlu1 %225 }
  0xe2   :  { %v139_v21 = vpop.f32.mrb[0].mxu0  ;;  %v180_v22 = vpop.f32.mrb[0].mxu1 }
  0xe3   :  { %v140_v23 = vadd.f32 %v139_v21, %v36_v20  ;;  %v141_v24 = vpop.f32.mrb[1].mxu0  ;;  %v182_v25 = vpop.f32.mrb[1].mxu1  ;;  %v181_v26 = vadd.f32 %v180_v22, %v36_v20 }
  0xe4   :  { %v142_v27 = vadd.f32 %v141_v24, %v36_v20  ;;  %v143_v28 = vpop.f32.mrb[2].mxu0  ;;  %v184_v29 = vpop.f32.mrb[2].mxu1  ;;  %v183_v34 = vadd.f32 %v182_v25, %v36_v20 }
  0xe5   :  { %v188_v30 = vsel %vm187_vm2, %v140_v23, 0.0  ;;  %v144_v31 = vpop.f32.mrb[3].mxu0  ;;  %v185_v32 = vpop.f32.mrb[3].mxu1  ;;  %v191_v36 = vsel %vm187_vm2, %v181_v26, 0.0 }
  0xe6   :  { %v189_v33 = vsel %vm187_vm2, %v142_v27, 0.0  ;;  %v193_v38 = vsel %vm187_vm2, %v183_v34, 0.0 }
  0xe7   :  { %v190_v35 = vadd.f32 %v189_v33, %v188_v30 }
  0xe9   :  { %v192_v37 = vadd.f32 %v191_v36, %v190_v35 }
  0xeb   :  { %v194_v39 = vadd.f32 %v193_v38, %v192_v37 }
  0xed   :  { %195 = vadd.xlane.f32.xlu0 %v194_v39 }
 0x17a   :  { %v196_v40 = vpop.xlane.xlu0 %195 }
 0x17b   :  { %v197_v41 = vmul.f32 0.001953125, %v196_v40 }
 0x17d   :  { %v198_v42 = vsub.f32 %v140_v23, %v197_v41  ;;  %v199_v43 = vsub.f32 %v142_v27, %v197_v41  ;;  %v200_v44 = vsub.f32 %v181_v26, %v197_v41  ;;  %v201_v45 = vsub.f32 %v183_v34, %v197_v41 }
 0x17f   :  { %v202_v46 = vmul.f32 %v198_v42, %v198_v42  ;;  %v203_v47 = vmul.f32 %v199_v43, %v199_v43  ;;  %v204_v48 = vmul.f32 %v200_v44, %v200_v44  ;;  %v205_v49 = vmul.f32 %v201_v45, %v201_v45 }
 0x181   :  { %v206_v50 = vsel %vm187_vm2, %v202_v46, 0.0  ;;  %v207_v51 = vsel %vm187_vm2, %v203_v47, 0.0  ;;  %v209_v53 = vsel %vm187_vm2, %v204_v48, 0.0  ;;  %v211_v55 = vsel %vm187_vm2, %v205_v49, 0.0 }
 0x182   :  { %v208_v52 = vadd.f32 %v207_v51, %v206_v50 }
 0x184   :  { %v210_v54 = vadd.f32 %v209_v53, %v208_v52 }
 0x186   :  { %v212_v56 = vadd.f32 %v211_v55, %v210_v54 }
 0x188   :  { %213 = vadd.xlane.f32.xlu1 %v212_v56 }
 0x199   :  { %235 = vperm.xlu1 %278, %v232_v57  }
 0x215   :  { %v214_v59 = vpop.xlane.xlu1 %213 }
 0x216   :  { %v215_v60 = vmul.f32 0.001953125, %v214_v59 }
 0x218   :  { %v216_v61 = vadd.f32 1e-05, %v215_v60 }
 0x219   :  { %v236_v7 = vpop.permute.xlu1 %235 }
 0x21a   :  { %295 = vrsqrt.f32 %v216_v61 }
 0x224   :  { %v296_v62 = vpop.eup %295 }
 0x225   :  { %v218_v63 = vmul.f32 %v296_v62, %v198_v42  ;;  %v219_v0 = vmul.f32 %v296_v62, %v199_v43  ;;  %v220_v1 = vmul.f32 %v296_v62, %v200_v44  ;;  %v221_v2 = vmul.f32 %v296_v62, %v201_v45 }
 0x227   :  { %v228_v3 = vmul.f32 %v226_v58, %v218_v63  ;;  %v229_v4 = vmul.f32 %v226_v58, %v219_v0  ;;  %v230_v5 = vmul.f32 %v226_v58, %v220_v1  ;;  %v231_v6 = vmul.f32 %v226_v58, %v221_v2 }
 0x229   :  { %v238_v8 = vadd.f32 %v236_v7, %v228_v3  ;;  %v239_v9 = vadd.f32 %v236_v7, %v229_v4  ;;  %v240_v10 = vadd.f32 %v236_v7, %v230_v5  ;;  %v241_v11 = vadd.f32 %v236_v7, %v231_v6 }
 0x22b   :  { %v242_v12 = vmax.f32 %v238_v8, 0.0  ;;  %v243_v13 = vmax.f32 %v239_v9, 0.0  ;;  %v244_v14 = vmax.f32 %v240_v10, 0.0  ;;  %v245_v15 = vmax.f32 %v241_v11, 0.0 }
 0x22d   :  { %v250_v16 = vcombine.low %v242_v12, %v243_v13  ;;  %v251_v17 = vcombine.low %v244_v14, %v245_v15 }
 0x22f   :  { %254 = vst [vmem:[%s393_s5] sm:$0xff] %v250_v16  ;;  %255 = vst [vmem:[%s393_s5 + $0x8] sm:$0xff] %v251_v17 }

// kernel: unet_forward.29
= control target key start
LH: loop header
LB: loop body
LE: loop exit
PB: predicated region body
PF: predicated region fallthrough
CT: control target
= control target key end

     0   :  { %vm200_vm0 = vcmask 15360   ;;  %vm393_vm1 = vcmask 7168   ;;  %s1323_s0 = inlined_call_operand.vmem [shape: f32[64,2,8,2], index: 0, kind: input, shape index: {}]   ;;  %s1324_s1 = inlined_call_operand.vmem [shape: f32[64,8,1], index: 1, kind: output, shape index: {}]  }
   0x1   :  { %v12_v0 = vld [vmem:[%s1323_s0 + $0x20] sm:$0xff]  ;;  %v13_v1 = vld [vmem:[%s1323_s0 + $0x28] sm:$0xff]  ;;  %v14_v5 = vld [vmem:[%s1323_s0 + $0x30] sm:$0xff] }
   0x2   :  { %v8_v2 = vld [vmem:[%s1323_s0] sm:$0xff]  ;;  %v138_v3 = vmax.f32 %v12_v0, %v13_v1  ;;  %v9_v4 = vld [vmem:[%s1323_s0 + $0x8] sm:$0xff]  ;;  %v15_v6 = vld [vmem:[%s1323_s0 + $0x38] sm:$0xff] }
   0x3   :  { %v136_v7 = vmax.f32 %v8_v2, %v9_v4  ;;  %v139_v8 = vmax.f32 %v14_v5, %v15_v6  ;;  %v10_v9 = vld [vmem:[%s1323_s0 + $0x10] sm:$0xff]  ;;  %v11_v10 = vld [vmem:[%s1323_s0 + $0x18] sm:$0xff]  ;;  %v16_v15 = vld [vmem:[%s1323_s0 + $0x40] sm:$0xff] }
   0x4   :  { %v18_v11 = vld [vmem:[%s1323_s0 + $0x50] sm:$0xff]  ;;  %v207_v12 = vsel %vm200_vm0, %v138_v3, -inf  ;;  %v137_v13 = vmax.f32 %v10_v9, %v11_v10  ;;  %v19_v14 = vld [vmem:[%s1323_s0 + $0x58] sm:$0xff]  ;;  %v17_v16 = vld [vmem:[%s1323_s0 + $0x48] sm:$0xff] }
   0x5   :  { %208 = vmax.xlane.f32.xlu1 %v207_v12  ;;  %v201_v17 = vsel %vm200_vm0, %v136_v7, -inf  ;;  %v210_v18 = vsel %vm200_vm0, %v139_v8, -inf  ;;  %v141_v19 = vmax.f32 %v18_v11, %v19_v14  ;;  %v140_v21 = vmax.f32 %v16_v15, %v17_v16  ;;  %v22_v22 = vld [vmem:[%s1323_s0 + $0x70] sm:$0xff]  ;;  %v23_v23 = vld [vmem:[%s1323_s0 + $0x78] sm:$0xff]  ;;  %v20_v24 = vld [vmem:[%s1323_s0 + $0x60] sm:$0xff] }
   0x6   :  { %202 = vmax.xlane.f32.xlu0 %v201_v17  ;;  %v204_v20 = vsel %vm200_vm0, %v137_v13, -inf  ;;  %v21_v25 = vld [vmem:[%s1323_s0 + $0x68] sm:$0xff]  ;;  %v143_v27 = vmax.f32 %v22_v22, %v23_v23  ;;  %v26_v30 = vld [vmem:[%s1323_s0 + $0x90] sm:$0xff]  ;;  %v27_v31 = vld [vmem:[%s1323_s0 + $0x98] sm:$0xff] }
   0x7   :  { %v216_v26 = vsel %vm200_vm0, %v141_v19, -inf  ;;  %v213_v28 = vsel %vm200_vm0, %v140_v21, -inf  ;;  %v142_v29 = vmax.f32 %v20_v24, %v21_v25  ;;  %v24_v32 = vld [vmem:[%s1323_s0 + $0x80] sm:$0xff]  ;;  %v25_v33 = vld [vmem:[%s1323_s0 + $0x88] sm:$0xff]  ;;  %v145_v35 = vmax.f32 %v26_v30, %v27_v31  ;;  %v30_v38 = vld [vmem:[%s1323_s0 + $0xb0] sm:$0xff] }
   0x8   :  { %v222_v34 = vsel %vm200_vm0, %v143_v27, -inf  ;;  %v144_v37 = vmax.f32 %v24_v32, %v25_v33  ;;  %v31_v39 = vld [vmem:[%s1323_s0 + $0xb8] sm:$0xff]  ;;  %v28_v40 = vld [vmem:[%s1323_s0 + $0xa0] sm:$0xff]  ;;  %v29_v41 = vld [vmem:[%s1323_s0 + $0xa8] sm:$0xff] }
   0x9   :  { %211 = vmax.xlane.f32.xlu1 %v210_v18  ;;  %v219_v36 = vsel %vm200_vm0, %v142_v29, -inf  ;;  %v228_v42 = vsel %vm200_vm0, %v145_v35, -inf  ;;  %v147_v43 = vmax.f32 %v30_v38, %v31_v39  ;;  %v34_v44 = vld [vmem:[%s1323_s0 + $0xd0] sm:$0xff]  ;;  %v35_v45 = vld [vmem:[%s1323_s0 + $0xd8] sm:$0xff]  ;;  %v146_v47 = vmax.f32 %v28_v40, %v29_v41  ;;  %v32_v48 = vld [vmem:[%s1323_s0 + $0xc0] sm:$0xff] }
   0xa   :  { %205 = vmax.xlane.f32.xlu0 %v204_v20  ;;  %v225_v46 = vsel %vm200_vm0, %v144_v37, -inf  ;;  %v33_v49 = vld [vmem:[%s1323_s0 + $0xc8] sm:$0xff]  ;;  %v149_v50 = vmax.f32 %v34_v44, %v35_v45  ;;  %v38_v51 = vld [vmem:[%s1323_s0 + $0xf0] sm:$0xff]  ;;  %v39_v52 = vld [vmem:[%s1323_s0 + $0xf8] sm:$0xff] }
   0xb   :  { %v575_v53 = vld [vmem:[%s1323_s0 + $0xe0] sm:$0xff]  ;;  %v234_v54 = vsel %vm200_vm0, %v147_v43, -inf  ;;  %v148_v55 = vmax.f32 %v32_v48, %v33_v49  ;;  %v37_v56 = vld [vmem:[%s1323_s0 + $0xe8] sm:$0xff]  ;;  %v74_v57 = vld [vmem:[%s1323_s0 + $0x210] sm:$0xff]  ;;  %v231_v59 = vsel %vm200_vm0, %v146_v47, -inf  ;;  %v151_v2 = vmax.f32 %v38_v51, %v39_v52 }
   0xc   :  { %v75_v58 = vld [vmem:[%s1323_s0 + $0x218] sm:$0xff]  ;;  %v591_v60 = vld [vmem:[%s1323_s0 + $0x110] sm:$0xff]  ;;  %v72_v63 = vld [vmem:[%s1323_s0 + $0x200] sm:$0xff]  ;;  %v240_v7 = vsel %vm200_vm0, %v149_v50, -inf  ;;  %v150_v17 = vmax.f32 %v575_v53, %v37_v56 }
   0xd   :  { %217 = vmax.xlane.f32.xlu1 %v216_v26  ;;  %v596_v61 = vld [vmem:[%s1323_s0 + $0x118] sm:$0xff]  ;;  %v169_v62 = vmax.f32 %v74_v57, %v75_v58  ;;  %v73_v0 = vld [vmem:[%s1323_s0 + $0x208] sm:$0xff]  ;;  %v78_v1 = vld [vmem:[%s1323_s0 + $0x230] sm:$0xff]  ;;  %v237_v16 = vsel %vm200_vm0, %v148_v55, -inf  ;;  %v246_v32 = vsel %vm200_vm0, %v151_v2, -inf }
   0xe   :  { %214 = vmax.xlane.f32.xlu0 %v213_v28  ;;  %v168_v3 = vmax.f32 %v72_v63, %v73_v0  ;;  %v79_v4 = vld [vmem:[%s1323_s0 + $0x238] sm:$0xff]  ;;  %v76_v5 = vld [vmem:[%s1323_s0 + $0x220] sm:$0xff]  ;;  %v77_v6 = vld [vmem:[%s1323_s0 + $0x228] sm:$0xff]  ;;  %v153_v33 = vmax.f32 %v591_v60, %v596_v61  ;;  %v243_v48 = vsel %vm200_vm0, %v150_v17, -inf }
   0xf   :  { %v620_v8 = vld [vmem:[%s1323_s0 + $0x100] sm:$0xff]  ;;  %v625_v9 = vld [vmem:[%s1323_s0 + $0x108] sm:$0xff]  ;;  %v628_v10 = vsel %vm200_vm0, %v169_v62, -inf  ;;  %v171_v11 = vmax.f32 %v78_v1, %v79_v4  ;;  %v170_v12 = vmax.f32 %v76_v5, %v77_v6  ;;  %v82_v13 = vld [vmem:[%s1323_s0 + $0x250] sm:$0xff] }
  0x10   :  { %v83_v14 = vld [vmem:[%s1323_s0 + $0x258] sm:$0xff]  ;;  %v80_v15 = vld [vmem:[%s1323_s0 + $0x240] sm:$0xff]  ;;  %v642_v18 = vsel %vm200_vm0, %v168_v3, -inf  ;;  %v81_v20 = vld [vmem:[%s1323_s0 + $0x248] sm:$0xff]  ;;  %v152_v49 = vmax.f32 %v620_v8, %v625_v9  ;;  %v252_v0 = vsel %vm200_vm0, %v153_v33, -inf }
  0x11   :  { %223 = vmax.xlane.f32.xlu1 %v222_v34  ;;  %v173_v19 = vmax.f32 %v82_v13, %v83_v14  ;;  %v86_v21 = vld [vmem:[%s1323_s0 + $0x270] sm:$0xff]  ;;  %v87_v22 = vld [vmem:[%s1323_s0 + $0x278] sm:$0xff]  ;;  %v664_v25 = vsel %vm200_vm0, %v171_v11, -inf  ;;  %v667_v26 = vsel %vm200_vm0, %v170_v12, -inf  ;;  %v172_v27 = vmax.f32 %v80_v15, %v81_v20  ;;  %v84_v29 = vld [vmem:[%s1323_s0 + $0x260] sm:$0xff] }
  0x12   :  { %220 = vmax.xlane.f32.xlu0 %v219_v36  ;;  %v656_v23 = vld [vmem:[%s1323_s0 + $0x130] sm:$0xff]  ;;  %v661_v24 = vld [vmem:[%s1323_s0 + $0x138] sm:$0xff]  ;;  %v175_v28 = vmax.f32 %v86_v21, %v87_v22  ;;  %v85_v30 = vld [vmem:[%s1323_s0 + $0x268] sm:$0xff]  ;;  %v249_v17 = vsel %vm200_vm0, %v152_v49, -inf }
  0x13   :  { %v90_v31 = vld [vmem:[%s1323_s0 + $0x290] sm:$0xff]  ;;  %v682_v34 = vsel %vm200_vm0, %v173_v19, -inf  ;;  %v174_v35 = vmax.f32 %v84_v29, %v85_v30  ;;  %v91_v36 = vld [vmem:[%s1323_s0 + $0x298] sm:$0xff]  ;;  %v88_v37 = vld [vmem:[%s1323_s0 + $0x280] sm:$0xff]  ;;  %v704_v41 = vsel %vm200_vm0, %v172_v27, -inf  ;;  %v155_v1 = vmax.f32 %v656_v23, %v661_v24 }
  0x14   :  { %v89_v38 = vld [vmem:[%s1323_s0 + $0x288] sm:$0xff]  ;;  %v696_v39 = vld [vmem:[%s1323_s0 + $0x120] sm:$0xff]  ;;  %v177_v43 = vmax.f32 %v90_v31, %v91_v36  ;;  %v94_v45 = vld [vmem:[%s1323_s0 + $0x2b0] sm:$0xff] }
  0x15   :  { %229 = vmax.xlane.f32.xlu1 %v228_v42  ;;  %v701_v40 = vld [vmem:[%s1323_s0 + $0x128] sm:$0xff]  ;;  %v707_v42 = vsel %vm200_vm0, %v175_v28, -inf  ;;  %v176_v44 = vmax.f32 %v88_v37, %v89_v38  ;;  %v92_v47 = vld [vmem:[%s1323_s0 + $0x2a0] sm:$0xff]  ;;  %v722_v50 = vsel %vm200_vm0, %v174_v35, -inf  ;;  %v98_v53 = vld [vmem:[%s1323_s0 + $0x2d0] sm:$0xff]  ;;  %v258_v37 = vsel %vm200_vm0, %v155_v1, -inf }
  0x16   :  { %226 = vmax.xlane.f32.xlu0 %v225_v46  ;;  %v95_v46 = vld [vmem:[%s1323_s0 + $0x2b8] sm:$0xff]  ;;  %v93_v52 = vld [vmem:[%s1323_s0 + $0x2a8] sm:$0xff]  ;;  %v736_v55 = vld [vmem:[%s1323_s0 + $0x150] sm:$0xff]  ;;  %v744_v57 = vsel %vm200_vm0, %v177_v43, -inf  ;;  %v154_v19 = vmax.f32 %v696_v39, %v701_v40 }
  0x17   :  { %v179_v51 = vmax.f32 %v94_v45, %v95_v46  ;;  %v741_v56 = vld [vmem:[%s1323_s0 + $0x158] sm:$0xff]  ;;  %v747_v58 = vsel %vm200_vm0, %v176_v44, -inf  ;;  %v96_v61 = vld [vmem:[%s1323_s0 + $0x2c0] sm:$0xff]  ;;  %v97_v62 = vld [vmem:[%s1323_s0 + $0x2c8] sm:$0xff] }
  0x18   :  { %v102_v63 = vld [vmem:[%s1323_s0 + $0x2f0] sm:$0xff]  ;;  %v180_v3 = vmax.f32 %v96_v61, %v97_v62  ;;  %v103_v4 = vld [vmem:[%s1323_s0 + $0x2f8] sm:$0xff]  ;;  %v100_v5 = vld [vmem:[%s1323_s0 + $0x2e0] sm:$0xff]  ;;  %v157_v38 = vmax.f32 %v736_v55, %v741_v56  ;;  %v255_v56 = vsel %vm200_vm0, %v154_v19, -inf }
  0x19   :  { %235 = vmax.xlane.f32.xlu1 %v234_v54  ;;  %v99_v54 = vld [vmem:[%s1323_s0 + $0x2d8] sm:$0xff]  ;;  %v762_v2 = vsel %vm200_vm0, %v179_v51, -inf  ;;  %v101_v6 = vld [vmem:[%s1323_s0 + $0x2e8] sm:$0xff]  ;;  %v183_v12 = vmax.f32 %v102_v63, %v103_v4  ;;  %v106_v14 = vld [vmem:[%s1323_s0 + $0x310] sm:$0xff] }
  0x1a   :  { %232 = vmax.xlane.f32.xlu0 %v231_v59  ;;  %v178_v59 = vmax.f32 %v92_v47, %v93_v52  ;;  %v181_v60 = vmax.f32 %v98_v53, %v99_v54  ;;  %v781_v8 = vld [vmem:[%s1323_s0 + $0x148] sm:$0xff]  ;;  %v182_v13 = vmax.f32 %v100_v5, %v101_v6  ;;  %v107_v15 = vld [vmem:[%s1323_s0 + $0x318] sm:$0xff]  ;;  %v802_v20 = vsel %vm200_vm0, %v180_v3, -inf  ;;  %v110_v23 = vld [vmem:[%s1323_s0 + $0x330] sm:$0xff] }
  0x1b   :  { %v185_v21 = vmax.f32 %v106_v14, %v107_v15  ;;  %v105_v22 = vld [vmem:[%s1323_s0 + $0x308] sm:$0xff]  ;;  %v111_v24 = vld [vmem:[%s1323_s0 + $0x338] sm:$0xff]  ;;  %v816_v27 = vld [vmem:[%s1323_s0 + $0x170] sm:$0xff]  ;;  %v824_v29 = vsel %vm200_vm0, %v183_v12, -inf  ;;  %v264_v12 = vsel %vm200_vm0, %v157_v38, -inf }
  0x1c   :  { %v784_v9 = vsel %vm200_vm0, %v178_v59, -inf  ;;  %v787_v11 = vsel %vm200_vm0, %v181_v60, -inf  ;;  %v821_v28 = vld [vmem:[%s1323_s0 + $0x178] sm:$0xff]  ;;  %v827_v30 = vsel %vm200_vm0, %v182_v13, -inf  ;;  %v108_v33 = vld [vmem:[%s1323_s0 + $0x320] sm:$0xff]  ;;  %v109_v35 = vld [vmem:[%s1323_s0 + $0x328] sm:$0xff] }
  0x1d   :  { %241 = vmax.xlane.f32.xlu1 %v240_v7  ;;  %v776_v7 = vld [vmem:[%s1323_s0 + $0x140] sm:$0xff]  ;;  %v114_v36 = vld [vmem:[%s1323_s0 + $0x350] sm:$0xff]  ;;  %v842_v39 = vsel %vm200_vm0, %v185_v21, -inf  ;;  %v186_v40 = vmax.f32 %v108_v33, %v109_v35  ;;  %v115_v43 = vld [vmem:[%s1323_s0 + $0x358] sm:$0xff]  ;;  %v159_v13 = vmax.f32 %v816_v27, %v821_v28 }
  0x1e   :  { %238 = vmax.xlane.f32.xlu0 %v237_v16  ;;  %v104_v16 = vld [vmem:[%s1323_s0 + $0x300] sm:$0xff]  ;;  %v113_v45 = vld [vmem:[%s1323_s0 + $0x348] sm:$0xff]  ;;  %v189_v51 = vmax.f32 %v114_v36, %v115_v43  ;;  %v118_v53 = vld [vmem:[%s1323_s0 + $0x370] sm:$0xff]  ;;  %v156_v59 = vmax.f32 %v776_v7, %v781_v8 }
  0x1f   :  { %v184_v31 = vmax.f32 %v104_v16, %v105_v22  ;;  %v112_v44 = vld [vmem:[%s1323_s0 + $0x340] sm:$0xff]  ;;  %v861_v47 = vld [vmem:[%s1323_s0 + $0x168] sm:$0xff]  ;;  %v119_v54 = vld [vmem:[%s1323_s0 + $0x378] sm:$0xff]  ;;  %v882_v60 = vsel %vm200_vm0, %v186_v40, -inf }
  0x20   :  { %v856_v46 = vld [vmem:[%s1323_s0 + $0x160] sm:$0xff]  ;;  %v188_v52 = vmax.f32 %v112_v44, %v113_v45  ;;  %v191_v61 = vmax.f32 %v118_v53, %v119_v54  ;;  %v117_v62 = vld [vmem:[%s1323_s0 + $0x368] sm:$0xff]  ;;  %v122_v63 = vld [vmem:[%s1323_s0 + $0x390] sm:$0xff]  ;;  %v894_v1 = vsel %vm200_vm0, %v189_v51, -inf  ;;  %v261_v33 = vsel %vm200_vm0, %v156_v59, -inf }
  0x21   :  { %247 = vmax.xlane.f32.xlu1 %v246_v32  ;;  %v187_v32 = vmax.f32 %v110_v23, %v111_v24  ;;  %v116_v55 = vld [vmem:[%s1323_s0 + $0x360] sm:$0xff]  ;;  %v121_v7 = vld [vmem:[%s1323_s0 + $0x388] sm:$0xff]  ;;  %v126_v8 = vld [vmem:[%s1323_s0 + $0x3b0] sm:$0xff]  ;;  %v158_v35 = vmax.f32 %v856_v46, %v861_v47 }
  0x22   :  { %244 = vmax.xlane.f32.xlu0 %v243_v48  ;;  %v864_v48 = vsel %vm200_vm0, %v184_v31, -inf  ;;  %v897_v3 = vsel %vm200_vm0, %v188_v52, -inf  ;;  %v190_v4 = vmax.f32 %v116_v55, %v117_v62  ;;  %v120_v6 = vld [vmem:[%s1323_s0 + $0x380] sm:$0xff]  ;;  %v912_v14 = vsel %vm200_vm0, %v191_v61, -inf  ;;  %v127_v16 = vld [vmem:[%s1323_s0 + $0x3b8] sm:$0xff]  ;;  %v125_v19 = vld [vmem:[%s1323_s0 + $0x3a8] sm:$0xff] }
  0x23   :  { %v867_v49 = vsel %vm200_vm0, %v187_v32, -inf  ;;  %v192_v15 = vmax.f32 %v120_v6, %v121_v7  ;;  %v58_v21 = vld [vmem:[%s1323_s0 + $0x190] sm:$0xff]  ;;  %v195_v24 = vmax.f32 %v126_v8, %v127_v16  ;;  %v131_v31 = vld [vmem:[%s1323_s0 + $0x3d8] sm:$0xff]  ;;  %v128_v32 = vld [vmem:[%s1323_s0 + $0x3c0] sm:$0xff] }
  0x24   :  { %v927_v22 = vsel %vm200_vm0, %v190_v4, -inf  ;;  %v130_v28 = vld [vmem:[%s1323_s0 + $0x3d0] sm:$0xff]  ;;  %v129_v38 = vld [vmem:[%s1323_s0 + $0x3c8] sm:$0xff]  ;;  %v135_v43 = vld [vmem:[%s1323_s0 + $0x3f8] sm:$0xff] }
  0x25   :  { %253 = vmax.xlane.f32.xlu1 %v252_v0  ;;  %v123_v0 = vld [vmem:[%s1323_s0 + $0x398] sm:$0xff]  ;;  %v945_v36 = vsel %vm200_vm0, %v192_v15, -inf  ;;  %v134_v40 = vld [vmem:[%s1323_s0 + $0x3f0] sm:$0xff]  ;;  %v960_v45 = vsel %vm200_vm0, %v195_v24, -inf  ;;  %v196_v47 = vmax.f32 %v128_v32, %v129_v38  ;;  %v132_v52 = vld [vmem:[%s1323_s0 + $0x3e0] sm:$0xff] }
  0x26   :  { %250 = vmax.xlane.f32.xlu0 %v249_v17  ;;  %v193_v5 = vmax.f32 %v122_v63, %v123_v0  ;;  %v124_v17 = vld [vmem:[%s1323_s0 + $0x3a0] sm:$0xff]  ;;  %v59_v44 = vld [vmem:[%s1323_s0 + $0x198] sm:$0xff]  ;;  %v199_v51 = vmax.f32 %v134_v40, %v135_v43  ;;  %v133_v53 = vld [vmem:[%s1323_s0 + $0x3e8] sm:$0xff]  ;;  %v270_v63 = vsel %vm200_vm0, %v159_v13, -inf }
  0x27   :  { %v194_v27 = vmax.f32 %v124_v17, %v125_v19  ;;  %v56_v54 = vld [vmem:[%s1323_s0 + $0x180] sm:$0xff]  ;;  %v57_v55 = vld [vmem:[%s1323_s0 + $0x188] sm:$0xff]  ;;  %v198_v59 = vmax.f32 %v132_v52, %v133_v53  ;;  %v981_v61 = vsel %vm200_vm0, %v196_v47, -inf  ;;  %v161_v0 = vmax.f32 %v58_v21, %v59_v44  ;;  %v62_v7 = vld [vmem:[%s1323_s0 + $0x1b0] sm:$0xff] }
  0x28   :  { %v930_v23 = vsel %vm200_vm0, %v193_v5, -inf  ;;  %v984_v62 = vsel %vm200_vm0, %v199_v51, -inf  ;;  %v267_v5 = vsel %vm200_vm0, %v158_v35, -inf  ;;  %v160_v6 = vmax.f32 %v56_v54, %v57_v55  ;;  %v63_v8 = vld [vmem:[%s1323_s0 + $0x1b8] sm:$0xff]  ;;  %v61_v13 = vld [vmem:[%s1323_s0 + $0x1a8] sm:$0xff]  ;;  %v66_v21 = vld [vmem:[%s1323_s0 + $0x1d0] sm:$0xff] }
  0x29   :  { %259 = vmax.xlane.f32.xlu1 %v258_v37  ;;  %v197_v37 = vmax.f32 %v130_v28, %v131_v31  ;;  %v963_v46 = vsel %vm200_vm0, %v194_v27, -inf  ;;  %v988_v4 = vsel %vm200_vm0, %v198_v59, -inf  ;;  %v276_v15 = vsel %vm200_vm0, %v161_v0, -inf  ;;  %v67_v24 = vld [vmem:[%s1323_s0 + $0x1d8] sm:$0xff]  ;;  %v64_v27 = vld [vmem:[%s1323_s0 + $0x1c0] sm:$0xff]  ;;  %v65_v28 = vld [vmem:[%s1323_s0 + $0x1c8] sm:$0xff] }
  0x2a   :  { %256 = vmax.xlane.f32.xlu0 %v255_v56  ;;  %v163_v16 = vmax.f32 %v62_v7, %v63_v8  ;;  %v273_v17 = vsel %vm200_vm0, %v160_v6, -inf  ;;  %v165_v32 = vmax.f32 %v66_v21, %v67_v24  ;;  %v164_v35 = vmax.f32 %v64_v27, %v65_v28  ;;  %v71_v38 = vld [vmem:[%s1323_s0 + $0x1f8] sm:$0xff]  ;;  %v68_v40 = vld [vmem:[%s1323_s0 + $0x1e0] sm:$0xff]  ;;  %v69_v43 = vld [vmem:[%s1323_s0 + $0x1e8] sm:$0xff] }
  0x2b   :  { %v978_v56 = vsel %vm200_vm0, %v197_v37, -inf  ;;  %v70_v37 = vld [vmem:[%s1323_s0 + $0x1f0] sm:$0xff]  ;;  %v166_v52 = vmax.f32 %v68_v40, %v69_v43 }
  0x2c   :  { %v282_v31 = vsel %vm200_vm0, %v163_v16, -inf  ;;  %v288_v44 = vsel %vm200_vm0, %v165_v32, -inf  ;;  %v167_v47 = vmax.f32 %v70_v37, %v71_v38  ;;  %v285_v51 = vsel %vm200_vm0, %v164_v35, -inf }
  0x2d   :  { %265 = vmax.xlane.f32.xlu1 %v264_v12  ;;  %v60_v12 = vld [vmem:[%s1323_s0 + $0x1a0] sm:$0xff]  ;;  %v291_v54 = vsel %vm200_vm0, %v166_v52, -inf }
  0x2e   :  { %262 = vmax.xlane.f32.xlu0 %v261_v33  ;;  %v162_v19 = vmax.f32 %v60_v12, %v61_v13  ;;  %v294_v53 = vsel %vm200_vm0, %v167_v47, -inf }
  0x30   :  { %v279_v33 = vsel %vm200_vm0, %v162_v19, -inf }
  0x31   :  { %271 = vmax.xlane.f32.xlu1 %v270_v63 }
  0x32   :  { %268 = vmax.xlane.f32.xlu0 %v267_v5 }
  0x35   :  { %277 = vmax.xlane.f32.xlu1 %v276_v15 }
  0x36   :  { %274 = vmax.xlane.f32.xlu0 %v273_v17 }
  0x39   :  { %283 = vmax.xlane.f32.xlu1 %v282_v31 }
  0x3a   :  { %280 = vmax.xlane.f32.xlu0 %v279_v33 }
  0x3d   :  { %289 = vmax.xlane.f32.xlu1 %v288_v44 }
  0x3e   :  { %286 = vmax.xlane.f32.xlu0 %v285_v51 }
  0x41   :  { %295 = vmax.xlane.f32.xlu1 %v294_v53 }
  0x42   :  { %292 = vmax.xlane.f32.xlu0 %v291_v54 }
  0x45   :  { %301 = vmax.xlane.f32.xlu1 %v628_v10 }
  0x46   :  { %298 = vmax.xlane.f32.xlu0 %v642_v18 }
  0x49   :  { %307 = vmax.xlane.f32.xlu1 %v664_v25 }
  0x4a   :  { %304 = vmax.xlane.f32.xlu0 %v667_v26 }
  0x4d   :  { %313 = vmax.xlane.f32.xlu1 %v682_v34 }
  0x4e   :  { %310 = vmax.xlane.f32.xlu0 %v704_v41 }
  0x51   :  { %319 = vmax.xlane.f32.xlu1 %v707_v42 }
  0x52   :  { %316 = vmax.xlane.f32.xlu0 %v722_v50 }
  0x55   :  { %325 = vmax.xlane.f32.xlu1 %v744_v57 }
  0x56   :  { %322 = vmax.xlane.f32.xlu0 %v747_v58 }
  0x59   :  { %331 = vmax.xlane.f32.xlu1 %v762_v2 }
  0x5a   :  { %328 = vmax.xlane.f32.xlu0 %v784_v9 }
  0x5d   :  { %337 = vmax.xlane.f32.xlu1 %v787_v11 }
  0x5e   :  { %334 = vmax.xlane.f32.xlu0 %v802_v20 }
  0x61   :  { %343 = vmax.xlane.f32.xlu1 %v824_v29 }
  0x62   :  { %340 = vmax.xlane.f32.xlu0 %v827_v30 }
  0x65   :  { %349 = vmax.xlane.f32.xlu1 %v842_v39 }
  0x66   :  { %346 = vmax.xlane.f32.xlu0 %v864_v48 }
  0x69   :  { %355 = vmax.xlane.f32.xlu1 %v867_v49 }
  0x6a   :  { %352 = vmax.xlane.f32.xlu0 %v882_v60 }
  0x6d   :  { %361 = vmax.xlane.f32.xlu1 %v894_v1 }
  0x6e   :  { %358 = vmax.xlane.f32.xlu0 %v897_v3 }
  0x71   :  { %367 = vmax.xlane.f32.xlu1 %v912_v14 }
  0x72   :  { %364 = vmax.xlane.f32.xlu0 %v927_v22 }
  0x75   :  { %373 = vmax.xlane.f32.xlu1 %v930_v23 }
  0x76   :  { %370 = vmax.xlane.f32.xlu0 %v945_v36 }
  0x79   :  { %379 = vmax.xlane.f32.xlu1 %v960_v45 }
  0x7a   :  { %376 = vmax.xlane.f32.xlu0 %v963_v46 }
  0x7d   :  { %385 = vmax.xlane.f32.xlu1 %v978_v56 }
  0x7e   :  { %382 = vmax.xlane.f32.xlu0 %v981_v61 }
  0x81   :  { %391 = vmax.xlane.f32.xlu1 %v984_v62 }
  0x82   :  { %388 = vmax.xlane.f32.xlu0 %v988_v4 }
  0x92   :  { %v209_v10 = vpop.xlane.xlu1 %208 }
  0x93   :  { %396 = vst.msk [vmem:[%s1324_s1 + $0x10] sm:$0xff] %vm393_vm1, %v209_v10  ;;  %v203_v18 = vpop.xlane.xlu0 %202 }
  0x94   :  { %394 = vst.msk [vmem:[%s1324_s1] sm:$0xff] %vm393_vm1, %v203_v18 }
  0x96   :  { %v212_v25 = vpop.xlane.xlu1 %211 }
  0x97   :  { %397 = vst.msk [vmem:[%s1324_s1 + $0x18] sm:$0xff] %vm393_vm1, %v212_v25  ;;  %v206_v26 = vpop.xlane.xlu0 %205 }
  0x98   :  { %395 = vst.msk [vmem:[%s1324_s1 + $0x8] sm:$0xff] %vm393_vm1, %v206_v26 }
  0x9a   :  { %v218_v34 = vpop.xlane.xlu1 %217 }
  0x9b   :  { %399 = vst.msk [vmem:[%s1324_s1 + $0x28] sm:$0xff] %vm393_vm1, %v218_v34  ;;  %v215_v41 = vpop.xlane.xlu0 %214 }
  0x9c   :  { %398 = vst.msk [vmem:[%s1324_s1 + $0x20] sm:$0xff] %vm393_vm1, %v215_v41 }
  0x9e   :  { %v224_v42 = vpop.xlane.xlu1 %223 }
  0x9f   :  { %401 = vst.msk [vmem:[%s1324_s1 + $0x38] sm:$0xff] %vm393_vm1, %v224_v42  ;;  %v221_v50 = vpop.xlane.xlu0 %220 }
  0xa0   :  { %400 = vst.msk [vmem:[%s1324_s1 + $0x30] sm:$0xff] %vm393_vm1, %v221_v50 }
  0xa2   :  { %v230_v57 = vpop.xlane.xlu1 %229 }
  0xa3   :  { %403 = vst.msk [vmem:[%s1324_s1 + $0x48] sm:$0xff] %vm393_vm1, %v230_v57  ;;  %v227_v58 = vpop.xlane.xlu0 %226 }
  0xa4   :  { %402 = vst.msk [vmem:[%s1324_s1 + $0x40] sm:$0xff] %vm393_vm1, %v227_v58 }
  0xa6   :  { %v236_v2 = vpop.xlane.xlu1 %235 }
  0xa7   :  { %405 = vst.msk [vmem:[%s1324_s1 + $0x58] sm:$0xff] %vm393_vm1, %v236_v2  ;;  %v233_v9 = vpop.xlane.xlu0 %232 }
  0xa8   :  { %404 = vst.msk [vmem:[%s1324_s1 + $0x50] sm:$0xff] %vm393_vm1, %v233_v9 }
  0xaa   :  { %v242_v11 = vpop.xlane.xlu1 %241 }
  0xab   :  { %407 = vst.msk [vmem:[%s1324_s1 + $0x68] sm:$0xff] %vm393_vm1, %v242_v11  ;;  %v239_v20 = vpop.xlane.xlu0 %238 }
  0xac   :  { %406 = vst.msk [vmem:[%s1324_s1 + $0x60] sm:$0xff] %vm393_vm1, %v239_v20 }
  0xae   :  { %v248_v29 = vpop.xlane.xlu1 %247 }
  0xaf   :  { %409 = vst.msk [vmem:[%s1324_s1 + $0x78] sm:$0xff] %vm393_vm1, %v248_v29  ;;  %v245_v30 = vpop.xlane.xlu0 %244 }
  0xb0   :  { %408 = vst.msk [vmem:[%s1324_s1 + $0x70] sm:$0xff] %vm393_vm1, %v245_v30 }
  0xb2   :  { %v254_v39 = vpop.xlane.xlu1 %253 }
  0xb3   :  { %411 = vst.msk [vmem:[%s1324_s1 + $0x88] sm:$0xff] %vm393_vm1, %v254_v39  ;;  %v251_v48 = vpop.xlane.xlu0 %250 }
  0xb4   :  { %410 = vst.msk [vmem:[%s1324_s1 + $0x80] sm:$0xff] %vm393_vm1, %v251_v48 }
  0xb6   :  { %v260_v49 = vpop.xlane.xlu1 %259 }
  0xb7   :  { %413 = vst.msk [vmem:[%s1324_s1 + $0x98] sm:$0xff] %vm393_vm1, %v260_v49  ;;  %v257_v60 = vpop.xlane.xlu0 %256 }
  0xb8   :  { %412 = vst.msk [vmem:[%s1324_s1 + $0x90] sm:$0xff] %vm393_vm1, %v257_v60 }
  0xba   :  { %v266_v1 = vpop.xlane.xlu1 %265 }
  0xbb   :  { %415 = vst.msk [vmem:[%s1324_s1 + $0xa8] sm:$0xff] %vm393_vm1, %v266_v1  ;;  %v263_v3 = vpop.xlane.xlu0 %262 }
  0xbc   :  { %414 = vst.msk [vmem:[%s1324_s1 + $0xa0] sm:$0xff] %vm393_vm1, %v263_v3 }
  0xbe   :  { %v272_v14 = vpop.xlane.xlu1 %271 }
  0xbf   :  { %417 = vst.msk [vmem:[%s1324_s1 + $0xb8] sm:$0xff] %vm393_vm1, %v272_v14  ;;  %v269_v22 = vpop.xlane.xlu0 %268 }
  0xc0   :  { %416 = vst.msk [vmem:[%s1324_s1 + $0xb0] sm:$0xff] %vm393_vm1, %v269_v22 }
  0xc2   :  { %v278_v23 = vpop.xlane.xlu1 %277 }
  0xc3   :  { %419 = vst.msk [vmem:[%s1324_s1 + $0xc8] sm:$0xff] %vm393_vm1, %v278_v23  ;;  %v275_v36 = vpop.xlane.xlu0 %274 }
  0xc4   :  { %418 = vst.msk [vmem:[%s1324_s1 + $0xc0] sm:$0xff] %vm393_vm1, %v275_v36 }
  0xc6   :  { %v284_v45 = vpop.xlane.xlu1 %283 }
  0xc7   :  { %421 = vst.msk [vmem:[%s1324_s1 + $0xd8] sm:$0xff] %vm393_vm1, %v284_v45  ;;  %v281_v46 = vpop.xlane.xlu0 %280 }
  0xc8   :  { %420 = vst.msk [vmem:[%s1324_s1 + $0xd0] sm:$0xff] %vm393_vm1, %v281_v46 }
  0xca   :  { %v290_v55 = vpop.xlane.xlu1 %289 }
  0xcb   :  { %423 = vst.msk [vmem:[%s1324_s1 + $0xe8] sm:$0xff] %vm393_vm1, %v290_v55  ;;  %v287_v56 = vpop.xlane.xlu0 %286 }
  0xcc   :  { %422 = vst.msk [vmem:[%s1324_s1 + $0xe0] sm:$0xff] %vm393_vm1, %v287_v56 }
  0xce   :  { %v296_v59 = vpop.xlane.xlu1 %295 }
  0xcf   :  { %425 = vst.msk [vmem:[%s1324_s1 + $0xf8] sm:$0xff] %vm393_vm1, %v296_v59  ;;  %v293_v61 = vpop.xlane.xlu0 %292 }
  0xd0   :  { %424 = vst.msk [vmem:[%s1324_s1 + $0xf0] sm:$0xff] %vm393_vm1, %v293_v61 }
  0xd2   :  { %v302_v62 = vpop.xlane.xlu1 %301 }
  0xd3   :  { %427 = vst.msk [vmem:[%s1324_s1 + $0x108] sm:$0xff] %vm393_vm1, %v302_v62  ;;  %v299_v63 = vpop.xlane.xlu0 %298 }
  0xd4   :  { %426 = vst.msk [vmem:[%s1324_s1 + $0x100] sm:$0xff] %vm393_vm1, %v299_v63 }
  0xd6   :  { %v308_v0 = vpop.xlane.xlu1 %307 }
  0xd7   :  { %429 = vst.msk [vmem:[%s1324_s1 + $0x118] sm:$0xff] %vm393_vm1, %v308_v0  ;;  %v305_v4 = vpop.xlane.xlu0 %304 }
  0xd8   :  { %428 = vst.msk [vmem:[%s1324_s1 + $0x110] sm:$0xff] %vm393_vm1, %v305_v4 }
  0xda   :  { %v314_v5 = vpop.xlane.xlu1 %313 }
  0xdb   :  { %431 = vst.msk [vmem:[%s1324_s1 + $0x128] sm:$0xff] %vm393_vm1, %v314_v5  ;;  %v311_v6 = vpop.xlane.xlu0 %310 }
  0xdc   :  { %430 = vst.msk [vmem:[%s1324_s1 + $0x120] sm:$0xff] %vm393_vm1, %v311_v6 }
  0xde   :  { %v320_v7 = vpop.xlane.xlu1 %319 }
  0xdf   :  { %433 = vst.msk [vmem:[%s1324_s1 + $0x138] sm:$0xff] %vm393_vm1, %v320_v7  ;;  %v317_v8 = vpop.xlane.xlu0 %316 }
  0xe0   :  { %432 = vst.msk [vmem:[%s1324_s1 + $0x130] sm:$0xff] %vm393_vm1, %v317_v8 }
  0xe2   :  { %v326_v12 = vpop.xlane.xlu1 %325 }
  0xe3   :  { %435 = vst.msk [vmem:[%s1324_s1 + $0x148] sm:$0xff] %vm393_vm1, %v326_v12  ;;  %v323_v13 = vpop.xlane.xlu0 %322 }
  0xe4   :  { %434 = vst.msk [vmem:[%s1324_s1 + $0x140] sm:$0xff] %vm393_vm1, %v323_v13 }
  0xe6   :  { %v332_v15 = vpop.xlane.xlu1 %331 }
  0xe7   :  { %437 = vst.msk [vmem:[%s1324_s1 + $0x158] sm:$0xff] %vm393_vm1, %v332_v15  ;;  %v329_v16 = vpop.xlane.xlu0 %328 }
  0xe8   :  { %436 = vst.msk [vmem:[%s1324_s1 + $0x150] sm:$0xff] %vm393_vm1, %v329_v16 }
  0xea   :  { %v338_v17 = vpop.xlane.xlu1 %337 }
  0xeb   :  { %439 = vst.msk [vmem:[%s1324_s1 + $0x168] sm:$0xff] %vm393_vm1, %v338_v17  ;;  %v335_v19 = vpop.xlane.xlu0 %334 }
  0xec   :  { %438 = vst.msk [vmem:[%s1324_s1 + $0x160] sm:$0xff] %vm393_vm1, %v335_v19 }
  0xee   :  { %v344_v21 = vpop.xlane.xlu1 %343 }
  0xef   :  { %441 = vst.msk [vmem:[%s1324_s1 + $0x178] sm:$0xff] %vm393_vm1, %v344_v21  ;;  %v341_v24 = vpop.xlane.xlu0 %340 }
  0xf0   :  { %440 = vst.msk [vmem:[%s1324_s1 + $0x170] sm:$0xff] %vm393_vm1, %v341_v24 }
  0xf2   :  { %v350_v27 = vpop.xlane.xlu1 %349 }
  0xf3   :  { %443 = vst.msk [vmem:[%s1324_s1 + $0x188] sm:$0xff] %vm393_vm1, %v350_v27  ;;  %v347_v28 = vpop.xlane.xlu0 %346 }
  0xf4   :  { %442 = vst.msk [vmem:[%s1324_s1 + $0x180] sm:$0xff] %vm393_vm1, %v347_v28 }
  0xf6   :  { %v356_v31 = vpop.xlane.xlu1 %355 }
  0xf7   :  { %445 = vst.msk [vmem:[%s1324_s1 + $0x198] sm:$0xff] %vm393_vm1, %v356_v31  ;;  %v353_v32 = vpop.xlane.xlu0 %352 }
  0xf8   :  { %444 = vst.msk [vmem:[%s1324_s1 + $0x190] sm:$0xff] %vm393_vm1, %v353_v32 }
  0xfa   :  { %v362_v33 = vpop.xlane.xlu1 %361 }
  0xfb   :  { %447 = vst.msk [vmem:[%s1324_s1 + $0x1a8] sm:$0xff] %vm393_vm1, %v362_v33  ;;  %v359_v35 = vpop.xlane.xlu0 %358 }
  0xfc   :  { %446 = vst.msk [vmem:[%s1324_s1 + $0x1a0] sm:$0xff] %vm393_vm1, %v359_v35 }
  0xfe   :  { %v368_v37 = vpop.xlane.xlu1 %367 }
  0xff   :  { %449 = vst.msk [vmem:[%s1324_s1 + $0x1b8] sm:$0xff] %vm393_vm1, %v368_v37  ;;  %v365_v38 = vpop.xlane.xlu0 %364 }
 0x100   :  { %448 = vst.msk [vmem:[%s1324_s1 + $0x1b0] sm:$0xff] %vm393_vm1, %v365_v38 }
 0x102   :  { %v374_v40 = vpop.xlane.xlu1 %373 }
 0x103   :  { %451 = vst.msk [vmem:[%s1324_s1 + $0x1c8] sm:$0xff] %vm393_vm1, %v374_v40  ;;  %v371_v43 = vpop.xlane.xlu0 %370 }
 0x104   :  { %450 = vst.msk [vmem:[%s1324_s1 + $0x1c0] sm:$0xff] %vm393_vm1, %v371_v43 }
 0x106   :  { %v380_v44 = vpop.xlane.xlu1 %379 }
 0x107   :  { %453 = vst.msk [vmem:[%s1324_s1 + $0x1d8] sm:$0xff] %vm393_vm1, %v380_v44  ;;  %v377_v47 = vpop.xlane.xlu0 %376 }
 0x108   :  { %452 = vst.msk [vmem:[%s1324_s1 + $0x1d0] sm:$0xff] %vm393_vm1, %v377_v47 }
 0x10a   :  { %v386_v51 = vpop.xlane.xlu1 %385 }
 0x10b   :  { %455 = vst.msk [vmem:[%s1324_s1 + $0x1e8] sm:$0xff] %vm393_vm1, %v386_v51  ;;  %v383_v52 = vpop.xlane.xlu0 %382 }
 0x10c   :  { %454 = vst.msk [vmem:[%s1324_s1 + $0x1e0] sm:$0xff] %vm393_vm1, %v383_v52 }
 0x10e   :  { %v392_v53 = vpop.xlane.xlu1 %391 }
 0x10f   :  { %457 = vst.msk [vmem:[%s1324_s1 + $0x1f8] sm:$0xff] %vm393_vm1, %v392_v53  ;;  %v389_v54 = vpop.xlane.xlu0 %388 }
 0x110   :  { %456 = vst.msk [vmem:[%s1324_s1 + $0x1f0] sm:$0xff] %vm393_vm1, %v389_v54 }

// kernel: unet_forward.30
= control target key start
LH: loop header
LB: loop body
LE: loop exit
PB: predicated region body
PF: predicated region fallthrough
CT: control target
= control target key end

     0   :  { %v155_v0 = vmov 0.0   ;;  %vm156_vm0 = vmmov 0   ;;  %v157_v2 = vmov 0   ;;  %vm52_vm1 = vcmask 1041408   ;;  %s212_s0 = inlined_call_operand.vmem [shape: bf16[36,128], index: 0, kind: input, shape index: {}]   ;;  %s213_s2 = inlined_call_operand.vmem [shape: f32[8,1], index: 2, kind: input, shape index: {}]   ;;  %s214_s1 = inlined_call_operand.vmem [shape: bf16[8,36], index: 1, kind: input, shape index: {}]   ;;  %s215_s3 = inlined_call_operand.vmem [shape: f32[8,1], index: 3, kind: input, shape index: {}]   ;;  %s216_s4 = inlined_call_operand.vmem [shape: f32[8,1], index: 4, kind: input, shape index: {}]   ;;  %s217_s5 = inlined_call_operand.vmem [shape: f32[8,128], index: 5, kind: output, shape index: {}]  }
   0x1   :  { %135 = vmatprep.subr.bf16.mxu0 %v155_v0  ;;  %v150_v1 = vld [vmem:[%s212_s0] sm:$0xff]   ;;  %141 = vmatprep.mubr.msk.bf16.mxu0 %vm156_vm0, %v155_v0  ;;  %v151_v3 = vld [vmem:[%s212_s0 + $0x8] sm:$0xff]   ;;  %v152_v5 = vld [vmem:[%s212_s0 + $0x10] ss:$0 sps:$4 sm:$0x33]   ;;  %vm48_vm2 = vcmask 293888  }
   0x2   :  { %148 = vset.pattern.permute.xlu0 %v157_v2  ;;  %149 = vset.pattern.permute.xlu1 %v157_v2  ;;  %v27_v4 = vld [vmem:[%s213_s2] sm:$0xff]  ;;  %v54_v6 = vsel %vm52_vm1, %v152_v5, 0 }
   0x3   :  { %136 = vmatpush3.bf16.msra.mxu0 %v150_v1  ;;  %30 = vperm.xlu0 %148, %v27_v4   ;;  %v21_v7 = vld [vmem:[%s214_s1] sm:$0xf] }
   0x4   :  { %137 = vmatprep.subr.bf16.mxu0 %v155_v0  ;;  %v107_v8 = vld [vmem:[%s215_s3] sm:$0xff] }
   0x5   :  { %110 = vperm.xlu1 %149, %v107_v8   ;;  %v114_v19 = vld [vmem:[%s216_s4] sm:$0xff] }
   0x7   :  { %138 = vmatpush3.bf16.msra.mxu0 %v151_v3 }
   0x8   :  { %139 = vmatprep.subr.bf16.mxu0 %v155_v0 }
   0xb   :  { %140 = vmatpush3.bf16.msra.mxu0 %v54_v6 }
   0xe   :  { %142 = vmatmul.mubr.msk.bf16.vlgmr.msra.gmra.mrb[0].mxu0 %vm48_vm2, %v21_v7 }
  0x82   :  { %v31_v9 = vpop.permute.xlu0 %30 }
  0x84   :  { %v111_v20 = vpop.permute.xlu1 %110 }
  0xe1   :  { %v90_v10 = vpop.f32.mrb[0].mxu0 }
  0xe2   :  { %v91_v11 = vadd.f32 %v90_v10, %v31_v9  ;;  %v143_v12 = vpop.f32.mrb[1].mxu0 }
  0xe3   :  { %v93_v13 = vpop.f32.mrb[2].mxu0 }
  0xe4   :  { %96 = vadd.xlane.f32.xlu0 %v91_v11  ;;  %v144_v14 = vpop.f32.mrb[3].mxu0 }
 0x171   :  { %v97_v15 = vpop.xlane.xlu0 %96 }
 0x172   :  { %v98_v16 = vmul.f32 0.0078125, %v97_v15 }
 0x174   :  { %v99_v17 = vsub.f32 %v91_v11, %v98_v16 }
 0x176   :  { %v100_v18 = vmul.f32 %v99_v17, %v99_v17 }
 0x178   :  { %101 = vadd.xlane.f32.xlu1 %v100_v18 }
 0x189   :  { %117 = vperm.xlu1 %149, %v114_v19  }
 0x205   :  { %v102_v21 = vpop.xlane.xlu1 %101 }
 0x206   :  { %v103_v22 = vmul.f32 0.0078125, %v102_v21 }
 0x208   :  { %v104_v23 = vadd.f32 1e-05, %v103_v22 }
 0x209   :  { %v118_v27 = vpop.permute.xlu1 %117 }
 0x20a   :  { %153 = vrsqrt.f32 %v104_v23 }
 0x214   :  { %v154_v24 = vpop.eup %153 }
 0x215   :  { %v106_v25 = vmul.f32 %v154_v24, %v99_v17 }
 0x217   :  { %v113_v26 = vmul.f32 %v111_v20, %v106_v25 }
 0x219   :  { %v120_v28 = vadd.f32 %v118_v27, %v113_v26 }
 0x21b   :  { %v121_v29 = vmax.f32 %v120_v28, 0.0 }
 0x21d   :  { %122 = vst [vmem:[%s217_s5] sm:$0xff] %v121_v29 }

// kernel: unet_forward.31
= control target key start
LH: loop header
LB: loop body
LE: loop exit
PB: predicated region body
PF: predicated region fallthrough
CT: control target
= control target key end

     0   :  { %v181_v0 = vmov 0.0   ;;  %vm182_vm0 = vmmov 0   ;;  %v183_v2 = vmov 0   ;;  %vm68_vm1 = vcmask 1043456   ;;  %s244_s0 = inlined_call_operand.vmem [shape: bf16[72,128], index: 0, kind: input, shape index: {}]   ;;  %s245_s2 = inlined_call_operand.vmem [shape: f32[8,1], index: 2, kind: input, shape index: {}]   ;;  %s246_s1 = inlined_call_operand.vmem [shape: bf16[8,72], index: 1, kind: input, shape index: {}]   ;;  %s247_s3 = inlined_call_operand.vmem [shape: f32[8,1], index: 3, kind: input, shape index: {}]   ;;  %s248_s4 = inlined_call_operand.vmem [shape: f32[8,1], index: 4, kind: input, shape index: {}]   ;;  %s249_s5 = inlined_call_operand.vmem [shape: f32[8,128], index: 5, kind: output, shape index: {}]  }
   0x1   :  { %155 = vmatprep.subr.bf16.mxu0 %v181_v0  ;;  %v174_v1 = vld [vmem:[%s244_s0] sm:$0xff]   ;;  %165 = vmatprep.mubr.msk.bf16.mxu0 %vm182_vm0, %v181_v0  ;;  %v175_v3 = vld [vmem:[%s244_s0 + $0x8] sm:$0xff]   ;;  %v176_v5 = vld [vmem:[%s244_s0 + $0x10] sm:$0xff]   ;;  %vm64_vm2 = vcmask 588800  }
   0x2   :  { %172 = vset.pattern.permute.xlu0 %v183_v2  ;;  %173 = vset.pattern.permute.xlu1 %v183_v2  ;;  %v31_v4 = vld [vmem:[%s245_s2] sm:$0xff]  ;;  %v177_v6 = vld [vmem:[%s244_s0 + $0x18] sm:$0xff]  }
   0x3   :  { %156 = vmatpush3.bf16.msra.mxu0 %v174_v1  ;;  %34 = vperm.xlu0 %172, %v31_v4   ;;  %v178_v7 = vld [vmem:[%s244_s0 + $0x20] ss:$0 sps:$4 sm:$0xff]  }
   0x4   :  { %157 = vmatprep.subr.bf16.mxu0 %v181_v0  ;;  %v70_v8 = vsel %vm68_vm1, %v178_v7, 0  ;;  %v21_v9 = vld [vmem:[%s246_s1] sm:$0xf] }
   0x5   :  { %v123_v10 = vld [vmem:[%s247_s3] sm:$0xff] }
   0x6   :  { %126 = vperm.xlu1 %173, %v123_v10   ;;  %v130_v21 = vld [vmem:[%s248_s4] sm:$0xff] }
   0x7   :  { %158 = vmatpush3.bf16.msra.mxu0 %v175_v3 }
   0x8   :  { %159 = vmatprep.subr.bf16.mxu0 %v181_v0 }
   0xb   :  { %160 = vmatpush3.bf16.msra.mxu0 %v176_v5 }
   0xc   :  { %161 = vmatprep.subr.bf16.mxu0 %v181_v0 }
   0xf   :  { %162 = vmatpush3.bf16.msra.mxu0 %v177_v6 }
  0x10   :  { %163 = vmatprep.subr.bf16.mxu0 %v181_v0 }
  0x13   :  { %164 = vmatpush3.bf16.msra.mxu0 %v70_v8 }
  0x16   :  { %166 = vmatmul.mubr.msk.bf16.vlgmr.msra.gmra.mrb[0].mxu0 %vm64_vm2, %v21_v9 }
  0x82   :  { %v35_v11 = vpop.permute.xlu0 %34 }
  0x85   :  { %v127_v22 = vpop.permute.xlu1 %126 }
  0xe9   :  { %v106_v12 = vpop.f32.mrb[0].mxu0 }
  0xea   :  { %v107_v13 = vadd.f32 %v106_v12, %v35_v11  ;;  %v167_v14 = vpop.f32.mrb[1].mxu0 }
  0xeb   :  { %v109_v15 = vpop.f32.mrb[2].mxu0 }
  0xec   :  { %112 = vadd.xlane.f32.xlu0 %v107_v13  ;;  %v168_v16 = vpop.f32.mrb[3].mxu0 }
 0x179   :  { %v113_v17 = vpop.xlane.xlu0 %112 }
 0x17a   :  { %v114_v18 = vmul.f32 0.0078125, %v113_v17 }
 0x17c   :  { %v115_v19 = vsub.f32 %v107_v13, %v114_v18 }
 0x17e   :  { %v116_v20 = vmul.f32 %v115_v19, %v115_v19 }
 0x180   :  { %117 = vadd.xlane.f32.xlu1 %v116_v20 }
 0x191   :  { %133 = vperm.xlu1 %173, %v130_v21  }
 0x20d   :  { %v118_v23 = vpop.xlane.xlu1 %117 }
 0x20e   :  { %v119_v24 = vmul.f32 0.0078125, %v118_v23 }
 0x210   :  { %v120_v25 = vadd.f32 1e-05, %v119_v24 }
 0x211   :  { %v134_v29 = vpop.permute.xlu1 %133 }
 0x212   :  { %179 = vrsqrt.f32 %v120_v25 }
 0x21c   :  { %v180_v26 = vpop.eup %179 }
 0x21d   :  { %v122_v27 = vmul.f32 %v180_v26, %v115_v19 }
 0x21f   :  { %v129_v28 = vmul.f32 %v127_v22, %v122_v27 }
 0x221   :  { %v136_v30 = vadd.f32 %v134_v29, %v129_v28 }
 0x223   :  { %v137_v31 = vmax.f32 %v136_v30, 0.0 }
 0x225   :  { %138 = vst [vmem:[%s249_s5] sm:$0xff] %v137_v31 }

// kernel: unet_forward.32
= control target key start
LH: loop header
LB: loop body
LE: loop exit
PB: predicated region body
PF: predicated region fallthrough
CT: control target
= control target key end

     0   :  { %vm200_vm0 = vcmask 11264   ;;  %vm393_vm1 = vcmask 3072   ;;  %s1245_s0 = inlined_call_operand.vmem [shape: f32[64,2,4,2], index: 0, kind: input, shape index: {}]   ;;  %s1246_s1 = inlined_call_operand.vmem [shape: f32[64,4,1], index: 1, kind: output, shape index: {}]  }
   0x1   :  { %v12_v0 = vld [vmem:[%s1245_s0 + $0x10] sm:$0xf]  ;;  %v13_v1 = vld [vmem:[%s1245_s0 + $0x14] sm:$0xf]  ;;  %v8_v2 = vld [vmem:[%s1245_s0] sm:$0xf] }
   0x2   :  { %v138_v3 = vmax.f32 %v12_v0, %v13_v1  ;;  %v9_v4 = vld [vmem:[%s1245_s0 + $0x4] sm:$0xf]  ;;  %v14_v5 = vld [vmem:[%s1245_s0 + $0x18] sm:$0xf]  ;;  %v15_v6 = vld [vmem:[%s1245_s0 + $0x1c] sm:$0xf] }
   0x3   :  { %v136_v7 = vmax.f32 %v8_v2, %v9_v4  ;;  %v139_v8 = vmax.f32 %v14_v5, %v15_v6  ;;  %v10_v9 = vld [vmem:[%s1245_s0 + $0x8] sm:$0xf]  ;;  %v11_v10 = vld [vmem:[%s1245_s0 + $0xc] sm:$0xf]  ;;  %v16_v15 = vld [vmem:[%s1245_s0 + $0x20] sm:$0xf] }
   0x4   :  { %v18_v11 = vld [vmem:[%s1245_s0 + $0x28] sm:$0xf]  ;;  %v207_v12 = vsel %vm200_vm0, %v138_v3, -inf  ;;  %v137_v13 = vmax.f32 %v10_v9, %v11_v10  ;;  %v19_v14 = vld [vmem:[%s1245_s0 + $0x2c] sm:$0xf] }
   0x5   :  { %208 = vmax.xlane.f32.xlu1 %v207_v12  ;;  %v201_v16 = vsel %vm200_vm0, %v136_v7, -inf  ;;  %v17_v17 = vld [vmem:[%s1245_s0 + $0x24] sm:$0xf]  ;;  %v210_v18 = vsel %vm200_vm0, %v139_v8, -inf  ;;  %v141_v19 = vmax.f32 %v18_v11, %v19_v14  ;;  %v22_v22 = vld [vmem:[%s1245_s0 + $0x38] sm:$0xf] }
   0x6   :  { %202 = vmax.xlane.f32.xlu0 %v201_v16  ;;  %v204_v20 = vsel %vm200_vm0, %v137_v13, -inf  ;;  %v140_v21 = vmax.f32 %v16_v15, %v17_v17  ;;  %v23_v23 = vld [vmem:[%s1245_s0 + $0x3c] sm:$0xf]  ;;  %v20_v24 = vld [vmem:[%s1245_s0 + $0x30] sm:$0xf] }
   0x7   :  { %v21_v25 = vld [vmem:[%s1245_s0 + $0x34] sm:$0xf]  ;;  %v216_v26 = vsel %vm200_vm0, %v141_v19, -inf  ;;  %v143_v27 = vmax.f32 %v22_v22, %v23_v23  ;;  %v26_v30 = vld [vmem:[%s1245_s0 + $0x48] sm:$0xf] }
   0x8   :  { %v213_v28 = vsel %vm200_vm0, %v140_v21, -inf  ;;  %v142_v29 = vmax.f32 %v20_v24, %v21_v25  ;;  %v27_v31 = vld [vmem:[%s1245_s0 + $0x4c] sm:$0xf]  ;;  %v24_v32 = vld [vmem:[%s1245_s0 + $0x40] sm:$0xf] }
   0x9   :  { %211 = vmax.xlane.f32.xlu1 %v210_v18  ;;  %v25_v33 = vld [vmem:[%s1245_s0 + $0x44] sm:$0xf]  ;;  %v222_v34 = vsel %vm200_vm0, %v143_v27, -inf  ;;  %v145_v35 = vmax.f32 %v26_v30, %v27_v31  ;;  %v30_v38 = vld [vmem:[%s1245_s0 + $0x58] sm:$0xf] }
   0xa   :  { %205 = vmax.xlane.f32.xlu0 %v204_v20  ;;  %v219_v36 = vsel %vm200_vm0, %v142_v29, -inf  ;;  %v144_v37 = vmax.f32 %v24_v32, %v25_v33  ;;  %v31_v39 = vld [vmem:[%s1245_s0 + $0x5c] sm:$0xf]  ;;  %v28_v40 = vld [vmem:[%s1245_s0 + $0x50] sm:$0xf] }
   0xb   :  { %v29_v41 = vld [vmem:[%s1245_s0 + $0x54] sm:$0xf]  ;;  %v228_v42 = vsel %vm200_vm0, %v145_v35, -inf  ;;  %v147_v43 = vmax.f32 %v30_v38, %v31_v39  ;;  %v34_v46 = vld [vmem:[%s1245_s0 + $0x68] sm:$0xf] }
   0xc   :  { %v225_v44 = vsel %vm200_vm0, %v144_v37, -inf  ;;  %v146_v45 = vmax.f32 %v28_v40, %v29_v41  ;;  %v35_v47 = vld [vmem:[%s1245_s0 + $0x6c] sm:$0xf]  ;;  %v32_v48 = vld [vmem:[%s1245_s0 + $0x60] sm:$0xf] }
   0xd   :  { %217 = vmax.xlane.f32.xlu1 %v216_v26  ;;  %v33_v49 = vld [vmem:[%s1245_s0 + $0x64] sm:$0xf]  ;;  %v234_v50 = vsel %vm200_vm0, %v147_v43, -inf  ;;  %v149_v51 = vmax.f32 %v34_v46, %v35_v47  ;;  %v38_v52 = vld [vmem:[%s1245_s0 + $0x78] sm:$0xf] }
   0xe   :  { %214 = vmax.xlane.f32.xlu0 %v213_v28  ;;  %v231_v53 = vsel %vm200_vm0, %v146_v45, -inf  ;;  %v148_v54 = vmax.f32 %v32_v48, %v33_v49  ;;  %v39_v55 = vld [vmem:[%s1245_s0 + $0x7c] sm:$0xf]  ;;  %v36_v56 = vld [vmem:[%s1245_s0 + $0x70] sm:$0xf] }
   0xf   :  { %v37_v57 = vld [vmem:[%s1245_s0 + $0x74] sm:$0xf]  ;;  %v42_v58 = vld [vmem:[%s1245_s0 + $0x88] sm:$0xf]  ;;  %v43_v59 = vld [vmem:[%s1245_s0 + $0x8c] sm:$0xf]  ;;  %v151_v61 = vmax.f32 %v38_v52, %v39_v55 }
  0x10   :  { %v240_v60 = vsel %vm200_vm0, %v149_v51, -inf  ;;  %v237_v62 = vsel %vm200_vm0, %v148_v54, -inf  ;;  %v150_v63 = vmax.f32 %v36_v56, %v37_v57  ;;  %v153_v0 = vmax.f32 %v42_v58, %v43_v59  ;;  %v40_v1 = vld [vmem:[%s1245_s0 + $0x80] sm:$0xf]  ;;  %v41_v2 = vld [vmem:[%s1245_s0 + $0x84] sm:$0xf] }
  0x11   :  { %223 = vmax.xlane.f32.xlu1 %v222_v34  ;;  %v246_v3 = vsel %vm200_vm0, %v151_v61, -inf  ;;  %v46_v4 = vld [vmem:[%s1245_s0 + $0x98] sm:$0xf]  ;;  %v47_v5 = vld [vmem:[%s1245_s0 + $0x9c] sm:$0xf]  ;;  %v152_v8 = vmax.f32 %v40_v1, %v41_v2 }
  0x12   :  { %220 = vmax.xlane.f32.xlu0 %v219_v36  ;;  %v243_v6 = vsel %vm200_vm0, %v150_v63, -inf  ;;  %v252_v7 = vsel %vm200_vm0, %v153_v0, -inf  ;;  %v44_v9 = vld [vmem:[%s1245_s0 + $0x90] sm:$0xf]  ;;  %v74_v10 = vld [vmem:[%s1245_s0 + $0x108] sm:$0xf]  ;;  %v155_v19 = vmax.f32 %v46_v4, %v47_v5 }
  0x13   :  { %v45_v11 = vld [vmem:[%s1245_s0 + $0x94] sm:$0xf]  ;;  %v75_v12 = vld [vmem:[%s1245_s0 + $0x10c] sm:$0xf]  ;;  %v72_v13 = vld [vmem:[%s1245_s0 + $0x100] sm:$0xf] }
  0x14   :  { %v50_v14 = vld [vmem:[%s1245_s0 + $0xa8] sm:$0xf]  ;;  %v51_v15 = vld [vmem:[%s1245_s0 + $0xac] sm:$0xf]  ;;  %v169_v16 = vmax.f32 %v74_v10, %v75_v12  ;;  %v73_v17 = vld [vmem:[%s1245_s0 + $0x104] sm:$0xf]  ;;  %v154_v26 = vmax.f32 %v44_v9, %v45_v11 }
  0x15   :  { %229 = vmax.xlane.f32.xlu1 %v228_v42  ;;  %v78_v18 = vld [vmem:[%s1245_s0 + $0x118] sm:$0xf]  ;;  %v48_v20 = vld [vmem:[%s1245_s0 + $0xa0] sm:$0xf]  ;;  %v49_v21 = vld [vmem:[%s1245_s0 + $0xa4] sm:$0xf]  ;;  %v168_v22 = vmax.f32 %v72_v13, %v73_v17  ;;  %v157_v42 = vmax.f32 %v50_v14, %v51_v15 }
  0x16   :  { %226 = vmax.xlane.f32.xlu0 %v225_v44  ;;  %v79_v23 = vld [vmem:[%s1245_s0 + $0x11c] sm:$0xf]  ;;  %v76_v24 = vld [vmem:[%s1245_s0 + $0x110] sm:$0xf]  ;;  %v249_v25 = vsel %vm200_vm0, %v152_v8, -inf  ;;  %v644_v27 = vsel %vm200_vm0, %v169_v16, -inf }
  0x17   :  { %v171_v28 = vmax.f32 %v78_v18, %v79_v23  ;;  %v77_v29 = vld [vmem:[%s1245_s0 + $0x114] sm:$0xf]  ;;  %v82_v30 = vld [vmem:[%s1245_s0 + $0x128] sm:$0xf]  ;;  %v653_v31 = vsel %vm200_vm0, %v168_v22, -inf  ;;  %v258_v41 = vsel %vm200_vm0, %v155_v19, -inf }
  0x18   :  { %v170_v32 = vmax.f32 %v76_v24, %v77_v29  ;;  %v83_v33 = vld [vmem:[%s1245_s0 + $0x12c] sm:$0xf]  ;;  %v80_v34 = vld [vmem:[%s1245_s0 + $0x120] sm:$0xf]  ;;  %v54_v35 = vld [vmem:[%s1245_s0 + $0xb8] sm:$0xf] }
  0x19   :  { %235 = vmax.xlane.f32.xlu1 %v234_v50  ;;  %v55_v36 = vld [vmem:[%s1245_s0 + $0xbc] sm:$0xf]  ;;  %v668_v37 = vsel %vm200_vm0, %v171_v28, -inf  ;;  %v173_v38 = vmax.f32 %v82_v30, %v83_v33  ;;  %v81_v39 = vld [vmem:[%s1245_s0 + $0x124] sm:$0xf]  ;;  %v255_v49 = vsel %vm200_vm0, %v154_v26, -inf  ;;  %v156_v50 = vmax.f32 %v48_v20, %v49_v21 }
  0x1a   :  { %232 = vmax.xlane.f32.xlu0 %v231_v53  ;;  %v86_v40 = vld [vmem:[%s1245_s0 + $0x138] sm:$0xf]  ;;  %v52_v43 = vld [vmem:[%s1245_s0 + $0xb0] sm:$0xf]  ;;  %v53_v44 = vld [vmem:[%s1245_s0 + $0xb4] sm:$0xf]  ;;  %v172_v46 = vmax.f32 %v80_v34, %v81_v39  ;;  %v159_v2 = vmax.f32 %v54_v35, %v55_v36 }
  0x1b   :  { %v684_v45 = vsel %vm200_vm0, %v170_v32, -inf  ;;  %v87_v47 = vld [vmem:[%s1245_s0 + $0x13c] sm:$0xf]  ;;  %v84_v48 = vld [vmem:[%s1245_s0 + $0x130] sm:$0xf]  ;;  %v694_v51 = vsel %vm200_vm0, %v173_v38, -inf  ;;  %v158_v10 = vmax.f32 %v52_v43, %v53_v44 }
  0x1c   :  { %v175_v52 = vmax.f32 %v86_v40, %v87_v47  ;;  %v85_v53 = vld [vmem:[%s1245_s0 + $0x134] sm:$0xf]  ;;  %v90_v54 = vld [vmem:[%s1245_s0 + $0x148] sm:$0xf]  ;;  %v703_v55 = vsel %vm200_vm0, %v172_v46, -inf  ;;  %v264_v1 = vsel %vm200_vm0, %v157_v42, -inf }
  0x1d   :  { %241 = vmax.xlane.f32.xlu1 %v240_v60  ;;  %v174_v56 = vmax.f32 %v84_v48, %v85_v53  ;;  %v91_v57 = vld [vmem:[%s1245_s0 + $0x14c] sm:$0xf]  ;;  %v88_v58 = vld [vmem:[%s1245_s0 + $0x140] sm:$0xf]  ;;  %v58_v59 = vld [vmem:[%s1245_s0 + $0xc8] sm:$0xf] }
  0x1e   :  { %238 = vmax.xlane.f32.xlu0 %v237_v62  ;;  %v59_v60 = vld [vmem:[%s1245_s0 + $0xcc] sm:$0xf]  ;;  %v718_v61 = vsel %vm200_vm0, %v175_v52, -inf  ;;  %v177_v62 = vmax.f32 %v90_v54, %v91_v57  ;;  %v89_v63 = vld [vmem:[%s1245_s0 + $0x144] sm:$0xf]  ;;  %v261_v9 = vsel %vm200_vm0, %v156_v50, -inf }
  0x1f   :  { %v94_v0 = vld [vmem:[%s1245_s0 + $0x158] sm:$0xf]  ;;  %v57_v4 = vld [vmem:[%s1245_s0 + $0xc4] sm:$0xf]  ;;  %v734_v5 = vsel %vm200_vm0, %v174_v56, -inf  ;;  %v161_v26 = vmax.f32 %v58_v59, %v59_v60  ;;  %v267_v35 = vsel %vm200_vm0, %v158_v10, -inf }
  0x20   :  { %v92_v8 = vld [vmem:[%s1245_s0 + $0x150] sm:$0xf]  ;;  %v744_v11 = vsel %vm200_vm0, %v177_v62, -inf  ;;  %v93_v13 = vld [vmem:[%s1245_s0 + $0x154] sm:$0xf] }
  0x21   :  { %247 = vmax.xlane.f32.xlu1 %v246_v3  ;;  %v56_v3 = vld [vmem:[%s1245_s0 + $0xc0] sm:$0xf]  ;;  %v98_v14 = vld [vmem:[%s1245_s0 + $0x168] sm:$0xf]  ;;  %v178_v16 = vmax.f32 %v92_v8, %v93_v13  ;;  %v99_v17 = vld [vmem:[%s1245_s0 + $0x16c] sm:$0xf] }
  0x22   :  { %244 = vmax.xlane.f32.xlu0 %v243_v6  ;;  %v176_v6 = vmax.f32 %v88_v58, %v89_v63  ;;  %v96_v18 = vld [vmem:[%s1245_s0 + $0x160] sm:$0xf]  ;;  %v62_v19 = vld [vmem:[%s1245_s0 + $0xd8] sm:$0xf]  ;;  %v63_v20 = vld [vmem:[%s1245_s0 + $0xdc] sm:$0xf]  ;;  %v181_v22 = vmax.f32 %v98_v14, %v99_v17  ;;  %v160_v36 = vmax.f32 %v56_v3, %v57_v4 }
  0x23   :  { %v97_v23 = vld [vmem:[%s1245_s0 + $0x164] sm:$0xf]  ;;  %v102_v24 = vld [vmem:[%s1245_s0 + $0x178] sm:$0xf]  ;;  %v60_v28 = vld [vmem:[%s1245_s0 + $0xd0] sm:$0xf]  ;;  %v163_v56 = vmax.f32 %v62_v19, %v63_v20 }
  0x24   :  { %v753_v15 = vsel %vm200_vm0, %v176_v6, -inf  ;;  %v61_v29 = vld [vmem:[%s1245_s0 + $0xd4] sm:$0xf]  ;;  %v784_v30 = vsel %vm200_vm0, %v178_v16, -inf  ;;  %v180_v32 = vmax.f32 %v96_v18, %v97_v23  ;;  %v103_v33 = vld [vmem:[%s1245_s0 + $0x17c] sm:$0xf] }
  0x25   :  { %253 = vmax.xlane.f32.xlu1 %v252_v7  ;;  %v95_v7 = vld [vmem:[%s1245_s0 + $0x15c] sm:$0xf]  ;;  %v100_v34 = vld [vmem:[%s1245_s0 + $0x170] sm:$0xf]  ;;  %v794_v38 = vsel %vm200_vm0, %v181_v22, -inf  ;;  %v183_v39 = vmax.f32 %v102_v24, %v103_v33  ;;  %v276_v54 = vsel %vm200_vm0, %v161_v26, -inf }
  0x26   :  { %250 = vmax.xlane.f32.xlu0 %v249_v25  ;;  %v179_v12 = vmax.f32 %v94_v0, %v95_v7  ;;  %v270_v25 = vsel %vm200_vm0, %v159_v2, -inf  ;;  %v101_v40 = vld [vmem:[%s1245_s0 + $0x174] sm:$0xf]  ;;  %v803_v42 = vsel %vm200_vm0, %v180_v32, -inf  ;;  %v107_v44 = vld [vmem:[%s1245_s0 + $0x18c] sm:$0xf] }
  0x27   :  { %v182_v43 = vmax.f32 %v100_v34, %v101_v40  ;;  %v104_v46 = vld [vmem:[%s1245_s0 + $0x180] sm:$0xf]  ;;  %v66_v47 = vld [vmem:[%s1245_s0 + $0xe8] sm:$0xf]  ;;  %v67_v48 = vld [vmem:[%s1245_s0 + $0xec] sm:$0xf] }
  0x28   :  { %v768_v21 = vsel %vm200_vm0, %v179_v12, -inf  ;;  %v105_v52 = vld [vmem:[%s1245_s0 + $0x184] sm:$0xf]  ;;  %v110_v53 = vld [vmem:[%s1245_s0 + $0x198] sm:$0xf]  ;;  %v273_v0 = vsel %vm200_vm0, %v160_v36, -inf  ;;  %v165_v20 = vmax.f32 %v66_v47, %v67_v48 }
  0x29   :  { %259 = vmax.xlane.f32.xlu1 %v258_v41  ;;  %v106_v41 = vld [vmem:[%s1245_s0 + $0x188] sm:$0xf]  ;;  %v64_v57 = vld [vmem:[%s1245_s0 + $0xe0] sm:$0xf]  ;;  %v65_v58 = vld [vmem:[%s1245_s0 + $0xe4] sm:$0xf]  ;;  %v184_v60 = vmax.f32 %v104_v46, %v105_v52 }
  0x2a   :  { %256 = vmax.xlane.f32.xlu0 %v255_v49  ;;  %v818_v49 = vsel %vm200_vm0, %v183_v39, -inf  ;;  %v185_v50 = vmax.f32 %v106_v41, %v107_v44  ;;  %v834_v59 = vsel %vm200_vm0, %v182_v43, -inf  ;;  %v111_v62 = vld [vmem:[%s1245_s0 + $0x19c] sm:$0xf]  ;;  %v108_v63 = vld [vmem:[%s1245_s0 + $0x190] sm:$0xf]  ;;  %v164_v32 = vmax.f32 %v64_v57, %v65_v58 }
  0x2b   :  { %v187_v3 = vmax.f32 %v110_v53, %v111_v62  ;;  %v109_v4 = vld [vmem:[%s1245_s0 + $0x194] sm:$0xf]  ;;  %v114_v6 = vld [vmem:[%s1245_s0 + $0x1a8] sm:$0xf]  ;;  %v853_v7 = vsel %vm200_vm0, %v184_v60, -inf  ;;  %v282_v19 = vsel %vm200_vm0, %v163_v56, -inf }
  0x2c   :  { %v844_v2 = vsel %vm200_vm0, %v185_v50, -inf  ;;  %v186_v8 = vmax.f32 %v108_v63, %v109_v4  ;;  %v112_v10 = vld [vmem:[%s1245_s0 + $0x1a0] sm:$0xf]  ;;  %v70_v12 = vld [vmem:[%s1245_s0 + $0xf8] sm:$0xf]  ;;  %v288_v50 = vsel %vm200_vm0, %v165_v20, -inf }
  0x2d   :  { %265 = vmax.xlane.f32.xlu1 %v264_v1  ;;  %v162_v1 = vmax.f32 %v60_v28, %v61_v29  ;;  %v71_v13 = vld [vmem:[%s1245_s0 + $0xfc] sm:$0xf]  ;;  %v868_v14 = vsel %vm200_vm0, %v187_v3, -inf  ;;  %v113_v17 = vld [vmem:[%s1245_s0 + $0x1a4] sm:$0xf]  ;;  %v285_v58 = vsel %vm200_vm0, %v164_v32, -inf }
  0x2e   :  { %262 = vmax.xlane.f32.xlu0 %v261_v9  ;;  %v115_v9 = vld [vmem:[%s1245_s0 + $0x1ac] sm:$0xf]  ;;  %v118_v18 = vld [vmem:[%s1245_s0 + $0x1b8] sm:$0xf]  ;;  %v68_v22 = vld [vmem:[%s1245_s0 + $0xf0] sm:$0xf]  ;;  %v167_v52 = vmax.f32 %v70_v12, %v71_v13 }
  0x2f   :  { %v189_v16 = vmax.f32 %v114_v6, %v115_v9  ;;  %v69_v23 = vld [vmem:[%s1245_s0 + $0xf4] sm:$0xf]  ;;  %v884_v24 = vsel %vm200_vm0, %v186_v8, -inf  ;;  %v119_v26 = vld [vmem:[%s1245_s0 + $0x1bc] sm:$0xf]  ;;  %v279_v29 = vsel %vm200_vm0, %v162_v1, -inf }
  0x30   :  { %v116_v28 = vld [vmem:[%s1245_s0 + $0x1b0] sm:$0xf]  ;;  %v191_v34 = vmax.f32 %v118_v18, %v119_v26  ;;  %v122_v36 = vld [vmem:[%s1245_s0 + $0x1c8] sm:$0xf]  ;;  %v123_v41 = vld [vmem:[%s1245_s0 + $0x1cc] sm:$0xf]  ;;  %v166_v60 = vmax.f32 %v68_v22, %v69_v23 }
  0x31   :  { %271 = vmax.xlane.f32.xlu1 %v270_v25  ;;  %v188_v25 = vmax.f32 %v112_v10, %v113_v17  ;;  %v894_v33 = vsel %vm200_vm0, %v189_v16, -inf  ;;  %v120_v43 = vld [vmem:[%s1245_s0 + $0x1c0] sm:$0xf]  ;;  %v193_v46 = vmax.f32 %v122_v36, %v123_v41  ;;  %v121_v47 = vld [vmem:[%s1245_s0 + $0x1c4] sm:$0xf]  ;;  %v294_v16 = vsel %vm200_vm0, %v167_v52, -inf }
  0x32   :  { %268 = vmax.xlane.f32.xlu0 %v267_v35  ;;  %v117_v35 = vld [vmem:[%s1245_s0 + $0x1b4] sm:$0xf]  ;;  %v912_v44 = vsel %vm200_vm0, %v191_v34, -inf  ;;  %v126_v48 = vld [vmem:[%s1245_s0 + $0x1d8] sm:$0xf]  ;;  %v291_v22 = vsel %vm200_vm0, %v166_v60, -inf }
  0x33   :  { %v903_v39 = vsel %vm200_vm0, %v188_v25, -inf  ;;  %v190_v40 = vmax.f32 %v116_v28, %v117_v35  ;;  %v127_v56 = vld [vmem:[%s1245_s0 + $0x1dc] sm:$0xf]  ;;  %v124_v57 = vld [vmem:[%s1245_s0 + $0x1d0] sm:$0xf]  ;;  %v372_v62 = vsel %vm200_vm0, %v193_v46, -inf }
  0x34   :  { %v195_v63 = vmax.f32 %v126_v48, %v127_v56  ;;  %v130_v1 = vld [vmem:[%s1245_s0 + $0x1e8] sm:$0xf]  ;;  %v131_v6 = vld [vmem:[%s1245_s0 + $0x1ec] sm:$0xf]  ;;  %v128_v8 = vld [vmem:[%s1245_s0 + $0x1e0] sm:$0xf] }
  0x35   :  { %277 = vmax.xlane.f32.xlu1 %v276_v54  ;;  %v363_v53 = vsel %vm200_vm0, %v190_v40, -inf  ;;  %v192_v54 = vmax.f32 %v120_v43, %v121_v47  ;;  %v197_v10 = vmax.f32 %v130_v1, %v131_v6  ;;  %v129_v12 = vld [vmem:[%s1245_s0 + $0x1e4] sm:$0xf]  ;;  %v134_v13 = vld [vmem:[%s1245_s0 + $0x1f8] sm:$0xf] }
  0x36   :  { %274 = vmax.xlane.f32.xlu0 %v273_v0  ;;  %v125_v0 = vld [vmem:[%s1245_s0 + $0x1d4] sm:$0xf]  ;;  %v378_v9 = vsel %vm200_vm0, %v195_v63, -inf  ;;  %v196_v18 = vmax.f32 %v128_v8, %v129_v12  ;;  %v132_v20 = vld [vmem:[%s1245_s0 + $0x1f0] sm:$0xf] }
  0x37   :  { %v369_v3 = vsel %vm200_vm0, %v192_v54, -inf  ;;  %v194_v4 = vmax.f32 %v124_v57, %v125_v0  ;;  %v384_v23 = vsel %vm200_vm0, %v197_v10, -inf  ;;  %v133_v26 = vld [vmem:[%s1245_s0 + $0x1f4] sm:$0xf] }
  0x38   :  { %v381_v28 = vsel %vm200_vm0, %v196_v18, -inf }
  0x39   :  { %283 = vmax.xlane.f32.xlu1 %v282_v19  ;;  %v375_v17 = vsel %vm200_vm0, %v194_v4, -inf  ;;  %v135_v19 = vld [vmem:[%s1245_s0 + $0x1fc] sm:$0xf] }
  0x3a   :  { %280 = vmax.xlane.f32.xlu0 %v279_v29  ;;  %v199_v25 = vmax.f32 %v134_v13, %v135_v19  ;;  %v198_v29 = vmax.f32 %v132_v20, %v133_v26 }
  0x3c   :  { %v390_v32 = vsel %vm200_vm0, %v199_v25, -inf  ;;  %v387_v34 = vsel %vm200_vm0, %v198_v29, -inf }
  0x3d   :  { %289 = vmax.xlane.f32.xlu1 %v288_v50 }
  0x3e   :  { %286 = vmax.xlane.f32.xlu0 %v285_v58 }
  0x41   :  { %295 = vmax.xlane.f32.xlu1 %v294_v16 }
  0x42   :  { %292 = vmax.xlane.f32.xlu0 %v291_v22 }
  0x45   :  { %301 = vmax.xlane.f32.xlu1 %v644_v27 }
  0x46   :  { %298 = vmax.xlane.f32.xlu0 %v653_v31 }
  0x49   :  { %307 = vmax.xlane.f32.xlu1 %v668_v37 }
  0x4a   :  { %304 = vmax.xlane.f32.xlu0 %v684_v45 }
  0x4d   :  { %313 = vmax.xlane.f32.xlu1 %v694_v51 }
  0x4e   :  { %310 = vmax.xlane.f32.xlu0 %v703_v55 }
  0x51   :  { %319 = vmax.xlane.f32.xlu1 %v718_v61 }
  0x52   :  { %316 = vmax.xlane.f32.xlu0 %v734_v5 }
  0x55   :  { %325 = vmax.xlane.f32.xlu1 %v744_v11 }
  0x56   :  { %322 = vmax.xlane.f32.xlu0 %v753_v15 }
  0x59   :  { %331 = vmax.xlane.f32.xlu1 %v768_v21 }
  0x5a   :  { %328 = vmax.xlane.f32.xlu0 %v784_v30 }
  0x5d   :  { %337 = vmax.xlane.f32.xlu1 %v794_v38 }
  0x5e   :  { %334 = vmax.xlane.f32.xlu0 %v803_v42 }
  0x61   :  { %343 = vmax.xlane.f32.xlu1 %v818_v49 }
  0x62   :  { %340 = vmax.xlane.f32.xlu0 %v834_v59 }
  0x65   :  { %349 = vmax.xlane.f32.xlu1 %v844_v2 }
  0x66   :  { %346 = vmax.xlane.f32.xlu0 %v853_v7 }
  0x69   :  { %355 = vmax.xlane.f32.xlu1 %v868_v14 }
  0x6a   :  { %352 = vmax.xlane.f32.xlu0 %v884_v24 }
  0x6d   :  { %361 = vmax.xlane.f32.xlu1 %v894_v33 }
  0x6e   :  { %358 = vmax.xlane.f32.xlu0 %v903_v39 }
  0x71   :  { %367 = vmax.xlane.f32.xlu1 %v912_v44 }
  0x72   :  { %364 = vmax.xlane.f32.xlu0 %v363_v53 }
  0x75   :  { %373 = vmax.xlane.f32.xlu1 %v372_v62 }
  0x76   :  { %370 = vmax.xlane.f32.xlu0 %v369_v3 }
  0x79   :  { %379 = vmax.xlane.f32.xlu1 %v378_v9 }
  0x7a   :  { %376 = vmax.xlane.f32.xlu0 %v375_v17 }
  0x7d   :  { %385 = vmax.xlane.f32.xlu1 %v384_v23 }
  0x7e   :  { %382 = vmax.xlane.f32.xlu0 %v381_v28 }
  0x81   :  { %391 = vmax.xlane.f32.xlu1 %v390_v32 }
  0x82   :  { %388 = vmax.xlane.f32.xlu0 %v387_v34 }
  0x92   :  { %v209_v27 = vpop.xlane.xlu1 %208 }
  0x93   :  { %396 = vst.msk [vmem:[%s1246_s1 + $0x8] sm:$0xf] %vm393_vm1, %v209_v27  ;;  %v203_v31 = vpop.xlane.xlu0 %202 }
  0x94   :  { %394 = vst.msk [vmem:[%s1246_s1] sm:$0xf] %vm393_vm1, %v203_v31 }
  0x96   :  { %v212_v37 = vpop.xlane.xlu1 %211 }
  0x97   :  { %397 = vst.msk [vmem:[%s1246_s1 + $0xc] sm:$0xf] %vm393_vm1, %v212_v37  ;;  %v206_v45 = vpop.xlane.xlu0 %205 }
  0x98   :  { %395 = vst.msk [vmem:[%s1246_s1 + $0x4] sm:$0xf] %vm393_vm1, %v206_v45 }
  0x9a   :  { %v218_v51 = vpop.xlane.xlu1 %217 }
  0x9b   :  { %399 = vst.msk [vmem:[%s1246_s1 + $0x14] sm:$0xf] %vm393_vm1, %v218_v51  ;;  %v215_v55 = vpop.xlane.xlu0 %214 }
  0x9c   :  { %398 = vst.msk [vmem:[%s1246_s1 + $0x10] sm:$0xf] %vm393_vm1, %v215_v55 }
  0x9e   :  { %v224_v61 = vpop.xlane.xlu1 %223 }
  0x9f   :  { %401 = vst.msk [vmem:[%s1246_s1 + $0x1c] sm:$0xf] %vm393_vm1, %v224_v61  ;;  %v221_v5 = vpop.xlane.xlu0 %220 }
  0xa0   :  { %400 = vst.msk [vmem:[%s1246_s1 + $0x18] sm:$0xf] %vm393_vm1, %v221_v5 }
  0xa2   :  { %v230_v11 = vpop.xlane.xlu1 %229 }
  0xa3   :  { %403 = vst.msk [vmem:[%s1246_s1 + $0x24] sm:$0xf] %vm393_vm1, %v230_v11  ;;  %v227_v15 = vpop.xlane.xlu0 %226 }
  0xa4   :  { %402 = vst.msk [vmem:[%s1246_s1 + $0x20] sm:$0xf] %vm393_vm1, %v227_v15 }
  0xa6   :  { %v236_v21 = vpop.xlane.xlu1 %235 }
  0xa7   :  { %405 = vst.msk [vmem:[%s1246_s1 + $0x2c] sm:$0xf] %vm393_vm1, %v236_v21  ;;  %v233_v30 = vpop.xlane.xlu0 %232 }
  0xa8   :  { %404 = vst.msk [vmem:[%s1246_s1 + $0x28] sm:$0xf] %vm393_vm1, %v233_v30 }
  0xaa   :  { %v242_v38 = vpop.xlane.xlu1 %241 }
  0xab   :  { %407 = vst.msk [vmem:[%s1246_s1 + $0x34] sm:$0xf] %vm393_vm1, %v242_v38  ;;  %v239_v42 = vpop.xlane.xlu0 %238 }
  0xac   :  { %406 = vst.msk [vmem:[%s1246_s1 + $0x30] sm:$0xf] %vm393_vm1, %v239_v42 }
  0xae   :  { %v248_v49 = vpop.xlane.xlu1 %247 }
  0xaf   :  { %409 = vst.msk [vmem:[%s1246_s1 + $0x3c] sm:$0xf] %vm393_vm1, %v248_v49  ;;  %v245_v59 = vpop.xlane.xlu0 %244 }
  0xb0   :  { %408 = vst.msk [vmem:[%s1246_s1 + $0x38] sm:$0xf] %vm393_vm1, %v245_v59 }
  0xb2   :  { %v254_v2 = vpop.xlane.xlu1 %253 }
  0xb3   :  { %411 = vst.msk [vmem:[%s1246_s1 + $0x44] sm:$0xf] %vm393_vm1, %v254_v2  ;;  %v251_v7 = vpop.xlane.xlu0 %250 }
  0xb4   :  { %410 = vst.msk [vmem:[%s1246_s1 + $0x40] sm:$0xf] %vm393_vm1, %v251_v7 }
  0xb6   :  { %v260_v14 = vpop.xlane.xlu1 %259 }
  0xb7   :  { %413 = vst.msk [vmem:[%s1246_s1 + $0x4c] sm:$0xf] %vm393_vm1, %v260_v14  ;;  %v257_v24 = vpop.xlane.xlu0 %256 }
  0xb8   :  { %412 = vst.msk [vmem:[%s1246_s1 + $0x48] sm:$0xf] %vm393_vm1, %v257_v24 }
  0xba   :  { %v266_v33 = vpop.xlane.xlu1 %265 }
  0xbb   :  { %415 = vst.msk [vmem:[%s1246_s1 + $0x54] sm:$0xf] %vm393_vm1, %v266_v33  ;;  %v263_v35 = vpop.xlane.xlu0 %262 }
  0xbc   :  { %414 = vst.msk [vmem:[%s1246_s1 + $0x50] sm:$0xf] %vm393_vm1, %v263_v35 }
  0xbe   :  { %v272_v36 = vpop.xlane.xlu1 %271 }
  0xbf   :  { %417 = vst.msk [vmem:[%s1246_s1 + $0x5c] sm:$0xf] %vm393_vm1, %v272_v36  ;;  %v269_v39 = vpop.xlane.xlu0 %268 }
  0xc0   :  { %416 = vst.msk [vmem:[%s1246_s1 + $0x58] sm:$0xf] %vm393_vm1, %v269_v39 }
  0xc2   :  { %v278_v40 = vpop.xlane.xlu1 %277 }
  0xc3   :  { %419 = vst.msk [vmem:[%s1246_s1 + $0x64] sm:$0xf] %vm393_vm1, %v278_v40  ;;  %v275_v41 = vpop.xlane.xlu0 %274 }
  0xc4   :  { %418 = vst.msk [vmem:[%s1246_s1 + $0x60] sm:$0xf] %vm393_vm1, %v275_v41 }
  0xc6   :  { %v284_v43 = vpop.xlane.xlu1 %283 }
  0xc7   :  { %421 = vst.msk [vmem:[%s1246_s1 + $0x6c] sm:$0xf] %vm393_vm1, %v284_v43  ;;  %v281_v44 = vpop.xlane.xlu0 %280 }
  0xc8   :  { %420 = vst.msk [vmem:[%s1246_s1 + $0x68] sm:$0xf] %vm393_vm1, %v281_v44 }
  0xca   :  { %v290_v46 = vpop.xlane.xlu1 %289 }
  0xcb   :  { %423 = vst.msk [vmem:[%s1246_s1 + $0x74] sm:$0xf] %vm393_vm1, %v290_v46  ;;  %v287_v47 = vpop.xlane.xlu0 %286 }
  0xcc   :  { %422 = vst.msk [vmem:[%s1246_s1 + $0x70] sm:$0xf] %vm393_vm1, %v287_v47 }
  0xce   :  { %v296_v48 = vpop.xlane.xlu1 %295 }
  0xcf   :  { %425 = vst.msk [vmem:[%s1246_s1 + $0x7c] sm:$0xf] %vm393_vm1, %v296_v48  ;;  %v293_v50 = vpop.xlane.xlu0 %292 }
  0xd0   :  { %424 = vst.msk [vmem:[%s1246_s1 + $0x78] sm:$0xf] %vm393_vm1, %v293_v50 }
  0xd2   :  { %v302_v52 = vpop.xlane.xlu1 %301 }
  0xd3   :  { %427 = vst.msk [vmem:[%s1246_s1 + $0x84] sm:$0xf] %vm393_vm1, %v302_v52  ;;  %v299_v53 = vpop.xlane.xlu0 %298 }
  0xd4   :  { %426 = vst.msk [vmem:[%s1246_s1 + $0x80] sm:$0xf] %vm393_vm1, %v299_v53 }
  0xd6   :  { %v308_v54 = vpop.xlane.xlu1 %307 }
  0xd7   :  { %429 = vst.msk [vmem:[%s1246_s1 + $0x8c] sm:$0xf] %vm393_vm1, %v308_v54  ;;  %v305_v56 = vpop.xlane.xlu0 %304 }
  0xd8   :  { %428 = vst.msk [vmem:[%s1246_s1 + $0x88] sm:$0xf] %vm393_vm1, %v305_v56 }
  0xda   :  { %v314_v57 = vpop.xlane.xlu1 %313 }
  0xdb   :  { %431 = vst.msk [vmem:[%s1246_s1 + $0x94] sm:$0xf] %vm393_vm1, %v314_v57  ;;  %v311_v58 = vpop.xlane.xlu0 %310 }
  0xdc   :  { %430 = vst.msk [vmem:[%s1246_s1 + $0x90] sm:$0xf] %vm393_vm1, %v311_v58 }
  0xde   :  { %v320_v60 = vpop.xlane.xlu1 %319 }
  0xdf   :  { %433 = vst.msk [vmem:[%s1246_s1 + $0x9c] sm:$0xf] %vm393_vm1, %v320_v60  ;;  %v317_v62 = vpop.xlane.xlu0 %316 }
  0xe0   :  { %432 = vst.msk [vmem:[%s1246_s1 + $0x98] sm:$0xf] %vm393_vm1, %v317_v62 }
  0xe2   :  { %v326_v63 = vpop.xlane.xlu1 %325 }
  0xe3   :  { %435 = vst.msk [vmem:[%s1246_s1 + $0xa4] sm:$0xf] %vm393_vm1, %v326_v63  ;;  %v323_v0 = vpop.xlane.xlu0 %322 }
  0xe4   :  { %434 = vst.msk [vmem:[%s1246_s1 + $0xa0] sm:$0xf] %vm393_vm1, %v323_v0 }
  0xe6   :  { %v332_v1 = vpop.xlane.xlu1 %331 }
  0xe7   :  { %437 = vst.msk [vmem:[%s1246_s1 + $0xac] sm:$0xf] %vm393_vm1, %v332_v1  ;;  %v329_v3 = vpop.xlane.xlu0 %328 }
  0xe8   :  { %436 = vst.msk [vmem:[%s1246_s1 + $0xa8] sm:$0xf] %vm393_vm1, %v329_v3 }
  0xea   :  { %v338_v4 = vpop.xlane.xlu1 %337 }
  0xeb   :  { %439 = vst.msk [vmem:[%s1246_s1 + $0xb4] sm:$0xf] %vm393_vm1, %v338_v4  ;;  %v335_v6 = vpop.xlane.xlu0 %334 }
  0xec   :  { %438 = vst.msk [vmem:[%s1246_s1 + $0xb0] sm:$0xf] %vm393_vm1, %v335_v6 }
  0xee   :  { %v344_v8 = vpop.xlane.xlu1 %343 }
  0xef   :  { %441 = vst.msk [vmem:[%s1246_s1 + $0xbc] sm:$0xf] %vm393_vm1, %v344_v8  ;;  %v341_v9 = vpop.xlane.xlu0 %340 }
  0xf0   :  { %440 = vst.msk [vmem:[%s1246_s1 + $0xb8] sm:$0xf] %vm393_vm1, %v341_v9 }
  0xf2   :  { %v350_v10 = vpop.xlane.xlu1 %349 }
  0xf3   :  { %443 = vst.msk [vmem:[%s1246_s1 + $0xc4] sm:$0xf] %vm393_vm1, %v350_v10  ;;  %v347_v12 = vpop.xlane.xlu0 %346 }
  0xf4   :  { %442 = vst.msk [vmem:[%s1246_s1 + $0xc0] sm:$0xf] %vm393_vm1, %v347_v12 }
  0xf6   :  { %v356_v13 = vpop.xlane.xlu1 %355 }
  0xf7   :  { %445 = vst.msk [vmem:[%s1246_s1 + $0xcc] sm:$0xf] %vm393_vm1, %v356_v13  ;;  %v353_v16 = vpop.xlane.xlu0 %352 }
  0xf8   :  { %444 = vst.msk [vmem:[%s1246_s1 + $0xc8] sm:$0xf] %vm393_vm1, %v353_v16 }
  0xfa   :  { %v362_v17 = vpop.xlane.xlu1 %361 }
  0xfb   :  { %447 = vst.msk [vmem:[%s1246_s1 + $0xd4] sm:$0xf] %vm393_vm1, %v362_v17  ;;  %v359_v18 = vpop.xlane.xlu0 %358 }
  0xfc   :  { %446 = vst.msk [vmem:[%s1246_s1 + $0xd0] sm:$0xf] %vm393_vm1, %v359_v18 }
  0xfe   :  { %v368_v19 = vpop.xlane.xlu1 %367 }
  0xff   :  { %449 = vst.msk [vmem:[%s1246_s1 + $0xdc] sm:$0xf] %vm393_vm1, %v368_v19  ;;  %v365_v20 = vpop.xlane.xlu0 %364 }
 0x100   :  { %448 = vst.msk [vmem:[%s1246_s1 + $0xd8] sm:$0xf] %vm393_vm1, %v365_v20 }
 0x102   :  { %v374_v22 = vpop.xlane.xlu1 %373 }
 0x103   :  { %451 = vst.msk [vmem:[%s1246_s1 + $0xe4] sm:$0xf] %vm393_vm1, %v374_v22  ;;  %v371_v23 = vpop.xlane.xlu0 %370 }
 0x104   :  { %450 = vst.msk [vmem:[%s1246_s1 + $0xe0] sm:$0xf] %vm393_vm1, %v371_v23 }
 0x106   :  { %v380_v25 = vpop.xlane.xlu1 %379 }
 0x107   :  { %453 = vst.msk [vmem:[%s1246_s1 + $0xec] sm:$0xf] %vm393_vm1, %v380_v25  ;;  %v377_v26 = vpop.xlane.xlu0 %376 }
 0x108   :  { %452 = vst.msk [vmem:[%s1246_s1 + $0xe8] sm:$0xf] %vm393_vm1, %v377_v26 }
 0x10a   :  { %v386_v28 = vpop.xlane.xlu1 %385 }
 0x10b   :  { %455 = vst.msk [vmem:[%s1246_s1 + $0xf4] sm:$0xf] %vm393_vm1, %v386_v28  ;;  %v383_v29 = vpop.xlane.xlu0 %382 }
 0x10c   :  { %454 = vst.msk [vmem:[%s1246_s1 + $0xf0] sm:$0xf] %vm393_vm1, %v383_v29 }
 0x10e   :  { %v392_v32 = vpop.xlane.xlu1 %391 }
 0x10f   :  { %457 = vst.msk [vmem:[%s1246_s1 + $0xfc] sm:$0xf] %vm393_vm1, %v392_v32  ;;  %v389_v34 = vpop.xlane.xlu0 %388 }
 0x110   :  { %456 = vst.msk [vmem:[%s1246_s1 + $0xf8] sm:$0xf] %vm393_vm1, %v389_v34 }

// kernel: unet_forward.33
= control target key start
LH: loop header
LB: loop body
LE: loop exit
PB: predicated region body
PF: predicated region fallthrough
CT: control target
= control target key end

     0   :  { %v230_v0 = vmov 0.0   ;;  %vm231_vm0 = vmmov 0   ;;  %v232_v2 = vmov 0   ;;  %vm80_vm1 = vcmask 1043456   ;;  %s311_s0 = inlined_call_operand.vmem [shape: bf16[72,32], index: 0, kind: input, shape index: {}]   ;;  %s312_s2 = inlined_call_operand.vmem [shape: f32[16,1], index: 2, kind: input, shape index: {}]   ;;  %s313_s1 = inlined_call_operand.vmem [shape: bf16[16,72], index: 1, kind: input, shape index: {}]   ;;  %s314_s3 = inlined_call_operand.vmem [shape: f32[16,1], index: 3, kind: input, shape index: {}]   ;;  %s315_s4 = inlined_call_operand.vmem [shape: f32[16,1], index: 4, kind: input, shape index: {}]   ;;  %s316_s5 = inlined_call_operand.vmem [shape: f32[16,32], index: 5, kind: output, shape index: {}]  }
   0x1   :  { %201 = vmatprep.subr.bf16.mxu0 %v230_v0  ;;  %v220_v1 = vld [vmem:[%s311_s0] sm:$0xff]   ;;  %211 = vmatprep.mubr.msk.bf16.mxu0 %vm231_vm0, %v230_v0  ;;  %v221_v3 = vld [vmem:[%s311_s0 + $0x8] sm:$0xff]   ;;  %v222_v5 = vld [vmem:[%s311_s0 + $0x10] sm:$0xff]   ;;  %vm76_vm2 = vcmask 588800   ;;  %vm125_vm3 = vcmask 261120  }
   0x2   :  { %218 = vset.pattern.permute.xlu0 %v232_v2  ;;  %219 = vset.pattern.permute.xlu1 %v232_v2  ;;  %v32_v4 = vld [vmem:[%s312_s2] sm:$0xff]  ;;  %v33_v6 = vld [vmem:[%s312_s2 + $0x8] sm:$0xff]  ;;  %v223_v7 = vld [vmem:[%s311_s0 + $0x18] sm:$0xff]  }
   0x3   :  { %202 = vmatpush3.bf16.msra.mxu0 %v220_v1  ;;  %36 = vperm.xlu0 %218, %v32_v4   ;;  %v224_v8 = vld [vmem:[%s311_s0 + $0x20] ss:$0 sps:$4 sm:$0xff]   ;;  %v153_v22 = vld [vmem:[%s314_s3 + $0x8] sm:$0xff] }
   0x4   :  { %203 = vmatprep.subr.bf16.mxu0 %v230_v0  ;;  %v82_v9 = vsel %vm80_vm1, %v224_v8, 0  ;;  %v225_v10 = vld [vmem:[%s313_s1] sm:$0xff]   ;;  %v167_v34 = vld [vmem:[%s315_s4 + $0x8] sm:$0xff] }
   0x5   :  { %v152_v21 = vld [vmem:[%s314_s3] sm:$0xff] }
   0x6   :  { %v166_v23 = vld [vmem:[%s315_s4] sm:$0xff] }
   0x7   :  { %204 = vmatpush3.bf16.msra.mxu0 %v221_v3  ;;  %41 = vperm.xlu0 %218, %v33_v6  }
   0x8   :  { %205 = vmatprep.subr.bf16.mxu0 %v230_v0 }
   0xb   :  { %206 = vmatpush3.bf16.msra.mxu0 %v222_v5 }
   0xc   :  { %207 = vmatprep.subr.bf16.mxu0 %v230_v0 }
   0xf   :  { %208 = vmatpush3.bf16.msra.mxu0 %v223_v7 }
  0x10   :  { %209 = vmatprep.subr.bf16.mxu0 %v230_v0 }
  0x13   :  { %210 = vmatpush3.bf16.msra.mxu0 %v82_v9 }
  0x16   :  { %212 = vmatmul.mubr.msk.bf16.vlgmr.msra.gmra.mrb[0].mxu0 %vm76_vm2, %v225_v10 }
  0x82   :  { %v37_v11 = vpop.permute.xlu0 %36 }
  0x86   :  { %v42_v15 = vpop.permute.xlu0 %41 }
  0xe9   :  { %v118_v12 = vpop.f32.mrb[0].mxu0 }
  0xea   :  { %v119_v13 = vadd.f32 %v118_v12, %v37_v11  ;;  %v213_v14 = vpop.f32.mrb[1].mxu0 }
  0xeb   :  { %v121_v16 = vpop.f32.mrb[2].mxu0 }
  0xec   :  { %v122_v17 = vadd.f32 %v121_v16, %v42_v15  ;;  %v214_v18 = vpop.f32.mrb[3].mxu0  ;;  %v126_v19 = vsel %vm125_vm3, %v119_v13, 0.0 }
  0xed   :  { %127 = vadd.xlane.f32.xlu1 %v126_v19 }
  0xee   :  { %v129_v20 = vsel %vm125_vm3, %v122_v17, 0.0 }
  0xf1   :  { %130 = vadd.xlane.f32.xlu1 %v129_v20 }
 0x102   :  { %156 = vperm.xlu1 %219, %v152_v21  }
 0x106   :  { %161 = vperm.xlu1 %219, %v153_v22  }
 0x10a   :  { %170 = vperm.xlu1 %219, %v166_v23  }
 0x17a   :  { %v128_v24 = vpop.xlane.xlu1 %127 }
 0x17b   :  { %v132_v25 = vmul.f32 0.03125, %v128_v24 }
 0x17d   :  { %v134_v26 = vsub.f32 %v119_v13, %v132_v25 }
 0x17e   :  { %v131_v27 = vpop.xlane.xlu1 %130 }
 0x17f   :  { %v133_v28 = vmul.f32 0.03125, %v131_v27  ;;  %v136_v29 = vmul.f32 %v134_v26, %v134_v26 }
 0x181   :  { %v135_v30 = vsub.f32 %v122_v17, %v133_v28  ;;  %v138_v31 = vsel %vm125_vm3, %v136_v29, 0.0 }
 0x182   :  { %139 = vadd.xlane.f32.xlu0 %v138_v31  ;;  %v157_v35 = vpop.permute.xlu1 %156 }
 0x183   :  { %v137_v32 = vmul.f32 %v135_v30, %v135_v30 }
 0x185   :  { %v141_v33 = vsel %vm125_vm3, %v137_v32, 0.0 }
 0x186   :  { %142 = vadd.xlane.f32.xlu1 %v141_v33  ;;  %v162_v36 = vpop.permute.xlu1 %161 }
 0x18a   :  { %v171_v37 = vpop.permute.xlu1 %170 }
 0x197   :  { %175 = vperm.xlu1 %219, %v167_v34  }
 0x20f   :  { %v140_v38 = vpop.xlane.xlu0 %139 }
 0x210   :  { %v144_v39 = vmul.f32 0.03125, %v140_v38 }
 0x212   :  { %v146_v40 = vadd.f32 1e-05, %v144_v39 }
 0x213   :  { %v143_v41 = vpop.xlane.xlu1 %142 }
 0x214   :  { %226 = vrsqrt.f32 %v146_v40  ;;  %v145_v42 = vmul.f32 0.03125, %v143_v41 }
 0x216   :  { %v147_v43 = vadd.f32 1e-05, %v145_v42 }
 0x217   :  { %v176_v52 = vpop.permute.xlu1 %175 }
 0x218   :  { %228 = vrsqrt.f32 %v147_v43 }
 0x21e   :  { %v227_v44 = vpop.eup %226 }
 0x21f   :  { %v150_v45 = vmul.f32 %v227_v44, %v134_v26 }
 0x221   :  { %v164_v46 = vmul.f32 %v157_v35, %v150_v45 }
 0x222   :  { %v229_v47 = vpop.eup %228 }
 0x223   :  { %v151_v48 = vmul.f32 %v229_v47, %v135_v30  ;;  %v178_v49 = vadd.f32 %v171_v37, %v164_v46 }
 0x225   :  { %v165_v50 = vmul.f32 %v162_v36, %v151_v48  ;;  %v180_v51 = vmax.f32 %v178_v49, 0.0 }
 0x227   :  { %182 = vst.msk [vmem:[%s316_s5] sm:$0xff] %vm125_vm3, %v180_v51  ;;  %v179_v53 = vadd.f32 %v176_v52, %v165_v50 }
 0x229   :  { %v181_v54 = vmax.f32 %v179_v53, 0.0 }
 0x22b   :  { %183 = vst.msk [vmem:[%s316_s5 + $0x8] sm:$0xff] %vm125_vm3, %v181_v54 }

// kernel: unet_forward.34
= control target key start
LH: loop header
LB: loop body
LE: loop exit
PB: predicated region body
PF: predicated region fallthrough
CT: control target
= control target key end

     0   :  { %v255_v0 = vmov 0   ;;  %vm116_vm0 = vcmask 130048   ;;  %vm161_vm1 = vcmask 261120   ;;  %s349_s0 = inlined_call_operand.vmem [shape: bf16[144,32], index: 0, kind: input, shape index: {}]   ;;  %s350_s1 = inlined_call_operand.vmem [shape: bf16[16,144], index: 1, kind: input, shape index: {}]   ;;  %s351_s2 = inlined_call_operand.vmem [shape: f32[16,1], index: 2, kind: input, shape index: {}]   ;;  %s352_s3 = inlined_call_operand.vmem [shape: f32[16,1], index: 3, kind: input, shape index: {}]   ;;  %s353_s4 = inlined_call_operand.vmem [shape: f32[16,1], index: 4, kind: input, shape index: {}]   ;;  %s354_s5 = inlined_call_operand.vmem [shape: f32[16,32], index: 5, kind: output, shape index: {}]  }
   0x1   :  { %120 = vmatprep.subr.bf16.mxu0 %v255_v0  ;;  %v239_v1 = vld [vmem:[%s349_s0] sm:$0xff]   ;;  %237 = vset.pattern.permute.xlu0 %v255_v0  ;;  %v240_v2 = vld [vmem:[%s349_s0 + $0x8] sm:$0xff]   ;;  %v241_v3 = vld [vmem:[%s349_s0 + $0x10] sm:$0xff]  }
   0x2   :  { %238 = vset.pattern.permute.xlu1 %v255_v0  ;;  %121 = vmatpush1.bf16.msra.mxu0 %v239_v1  ;;  %v242_v4 = vld [vmem:[%s349_s0 + $0x18] sm:$0xff]   ;;  %v250_v5 = vld [vmem:[%s350_s1 + $0x4] ss:$8 sps:$4 sm:$0xff]   ;;  %v245_v10 = vld [vmem:[%s349_s0 + $0x30] sm:$0xff]  }
   0x3   :  { %122 = vmatprep.subr.bf16.mxu0 %v255_v0  ;;  %v41_v6 = vld [vmem:[%s351_s2] sm:$0xff]  ;;  %235 = vmatprep.mubr.msk.bf16.mxu0 %vm116_vm0, %v250_v5  ;;  %v42_v7 = vld [vmem:[%s351_s2 + $0x8] sm:$0xff]  ;;  %v246_v11 = vld [vmem:[%s349_s0 + $0x38] sm:$0xff]  }
   0x4   :  { %45 = vperm.xlu0 %237, %v41_v6   ;;  %v243_v8 = vld [vmem:[%s349_s0 + $0x20] sm:$0xff]   ;;  %v244_v9 = vld [vmem:[%s349_s0 + $0x28] sm:$0xff]  }
   0x5   :  { %v247_v12 = vld [vmem:[%s349_s0 + $0x40] sm:$0xff]   ;;  %v189_v25 = vld [vmem:[%s352_s3 + $0x8] sm:$0xff] }
   0x6   :  { %123 = vmatpush1.bf16.msra.mxu0 %v240_v2  ;;  %v248_v13 = vld [vmem:[%s350_s1] ss:$8 sps:$4 sm:$0xff]  }
   0x7   :  { %124 = vmatprep.subr.bf16.mxu0 %v255_v0  ;;  %v188_v24 = vld [vmem:[%s352_s3] sm:$0xff]  ;;  %v203_v37 = vld [vmem:[%s353_s4 + $0x8] sm:$0xff] }
   0x8   :  { %50 = vperm.xlu0 %237, %v42_v7   ;;  %v202_v26 = vld [vmem:[%s353_s4] sm:$0xff] }
   0xa   :  { %125 = vmatpush1.bf16.msra.mxu0 %v241_v3 }
   0xb   :  { %126 = vmatprep.subr.bf16.mxu0 %v255_v0 }
   0xe   :  { %127 = vmatpush1.bf16.msra.mxu0 %v242_v4 }
   0xf   :  { %128 = vmatprep.subr.bf16.mxu0 %v255_v0 }
  0x12   :  { %129 = vmatpush1.bf16.msra.mxu0 %v243_v8 }
  0x13   :  { %130 = vmatprep.subr.bf16.mxu0 %v255_v0 }
  0x16   :  { %131 = vmatpush1.bf16.msra.mxu0 %v244_v9 }
  0x17   :  { %132 = vmatprep.subr.bf16.mxu0 %v255_v0 }
  0x1a   :  { %133 = vmatpush1.bf16.msra.mxu0 %v245_v10 }
  0x1b   :  { %134 = vmatprep.subr.bf16.mxu0 %v255_v0 }
  0x1e   :  { %135 = vmatpush1.bf16.msra.mxu0 %v246_v11 }
  0x1f   :  { %136 = vmatprep.subr.bf16.mxu0 %v255_v0 }
  0x22   :  { %137 = vmatpush1.bf16.msra.mxu0 %v247_v12 }
  0x25   :  { %153 = vmatmul.mubr.bf16.vlgmr.msra.gmra.mrb[0].mxu0 %v248_v13 }
  0x83   :  { %v46_v14 = vpop.permute.xlu0 %45 }
  0x87   :  { %v51_v18 = vpop.permute.xlu0 %50 }
  0xf8   :  { %v154_v15 = vpop.f32.mrb[0].mxu0 }
  0xf9   :  { %v155_v16 = vadd.f32 %v154_v15, %v46_v14  ;;  %v156_v17 = vpop.f32.mrb[1].mxu0 }
  0xfa   :  { %v157_v19 = vpop.f32.mrb[2].mxu0 }
  0xfb   :  { %v158_v20 = vadd.f32 %v157_v19, %v51_v18  ;;  %v159_v21 = vpop.f32.mrb[3].mxu0  ;;  %v162_v22 = vsel %vm161_vm1, %v155_v16, 0.0 }
  0xfc   :  { %163 = vadd.xlane.f32.xlu1 %v162_v22 }
  0xfd   :  { %v165_v23 = vsel %vm161_vm1, %v158_v20, 0.0 }
 0x100   :  { %166 = vadd.xlane.f32.xlu1 %v165_v23 }
 0x111   :  { %192 = vperm.xlu1 %238, %v188_v24  }
 0x115   :  { %197 = vperm.xlu1 %238, %v189_v25  }
 0x119   :  { %206 = vperm.xlu1 %238, %v202_v26  }
 0x189   :  { %v164_v27 = vpop.xlane.xlu1 %163 }
 0x18a   :  { %v168_v28 = vmul.f32 0.03125, %v164_v27 }
 0x18c   :  { %v170_v29 = vsub.f32 %v155_v16, %v168_v28 }
 0x18d   :  { %v167_v30 = vpop.xlane.xlu1 %166 }
 0x18e   :  { %v169_v31 = vmul.f32 0.03125, %v167_v30  ;;  %v172_v32 = vmul.f32 %v170_v29, %v170_v29 }
 0x190   :  { %v171_v33 = vsub.f32 %v158_v20, %v169_v31  ;;  %v174_v34 = vsel %vm161_vm1, %v172_v32, 0.0 }
 0x191   :  { %175 = vadd.xlane.f32.xlu0 %v174_v34  ;;  %v193_v38 = vpop.permute.xlu1 %192 }
 0x192   :  { %v173_v35 = vmul.f32 %v171_v33, %v171_v33 }
 0x194   :  { %v177_v36 = vsel %vm161_vm1, %v173_v35, 0.0 }
 0x195   :  { %178 = vadd.xlane.f32.xlu1 %v177_v36  ;;  %v198_v39 = vpop.permute.xlu1 %197 }
 0x199   :  { %v207_v40 = vpop.permute.xlu1 %206 }
 0x1a6   :  { %211 = vperm.xlu1 %238, %v203_v37  }
 0x21e   :  { %v176_v41 = vpop.xlane.xlu0 %175 }
 0x21f   :  { %v180_v42 = vmul.f32 0.03125, %v176_v41 }
 0x221   :  { %v182_v43 = vadd.f32 1e-05, %v180_v42 }
 0x222   :  { %v179_v44 = vpop.xlane.xlu1 %178 }
 0x223   :  { %251 = vrsqrt.f32 %v182_v43  ;;  %v181_v45 = vmul.f32 0.03125, %v179_v44 }
 0x225   :  { %v183_v46 = vadd.f32 1e-05, %v181_v45 }
 0x226   :  { %v212_v55 = vpop.permute.xlu1 %211 }
 0x227   :  { %253 = vrsqrt.f32 %v183_v46 }
 0x22d   :  { %v252_v47 = vpop.eup %251 }
 0x22e   :  { %v186_v48 = vmul.f32 %v252_v47, %v170_v29 }
 0x230   :  { %v200_v49 = vmul.f32 %v193_v38, %v186_v48 }
 0x231   :  { %v254_v50 = vpop.eup %253 }
 0x232   :  { %v187_v51 = vmul.f32 %v254_v50, %v171_v33  ;;  %v214_v52 = vadd.f32 %v207_v40, %v200_v49 }
 0x234   :  { %v201_v53 = vmul.f32 %v198_v39, %v187_v51  ;;  %v216_v54 = vmax.f32 %v214_v52, 0.0 }
 0x236   :  { %218 = vst.msk [vmem:[%s354_s5] sm:$0xff] %vm161_vm1, %v216_v54  ;;  %v215_v56 = vadd.f32 %v212_v55, %v201_v53 }
 0x238   :  { %v217_v57 = vmax.f32 %v215_v56, 0.0 }
 0x23a   :  { %219 = vst.msk [vmem:[%s354_s5 + $0x8] sm:$0xff] %vm161_vm1, %v217_v57 }

// kernel: unet_forward.35
= control target key start
LH: loop header
LB: loop body
LE: loop exit
PB: predicated region body
PF: predicated region fallthrough
CT: control target
= control target key end

     0   :  { %vm200_vm0 = vcmask 9216   ;;  %vm393_vm1 = vcmask 1024   ;;  %s1245_s0 = inlined_call_operand.vmem [shape: f32[64,2,2,2], index: 0, kind: input, shape index: {}]   ;;  %s1246_s1 = inlined_call_operand.vmem [shape: f32[64,2,1], index: 1, kind: output, shape index: {}]  }
   0x1   :  { %v12_v0 = vld [vmem:[%s1245_s0 + $0x8] sm:$0x3]  ;;  %v13_v1 = vld [vmem:[%s1245_s0 + $0xa] sm:$0x3]  ;;  %v8_v2 = vld [vmem:[%s1245_s0] sm:$0x3] }
   0x2   :  { %v138_v3 = vmax.f32 %v12_v0, %v13_v1  ;;  %v9_v4 = vld [vmem:[%s1245_s0 + $0x2] sm:$0x3]  ;;  %v14_v5 = vld [vmem:[%s1245_s0 + $0xc] sm:$0x3]  ;;  %v15_v6 = vld [vmem:[%s1245_s0 + $0xe] sm:$0x3] }
   0x3   :  { %v136_v7 = vmax.f32 %v8_v2, %v9_v4  ;;  %v139_v8 = vmax.f32 %v14_v5, %v15_v6  ;;  %v10_v9 = vld [vmem:[%s1245_s0 + $0x4] sm:$0x3]  ;;  %v11_v10 = vld [vmem:[%s1245_s0 + $0x6] sm:$0x3]  ;;  %v18_v11 = vld [vmem:[%s1245_s0 + $0x14] sm:$0x3] }
   0x4   :  { %v207_v12 = vsel %vm200_vm0, %v138_v3, -inf  ;;  %v137_v13 = vmax.f32 %v10_v9, %v11_v10  ;;  %v19_v14 = vld [vmem:[%s1245_s0 + $0x16] sm:$0x3]  ;;  %v16_v15 = vld [vmem:[%s1245_s0 + $0x10] sm:$0x3] }
   0x5   :  { %208 = vmax.xlane.f32.xlu1 %v207_v12  ;;  %v201_v16 = vsel %vm200_vm0, %v136_v7, -inf  ;;  %v17_v17 = vld [vmem:[%s1245_s0 + $0x12] sm:$0x3]  ;;  %v210_v18 = vsel %vm200_vm0, %v139_v8, -inf  ;;  %v141_v19 = vmax.f32 %v18_v11, %v19_v14  ;;  %v22_v22 = vld [vmem:[%s1245_s0 + $0x1c] sm:$0x3] }
   0x6   :  { %202 = vmax.xlane.f32.xlu0 %v201_v16  ;;  %v204_v20 = vsel %vm200_vm0, %v137_v13, -inf  ;;  %v140_v21 = vmax.f32 %v16_v15, %v17_v17  ;;  %v23_v23 = vld [vmem:[%s1245_s0 + $0x1e] sm:$0x3]  ;;  %v20_v24 = vld [vmem:[%s1245_s0 + $0x18] sm:$0x3] }
   0x7   :  { %v21_v25 = vld [vmem:[%s1245_s0 + $0x1a] sm:$0x3]  ;;  %v216_v26 = vsel %vm200_vm0, %v141_v19, -inf  ;;  %v143_v27 = vmax.f32 %v22_v22, %v23_v23  ;;  %v26_v30 = vld [vmem:[%s1245_s0 + $0x24] sm:$0x3] }
   0x8   :  { %v213_v28 = vsel %vm200_vm0, %v140_v21, -inf  ;;  %v142_v29 = vmax.f32 %v20_v24, %v21_v25  ;;  %v27_v31 = vld [vmem:[%s1245_s0 + $0x26] sm:$0x3]  ;;  %v24_v32 = vld [vmem:[%s1245_s0 + $0x20] sm:$0x3] }
   0x9   :  { %211 = vmax.xlane.f32.xlu1 %v210_v18  ;;  %v25_v33 = vld [vmem:[%s1245_s0 + $0x22] sm:$0x3]  ;;  %v222_v34 = vsel %vm200_vm0, %v143_v27, -inf  ;;  %v145_v35 = vmax.f32 %v26_v30, %v27_v31  ;;  %v30_v38 = vld [vmem:[%s1245_s0 + $0x2c] sm:$0x3] }
   0xa   :  { %205 = vmax.xlane.f32.xlu0 %v204_v20  ;;  %v219_v36 = vsel %vm200_vm0, %v142_v29, -inf  ;;  %v144_v37 = vmax.f32 %v24_v32, %v25_v33  ;;  %v31_v39 = vld [vmem:[%s1245_s0 + $0x2e] sm:$0x3]  ;;  %v28_v40 = vld [vmem:[%s1245_s0 + $0x28] sm:$0x3] }
   0xb   :  { %v29_v41 = vld [vmem:[%s1245_s0 + $0x2a] sm:$0x3]  ;;  %v228_v42 = vsel %vm200_vm0, %v145_v35, -inf  ;;  %v147_v43 = vmax.f32 %v30_v38, %v31_v39  ;;  %v34_v46 = vld [vmem:[%s1245_s0 + $0x34] sm:$0x3] }
   0xc   :  { %v225_v44 = vsel %vm200_vm0, %v144_v37, -inf  ;;  %v146_v45 = vmax.f32 %v28_v40, %v29_v41  ;;  %v35_v47 = vld [vmem:[%s1245_s0 + $0x36] sm:$0x3]  ;;  %v32_v48 = vld [vmem:[%s1245_s0 + $0x30] sm:$0x3] }
   0xd   :  { %217 = vmax.xlane.f32.xlu1 %v216_v26  ;;  %v33_v49 = vld [vmem:[%s1245_s0 + $0x32] sm:$0x3]  ;;  %v234_v50 = vsel %vm200_vm0, %v147_v43, -inf  ;;  %v149_v51 = vmax.f32 %v34_v46, %v35_v47  ;;  %v38_v52 = vld [vmem:[%s1245_s0 + $0x3c] sm:$0x3] }
   0xe   :  { %214 = vmax.xlane.f32.xlu0 %v213_v28  ;;  %v231_v53 = vsel %vm200_vm0, %v146_v45, -inf  ;;  %v148_v54 = vmax.f32 %v32_v48, %v33_v49  ;;  %v39_v55 = vld [vmem:[%s1245_s0 + $0x3e] sm:$0x3]  ;;  %v36_v56 = vld [vmem:[%s1245_s0 + $0x38] sm:$0x3] }
   0xf   :  { %v37_v57 = vld [vmem:[%s1245_s0 + $0x3a] sm:$0x3]  ;;  %v42_v58 = vld [vmem:[%s1245_s0 + $0x44] sm:$0x3]  ;;  %v43_v59 = vld [vmem:[%s1245_s0 + $0x46] sm:$0x3]  ;;  %v151_v61 = vmax.f32 %v38_v52, %v39_v55 }
  0x10   :  { %v240_v60 = vsel %vm200_vm0, %v149_v51, -inf  ;;  %v237_v62 = vsel %vm200_vm0, %v148_v54, -inf  ;;  %v150_v63 = vmax.f32 %v36_v56, %v37_v57  ;;  %v153_v0 = vmax.f32 %v42_v58, %v43_v59  ;;  %v40_v1 = vld [vmem:[%s1245_s0 + $0x40] sm:$0x3]  ;;  %v41_v2 = vld [vmem:[%s1245_s0 + $0x42] sm:$0x3] }
  0x11   :  { %223 = vmax.xlane.f32.xlu1 %v222_v34  ;;  %v246_v3 = vsel %vm200_vm0, %v151_v61, -inf  ;;  %v46_v4 = vld [vmem:[%s1245_s0 + $0x4c] sm:$0x3]  ;;  %v47_v5 = vld [vmem:[%s1245_s0 + $0x4e] sm:$0x3]  ;;  %v152_v8 = vmax.f32 %v40_v1, %v41_v2 }
  0x12   :  { %220 = vmax.xlane.f32.xlu0 %v219_v36  ;;  %v243_v6 = vsel %vm200_vm0, %v150_v63, -inf  ;;  %v252_v7 = vsel %vm200_vm0, %v153_v0, -inf  ;;  %v44_v9 = vld [vmem:[%s1245_s0 + $0x48] sm:$0x3]  ;;  %v74_v10 = vld [vmem:[%s1245_s0 + $0x84] sm:$0x3]  ;;  %v155_v19 = vmax.f32 %v46_v4, %v47_v5 }
  0x13   :  { %v45_v11 = vld [vmem:[%s1245_s0 + $0x4a] sm:$0x3]  ;;  %v75_v12 = vld [vmem:[%s1245_s0 + $0x86] sm:$0x3]  ;;  %v72_v13 = vld [vmem:[%s1245_s0 + $0x80] sm:$0x3] }
  0x14   :  { %v50_v14 = vld [vmem:[%s1245_s0 + $0x54] sm:$0x3]  ;;  %v51_v15 = vld [vmem:[%s1245_s0 + $0x56] sm:$0x3]  ;;  %v169_v16 = vmax.f32 %v74_v10, %v75_v12  ;;  %v73_v17 = vld [vmem:[%s1245_s0 + $0x82] sm:$0x3]  ;;  %v154_v26 = vmax.f32 %v44_v9, %v45_v11 }
  0x15   :  { %229 = vmax.xlane.f32.xlu1 %v228_v42  ;;  %v78_v18 = vld [vmem:[%s1245_s0 + $0x8c] sm:$0x3]  ;;  %v48_v20 = vld [vmem:[%s1245_s0 + $0x50] sm:$0x3]  ;;  %v49_v21 = vld [vmem:[%s1245_s0 + $0x52] sm:$0x3]  ;;  %v168_v22 = vmax.f32 %v72_v13, %v73_v17  ;;  %v157_v42 = vmax.f32 %v50_v14, %v51_v15 }
  0x16   :  { %226 = vmax.xlane.f32.xlu0 %v225_v44  ;;  %v79_v23 = vld [vmem:[%s1245_s0 + $0x8e] sm:$0x3]  ;;  %v76_v24 = vld [vmem:[%s1245_s0 + $0x88] sm:$0x3]  ;;  %v249_v25 = vsel %vm200_vm0, %v152_v8, -inf  ;;  %v644_v27 = vsel %vm200_vm0, %v169_v16, -inf }
  0x17   :  { %v171_v28 = vmax.f32 %v78_v18, %v79_v23  ;;  %v77_v29 = vld [vmem:[%s1245_s0 + $0x8a] sm:$0x3]  ;;  %v82_v30 = vld [vmem:[%s1245_s0 + $0x94] sm:$0x3]  ;;  %v653_v31 = vsel %vm200_vm0, %v168_v22, -inf  ;;  %v258_v41 = vsel %vm200_vm0, %v155_v19, -inf }
  0x18   :  { %v170_v32 = vmax.f32 %v76_v24, %v77_v29  ;;  %v83_v33 = vld [vmem:[%s1245_s0 + $0x96] sm:$0x3]  ;;  %v80_v34 = vld [vmem:[%s1245_s0 + $0x90] sm:$0x3]  ;;  %v54_v35 = vld [vmem:[%s1245_s0 + $0x5c] sm:$0x3] }
  0x19   :  { %235 = vmax.xlane.f32.xlu1 %v234_v50  ;;  %v55_v36 = vld [vmem:[%s1245_s0 + $0x5e] sm:$0x3]  ;;  %v668_v37 = vsel %vm200_vm0, %v171_v28, -inf  ;;  %v173_v38 = vmax.f32 %v82_v30, %v83_v33  ;;  %v81_v39 = vld [vmem:[%s1245_s0 + $0x92] sm:$0x3]  ;;  %v255_v49 = vsel %vm200_vm0, %v154_v26, -inf  ;;  %v156_v50 = vmax.f32 %v48_v20, %v49_v21 }
  0x1a   :  { %232 = vmax.xlane.f32.xlu0 %v231_v53  ;;  %v86_v40 = vld [vmem:[%s1245_s0 + $0x9c] sm:$0x3]  ;;  %v52_v43 = vld [vmem:[%s1245_s0 + $0x58] sm:$0x3]  ;;  %v53_v44 = vld [vmem:[%s1245_s0 + $0x5a] sm:$0x3]  ;;  %v172_v46 = vmax.f32 %v80_v34, %v81_v39  ;;  %v159_v2 = vmax.f32 %v54_v35, %v55_v36 }
  0x1b   :  { %v684_v45 = vsel %vm200_vm0, %v170_v32, -inf  ;;  %v87_v47 = vld [vmem:[%s1245_s0 + $0x9e] sm:$0x3]  ;;  %v84_v48 = vld [vmem:[%s1245_s0 + $0x98] sm:$0x3]  ;;  %v694_v51 = vsel %vm200_vm0, %v173_v38, -inf  ;;  %v158_v10 = vmax.f32 %v52_v43, %v53_v44 }
  0x1c   :  { %v175_v52 = vmax.f32 %v86_v40, %v87_v47  ;;  %v85_v53 = vld [vmem:[%s1245_s0 + $0x9a] sm:$0x3]  ;;  %v90_v54 = vld [vmem:[%s1245_s0 + $0xa4] sm:$0x3]  ;;  %v703_v55 = vsel %vm200_vm0, %v172_v46, -inf  ;;  %v264_v1 = vsel %vm200_vm0, %v157_v42, -inf }
  0x1d   :  { %241 = vmax.xlane.f32.xlu1 %v240_v60  ;;  %v174_v56 = vmax.f32 %v84_v48, %v85_v53  ;;  %v91_v57 = vld [vmem:[%s1245_s0 + $0xa6] sm:$0x3]  ;;  %v88_v58 = vld [vmem:[%s1245_s0 + $0xa0] sm:$0x3]  ;;  %v58_v59 = vld [vmem:[%s1245_s0 + $0x64] sm:$0x3] }
  0x1e   :  { %238 = vmax.xlane.f32.xlu0 %v237_v62  ;;  %v59_v60 = vld [vmem:[%s1245_s0 + $0x66] sm:$0x3]  ;;  %v718_v61 = vsel %vm200_vm0, %v175_v52, -inf  ;;  %v177_v62 = vmax.f32 %v90_v54, %v91_v57  ;;  %v89_v63 = vld [vmem:[%s1245_s0 + $0xa2] sm:$0x3]  ;;  %v261_v9 = vsel %vm200_vm0, %v156_v50, -inf }
  0x1f   :  { %v94_v0 = vld [vmem:[%s1245_s0 + $0xac] sm:$0x3]  ;;  %v57_v4 = vld [vmem:[%s1245_s0 + $0x62] sm:$0x3]  ;;  %v734_v5 = vsel %vm200_vm0, %v174_v56, -inf  ;;  %v161_v26 = vmax.f32 %v58_v59, %v59_v60  ;;  %v267_v35 = vsel %vm200_vm0, %v158_v10, -inf }
  0x20   :  { %v92_v8 = vld [vmem:[%s1245_s0 + $0xa8] sm:$0x3]  ;;  %v744_v11 = vsel %vm200_vm0, %v177_v62, -inf  ;;  %v93_v13 = vld [vmem:[%s1245_s0 + $0xaa] sm:$0x3] }
  0x21   :  { %247 = vmax.xlane.f32.xlu1 %v246_v3  ;;  %v56_v3 = vld [vmem:[%s1245_s0 + $0x60] sm:$0x3]  ;;  %v98_v14 = vld [vmem:[%s1245_s0 + $0xb4] sm:$0x3]  ;;  %v178_v16 = vmax.f32 %v92_v8, %v93_v13  ;;  %v99_v17 = vld [vmem:[%s1245_s0 + $0xb6] sm:$0x3] }
  0x22   :  { %244 = vmax.xlane.f32.xlu0 %v243_v6  ;;  %v176_v6 = vmax.f32 %v88_v58, %v89_v63  ;;  %v96_v18 = vld [vmem:[%s1245_s0 + $0xb0] sm:$0x3]  ;;  %v62_v19 = vld [vmem:[%s1245_s0 + $0x6c] sm:$0x3]  ;;  %v63_v20 = vld [vmem:[%s1245_s0 + $0x6e] sm:$0x3]  ;;  %v181_v22 = vmax.f32 %v98_v14, %v99_v17  ;;  %v160_v36 = vmax.f32 %v56_v3, %v57_v4 }
  0x23   :  { %v97_v23 = vld [vmem:[%s1245_s0 + $0xb2] sm:$0x3]  ;;  %v102_v24 = vld [vmem:[%s1245_s0 + $0xbc] sm:$0x3]  ;;  %v60_v28 = vld [vmem:[%s1245_s0 + $0x68] sm:$0x3]  ;;  %v163_v56 = vmax.f32 %v62_v19, %v63_v20 }
  0x24   :  { %v753_v15 = vsel %vm200_vm0, %v176_v6, -inf  ;;  %v61_v29 = vld [vmem:[%s1245_s0 + $0x6a] sm:$0x3]  ;;  %v784_v30 = vsel %vm200_vm0, %v178_v16, -inf  ;;  %v180_v32 = vmax.f32 %v96_v18, %v97_v23  ;;  %v103_v33 = vld [vmem:[%s1245_s0 + $0xbe] sm:$0x3] }
  0x25   :  { %253 = vmax.xlane.f32.xlu1 %v252_v7  ;;  %v95_v7 = vld [vmem:[%s1245_s0 + $0xae] sm:$0x3]  ;;  %v100_v34 = vld [vmem:[%s1245_s0 + $0xb8] sm:$0x3]  ;;  %v794_v38 = vsel %vm200_vm0, %v181_v22, -inf  ;;  %v183_v39 = vmax.f32 %v102_v24, %v103_v33  ;;  %v276_v54 = vsel %vm200_vm0, %v161_v26, -inf }
  0x26   :  { %250 = vmax.xlane.f32.xlu0 %v249_v25  ;;  %v179_v12 = vmax.f32 %v94_v0, %v95_v7  ;;  %v270_v25 = vsel %vm200_vm0, %v159_v2, -inf  ;;  %v101_v40 = vld [vmem:[%s1245_s0 + $0xba] sm:$0x3]  ;;  %v803_v42 = vsel %vm200_vm0, %v180_v32, -inf  ;;  %v107_v44 = vld [vmem:[%s1245_s0 + $0xc6] sm:$0x3] }
  0x27   :  { %v182_v43 = vmax.f32 %v100_v34, %v101_v40  ;;  %v104_v46 = vld [vmem:[%s1245_s0 + $0xc0] sm:$0x3]  ;;  %v66_v47 = vld [vmem:[%s1245_s0 + $0x74] sm:$0x3]  ;;  %v67_v48 = vld [vmem:[%s1245_s0 + $0x76] sm:$0x3] }
  0x28   :  { %v768_v21 = vsel %vm200_vm0, %v179_v12, -inf  ;;  %v105_v52 = vld [vmem:[%s1245_s0 + $0xc2] sm:$0x3]  ;;  %v110_v53 = vld [vmem:[%s1245_s0 + $0xcc] sm:$0x3]  ;;  %v273_v0 = vsel %vm200_vm0, %v160_v36, -inf  ;;  %v165_v20 = vmax.f32 %v66_v47, %v67_v48 }
  0x29   :  { %259 = vmax.xlane.f32.xlu1 %v258_v41  ;;  %v106_v41 = vld [vmem:[%s1245_s0 + $0xc4] sm:$0x3]  ;;  %v64_v57 = vld [vmem:[%s1245_s0 + $0x70] sm:$0x3]  ;;  %v65_v58 = vld [vmem:[%s1245_s0 + $0x72] sm:$0x3]  ;;  %v184_v60 = vmax.f32 %v104_v46, %v105_v52 }
  0x2a   :  { %256 = vmax.xlane.f32.xlu0 %v255_v49  ;;  %v818_v49 = vsel %vm200_vm0, %v183_v39, -inf  ;;  %v185_v50 = vmax.f32 %v106_v41, %v107_v44  ;;  %v834_v59 = vsel %vm200_vm0, %v182_v43, -inf  ;;  %v111_v62 = vld [vmem:[%s1245_s0 + $0xce] sm:$0x3]  ;;  %v108_v63 = vld [vmem:[%s1245_s0 + $0xc8] sm:$0x3]  ;;  %v164_v32 = vmax.f32 %v64_v57, %v65_v58 }
  0x2b   :  { %v187_v3 = vmax.f32 %v110_v53, %v111_v62  ;;  %v109_v4 = vld [vmem:[%s1245_s0 + $0xca] sm:$0x3]  ;;  %v114_v6 = vld [vmem:[%s1245_s0 + $0xd4] sm:$0x3]  ;;  %v853_v7 = vsel %vm200_vm0, %v184_v60, -inf  ;;  %v282_v19 = vsel %vm200_vm0, %v163_v56, -inf }
  0x2c   :  { %v844_v2 = vsel %vm200_vm0, %v185_v50, -inf  ;;  %v186_v8 = vmax.f32 %v108_v63, %v109_v4  ;;  %v112_v10 = vld [vmem:[%s1245_s0 + $0xd0] sm:$0x3]  ;;  %v70_v12 = vld [vmem:[%s1245_s0 + $0x7c] sm:$0x3]  ;;  %v288_v50 = vsel %vm200_vm0, %v165_v20, -inf }
  0x2d   :  { %265 = vmax.xlane.f32.xlu1 %v264_v1  ;;  %v162_v1 = vmax.f32 %v60_v28, %v61_v29  ;;  %v71_v13 = vld [vmem:[%s1245_s0 + $0x7e] sm:$0x3]  ;;  %v868_v14 = vsel %vm200_vm0, %v187_v3, -inf  ;;  %v113_v17 = vld [vmem:[%s1245_s0 + $0xd2] sm:$0x3]  ;;  %v285_v58 = vsel %vm200_vm0, %v164_v32, -inf }
  0x2e   :  { %262 = vmax.xlane.f32.xlu0 %v261_v9  ;;  %v115_v9 = vld [vmem:[%s1245_s0 + $0xd6] sm:$0x3]  ;;  %v118_v18 = vld [vmem:[%s1245_s0 + $0xdc] sm:$0x3]  ;;  %v68_v22 = vld [vmem:[%s1245_s0 + $0x78] sm:$0x3]  ;;  %v167_v52 = vmax.f32 %v70_v12, %v71_v13 }
  0x2f   :  { %v189_v16 = vmax.f32 %v114_v6, %v115_v9  ;;  %v69_v23 = vld [vmem:[%s1245_s0 + $0x7a] sm:$0x3]  ;;  %v884_v24 = vsel %vm200_vm0, %v186_v8, -inf  ;;  %v119_v26 = vld [vmem:[%s1245_s0 + $0xde] sm:$0x3]  ;;  %v279_v29 = vsel %vm200_vm0, %v162_v1, -inf }
  0x30   :  { %v116_v28 = vld [vmem:[%s1245_s0 + $0xd8] sm:$0x3]  ;;  %v191_v34 = vmax.f32 %v118_v18, %v119_v26  ;;  %v122_v36 = vld [vmem:[%s1245_s0 + $0xe4] sm:$0x3]  ;;  %v123_v41 = vld [vmem:[%s1245_s0 + $0xe6] sm:$0x3]  ;;  %v166_v60 = vmax.f32 %v68_v22, %v69_v23 }
  0x31   :  { %271 = vmax.xlane.f32.xlu1 %v270_v25  ;;  %v188_v25 = vmax.f32 %v112_v10, %v113_v17  ;;  %v894_v33 = vsel %vm200_vm0, %v189_v16, -inf  ;;  %v120_v43 = vld [vmem:[%s1245_s0 + $0xe0] sm:$0x3]  ;;  %v193_v46 = vmax.f32 %v122_v36, %v123_v41  ;;  %v121_v47 = vld [vmem:[%s1245_s0 + $0xe2] sm:$0x3]  ;;  %v294_v16 = vsel %vm200_vm0, %v167_v52, -inf }
  0x32   :  { %268 = vmax.xlane.f32.xlu0 %v267_v35  ;;  %v117_v35 = vld [vmem:[%s1245_s0 + $0xda] sm:$0x3]  ;;  %v912_v44 = vsel %vm200_vm0, %v191_v34, -inf  ;;  %v126_v48 = vld [vmem:[%s1245_s0 + $0xec] sm:$0x3]  ;;  %v291_v22 = vsel %vm200_vm0, %v166_v60, -inf }
  0x33   :  { %v903_v39 = vsel %vm200_vm0, %v188_v25, -inf  ;;  %v190_v40 = vmax.f32 %v116_v28, %v117_v35  ;;  %v127_v56 = vld [vmem:[%s1245_s0 + $0xee] sm:$0x3]  ;;  %v124_v57 = vld [vmem:[%s1245_s0 + $0xe8] sm:$0x3]  ;;  %v372_v62 = vsel %vm200_vm0, %v193_v46, -inf }
  0x34   :  { %v195_v63 = vmax.f32 %v126_v48, %v127_v56  ;;  %v130_v1 = vld [vmem:[%s1245_s0 + $0xf4] sm:$0x3]  ;;  %v131_v6 = vld [vmem:[%s1245_s0 + $0xf6] sm:$0x3]  ;;  %v128_v8 = vld [vmem:[%s1245_s0 + $0xf0] sm:$0x3] }
  0x35   :  { %277 = vmax.xlane.f32.xlu1 %v276_v54  ;;  %v363_v53 = vsel %vm200_vm0, %v190_v40, -inf  ;;  %v192_v54 = vmax.f32 %v120_v43, %v121_v47  ;;  %v197_v10 = vmax.f32 %v130_v1, %v131_v6  ;;  %v129_v12 = vld [vmem:[%s1245_s0 + $0xf2] sm:$0x3]  ;;  %v134_v13 = vld [vmem:[%s1245_s0 + $0xfc] sm:$0x3] }
  0x36   :  { %274 = vmax.xlane.f32.xlu0 %v273_v0  ;;  %v125_v0 = vld [vmem:[%s1245_s0 + $0xea] sm:$0x3]  ;;  %v378_v9 = vsel %vm200_vm0, %v195_v63, -inf  ;;  %v196_v18 = vmax.f32 %v128_v8, %v129_v12  ;;  %v132_v20 = vld [vmem:[%s1245_s0 + $0xf8] sm:$0x3] }
  0x37   :  { %v369_v3 = vsel %vm200_vm0, %v192_v54, -inf  ;;  %v194_v4 = vmax.f32 %v124_v57, %v125_v0  ;;  %v384_v23 = vsel %vm200_vm0, %v197_v10, -inf  ;;  %v133_v26 = vld [vmem:[%s1245_s0 + $0xfa] sm:$0x3] }
  0x38   :  { %v381_v28 = vsel %vm200_vm0, %v196_v18, -inf }
  0x39   :  { %283 = vmax.xlane.f32.xlu1 %v282_v19  ;;  %v375_v17 = vsel %vm200_vm0, %v194_v4, -inf  ;;  %v135_v19 = vld [vmem:[%s1245_s0 + $0xfe] sm:$0x3] }
  0x3a   :  { %280 = vmax.xlane.f32.xlu0 %v279_v29  ;;  %v199_v25 = vmax.f32 %v134_v13, %v135_v19  ;;  %v198_v29 = vmax.f32 %v132_v20, %v133_v26 }
  0x3c   :  { %v390_v32 = vsel %vm200_vm0, %v199_v25, -inf  ;;  %v387_v34 = vsel %vm200_vm0, %v198_v29, -inf }
  0x3d   :  { %289 = vmax.xlane.f32.xlu1 %v288_v50 }
  0x3e   :  { %286 = vmax.xlane.f32.xlu0 %v285_v58 }
  0x41   :  { %295 = vmax.xlane.f32.xlu1 %v294_v16 }
  0x42   :  { %292 = vmax.xlane.f32.xlu0 %v291_v22 }
  0x45   :  { %301 = vmax.xlane.f32.xlu1 %v644_v27 }
  0x46   :  { %298 = vmax.xlane.f32.xlu0 %v653_v31 }
  0x49   :  { %307 = vmax.xlane.f32.xlu1 %v668_v37 }
  0x4a   :  { %304 = vmax.xlane.f32.xlu0 %v684_v45 }
  0x4d   :  { %313 = vmax.xlane.f32.xlu1 %v694_v51 }
  0x4e   :  { %310 = vmax.xlane.f32.xlu0 %v703_v55 }
  0x51   :  { %319 = vmax.xlane.f32.xlu1 %v718_v61 }
  0x52   :  { %316 = vmax.xlane.f32.xlu0 %v734_v5 }
  0x55   :  { %325 = vmax.xlane.f32.xlu1 %v744_v11 }
  0x56   :  { %322 = vmax.xlane.f32.xlu0 %v753_v15 }
  0x59   :  { %331 = vmax.xlane.f32.xlu1 %v768_v21 }
  0x5a   :  { %328 = vmax.xlane.f32.xlu0 %v784_v30 }
  0x5d   :  { %337 = vmax.xlane.f32.xlu1 %v794_v38 }
  0x5e   :  { %334 = vmax.xlane.f32.xlu0 %v803_v42 }
  0x61   :  { %343 = vmax.xlane.f32.xlu1 %v818_v49 }
  0x62   :  { %340 = vmax.xlane.f32.xlu0 %v834_v59 }
  0x65   :  { %349 = vmax.xlane.f32.xlu1 %v844_v2 }
  0x66   :  { %346 = vmax.xlane.f32.xlu0 %v853_v7 }
  0x69   :  { %355 = vmax.xlane.f32.xlu1 %v868_v14 }
  0x6a   :  { %352 = vmax.xlane.f32.xlu0 %v884_v24 }
  0x6d   :  { %361 = vmax.xlane.f32.xlu1 %v894_v33 }
  0x6e   :  { %358 = vmax.xlane.f32.xlu0 %v903_v39 }
  0x71   :  { %367 = vmax.xlane.f32.xlu1 %v912_v44 }
  0x72   :  { %364 = vmax.xlane.f32.xlu0 %v363_v53 }
  0x75   :  { %373 = vmax.xlane.f32.xlu1 %v372_v62 }
  0x76   :  { %370 = vmax.xlane.f32.xlu0 %v369_v3 }
  0x79   :  { %379 = vmax.xlane.f32.xlu1 %v378_v9 }
  0x7a   :  { %376 = vmax.xlane.f32.xlu0 %v375_v17 }
  0x7d   :  { %385 = vmax.xlane.f32.xlu1 %v384_v23 }
  0x7e   :  { %382 = vmax.xlane.f32.xlu0 %v381_v28 }
  0x81   :  { %391 = vmax.xlane.f32.xlu1 %v390_v32 }
  0x82   :  { %388 = vmax.xlane.f32.xlu0 %v387_v34 }
  0x92   :  { %v209_v27 = vpop.xlane.xlu1 %208 }
  0x93   :  { %396 = vst.msk [vmem:[%s1246_s1 + $0x4] sm:$0x3] %vm393_vm1, %v209_v27  ;;  %v203_v31 = vpop.xlane.xlu0 %202 }
  0x94   :  { %394 = vst.msk [vmem:[%s1246_s1] sm:$0x3] %vm393_vm1, %v203_v31 }
  0x96   :  { %v212_v37 = vpop.xlane.xlu1 %211 }
  0x97   :  { %397 = vst.msk [vmem:[%s1246_s1 + $0x6] sm:$0x3] %vm393_vm1, %v212_v37  ;;  %v206_v45 = vpop.xlane.xlu0 %205 }
  0x98   :  { %395 = vst.msk [vmem:[%s1246_s1 + $0x2] sm:$0x3] %vm393_vm1, %v206_v45 }
  0x9a   :  { %v218_v51 = vpop.xlane.xlu1 %217 }
  0x9b   :  { %399 = vst.msk [vmem:[%s1246_s1 + $0xa] sm:$0x3] %vm393_vm1, %v218_v51  ;;  %v215_v55 = vpop.xlane.xlu0 %214 }
  0x9c   :  { %398 = vst.msk [vmem:[%s1246_s1 + $0x8] sm:$0x3] %vm393_vm1, %v215_v55 }
  0x9e   :  { %v224_v61 = vpop.xlane.xlu1 %223 }
  0x9f   :  { %401 = vst.msk [vmem:[%s1246_s1 + $0xe] sm:$0x3] %vm393_vm1, %v224_v61  ;;  %v221_v5 = vpop.xlane.xlu0 %220 }
  0xa0   :  { %400 = vst.msk [vmem:[%s1246_s1 + $0xc] sm:$0x3] %vm393_vm1, %v221_v5 }
  0xa2   :  { %v230_v11 = vpop.xlane.xlu1 %229 }
  0xa3   :  { %403 = vst.msk [vmem:[%s1246_s1 + $0x12] sm:$0x3] %vm393_vm1, %v230_v11  ;;  %v227_v15 = vpop.xlane.xlu0 %226 }
  0xa4   :  { %402 = vst.msk [vmem:[%s1246_s1 + $0x10] sm:$0x3] %vm393_vm1, %v227_v15 }
  0xa6   :  { %v236_v21 = vpop.xlane.xlu1 %235 }
  0xa7   :  { %405 = vst.msk [vmem:[%s1246_s1 + $0x16] sm:$0x3] %vm393_vm1, %v236_v21  ;;  %v233_v30 = vpop.xlane.xlu0 %232 }
  0xa8   :  { %404 = vst.msk [vmem:[%s1246_s1 + $0x14] sm:$0x3] %vm393_vm1, %v233_v30 }
  0xaa   :  { %v242_v38 = vpop.xlane.xlu1 %241 }
  0xab   :  { %407 = vst.msk [vmem:[%s1246_s1 + $0x1a] sm:$0x3] %vm393_vm1, %v242_v38  ;;  %v239_v42 = vpop.xlane.xlu0 %238 }
  0xac   :  { %406 = vst.msk [vmem:[%s1246_s1 + $0x18] sm:$0x3] %vm393_vm1, %v239_v42 }
  0xae   :  { %v248_v49 = vpop.xlane.xlu1 %247 }
  0xaf   :  { %409 = vst.msk [vmem:[%s1246_s1 + $0x1e] sm:$0x3] %vm393_vm1, %v248_v49  ;;  %v245_v59 = vpop.xlane.xlu0 %244 }
  0xb0   :  { %408 = vst.msk [vmem:[%s1246_s1 + $0x1c] sm:$0x3] %vm393_vm1, %v245_v59 }
  0xb2   :  { %v254_v2 = vpop.xlane.xlu1 %253 }
  0xb3   :  { %411 = vst.msk [vmem:[%s1246_s1 + $0x22] sm:$0x3] %vm393_vm1, %v254_v2  ;;  %v251_v7 = vpop.xlane.xlu0 %250 }
  0xb4   :  { %410 = vst.msk [vmem:[%s1246_s1 + $0x20] sm:$0x3] %vm393_vm1, %v251_v7 }
  0xb6   :  { %v260_v14 = vpop.xlane.xlu1 %259 }
  0xb7   :  { %413 = vst.msk [vmem:[%s1246_s1 + $0x26] sm:$0x3] %vm393_vm1, %v260_v14  ;;  %v257_v24 = vpop.xlane.xlu0 %256 }
  0xb8   :  { %412 = vst.msk [vmem:[%s1246_s1 + $0x24] sm:$0x3] %vm393_vm1, %v257_v24 }
  0xba   :  { %v266_v33 = vpop.xlane.xlu1 %265 }
  0xbb   :  { %415 = vst.msk [vmem:[%s1246_s1 + $0x2a] sm:$0x3] %vm393_vm1, %v266_v33  ;;  %v263_v35 = vpop.xlane.xlu0 %262 }
  0xbc   :  { %414 = vst.msk [vmem:[%s1246_s1 + $0x28] sm:$0x3] %vm393_vm1, %v263_v35 }
  0xbe   :  { %v272_v36 = vpop.xlane.xlu1 %271 }
  0xbf   :  { %417 = vst.msk [vmem:[%s1246_s1 + $0x2e] sm:$0x3] %vm393_vm1, %v272_v36  ;;  %v269_v39 = vpop.xlane.xlu0 %268 }
  0xc0   :  { %416 = vst.msk [vmem:[%s1246_s1 + $0x2c] sm:$0x3] %vm393_vm1, %v269_v39 }
  0xc2   :  { %v278_v40 = vpop.xlane.xlu1 %277 }
  0xc3   :  { %419 = vst.msk [vmem:[%s1246_s1 + $0x32] sm:$0x3] %vm393_vm1, %v278_v40  ;;  %v275_v41 = vpop.xlane.xlu0 %274 }
  0xc4   :  { %418 = vst.msk [vmem:[%s1246_s1 + $0x30] sm:$0x3] %vm393_vm1, %v275_v41 }
  0xc6   :  { %v284_v43 = vpop.xlane.xlu1 %283 }
  0xc7   :  { %421 = vst.msk [vmem:[%s1246_s1 + $0x36] sm:$0x3] %vm393_vm1, %v284_v43  ;;  %v281_v44 = vpop.xlane.xlu0 %280 }
  0xc8   :  { %420 = vst.msk [vmem:[%s1246_s1 + $0x34] sm:$0x3] %vm393_vm1, %v281_v44 }
  0xca   :  { %v290_v46 = vpop.xlane.xlu1 %289 }
  0xcb   :  { %423 = vst.msk [vmem:[%s1246_s1 + $0x3a] sm:$0x3] %vm393_vm1, %v290_v46  ;;  %v287_v47 = vpop.xlane.xlu0 %286 }
  0xcc   :  { %422 = vst.msk [vmem:[%s1246_s1 + $0x38] sm:$0x3] %vm393_vm1, %v287_v47 }
  0xce   :  { %v296_v48 = vpop.xlane.xlu1 %295 }
  0xcf   :  { %425 = vst.msk [vmem:[%s1246_s1 + $0x3e] sm:$0x3] %vm393_vm1, %v296_v48  ;;  %v293_v50 = vpop.xlane.xlu0 %292 }
  0xd0   :  { %424 = vst.msk [vmem:[%s1246_s1 + $0x3c] sm:$0x3] %vm393_vm1, %v293_v50 }
  0xd2   :  { %v302_v52 = vpop.xlane.xlu1 %301 }
  0xd3   :  { %427 = vst.msk [vmem:[%s1246_s1 + $0x42] sm:$0x3] %vm393_vm1, %v302_v52  ;;  %v299_v53 = vpop.xlane.xlu0 %298 }
  0xd4   :  { %426 = vst.msk [vmem:[%s1246_s1 + $0x40] sm:$0x3] %vm393_vm1, %v299_v53 }
  0xd6   :  { %v308_v54 = vpop.xlane.xlu1 %307 }
  0xd7   :  { %429 = vst.msk [vmem:[%s1246_s1 + $0x46] sm:$0x3] %vm393_vm1, %v308_v54  ;;  %v305_v56 = vpop.xlane.xlu0 %304 }
  0xd8   :  { %428 = vst.msk [vmem:[%s1246_s1 + $0x44] sm:$0x3] %vm393_vm1, %v305_v56 }
  0xda   :  { %v314_v57 = vpop.xlane.xlu1 %313 }
  0xdb   :  { %431 = vst.msk [vmem:[%s1246_s1 + $0x4a] sm:$0x3] %vm393_vm1, %v314_v57  ;;  %v311_v58 = vpop.xlane.xlu0 %310 }
  0xdc   :  { %430 = vst.msk [vmem:[%s1246_s1 + $0x48] sm:$0x3] %vm393_vm1, %v311_v58 }
  0xde   :  { %v320_v60 = vpop.xlane.xlu1 %319 }
  0xdf   :  { %433 = vst.msk [vmem:[%s1246_s1 + $0x4e] sm:$0x3] %vm393_vm1, %v320_v60  ;;  %v317_v62 = vpop.xlane.xlu0 %316 }
  0xe0   :  { %432 = vst.msk [vmem:[%s1246_s1 + $0x4c] sm:$0x3] %vm393_vm1, %v317_v62 }
  0xe2   :  { %v326_v63 = vpop.xlane.xlu1 %325 }
  0xe3   :  { %435 = vst.msk [vmem:[%s1246_s1 + $0x52] sm:$0x3] %vm393_vm1, %v326_v63  ;;  %v323_v0 = vpop.xlane.xlu0 %322 }
  0xe4   :  { %434 = vst.msk [vmem:[%s1246_s1 + $0x50] sm:$0x3] %vm393_vm1, %v323_v0 }
  0xe6   :  { %v332_v1 = vpop.xlane.xlu1 %331 }
  0xe7   :  { %437 = vst.msk [vmem:[%s1246_s1 + $0x56] sm:$0x3] %vm393_vm1, %v332_v1  ;;  %v329_v3 = vpop.xlane.xlu0 %328 }
  0xe8   :  { %436 = vst.msk [vmem:[%s1246_s1 + $0x54] sm:$0x3] %vm393_vm1, %v329_v3 }
  0xea   :  { %v338_v4 = vpop.xlane.xlu1 %337 }
  0xeb   :  { %439 = vst.msk [vmem:[%s1246_s1 + $0x5a] sm:$0x3] %vm393_vm1, %v338_v4  ;;  %v335_v6 = vpop.xlane.xlu0 %334 }
  0xec   :  { %438 = vst.msk [vmem:[%s1246_s1 + $0x58] sm:$0x3] %vm393_vm1, %v335_v6 }
  0xee   :  { %v344_v8 = vpop.xlane.xlu1 %343 }
  0xef   :  { %441 = vst.msk [vmem:[%s1246_s1 + $0x5e] sm:$0x3] %vm393_vm1, %v344_v8  ;;  %v341_v9 = vpop.xlane.xlu0 %340 }
  0xf0   :  { %440 = vst.msk [vmem:[%s1246_s1 + $0x5c] sm:$0x3] %vm393_vm1, %v341_v9 }
  0xf2   :  { %v350_v10 = vpop.xlane.xlu1 %349 }
  0xf3   :  { %443 = vst.msk [vmem:[%s1246_s1 + $0x62] sm:$0x3] %vm393_vm1, %v350_v10  ;;  %v347_v12 = vpop.xlane.xlu0 %346 }
  0xf4   :  { %442 = vst.msk [vmem:[%s1246_s1 + $0x60] sm:$0x3] %vm393_vm1, %v347_v12 }
  0xf6   :  { %v356_v13 = vpop.xlane.xlu1 %355 }
  0xf7   :  { %445 = vst.msk [vmem:[%s1246_s1 + $0x66] sm:$0x3] %vm393_vm1, %v356_v13  ;;  %v353_v16 = vpop.xlane.xlu0 %352 }
  0xf8   :  { %444 = vst.msk [vmem:[%s1246_s1 + $0x64] sm:$0x3] %vm393_vm1, %v353_v16 }
  0xfa   :  { %v362_v17 = vpop.xlane.xlu1 %361 }
  0xfb   :  { %447 = vst.msk [vmem:[%s1246_s1 + $0x6a] sm:$0x3] %vm393_vm1, %v362_v17  ;;  %v359_v18 = vpop.xlane.xlu0 %358 }
  0xfc   :  { %446 = vst.msk [vmem:[%s1246_s1 + $0x68] sm:$0x3] %vm393_vm1, %v359_v18 }
  0xfe   :  { %v368_v19 = vpop.xlane.xlu1 %367 }
  0xff   :  { %449 = vst.msk [vmem:[%s1246_s1 + $0x6e] sm:$0x3] %vm393_vm1, %v368_v19  ;;  %v365_v20 = vpop.xlane.xlu0 %364 }
 0x100   :  { %448 = vst.msk [vmem:[%s1246_s1 + $0x6c] sm:$0x3] %vm393_vm1, %v365_v20 }
 0x102   :  { %v374_v22 = vpop.xlane.xlu1 %373 }
 0x103   :  { %451 = vst.msk [vmem:[%s1246_s1 + $0x72] sm:$0x3] %vm393_vm1, %v374_v22  ;;  %v371_v23 = vpop.xlane.xlu0 %370 }
 0x104   :  { %450 = vst.msk [vmem:[%s1246_s1 + $0x70] sm:$0x3] %vm393_vm1, %v371_v23 }
 0x106   :  { %v380_v25 = vpop.xlane.xlu1 %379 }
 0x107   :  { %453 = vst.msk [vmem:[%s1246_s1 + $0x76] sm:$0x3] %vm393_vm1, %v380_v25  ;;  %v377_v26 = vpop.xlane.xlu0 %376 }
 0x108   :  { %452 = vst.msk [vmem:[%s1246_s1 + $0x74] sm:$0x3] %vm393_vm1, %v377_v26 }
 0x10a   :  { %v386_v28 = vpop.xlane.xlu1 %385 }
 0x10b   :  { %455 = vst.msk [vmem:[%s1246_s1 + $0x7a] sm:$0x3] %vm393_vm1, %v386_v28  ;;  %v383_v29 = vpop.xlane.xlu0 %382 }
 0x10c   :  { %454 = vst.msk [vmem:[%s1246_s1 + $0x78] sm:$0x3] %vm393_vm1, %v383_v29 }
 0x10e   :  { %v392_v32 = vpop.xlane.xlu1 %391 }
 0x10f   :  { %457 = vst.msk [vmem:[%s1246_s1 + $0x7e] sm:$0x3] %vm393_vm1, %v392_v32  ;;  %v389_v34 = vpop.xlane.xlu0 %388 }
 0x110   :  { %456 = vst.msk [vmem:[%s1246_s1 + $0x7c] sm:$0x3] %vm393_vm1, %v389_v34 }

// kernel: unet_forward.36
= control target key start
LH: loop header
LB: loop body
LE: loop exit
PB: predicated region body
PF: predicated region fallthrough
CT: control target
= control target key end

     0   :  { %v375_v0 = vmov 0   ;;  %vm139_vm0 = vcmask 130048   ;;  %vm195_vm1 = vcmask 64512   ;;  %s505_s0 = inlined_call_operand.vmem [shape: bf16[144,8], index: 0, kind: input, shape index: {}]   ;;  %s506_s1 = inlined_call_operand.vmem [shape: bf16[32,144], index: 1, kind: input, shape index: {}]   ;;  %s507_s2 = inlined_call_operand.vmem [shape: f32[32,1], index: 2, kind: input, shape index: {}]   ;;  %s508_s3 = inlined_call_operand.vmem [shape: f32[32,1], index: 3, kind: input, shape index: {}]   ;;  %s509_s4 = inlined_call_operand.vmem [shape: f32[32,1], index: 4, kind: input, shape index: {}]   ;;  %s510_s5 = inlined_call_operand.vmem [shape: f32[32,8], index: 5, kind: output, shape index: {}]  }
   0x1   :  { %146 = vmatprep.subr.bf16.mxu0 %v375_v0  ;;  %331 = vmatprep.subr.bf16.mxu1 %v375_v0  ;;  %v352_v1 = vld [vmem:[%s505_s0] sm:$0xff]   ;;  %v353_v2 = vld [vmem:[%s505_s0 + $0x8] sm:$0xff]   ;;  %v354_v3 = vld [vmem:[%s505_s0 + $0x10] sm:$0xff]  }
   0x2   :  { %350 = vset.pattern.permute.xlu0 %v375_v0  ;;  %351 = vset.pattern.permute.xlu1 %v375_v0  ;;  %v355_v4 = vld [vmem:[%s505_s0 + $0x18] sm:$0xff]   ;;  %v363_v5 = vld [vmem:[%s506_s1 + $0x4] ss:$8 sps:$4 sm:$0xff]   ;;  %v45_v8 = vld [vmem:[%s507_s2 + $0x10] sm:$0xff] }
   0x3   :  { %147 = vmatpush1.bf16.msra.mxu0 %v352_v1  ;;  %340 = vmatpush1.bf16.msra.mxu1 %v352_v1  ;;  %v366_v6 = vld [vmem:[%s506_s1 + $0x14] ss:$8 sps:$4 sm:$0xff]   ;;  %v43_v7 = vld [vmem:[%s507_s2] sm:$0xff]  ;;  %v44_v9 = vld [vmem:[%s507_s2 + $0x8] sm:$0xff] }
   0x4   :  { %148 = vmatprep.subr.bf16.mxu0 %v375_v0  ;;  %332 = vmatprep.subr.bf16.mxu1 %v375_v0  ;;  %v356_v10 = vld [vmem:[%s505_s0 + $0x20] sm:$0xff]   ;;  %v46_v11 = vld [vmem:[%s507_s2 + $0x18] sm:$0xff]  ;;  %v357_v12 = vld [vmem:[%s505_s0 + $0x28] sm:$0xff]  }
   0x5   :  { %329 = vmatprep.mubr.msk.bf16.mxu0 %vm139_vm0, %v363_v5  ;;  %49 = vperm.xlu0 %350, %v43_v7   ;;  %v358_v13 = vld [vmem:[%s505_s0 + $0x30] sm:$0xff]   ;;  %v359_v14 = vld [vmem:[%s505_s0 + $0x38] sm:$0xff]   ;;  %v360_v15 = vld [vmem:[%s505_s0 + $0x40] sm:$0xff]  }
   0x6   :  { %330 = vmatprep.mubr.msk.bf16.mxu1 %vm139_vm0, %v366_v6  ;;  %59 = vperm.xlu1 %351, %v45_v8   ;;  %v361_v16 = vld [vmem:[%s506_s1] ss:$8 sps:$4 sm:$0xff]   ;;  %v364_v17 = vld [vmem:[%s506_s1 + $0x10] ss:$8 sps:$4 sm:$0xff]  }
   0x7   :  { %149 = vmatpush1.bf16.msra.mxu0 %v353_v2  ;;  %341 = vmatpush1.bf16.msra.mxu1 %v353_v2  ;;  %v248_v38 = vld [vmem:[%s508_s3] sm:$0xff]  ;;  %v250_v39 = vld [vmem:[%s508_s3 + $0x10] sm:$0xff]  ;;  %v251_v40 = vld [vmem:[%s508_s3 + $0x18] sm:$0xff] }
   0x8   :  { %150 = vmatprep.subr.bf16.mxu0 %v375_v0  ;;  %333 = vmatprep.subr.bf16.mxu1 %v375_v0  ;;  %v249_v41 = vld [vmem:[%s508_s3 + $0x8] sm:$0xff]  ;;  %v276_v43 = vld [vmem:[%s509_s4] sm:$0xff]  ;;  %v278_v1 = vld [vmem:[%s509_s4 + $0x10] sm:$0xff] }
   0x9   :  { %54 = vperm.xlu0 %350, %v44_v9   ;;  %v277_v42 = vld [vmem:[%s509_s4 + $0x8] sm:$0xff] }
   0xa   :  { %64 = vperm.xlu1 %351, %v46_v11  }
   0xb   :  { %151 = vmatpush1.bf16.msra.mxu0 %v354_v3  ;;  %342 = vmatpush1.bf16.msra.mxu1 %v354_v3 }
   0xc   :  { %152 = vmatprep.subr.bf16.mxu0 %v375_v0  ;;  %334 = vmatprep.subr.bf16.mxu1 %v375_v0 }
   0xf   :  { %153 = vmatpush1.bf16.msra.mxu0 %v355_v4  ;;  %343 = vmatpush1.bf16.msra.mxu1 %v355_v4 }
  0x10   :  { %154 = vmatprep.subr.bf16.mxu0 %v375_v0  ;;  %335 = vmatprep.subr.bf16.mxu1 %v375_v0 }
  0x13   :  { %155 = vmatpush1.bf16.msra.mxu0 %v356_v10  ;;  %344 = vmatpush1.bf16.msra.mxu1 %v356_v10 }
  0x14   :  { %156 = vmatprep.subr.bf16.mxu0 %v375_v0  ;;  %336 = vmatprep.subr.bf16.mxu1 %v375_v0 }
  0x17   :  { %157 = vmatpush1.bf16.msra.mxu0 %v357_v12  ;;  %345 = vmatpush1.bf16.msra.mxu1 %v357_v12 }
  0x18   :  { %158 = vmatprep.subr.bf16.mxu0 %v375_v0  ;;  %337 = vmatprep.subr.bf16.mxu1 %v375_v0 }
  0x1b   :  { %159 = vmatpush1.bf16.msra.mxu0 %v358_v13  ;;  %346 = vmatpush1.bf16.msra.mxu1 %v358_v13 }
  0x1c   :  { %160 = vmatprep.subr.bf16.mxu0 %v375_v0  ;;  %338 = vmatprep.subr.bf16.mxu1 %v375_v0 }
  0x1f   :  { %161 = vmatpush1.bf16.msra.mxu0 %v359_v14  ;;  %347 = vmatpush1.bf16.msra.mxu1 %v359_v14 }
  0x20   :  { %162 = vmatprep.subr.bf16.mxu0 %v375_v0  ;;  %339 = vmatprep.subr.bf16.mxu1 %v375_v0  ;;  %v279_v0 = vld [vmem:[%s509_s4 + $0x18] sm:$0xff] }
  0x23   :  { %163 = vmatpush1.bf16.msra.mxu0 %v360_v15  ;;  %348 = vmatpush1.bf16.msra.mxu1 %v360_v15 }
  0x26   :  { %179 = vmatmul.mubr.bf16.vlgmr.msra.gmra.mrb[0].mxu0 %v361_v16  ;;  %187 = vmatmul.mubr.bf16.vlgmr.msra.gmra.mrb[0].mxu1 %v364_v17 }
  0x84   :  { %v50_v18 = vpop.permute.xlu0 %49 }
  0x85   :  { %v60_v19 = vpop.permute.xlu1 %59 }
  0x88   :  { %v55_v20 = vpop.permute.xlu0 %54 }
  0x89   :  { %v65_v33 = vpop.permute.xlu1 %64 }
  0xf9   :  { %v180_v21 = vpop.f32.mrb[0].mxu0  ;;  %v188_v22 = vpop.f32.mrb[0].mxu1 }
  0xfa   :  { %v181_v23 = vadd.f32 %v180_v21, %v50_v18  ;;  %v182_v24 = vpop.f32.mrb[1].mxu0  ;;  %v189_v25 = vadd.f32 %v188_v22, %v60_v19  ;;  %v190_v26 = vpop.f32.mrb[1].mxu1 }
  0xfb   :  { %v183_v27 = vpop.f32.mrb[2].mxu0  ;;  %v191_v28 = vpop.f32.mrb[2].mxu1 }
  0xfc   :  { %v184_v29 = vadd.f32 %v183_v27, %v55_v20  ;;  %v185_v30 = vpop.f32.mrb[3].mxu0  ;;  %v193_v31 = vpop.f32.mrb[3].mxu1  ;;  %v196_v32 = vsel %vm195_vm1, %v181_v23, 0.0  ;;  %v202_v35 = vsel %vm195_vm1, %v189_v25, 0.0  ;;  %v192_v36 = vadd.f32 %v191_v28, %v65_v33 }
  0xfd   :  { %197 = vadd.xlane.f32.xlu0 %v196_v32 }
  0xfe   :  { %v199_v34 = vsel %vm195_vm1, %v184_v29, 0.0  ;;  %v205_v37 = vsel %vm195_vm1, %v192_v36, 0.0 }
  0xff   :  { %200 = vadd.xlane.f32.xlu1 %v199_v34 }
 0x101   :  { %203 = vadd.xlane.f32.xlu0 %v202_v35 }
 0x105   :  { %206 = vadd.xlane.f32.xlu0 %v205_v37 }
 0x110   :  { %254 = vperm.xlu1 %351, %v248_v38  }
 0x114   :  { %264 = vperm.xlu1 %351, %v250_v39  }
 0x118   :  { %269 = vperm.xlu1 %351, %v251_v40  }
 0x11b   :  { %259 = vperm.xlu0 %350, %v249_v41  }
 0x11c   :  { %287 = vperm.xlu1 %351, %v277_v42  }
 0x11f   :  { %282 = vperm.xlu0 %350, %v276_v43  }
 0x18a   :  { %v198_v44 = vpop.xlane.xlu0 %197 }
 0x18b   :  { %v208_v45 = vmul.f32 0.125, %v198_v44 }
 0x18c   :  { %v201_v46 = vpop.xlane.xlu1 %200 }
 0x18d   :  { %v212_v47 = vsub.f32 %v181_v23, %v208_v45  ;;  %v209_v48 = vmul.f32 0.125, %v201_v46 }
 0x18e   :  { %v204_v49 = vpop.xlane.xlu0 %203 }
 0x18f   :  { %v213_v50 = vsub.f32 %v184_v29, %v209_v48  ;;  %v210_v51 = vmul.f32 0.125, %v204_v49  ;;  %v216_v52 = vmul.f32 %v212_v47, %v212_v47 }
 0x190   :  { %v255_v2 = vpop.permute.xlu1 %254 }
 0x191   :  { %v214_v53 = vsub.f32 %v189_v25, %v210_v51  ;;  %v220_v54 = vsel %vm195_vm1, %v216_v52, 0.0  ;;  %v217_v55 = vmul.f32 %v213_v50, %v213_v50 }
 0x192   :  { %221 = vadd.xlane.f32.xlu1 %v220_v54  ;;  %v207_v56 = vpop.xlane.xlu0 %206 }
 0x193   :  { %v211_v57 = vmul.f32 0.125, %v207_v56  ;;  %v223_v58 = vsel %vm195_vm1, %v217_v55, 0.0  ;;  %v218_v59 = vmul.f32 %v214_v53, %v214_v53 }
 0x194   :  { %224 = vadd.xlane.f32.xlu0 %v223_v58  ;;  %v265_v3 = vpop.permute.xlu1 %264 }
 0x195   :  { %v215_v60 = vsub.f32 %v192_v36, %v211_v57  ;;  %v226_v61 = vsel %vm195_vm1, %v218_v59, 0.0 }
 0x196   :  { %227 = vadd.xlane.f32.xlu1 %v226_v61 }
 0x197   :  { %v219_v62 = vmul.f32 %v215_v60, %v215_v60 }
 0x198   :  { %v270_v4 = vpop.permute.xlu1 %269 }
 0x199   :  { %v229_v63 = vsel %vm195_vm1, %v219_v62, 0.0 }
 0x19a   :  { %230 = vadd.xlane.f32.xlu0 %v229_v63  ;;  %v260_v5 = vpop.permute.xlu0 %259 }
 0x19c   :  { %v288_v6 = vpop.permute.xlu1 %287 }
 0x19e   :  { %v283_v7 = vpop.permute.xlu0 %282 }
 0x1a7   :  { %297 = vperm.xlu1 %351, %v279_v0  }
 0x1b0   :  { %292 = vperm.xlu0 %350, %v278_v1  }
 0x21f   :  { %v222_v8 = vpop.xlane.xlu1 %221 }
 0x220   :  { %v232_v9 = vmul.f32 0.125, %v222_v8 }
 0x221   :  { %v225_v10 = vpop.xlane.xlu0 %224 }
 0x222   :  { %v236_v11 = vadd.f32 1e-05, %v232_v9  ;;  %v233_v12 = vmul.f32 0.125, %v225_v10 }
 0x223   :  { %v228_v13 = vpop.xlane.xlu1 %227 }
 0x224   :  { %367 = vrsqrt.f32 %v236_v11  ;;  %v237_v14 = vadd.f32 1e-05, %v233_v12  ;;  %v234_v15 = vmul.f32 0.125, %v228_v13 }
 0x226   :  { %369 = vrsqrt.f32 %v237_v14  ;;  %v238_v16 = vadd.f32 1e-05, %v234_v15 }
 0x227   :  { %v231_v17 = vpop.xlane.xlu0 %230  ;;  %v298_v39 = vpop.permute.xlu1 %297 }
 0x228   :  { %371 = vrsqrt.f32 %v238_v16  ;;  %v235_v18 = vmul.f32 0.125, %v231_v17 }
 0x22a   :  { %v239_v19 = vadd.f32 1e-05, %v235_v18 }
 0x22c   :  { %373 = vrsqrt.f32 %v239_v19 }
 0x22e   :  { %v368_v20 = vpop.eup %367 }
 0x22f   :  { %v244_v21 = vmul.f32 %v368_v20, %v212_v47  ;;  %v293_v33 = vpop.permute.xlu0 %292 }
 0x230   :  { %v370_v22 = vpop.eup %369 }
 0x231   :  { %v272_v23 = vmul.f32 %v255_v2, %v244_v21  ;;  %v245_v24 = vmul.f32 %v370_v22, %v213_v50 }
 0x232   :  { %v372_v25 = vpop.eup %371 }
 0x233   :  { %v300_v26 = vadd.f32 %v283_v7, %v272_v23  ;;  %v273_v27 = vmul.f32 %v260_v5, %v245_v24  ;;  %v246_v28 = vmul.f32 %v372_v25, %v214_v53 }
 0x235   :  { %v304_v29 = vmax.f32 %v300_v26, 0.0  ;;  %v301_v30 = vadd.f32 %v288_v6, %v273_v27  ;;  %v274_v31 = vmul.f32 %v265_v3, %v246_v28 }
 0x236   :  { %v374_v32 = vpop.eup %373 }
 0x237   :  { %v305_v34 = vmax.f32 %v301_v30, 0.0  ;;  %v247_v35 = vmul.f32 %v374_v32, %v215_v60  ;;  %308 = vst.msk [vmem:[%s510_s5] sm:$0xff] %vm195_vm1, %v304_v29  ;;  %v302_v36 = vadd.f32 %v293_v33, %v274_v31 }
 0x239   :  { %v275_v37 = vmul.f32 %v270_v4, %v247_v35  ;;  %309 = vst.msk [vmem:[%s510_s5 + $0x8] sm:$0xff] %vm195_vm1, %v305_v34  ;;  %v306_v38 = vmax.f32 %v302_v36, 0.0 }
 0x23b   :  { %v303_v40 = vadd.f32 %v298_v39, %v275_v37  ;;  %310 = vst.msk [vmem:[%s510_s5 + $0x10] sm:$0xff] %vm195_vm1, %v306_v38 }
 0x23d   :  { %v307_v41 = vmax.f32 %v303_v40, 0.0 }
 0x23f   :  { %311 = vst.msk [vmem:[%s510_s5 + $0x18] sm:$0xff] %vm195_vm1, %v307_v41 }

// kernel: unet_forward.37
= control target key start
LH: loop header
LB: loop body
LE: loop exit
PB: predicated region body
PF: predicated region fallthrough
CT: control target
= control target key end

     0   :  { %v556_v1 = vmov 0   ;;  %vm227_vm0 = vcmask 261120   ;;  %vm332_vm1 = vcmask 64512   ;;  %s721_s0 = inlined_call_operand.vmem [shape: bf16[288,8], index: 0, kind: input, shape index: {}]   ;;  %s722_s1 = inlined_call_operand.vmem [shape: bf16[32,288], index: 1, kind: input, shape index: {}]   ;;  %s723_s2 = inlined_call_operand.vmem [shape: f32[32,1], index: 2, kind: input, shape index: {}]   ;;  %s724_s3 = inlined_call_operand.vmem [shape: f32[32,1], index: 3, kind: input, shape index: {}]   ;;  %s725_s4 = inlined_call_operand.vmem [shape: f32[32,1], index: 4, kind: input, shape index: {}]   ;;  %s726_s5 = inlined_call_operand.vmem [shape: f32[32,8], index: 5, kind: output, shape index: {}]  }
   0x1   :  { %v522_v0 = vld [vmem:[%s721_s0 + $0x40] sm:$0xff]   ;;  %520 = vset.pattern.permute.xlu0 %v556_v1  ;;  %521 = vset.pattern.permute.xlu1 %v556_v1  ;;  %v524_v3 = vld [vmem:[%s721_s0 + $0x48] sm:$0xff]   ;;  %v526_v5 = vld [vmem:[%s721_s0 + $0x50] sm:$0xff]  }
   0x2   :  { %v523_v2 = vld [vmem:[%s721_s0] sm:$0xff]   ;;  %479 = vmatprep.subr.bf16.mxu0 %v522_v0  ;;  %v525_v4 = vld [vmem:[%s721_s0 + $0x8] sm:$0xff]   ;;  %v527_v6 = vld [vmem:[%s721_s0 + $0x10] sm:$0xff]  }
   0x3   :  { %480 = vmatpush3.bf16.msra.mxu0 %v523_v2  ;;  %v528_v7 = vld [vmem:[%s721_s0 + $0x58] sm:$0xff]   ;;  %v530_v9 = vld [vmem:[%s721_s0 + $0x60] sm:$0xff]   ;;  %v532_v12 = vld [vmem:[%s721_s0 + $0x68] sm:$0xff]  }
   0x4   :  { %481 = vmatprep.subr.bf16.mxu0 %v524_v3  ;;  %v529_v8 = vld [vmem:[%s721_s0 + $0x18] sm:$0xff]   ;;  %v531_v10 = vld [vmem:[%s721_s0 + $0x20] sm:$0xff]   ;;  %v533_v13 = vld [vmem:[%s721_s0 + $0x28] sm:$0xff]  }
   0x5   :  { %v537_v11 = vld [vmem:[%s721_s0 + $0x80] sm:$0xff]   ;;  %v534_v14 = vld [vmem:[%s721_s0 + $0x70] sm:$0xff]   ;;  %v542_v16 = vld [vmem:[%s721_s0 + $0x88] sm:$0xff]  }
   0x6   :  { %511 = vmatprep.subr.bf16.mxu1 %v537_v11  ;;  %v541_v15 = vld [vmem:[%s722_s1 + $0x4] ss:$12 sps:$4 sm:$0xff]   ;;  %v543_v17 = vld [vmem:[%s722_s1 + $0x8] ss:$12 sps:$4 sm:$0xff]   ;;  %v544_v18 = vld [vmem:[%s722_s1 + $0x20] ss:$12 sps:$4 sm:$0xff]  }
   0x7   :  { %482 = vmatpush3.bf16.msra.mxu0 %v525_v4  ;;  %512 = vmatpush3.bf16.msra.mxu1 %v537_v11  ;;  %v65_v19 = vld [vmem:[%s723_s2] sm:$0xff]  ;;  %v535_v20 = vld [vmem:[%s721_s0 + $0x30] sm:$0xff]   ;;  %v536_v22 = vld [vmem:[%s721_s0 + $0x78] sm:$0xff]  }
   0x8   :  { %483 = vmatprep.subr.bf16.mxu0 %v526_v5  ;;  %266 = vmatprep.mubr.bf16.mxu0 %v541_v15  ;;  %v67_v21 = vld [vmem:[%s723_s2 + $0x10] sm:$0xff]  ;;  %v66_v23 = vld [vmem:[%s723_s2 + $0x8] sm:$0xff]  ;;  %v68_v24 = vld [vmem:[%s723_s2 + $0x18] sm:$0xff] }
   0x9   :  { %513 = vmatprep.subr.bf16.mxu1 %v542_v16  ;;  %515 = vmatprep.mubr.msk.bf16.mxu1 %vm227_vm0, %v543_v17  ;;  %v538_v25 = vld [vmem:[%s721_s0 + $0x38] sm:$0xff]   ;;  %v539_v26 = vld [vmem:[%s722_s1] ss:$12 sps:$4 sm:$0xff]   ;;  %v387_v62 = vld [vmem:[%s724_s3 + $0x10] sm:$0xff] }
   0xa   :  { %71 = vperm.xlu0 %520, %v65_v19   ;;  %81 = vperm.xlu1 %521, %v67_v21   ;;  %v545_v27 = vld [vmem:[%s722_s1 + $0x1c] ss:$12 sps:$4 sm:$0xff]   ;;  %v547_v28 = vld [vmem:[%s722_s1 + $0x18] ss:$12 sps:$4 sm:$0xff]  }
   0xb   :  { %484 = vmatpush3.bf16.msra.mxu0 %v527_v6  ;;  %514 = vmatpush3.bf16.msra.mxu1 %v542_v16  ;;  %v385_v61 = vld [vmem:[%s724_s3] sm:$0xff]  ;;  %v388_v63 = vld [vmem:[%s724_s3 + $0x18] sm:$0xff]  ;;  %v414_v0 = vld [vmem:[%s725_s4 + $0x8] sm:$0xff] }
   0xc   :  { %485 = vmatprep.subr.bf16.mxu0 %v528_v7  ;;  %v386_v1 = vld [vmem:[%s724_s3 + $0x8] sm:$0xff]  ;;  %v413_v2 = vld [vmem:[%s725_s4] sm:$0xff] }
   0xe   :  { %516 = vmatmul.mubr.msk.bf16.vlgmr.msra.gmra.mrb[0].mxu1 %vm227_vm0, %v544_v18  ;;  %76 = vperm.xlu0 %520, %v66_v23   ;;  %v416_v23 = vld [vmem:[%s725_s4 + $0x18] sm:$0xff] }
   0xf   :  { %486 = vmatpush3.bf16.msra.mxu0 %v529_v8  ;;  %86 = vperm.xlu1 %521, %v68_v24   ;;  %v415_v24 = vld [vmem:[%s725_s4 + $0x10] sm:$0xff] }
  0x10   :  { %487 = vmatprep.subr.bf16.mxu0 %v530_v9 }
  0x13   :  { %488 = vmatpush3.bf16.msra.mxu0 %v531_v10 }
  0x14   :  { %489 = vmatprep.subr.bf16.mxu0 %v532_v12 }
  0x17   :  { %490 = vmatpush3.bf16.msra.mxu0 %v533_v13 }
  0x18   :  { %491 = vmatprep.subr.bf16.mxu0 %v534_v14 }
  0x1b   :  { %492 = vmatpush3.bf16.msra.mxu0 %v535_v20 }
  0x1c   :  { %493 = vmatprep.subr.bf16.mxu0 %v536_v22 }
  0x1f   :  { %494 = vmatpush3.bf16.msra.mxu0 %v538_v25 }
  0x22   :  { %267 = vmatmul.mubr.bf16.vlgmr.msra.gmra.mrb[0].mxu0 %v539_v26 }
  0x23   :  { %274 = vmatprep.mubr.bf16.mxu0 %v545_v27 }
  0x2a   :  { %275 = vmatmul.mubr.bf16.gmra.mrb[4].mxu0 %v547_v28 }
  0x89   :  { %v72_v33 = vpop.permute.xlu0 %71  ;;  %v82_v44 = vpop.permute.xlu1 %81 }
  0x8d   :  { %v77_v39 = vpop.permute.xlu0 %76 }
  0x8e   :  { %v87_v55 = vpop.permute.xlu1 %86 }
  0xe1   :  { %v517_v29 = vpop.f32.mrb[0].mxu1 }
  0xe2   :  { %v317_v30 = vpop.f32.mrb[1].mxu1 }
  0xe3   :  { %v518_v31 = vpop.f32.mrb[2].mxu1 }
  0xe4   :  { %v320_v32 = vpop.f32.mrb[3].mxu1 }
  0xf5   :  { %v495_v34 = vpop.f32.mrb[0].mxu0 }
  0xf6   :  { %v496_v35 = vpop.f32.mrb[1].mxu0 }
  0xf7   :  { %v497_v36 = vadd.f32 %v496_v35, %v495_v34  ;;  %v498_v37 = vpop.f32.mrb[2].mxu0 }
  0xf8   :  { %v499_v38 = vpop.f32.mrb[3].mxu0 }
  0xf9   :  { %v500_v40 = vadd.f32 %v499_v38, %v498_v37  ;;  %v269_v41 = vadd.f32 %v497_v36, %v72_v33 }
  0xfb   :  { %v272_v42 = vadd.f32 %v500_v40, %v77_v39  ;;  %v318_v43 = vadd.f32 %v317_v30, %v269_v41 }
  0xfd   :  { %v321_v45 = vadd.f32 %v320_v32, %v272_v42  ;;  %v501_v46 = vpop.f32.mrb[4].mxu0  ;;  %v333_v47 = vsel %vm332_vm1, %v318_v43, 0.0 }
  0xfe   :  { %v502_v48 = vpop.f32.mrb[5].mxu0  ;;  %334 = vadd.xlane.f32.xlu0 %v333_v47 }
  0xff   :  { %v503_v49 = vadd.f32 %v502_v48, %v501_v46  ;;  %v504_v50 = vpop.f32.mrb[6].mxu0  ;;  %v336_v51 = vsel %vm332_vm1, %v321_v45, 0.0 }
 0x100   :  { %v505_v52 = vpop.f32.mrb[7].mxu0  ;;  %337 = vadd.xlane.f32.xlu1 %v336_v51 }
 0x101   :  { %v277_v53 = vadd.f32 %v503_v49, %v82_v44  ;;  %v506_v54 = vadd.f32 %v505_v52, %v504_v50 }
 0x103   :  { %v280_v56 = vadd.f32 %v506_v54, %v87_v55  ;;  %v326_v57 = vadd.f32 %v517_v29, %v277_v53 }
 0x105   :  { %v339_v58 = vsel %vm332_vm1, %v326_v57, 0.0  ;;  %v329_v59 = vadd.f32 %v518_v31, %v280_v56 }
 0x106   :  { %340 = vadd.xlane.f32.xlu0 %v339_v58 }
 0x107   :  { %v342_v60 = vsel %vm332_vm1, %v329_v59, 0.0 }
 0x10a   :  { %343 = vadd.xlane.f32.xlu0 %v342_v60 }
 0x111   :  { %391 = vperm.xlu1 %521, %v385_v61  }
 0x115   :  { %401 = vperm.xlu1 %521, %v387_v62  }
 0x119   :  { %406 = vperm.xlu1 %521, %v388_v63  }
 0x11d   :  { %424 = vperm.xlu1 %521, %v414_v0  }
 0x120   :  { %396 = vperm.xlu0 %520, %v386_v1  }
 0x124   :  { %419 = vperm.xlu0 %520, %v413_v2  }
 0x18b   :  { %v335_v3 = vpop.xlane.xlu0 %334 }
 0x18c   :  { %v345_v4 = vmul.f32 0.125, %v335_v3 }
 0x18d   :  { %v338_v5 = vpop.xlane.xlu1 %337 }
 0x18e   :  { %v349_v6 = vsub.f32 %v318_v43, %v345_v4  ;;  %v346_v7 = vmul.f32 0.125, %v338_v5 }
 0x190   :  { %v350_v8 = vsub.f32 %v321_v45, %v346_v7  ;;  %v353_v9 = vmul.f32 %v349_v6, %v349_v6 }
 0x191   :  { %v392_v25 = vpop.permute.xlu1 %391 }
 0x192   :  { %v357_v10 = vsel %vm332_vm1, %v353_v9, 0.0  ;;  %v354_v11 = vmul.f32 %v350_v8, %v350_v8 }
 0x193   :  { %358 = vadd.xlane.f32.xlu1 %v357_v10  ;;  %v341_v12 = vpop.xlane.xlu0 %340 }
 0x194   :  { %v347_v13 = vmul.f32 0.125, %v341_v12  ;;  %v360_v14 = vsel %vm332_vm1, %v354_v11, 0.0 }
 0x195   :  { %361 = vadd.xlane.f32.xlu0 %v360_v14  ;;  %v402_v26 = vpop.permute.xlu1 %401 }
 0x196   :  { %v351_v15 = vsub.f32 %v326_v57, %v347_v13 }
 0x197   :  { %v344_v16 = vpop.xlane.xlu0 %343 }
 0x198   :  { %v348_v17 = vmul.f32 0.125, %v344_v16  ;;  %v355_v18 = vmul.f32 %v351_v15, %v351_v15 }
 0x199   :  { %v407_v27 = vpop.permute.xlu1 %406 }
 0x19a   :  { %v352_v19 = vsub.f32 %v329_v59, %v348_v17  ;;  %v363_v20 = vsel %vm332_vm1, %v355_v18, 0.0 }
 0x19b   :  { %364 = vadd.xlane.f32.xlu1 %v363_v20 }
 0x19c   :  { %v356_v21 = vmul.f32 %v352_v19, %v352_v19 }
 0x19d   :  { %v425_v29 = vpop.permute.xlu1 %424 }
 0x19e   :  { %v366_v22 = vsel %vm332_vm1, %v356_v21, 0.0 }
 0x19f   :  { %367 = vadd.xlane.f32.xlu0 %v366_v22  ;;  %v397_v28 = vpop.permute.xlu0 %396 }
 0x1a3   :  { %v420_v30 = vpop.permute.xlu0 %419 }
 0x1ac   :  { %434 = vperm.xlu1 %521, %v416_v23  }
 0x1b5   :  { %429 = vperm.xlu0 %520, %v415_v24  }
 0x220   :  { %v359_v31 = vpop.xlane.xlu1 %358 }
 0x221   :  { %v369_v32 = vmul.f32 0.125, %v359_v31 }
 0x222   :  { %v362_v33 = vpop.xlane.xlu0 %361 }
 0x223   :  { %v373_v34 = vadd.f32 1e-05, %v369_v32  ;;  %v370_v35 = vmul.f32 0.125, %v362_v33 }
 0x225   :  { %548 = vrsqrt.f32 %v373_v34  ;;  %v374_v36 = vadd.f32 1e-05, %v370_v35 }
 0x227   :  { %550 = vrsqrt.f32 %v374_v36 }
 0x228   :  { %v365_v37 = vpop.xlane.xlu1 %364 }
 0x229   :  { %v371_v38 = vmul.f32 0.125, %v365_v37 }
 0x22b   :  { %v375_v39 = vadd.f32 1e-05, %v371_v38 }
 0x22c   :  { %v368_v40 = vpop.xlane.xlu0 %367  ;;  %v435_v62 = vpop.permute.xlu1 %434 }
 0x22d   :  { %552 = vrsqrt.f32 %v375_v39  ;;  %v372_v41 = vmul.f32 0.125, %v368_v40 }
 0x22f   :  { %v549_v42 = vpop.eup %548  ;;  %v376_v43 = vadd.f32 1e-05, %v372_v41 }
 0x230   :  { %v381_v44 = vmul.f32 %v549_v42, %v349_v6 }
 0x231   :  { %v551_v45 = vpop.eup %550  ;;  %554 = vrsqrt.f32 %v376_v43 }
 0x232   :  { %v409_v46 = vmul.f32 %v392_v25, %v381_v44  ;;  %v382_v47 = vmul.f32 %v551_v45, %v350_v8 }
 0x234   :  { %v437_v48 = vadd.f32 %v420_v30, %v409_v46  ;;  %v410_v49 = vmul.f32 %v397_v28, %v382_v47  ;;  %v430_v57 = vpop.permute.xlu0 %429 }
 0x236   :  { %v441_v50 = vmax.f32 %v437_v48, 0.0  ;;  %v438_v51 = vadd.f32 %v425_v29, %v410_v49 }
 0x237   :  { %v553_v52 = vpop.eup %552 }
 0x238   :  { %v442_v53 = vmax.f32 %v438_v51, 0.0  ;;  %v383_v54 = vmul.f32 %v553_v52, %v351_v15  ;;  %445 = vst.msk [vmem:[%s726_s5] sm:$0xff] %vm332_vm1, %v441_v50 }
 0x23a   :  { %v411_v55 = vmul.f32 %v402_v26, %v383_v54  ;;  %446 = vst.msk [vmem:[%s726_s5 + $0x8] sm:$0xff] %vm332_vm1, %v442_v53 }
 0x23b   :  { %v555_v56 = vpop.eup %554 }
 0x23c   :  { %v384_v58 = vmul.f32 %v555_v56, %v352_v19  ;;  %v439_v59 = vadd.f32 %v430_v57, %v411_v55 }
 0x23e   :  { %v412_v60 = vmul.f32 %v407_v27, %v384_v58  ;;  %v443_v61 = vmax.f32 %v439_v59, 0.0 }
 0x240   :  { %v440_v63 = vadd.f32 %v435_v62, %v412_v60  ;;  %447 = vst.msk [vmem:[%s726_s5 + $0x10] sm:$0xff] %vm332_vm1, %v443_v61 }
 0x242   :  { %v444_v0 = vmax.f32 %v440_v63, 0.0 }
 0x244   :  { %448 = vst.msk [vmem:[%s726_s5 + $0x18] sm:$0xff] %vm332_vm1, %v444_v0 }

// kernel: unet_forward.38
= control target key start
LH: loop header
LB: loop body
LE: loop exit
PB: predicated region body
PF: predicated region fallthrough
CT: control target
= control target key end

     0   :  { %vm200_vm0 = vcmask 8192   ;;  %vm393_vm1 = vcmask 0   ;;  %s1245_s0 = inlined_call_operand.vmem [shape: f32[64,2,1,2], index: 0, kind: input, shape index: {}]   ;;  %s1246_s1 = inlined_call_operand.vmem [shape: f32[64,1,1], index: 1, kind: output, shape index: {}]  }
   0x1   :  { %v12_v0 = vld [vmem:[%s1245_s0 + $0x4] sm:$0x1]  ;;  %v13_v1 = vld [vmem:[%s1245_s0 + $0x5] sm:$0x1]  ;;  %v8_v2 = vld [vmem:[%s1245_s0] sm:$0x1] }
   0x2   :  { %v138_v3 = vmax.f32 %v12_v0, %v13_v1  ;;  %v9_v4 = vld [vmem:[%s1245_s0 + $0x1] sm:$0x1]  ;;  %v14_v5 = vld [vmem:[%s1245_s0 + $0x6] sm:$0x1]  ;;  %v15_v6 = vld [vmem:[%s1245_s0 + $0x7] sm:$0x1] }
   0x3   :  { %v136_v7 = vmax.f32 %v8_v2, %v9_v4  ;;  %v139_v8 = vmax.f32 %v14_v5, %v15_v6  ;;  %v10_v9 = vld [vmem:[%s1245_s0 + $0x2] sm:$0x1]  ;;  %v11_v10 = vld [vmem:[%s1245_s0 + $0x3] sm:$0x1]  ;;  %v18_v11 = vld [vmem:[%s1245_s0 + $0xa] sm:$0x1] }
   0x4   :  { %v207_v12 = vsel %vm200_vm0, %v138_v3, -inf  ;;  %v137_v13 = vmax.f32 %v10_v9, %v11_v10  ;;  %v19_v14 = vld [vmem:[%s1245_s0 + $0xb] sm:$0x1]  ;;  %v16_v15 = vld [vmem:[%s1245_s0 + $0x8] sm:$0x1] }
   0x5   :  { %208 = vmax.xlane.f32.xlu1 %v207_v12  ;;  %v201_v16 = vsel %vm200_vm0, %v136_v7, -inf  ;;  %v17_v17 = vld [vmem:[%s1245_s0 + $0x9] sm:$0x1]  ;;  %v210_v18 = vsel %vm200_vm0, %v139_v8, -inf  ;;  %v141_v19 = vmax.f32 %v18_v11, %v19_v14  ;;  %v22_v22 = vld [vmem:[%s1245_s0 + $0xe] sm:$0x1] }
   0x6   :  { %202 = vmax.xlane.f32.xlu0 %v201_v16  ;;  %v204_v20 = vsel %vm200_vm0, %v137_v13, -inf  ;;  %v140_v21 = vmax.f32 %v16_v15, %v17_v17  ;;  %v23_v23 = vld [vmem:[%s1245_s0 + $0xf] sm:$0x1]  ;;  %v20_v24 = vld [vmem:[%s1245_s0 + $0xc] sm:$0x1] }
   0x7   :  { %v21_v25 = vld [vmem:[%s1245_s0 + $0xd] sm:$0x1]  ;;  %v216_v26 = vsel %vm200_vm0, %v141_v19, -inf  ;;  %v143_v27 = vmax.f32 %v22_v22, %v23_v23  ;;  %v26_v30 = vld [vmem:[%s1245_s0 + $0x12] sm:$0x1] }
   0x8   :  { %v213_v28 = vsel %vm200_vm0, %v140_v21, -inf  ;;  %v142_v29 = vmax.f32 %v20_v24, %v21_v25  ;;  %v27_v31 = vld [vmem:[%s1245_s0 + $0x13] sm:$0x1]  ;;  %v24_v32 = vld [vmem:[%s1245_s0 + $0x10] sm:$0x1] }
   0x9   :  { %211 = vmax.xlane.f32.xlu1 %v210_v18  ;;  %v25_v33 = vld [vmem:[%s1245_s0 + $0x11] sm:$0x1]  ;;  %v222_v34 = vsel %vm200_vm0, %v143_v27, -inf  ;;  %v145_v35 = vmax.f32 %v26_v30, %v27_v31  ;;  %v30_v38 = vld [vmem:[%s1245_s0 + $0x16] sm:$0x1] }
   0xa   :  { %205 = vmax.xlane.f32.xlu0 %v204_v20  ;;  %v219_v36 = vsel %vm200_vm0, %v142_v29, -inf  ;;  %v144_v37 = vmax.f32 %v24_v32, %v25_v33  ;;  %v31_v39 = vld [vmem:[%s1245_s0 + $0x17] sm:$0x1]  ;;  %v28_v40 = vld [vmem:[%s1245_s0 + $0x14] sm:$0x1] }
   0xb   :  { %v29_v41 = vld [vmem:[%s1245_s0 + $0x15] sm:$0x1]  ;;  %v228_v42 = vsel %vm200_vm0, %v145_v35, -inf  ;;  %v147_v43 = vmax.f32 %v30_v38, %v31_v39  ;;  %v34_v46 = vld [vmem:[%s1245_s0 + $0x1a] sm:$0x1] }
   0xc   :  { %v225_v44 = vsel %vm200_vm0, %v144_v37, -inf  ;;  %v146_v45 = vmax.f32 %v28_v40, %v29_v41  ;;  %v35_v47 = vld [vmem:[%s1245_s0 + $0x1b] sm:$0x1]  ;;  %v32_v48 = vld [vmem:[%s1245_s0 + $0x18] sm:$0x1] }
   0xd   :  { %217 = vmax.xlane.f32.xlu1 %v216_v26  ;;  %v33_v49 = vld [vmem:[%s1245_s0 + $0x19] sm:$0x1]  ;;  %v234_v50 = vsel %vm200_vm0, %v147_v43, -inf  ;;  %v149_v51 = vmax.f32 %v34_v46, %v35_v47  ;;  %v38_v52 = vld [vmem:[%s1245_s0 + $0x1e] sm:$0x1] }
   0xe   :  { %214 = vmax.xlane.f32.xlu0 %v213_v28  ;;  %v231_v53 = vsel %vm200_vm0, %v146_v45, -inf  ;;  %v148_v54 = vmax.f32 %v32_v48, %v33_v49  ;;  %v39_v55 = vld [vmem:[%s1245_s0 + $0x1f] sm:$0x1]  ;;  %v36_v56 = vld [vmem:[%s1245_s0 + $0x1c] sm:$0x1] }
   0xf   :  { %v37_v57 = vld [vmem:[%s1245_s0 + $0x1d] sm:$0x1]  ;;  %v42_v58 = vld [vmem:[%s1245_s0 + $0x22] sm:$0x1]  ;;  %v43_v59 = vld [vmem:[%s1245_s0 + $0x23] sm:$0x1]  ;;  %v151_v61 = vmax.f32 %v38_v52, %v39_v55 }
  0x10   :  { %v240_v60 = vsel %vm200_vm0, %v149_v51, -inf  ;;  %v237_v62 = vsel %vm200_vm0, %v148_v54, -inf  ;;  %v150_v63 = vmax.f32 %v36_v56, %v37_v57  ;;  %v153_v0 = vmax.f32 %v42_v58, %v43_v59  ;;  %v40_v1 = vld [vmem:[%s1245_s0 + $0x20] sm:$0x1]  ;;  %v41_v2 = vld [vmem:[%s1245_s0 + $0x21] sm:$0x1] }
  0x11   :  { %223 = vmax.xlane.f32.xlu1 %v222_v34  ;;  %v246_v3 = vsel %vm200_vm0, %v151_v61, -inf  ;;  %v46_v4 = vld [vmem:[%s1245_s0 + $0x26] sm:$0x1]  ;;  %v47_v5 = vld [vmem:[%s1245_s0 + $0x27] sm:$0x1]  ;;  %v152_v8 = vmax.f32 %v40_v1, %v41_v2 }
  0x12   :  { %220 = vmax.xlane.f32.xlu0 %v219_v36  ;;  %v243_v6 = vsel %vm200_vm0, %v150_v63, -inf  ;;  %v252_v7 = vsel %vm200_vm0, %v153_v0, -inf  ;;  %v44_v9 = vld [vmem:[%s1245_s0 + $0x24] sm:$0x1]  ;;  %v74_v10 = vld [vmem:[%s1245_s0 + $0x42] sm:$0x1]  ;;  %v155_v19 = vmax.f32 %v46_v4, %v47_v5 }
  0x13   :  { %v45_v11 = vld [vmem:[%s1245_s0 + $0x25] sm:$0x1]  ;;  %v75_v12 = vld [vmem:[%s1245_s0 + $0x43] sm:$0x1]  ;;  %v72_v13 = vld [vmem:[%s1245_s0 + $0x40] sm:$0x1] }
  0x14   :  { %v50_v14 = vld [vmem:[%s1245_s0 + $0x2a] sm:$0x1]  ;;  %v51_v15 = vld [vmem:[%s1245_s0 + $0x2b] sm:$0x1]  ;;  %v169_v16 = vmax.f32 %v74_v10, %v75_v12  ;;  %v73_v17 = vld [vmem:[%s1245_s0 + $0x41] sm:$0x1]  ;;  %v154_v26 = vmax.f32 %v44_v9, %v45_v11 }
  0x15   :  { %229 = vmax.xlane.f32.xlu1 %v228_v42  ;;  %v78_v18 = vld [vmem:[%s1245_s0 + $0x46] sm:$0x1]  ;;  %v48_v20 = vld [vmem:[%s1245_s0 + $0x28] sm:$0x1]  ;;  %v49_v21 = vld [vmem:[%s1245_s0 + $0x29] sm:$0x1]  ;;  %v168_v22 = vmax.f32 %v72_v13, %v73_v17  ;;  %v157_v42 = vmax.f32 %v50_v14, %v51_v15 }
  0x16   :  { %226 = vmax.xlane.f32.xlu0 %v225_v44  ;;  %v79_v23 = vld [vmem:[%s1245_s0 + $0x47] sm:$0x1]  ;;  %v76_v24 = vld [vmem:[%s1245_s0 + $0x44] sm:$0x1]  ;;  %v249_v25 = vsel %vm200_vm0, %v152_v8, -inf  ;;  %v644_v27 = vsel %vm200_vm0, %v169_v16, -inf }
  0x17   :  { %v171_v28 = vmax.f32 %v78_v18, %v79_v23  ;;  %v77_v29 = vld [vmem:[%s1245_s0 + $0x45] sm:$0x1]  ;;  %v82_v30 = vld [vmem:[%s1245_s0 + $0x4a] sm:$0x1]  ;;  %v653_v31 = vsel %vm200_vm0, %v168_v22, -inf  ;;  %v258_v41 = vsel %vm200_vm0, %v155_v19, -inf }
  0x18   :  { %v170_v32 = vmax.f32 %v76_v24, %v77_v29  ;;  %v83_v33 = vld [vmem:[%s1245_s0 + $0x4b] sm:$0x1]  ;;  %v80_v34 = vld [vmem:[%s1245_s0 + $0x48] sm:$0x1]  ;;  %v54_v35 = vld [vmem:[%s1245_s0 + $0x2e] sm:$0x1] }
  0x19   :  { %235 = vmax.xlane.f32.xlu1 %v234_v50  ;;  %v55_v36 = vld [vmem:[%s1245_s0 + $0x2f] sm:$0x1]  ;;  %v668_v37 = vsel %vm200_vm0, %v171_v28, -inf  ;;  %v173_v38 = vmax.f32 %v82_v30, %v83_v33  ;;  %v81_v39 = vld [vmem:[%s1245_s0 + $0x49] sm:$0x1]  ;;  %v255_v49 = vsel %vm200_vm0, %v154_v26, -inf  ;;  %v156_v50 = vmax.f32 %v48_v20, %v49_v21 }
  0x1a   :  { %232 = vmax.xlane.f32.xlu0 %v231_v53  ;;  %v86_v40 = vld [vmem:[%s1245_s0 + $0x4e] sm:$0x1]  ;;  %v52_v43 = vld [vmem:[%s1245_s0 + $0x2c] sm:$0x1]  ;;  %v53_v44 = vld [vmem:[%s1245_s0 + $0x2d] sm:$0x1]  ;;  %v172_v46 = vmax.f32 %v80_v34, %v81_v39  ;;  %v159_v2 = vmax.f32 %v54_v35, %v55_v36 }
  0x1b   :  { %v684_v45 = vsel %vm200_vm0, %v170_v32, -inf  ;;  %v87_v47 = vld [vmem:[%s1245_s0 + $0x4f] sm:$0x1]  ;;  %v84_v48 = vld [vmem:[%s1245_s0 + $0x4c] sm:$0x1]  ;;  %v694_v51 = vsel %vm200_vm0, %v173_v38, -inf  ;;  %v158_v10 = vmax.f32 %v52_v43, %v53_v44 }
  0x1c   :  { %v175_v52 = vmax.f32 %v86_v40, %v87_v47  ;;  %v85_v53 = vld [vmem:[%s1245_s0 + $0x4d] sm:$0x1]  ;;  %v90_v54 = vld [vmem:[%s1245_s0 + $0x52] sm:$0x1]  ;;  %v703_v55 = vsel %vm200_vm0, %v172_v46, -inf  ;;  %v264_v1 = vsel %vm200_vm0, %v157_v42, -inf }
  0x1d   :  { %241 = vmax.xlane.f32.xlu1 %v240_v60  ;;  %v174_v56 = vmax.f32 %v84_v48, %v85_v53  ;;  %v91_v57 = vld [vmem:[%s1245_s0 + $0x53] sm:$0x1]  ;;  %v88_v58 = vld [vmem:[%s1245_s0 + $0x50] sm:$0x1]  ;;  %v58_v59 = vld [vmem:[%s1245_s0 + $0x32] sm:$0x1] }
  0x1e   :  { %238 = vmax.xlane.f32.xlu0 %v237_v62  ;;  %v59_v60 = vld [vmem:[%s1245_s0 + $0x33] sm:$0x1]  ;;  %v718_v61 = vsel %vm200_vm0, %v175_v52, -inf  ;;  %v177_v62 = vmax.f32 %v90_v54, %v91_v57  ;;  %v89_v63 = vld [vmem:[%s1245_s0 + $0x51] sm:$0x1]  ;;  %v261_v9 = vsel %vm200_vm0, %v156_v50, -inf }
  0x1f   :  { %v94_v0 = vld [vmem:[%s1245_s0 + $0x56] sm:$0x1]  ;;  %v57_v4 = vld [vmem:[%s1245_s0 + $0x31] sm:$0x1]  ;;  %v734_v5 = vsel %vm200_vm0, %v174_v56, -inf  ;;  %v161_v26 = vmax.f32 %v58_v59, %v59_v60  ;;  %v267_v35 = vsel %vm200_vm0, %v158_v10, -inf }
  0x20   :  { %v92_v8 = vld [vmem:[%s1245_s0 + $0x54] sm:$0x1]  ;;  %v744_v11 = vsel %vm200_vm0, %v177_v62, -inf  ;;  %v93_v13 = vld [vmem:[%s1245_s0 + $0x55] sm:$0x1] }
  0x21   :  { %247 = vmax.xlane.f32.xlu1 %v246_v3  ;;  %v56_v3 = vld [vmem:[%s1245_s0 + $0x30] sm:$0x1]  ;;  %v98_v14 = vld [vmem:[%s1245_s0 + $0x5a] sm:$0x1]  ;;  %v178_v16 = vmax.f32 %v92_v8, %v93_v13  ;;  %v99_v17 = vld [vmem:[%s1245_s0 + $0x5b] sm:$0x1] }
  0x22   :  { %244 = vmax.xlane.f32.xlu0 %v243_v6  ;;  %v176_v6 = vmax.f32 %v88_v58, %v89_v63  ;;  %v96_v18 = vld [vmem:[%s1245_s0 + $0x58] sm:$0x1]  ;;  %v62_v19 = vld [vmem:[%s1245_s0 + $0x36] sm:$0x1]  ;;  %v63_v20 = vld [vmem:[%s1245_s0 + $0x37] sm:$0x1]  ;;  %v181_v22 = vmax.f32 %v98_v14, %v99_v17  ;;  %v160_v36 = vmax.f32 %v56_v3, %v57_v4 }
  0x23   :  { %v97_v23 = vld [vmem:[%s1245_s0 + $0x59] sm:$0x1]  ;;  %v102_v24 = vld [vmem:[%s1245_s0 + $0x5e] sm:$0x1]  ;;  %v60_v28 = vld [vmem:[%s1245_s0 + $0x34] sm:$0x1]  ;;  %v163_v56 = vmax.f32 %v62_v19, %v63_v20 }
  0x24   :  { %v753_v15 = vsel %vm200_vm0, %v176_v6, -inf  ;;  %v61_v29 = vld [vmem:[%s1245_s0 + $0x35] sm:$0x1]  ;;  %v784_v30 = vsel %vm200_vm0, %v178_v16, -inf  ;;  %v180_v32 = vmax.f32 %v96_v18, %v97_v23  ;;  %v103_v33 = vld [vmem:[%s1245_s0 + $0x5f] sm:$0x1] }
  0x25   :  { %253 = vmax.xlane.f32.xlu1 %v252_v7  ;;  %v95_v7 = vld [vmem:[%s1245_s0 + $0x57] sm:$0x1]  ;;  %v100_v34 = vld [vmem:[%s1245_s0 + $0x5c] sm:$0x1]  ;;  %v794_v38 = vsel %vm200_vm0, %v181_v22, -inf  ;;  %v183_v39 = vmax.f32 %v102_v24, %v103_v33  ;;  %v276_v54 = vsel %vm200_vm0, %v161_v26, -inf }
  0x26   :  { %250 = vmax.xlane.f32.xlu0 %v249_v25  ;;  %v179_v12 = vmax.f32 %v94_v0, %v95_v7  ;;  %v270_v25 = vsel %vm200_vm0, %v159_v2, -inf  ;;  %v101_v40 = vld [vmem:[%s1245_s0 + $0x5d] sm:$0x1]  ;;  %v803_v42 = vsel %vm200_vm0, %v180_v32, -inf  ;;  %v107_v44 = vld [vmem:[%s1245_s0 + $0x63] sm:$0x1] }
  0x27   :  { %v182_v43 = vmax.f32 %v100_v34, %v101_v40  ;;  %v104_v46 = vld [vmem:[%s1245_s0 + $0x60] sm:$0x1]  ;;  %v66_v47 = vld [vmem:[%s1245_s0 + $0x3a] sm:$0x1]  ;;  %v67_v48 = vld [vmem:[%s1245_s0 + $0x3b] sm:$0x1] }
  0x28   :  { %v768_v21 = vsel %vm200_vm0, %v179_v12, -inf  ;;  %v105_v52 = vld [vmem:[%s1245_s0 + $0x61] sm:$0x1]  ;;  %v110_v53 = vld [vmem:[%s1245_s0 + $0x66] sm:$0x1]  ;;  %v273_v0 = vsel %vm200_vm0, %v160_v36, -inf  ;;  %v165_v20 = vmax.f32 %v66_v47, %v67_v48 }
  0x29   :  { %259 = vmax.xlane.f32.xlu1 %v258_v41  ;;  %v106_v41 = vld [vmem:[%s1245_s0 + $0x62] sm:$0x1]  ;;  %v64_v57 = vld [vmem:[%s1245_s0 + $0x38] sm:$0x1]  ;;  %v65_v58 = vld [vmem:[%s1245_s0 + $0x39] sm:$0x1]  ;;  %v184_v60 = vmax.f32 %v104_v46, %v105_v52 }
  0x2a   :  { %256 = vmax.xlane.f32.xlu0 %v255_v49  ;;  %v818_v49 = vsel %vm200_vm0, %v183_v39, -inf  ;;  %v185_v50 = vmax.f32 %v106_v41, %v107_v44  ;;  %v834_v59 = vsel %vm200_vm0, %v182_v43, -inf  ;;  %v111_v62 = vld [vmem:[%s1245_s0 + $0x67] sm:$0x1]  ;;  %v108_v63 = vld [vmem:[%s1245_s0 + $0x64] sm:$0x1]  ;;  %v164_v32 = vmax.f32 %v64_v57, %v65_v58 }
  0x2b   :  { %v187_v3 = vmax.f32 %v110_v53, %v111_v62  ;;  %v109_v4 = vld [vmem:[%s1245_s0 + $0x65] sm:$0x1]  ;;  %v114_v6 = vld [vmem:[%s1245_s0 + $0x6a] sm:$0x1]  ;;  %v853_v7 = vsel %vm200_vm0, %v184_v60, -inf  ;;  %v282_v19 = vsel %vm200_vm0, %v163_v56, -inf }
  0x2c   :  { %v844_v2 = vsel %vm200_vm0, %v185_v50, -inf  ;;  %v186_v8 = vmax.f32 %v108_v63, %v109_v4  ;;  %v112_v10 = vld [vmem:[%s1245_s0 + $0x68] sm:$0x1]  ;;  %v70_v12 = vld [vmem:[%s1245_s0 + $0x3e] sm:$0x1]  ;;  %v288_v50 = vsel %vm200_vm0, %v165_v20, -inf }
  0x2d   :  { %265 = vmax.xlane.f32.xlu1 %v264_v1  ;;  %v162_v1 = vmax.f32 %v60_v28, %v61_v29  ;;  %v71_v13 = vld [vmem:[%s1245_s0 + $0x3f] sm:$0x1]  ;;  %v868_v14 = vsel %vm200_vm0, %v187_v3, -inf  ;;  %v113_v17 = vld [vmem:[%s1245_s0 + $0x69] sm:$0x1]  ;;  %v285_v58 = vsel %vm200_vm0, %v164_v32, -inf }
  0x2e   :  { %262 = vmax.xlane.f32.xlu0 %v261_v9  ;;  %v115_v9 = vld [vmem:[%s1245_s0 + $0x6b] sm:$0x1]  ;;  %v118_v18 = vld [vmem:[%s1245_s0 + $0x6e] sm:$0x1]  ;;  %v68_v22 = vld [vmem:[%s1245_s0 + $0x3c] sm:$0x1]  ;;  %v167_v52 = vmax.f32 %v70_v12, %v71_v13 }
  0x2f   :  { %v189_v16 = vmax.f32 %v114_v6, %v115_v9  ;;  %v69_v23 = vld [vmem:[%s1245_s0 + $0x3d] sm:$0x1]  ;;  %v884_v24 = vsel %vm200_vm0, %v186_v8, -inf  ;;  %v119_v26 = vld [vmem:[%s1245_s0 + $0x6f] sm:$0x1]  ;;  %v279_v29 = vsel %vm200_vm0, %v162_v1, -inf }
  0x30   :  { %v116_v28 = vld [vmem:[%s1245_s0 + $0x6c] sm:$0x1]  ;;  %v191_v34 = vmax.f32 %v118_v18, %v119_v26  ;;  %v122_v36 = vld [vmem:[%s1245_s0 + $0x72] sm:$0x1]  ;;  %v123_v41 = vld [vmem:[%s1245_s0 + $0x73] sm:$0x1]  ;;  %v166_v60 = vmax.f32 %v68_v22, %v69_v23 }
  0x31   :  { %271 = vmax.xlane.f32.xlu1 %v270_v25  ;;  %v188_v25 = vmax.f32 %v112_v10, %v113_v17  ;;  %v894_v33 = vsel %vm200_vm0, %v189_v16, -inf  ;;  %v120_v43 = vld [vmem:[%s1245_s0 + $0x70] sm:$0x1]  ;;  %v193_v46 = vmax.f32 %v122_v36, %v123_v41  ;;  %v121_v47 = vld [vmem:[%s1245_s0 + $0x71] sm:$0x1]  ;;  %v294_v16 = vsel %vm200_vm0, %v167_v52, -inf }
  0x32   :  { %268 = vmax.xlane.f32.xlu0 %v267_v35  ;;  %v117_v35 = vld [vmem:[%s1245_s0 + $0x6d] sm:$0x1]  ;;  %v912_v44 = vsel %vm200_vm0, %v191_v34, -inf  ;;  %v126_v48 = vld [vmem:[%s1245_s0 + $0x76] sm:$0x1]  ;;  %v291_v22 = vsel %vm200_vm0, %v166_v60, -inf }
  0x33   :  { %v903_v39 = vsel %vm200_vm0, %v188_v25, -inf  ;;  %v190_v40 = vmax.f32 %v116_v28, %v117_v35  ;;  %v127_v56 = vld [vmem:[%s1245_s0 + $0x77] sm:$0x1]  ;;  %v124_v57 = vld [vmem:[%s1245_s0 + $0x74] sm:$0x1]  ;;  %v372_v62 = vsel %vm200_vm0, %v193_v46, -inf }
  0x34   :  { %v195_v63 = vmax.f32 %v126_v48, %v127_v56  ;;  %v130_v1 = vld [vmem:[%s1245_s0 + $0x7a] sm:$0x1]  ;;  %v131_v6 = vld [vmem:[%s1245_s0 + $0x7b] sm:$0x1]  ;;  %v128_v8 = vld [vmem:[%s1245_s0 + $0x78] sm:$0x1] }
  0x35   :  { %277 = vmax.xlane.f32.xlu1 %v276_v54  ;;  %v363_v53 = vsel %vm200_vm0, %v190_v40, -inf  ;;  %v192_v54 = vmax.f32 %v120_v43, %v121_v47  ;;  %v197_v10 = vmax.f32 %v130_v1, %v131_v6  ;;  %v129_v12 = vld [vmem:[%s1245_s0 + $0x79] sm:$0x1]  ;;  %v134_v13 = vld [vmem:[%s1245_s0 + $0x7e] sm:$0x1] }
  0x36   :  { %274 = vmax.xlane.f32.xlu0 %v273_v0  ;;  %v125_v0 = vld [vmem:[%s1245_s0 + $0x75] sm:$0x1]  ;;  %v378_v9 = vsel %vm200_vm0, %v195_v63, -inf  ;;  %v196_v18 = vmax.f32 %v128_v8, %v129_v12  ;;  %v132_v20 = vld [vmem:[%s1245_s0 + $0x7c] sm:$0x1] }
  0x37   :  { %v369_v3 = vsel %vm200_vm0, %v192_v54, -inf  ;;  %v194_v4 = vmax.f32 %v124_v57, %v125_v0  ;;  %v384_v23 = vsel %vm200_vm0, %v197_v10, -inf  ;;  %v133_v26 = vld [vmem:[%s1245_s0 + $0x7d] sm:$0x1] }
  0x38   :  { %v381_v28 = vsel %vm200_vm0, %v196_v18, -inf }
  0x39   :  { %283 = vmax.xlane.f32.xlu1 %v282_v19  ;;  %v375_v17 = vsel %vm200_vm0, %v194_v4, -inf  ;;  %v135_v19 = vld [vmem:[%s1245_s0 + $0x7f] sm:$0x1] }
  0x3a   :  { %280 = vmax.xlane.f32.xlu0 %v279_v29  ;;  %v199_v25 = vmax.f32 %v134_v13, %v135_v19  ;;  %v198_v29 = vmax.f32 %v132_v20, %v133_v26 }
  0x3c   :  { %v390_v32 = vsel %vm200_vm0, %v199_v25, -inf  ;;  %v387_v34 = vsel %vm200_vm0, %v198_v29, -inf }
  0x3d   :  { %289 = vmax.xlane.f32.xlu1 %v288_v50 }
  0x3e   :  { %286 = vmax.xlane.f32.xlu0 %v285_v58 }
  0x41   :  { %295 = vmax.xlane.f32.xlu1 %v294_v16 }
  0x42   :  { %292 = vmax.xlane.f32.xlu0 %v291_v22 }
  0x45   :  { %301 = vmax.xlane.f32.xlu1 %v644_v27 }
  0x46   :  { %298 = vmax.xlane.f32.xlu0 %v653_v31 }
  0x49   :  { %307 = vmax.xlane.f32.xlu1 %v668_v37 }
  0x4a   :  { %304 = vmax.xlane.f32.xlu0 %v684_v45 }
  0x4d   :  { %313 = vmax.xlane.f32.xlu1 %v694_v51 }
  0x4e   :  { %310 = vmax.xlane.f32.xlu0 %v703_v55 }
  0x51   :  { %319 = vmax.xlane.f32.xlu1 %v718_v61 }
  0x52   :  { %316 = vmax.xlane.f32.xlu0 %v734_v5 }
  0x55   :  { %325 = vmax.xlane.f32.xlu1 %v744_v11 }
  0x56   :  { %322 = vmax.xlane.f32.xlu0 %v753_v15 }
  0x59   :  { %331 = vmax.xlane.f32.xlu1 %v768_v21 }
  0x5a   :  { %328 = vmax.xlane.f32.xlu0 %v784_v30 }
  0x5d   :  { %337 = vmax.xlane.f32.xlu1 %v794_v38 }
  0x5e   :  { %334 = vmax.xlane.f32.xlu0 %v803_v42 }
  0x61   :  { %343 = vmax.xlane.f32.xlu1 %v818_v49 }
  0x62   :  { %340 = vmax.xlane.f32.xlu0 %v834_v59 }
  0x65   :  { %349 = vmax.xlane.f32.xlu1 %v844_v2 }
  0x66   :  { %346 = vmax.xlane.f32.xlu0 %v853_v7 }
  0x69   :  { %355 = vmax.xlane.f32.xlu1 %v868_v14 }
  0x6a   :  { %352 = vmax.xlane.f32.xlu0 %v884_v24 }
  0x6d   :  { %361 = vmax.xlane.f32.xlu1 %v894_v33 }
  0x6e   :  { %358 = vmax.xlane.f32.xlu0 %v903_v39 }
  0x71   :  { %367 = vmax.xlane.f32.xlu1 %v912_v44 }
  0x72   :  { %364 = vmax.xlane.f32.xlu0 %v363_v53 }
  0x75   :  { %373 = vmax.xlane.f32.xlu1 %v372_v62 }
  0x76   :  { %370 = vmax.xlane.f32.xlu0 %v369_v3 }
  0x79   :  { %379 = vmax.xlane.f32.xlu1 %v378_v9 }
  0x7a   :  { %376 = vmax.xlane.f32.xlu0 %v375_v17 }
  0x7d   :  { %385 = vmax.xlane.f32.xlu1 %v384_v23 }
  0x7e   :  { %382 = vmax.xlane.f32.xlu0 %v381_v28 }
  0x81   :  { %391 = vmax.xlane.f32.xlu1 %v390_v32 }
  0x82   :  { %388 = vmax.xlane.f32.xlu0 %v387_v34 }
  0x92   :  { %v209_v27 = vpop.xlane.xlu1 %208 }
  0x93   :  { %396 = vst.msk [vmem:[%s1246_s1 + $0x2] sm:$0x1] %vm393_vm1, %v209_v27  ;;  %v203_v31 = vpop.xlane.xlu0 %202 }
  0x94   :  { %394 = vst.msk [vmem:[%s1246_s1] sm:$0x1] %vm393_vm1, %v203_v31 }
  0x96   :  { %v212_v37 = vpop.xlane.xlu1 %211 }
  0x97   :  { %397 = vst.msk [vmem:[%s1246_s1 + $0x3] sm:$0x1] %vm393_vm1, %v212_v37  ;;  %v206_v45 = vpop.xlane.xlu0 %205 }
  0x98   :  { %395 = vst.msk [vmem:[%s1246_s1 + $0x1] sm:$0x1] %vm393_vm1, %v206_v45 }
  0x9a   :  { %v218_v51 = vpop.xlane.xlu1 %217 }
  0x9b   :  { %399 = vst.msk [vmem:[%s1246_s1 + $0x5] sm:$0x1] %vm393_vm1, %v218_v51  ;;  %v215_v55 = vpop.xlane.xlu0 %214 }
  0x9c   :  { %398 = vst.msk [vmem:[%s1246_s1 + $0x4] sm:$0x1] %vm393_vm1, %v215_v55 }
  0x9e   :  { %v224_v61 = vpop.xlane.xlu1 %223 }
  0x9f   :  { %401 = vst.msk [vmem:[%s1246_s1 + $0x7] sm:$0x1] %vm393_vm1, %v224_v61  ;;  %v221_v5 = vpop.xlane.xlu0 %220 }
  0xa0   :  { %400 = vst.msk [vmem:[%s1246_s1 + $0x6] sm:$0x1] %vm393_vm1, %v221_v5 }
  0xa2   :  { %v230_v11 = vpop.xlane.xlu1 %229 }
  0xa3   :  { %403 = vst.msk [vmem:[%s1246_s1 + $0x9] sm:$0x1] %vm393_vm1, %v230_v11  ;;  %v227_v15 = vpop.xlane.xlu0 %226 }
  0xa4   :  { %402 = vst.msk [vmem:[%s1246_s1 + $0x8] sm:$0x1] %vm393_vm1, %v227_v15 }
  0xa6   :  { %v236_v21 = vpop.xlane.xlu1 %235 }
  0xa7   :  { %405 = vst.msk [vmem:[%s1246_s1 + $0xb] sm:$0x1] %vm393_vm1, %v236_v21  ;;  %v233_v30 = vpop.xlane.xlu0 %232 }
  0xa8   :  { %404 = vst.msk [vmem:[%s1246_s1 + $0xa] sm:$0x1] %vm393_vm1, %v233_v30 }
  0xaa   :  { %v242_v38 = vpop.xlane.xlu1 %241 }
  0xab   :  { %407 = vst.msk [vmem:[%s1246_s1 + $0xd] sm:$0x1] %vm393_vm1, %v242_v38  ;;  %v239_v42 = vpop.xlane.xlu0 %238 }
  0xac   :  { %406 = vst.msk [vmem:[%s1246_s1 + $0xc] sm:$0x1] %vm393_vm1, %v239_v42 }
  0xae   :  { %v248_v49 = vpop.xlane.xlu1 %247 }
  0xaf   :  { %409 = vst.msk [vmem:[%s1246_s1 + $0xf] sm:$0x1] %vm393_vm1, %v248_v49  ;;  %v245_v59 = vpop.xlane.xlu0 %244 }
  0xb0   :  { %408 = vst.msk [vmem:[%s1246_s1 + $0xe] sm:$0x1] %vm393_vm1, %v245_v59 }
  0xb2   :  { %v254_v2 = vpop.xlane.xlu1 %253 }
  0xb3   :  { %411 = vst.msk [vmem:[%s1246_s1 + $0x11] sm:$0x1] %vm393_vm1, %v254_v2  ;;  %v251_v7 = vpop.xlane.xlu0 %250 }
  0xb4   :  { %410 = vst.msk [vmem:[%s1246_s1 + $0x10] sm:$0x1] %vm393_vm1, %v251_v7 }
  0xb6   :  { %v260_v14 = vpop.xlane.xlu1 %259 }
  0xb7   :  { %413 = vst.msk [vmem:[%s1246_s1 + $0x13] sm:$0x1] %vm393_vm1, %v260_v14  ;;  %v257_v24 = vpop.xlane.xlu0 %256 }
  0xb8   :  { %412 = vst.msk [vmem:[%s1246_s1 + $0x12] sm:$0x1] %vm393_vm1, %v257_v24 }
  0xba   :  { %v266_v33 = vpop.xlane.xlu1 %265 }
  0xbb   :  { %415 = vst.msk [vmem:[%s1246_s1 + $0x15] sm:$0x1] %vm393_vm1, %v266_v33  ;;  %v263_v35 = vpop.xlane.xlu0 %262 }
  0xbc   :  { %414 = vst.msk [vmem:[%s1246_s1 + $0x14] sm:$0x1] %vm393_vm1, %v263_v35 }
  0xbe   :  { %v272_v36 = vpop.xlane.xlu1 %271 }
  0xbf   :  { %417 = vst.msk [vmem:[%s1246_s1 + $0x17] sm:$0x1] %vm393_vm1, %v272_v36  ;;  %v269_v39 = vpop.xlane.xlu0 %268 }
  0xc0   :  { %416 = vst.msk [vmem:[%s1246_s1 + $0x16] sm:$0x1] %vm393_vm1, %v269_v39 }
  0xc2   :  { %v278_v40 = vpop.xlane.xlu1 %277 }
  0xc3   :  { %419 = vst.msk [vmem:[%s1246_s1 + $0x19] sm:$0x1] %vm393_vm1, %v278_v40  ;;  %v275_v41 = vpop.xlane.xlu0 %274 }
  0xc4   :  { %418 = vst.msk [vmem:[%s1246_s1 + $0x18] sm:$0x1] %vm393_vm1, %v275_v41 }
  0xc6   :  { %v284_v43 = vpop.xlane.xlu1 %283 }
  0xc7   :  { %421 = vst.msk [vmem:[%s1246_s1 + $0x1b] sm:$0x1] %vm393_vm1, %v284_v43  ;;  %v281_v44 = vpop.xlane.xlu0 %280 }
  0xc8   :  { %420 = vst.msk [vmem:[%s1246_s1 + $0x1a] sm:$0x1] %vm393_vm1, %v281_v44 }
  0xca   :  { %v290_v46 = vpop.xlane.xlu1 %289 }
  0xcb   :  { %423 = vst.msk [vmem:[%s1246_s1 + $0x1d] sm:$0x1] %vm393_vm1, %v290_v46  ;;  %v287_v47 = vpop.xlane.xlu0 %286 }
  0xcc   :  { %422 = vst.msk [vmem:[%s1246_s1 + $0x1c] sm:$0x1] %vm393_vm1, %v287_v47 }
  0xce   :  { %v296_v48 = vpop.xlane.xlu1 %295 }
  0xcf   :  { %425 = vst.msk [vmem:[%s1246_s1 + $0x1f] sm:$0x1] %vm393_vm1, %v296_v48  ;;  %v293_v50 = vpop.xlane.xlu0 %292 }
  0xd0   :  { %424 = vst.msk [vmem:[%s1246_s1 + $0x1e] sm:$0x1] %vm393_vm1, %v293_v50 }
  0xd2   :  { %v302_v52 = vpop.xlane.xlu1 %301 }
  0xd3   :  { %427 = vst.msk [vmem:[%s1246_s1 + $0x21] sm:$0x1] %vm393_vm1, %v302_v52  ;;  %v299_v53 = vpop.xlane.xlu0 %298 }
  0xd4   :  { %426 = vst.msk [vmem:[%s1246_s1 + $0x20] sm:$0x1] %vm393_vm1, %v299_v53 }
  0xd6   :  { %v308_v54 = vpop.xlane.xlu1 %307 }
  0xd7   :  { %429 = vst.msk [vmem:[%s1246_s1 + $0x23] sm:$0x1] %vm393_vm1, %v308_v54  ;;  %v305_v56 = vpop.xlane.xlu0 %304 }
  0xd8   :  { %428 = vst.msk [vmem:[%s1246_s1 + $0x22] sm:$0x1] %vm393_vm1, %v305_v56 }
  0xda   :  { %v314_v57 = vpop.xlane.xlu1 %313 }
  0xdb   :  { %431 = vst.msk [vmem:[%s1246_s1 + $0x25] sm:$0x1] %vm393_vm1, %v314_v57  ;;  %v311_v58 = vpop.xlane.xlu0 %310 }
  0xdc   :  { %430 = vst.msk [vmem:[%s1246_s1 + $0x24] sm:$0x1] %vm393_vm1, %v311_v58 }
  0xde   :  { %v320_v60 = vpop.xlane.xlu1 %319 }
  0xdf   :  { %433 = vst.msk [vmem:[%s1246_s1 + $0x27] sm:$0x1] %vm393_vm1, %v320_v60  ;;  %v317_v62 = vpop.xlane.xlu0 %316 }
  0xe0   :  { %432 = vst.msk [vmem:[%s1246_s1 + $0x26] sm:$0x1] %vm393_vm1, %v317_v62 }
  0xe2   :  { %v326_v63 = vpop.xlane.xlu1 %325 }
  0xe3   :  { %435 = vst.msk [vmem:[%s1246_s1 + $0x29] sm:$0x1] %vm393_vm1, %v326_v63  ;;  %v323_v0 = vpop.xlane.xlu0 %322 }
  0xe4   :  { %434 = vst.msk [vmem:[%s1246_s1 + $0x28] sm:$0x1] %vm393_vm1, %v323_v0 }
  0xe6   :  { %v332_v1 = vpop.xlane.xlu1 %331 }
  0xe7   :  { %437 = vst.msk [vmem:[%s1246_s1 + $0x2b] sm:$0x1] %vm393_vm1, %v332_v1  ;;  %v329_v3 = vpop.xlane.xlu0 %328 }
  0xe8   :  { %436 = vst.msk [vmem:[%s1246_s1 + $0x2a] sm:$0x1] %vm393_vm1, %v329_v3 }
  0xea   :  { %v338_v4 = vpop.xlane.xlu1 %337 }
  0xeb   :  { %439 = vst.msk [vmem:[%s1246_s1 + $0x2d] sm:$0x1] %vm393_vm1, %v338_v4  ;;  %v335_v6 = vpop.xlane.xlu0 %334 }
  0xec   :  { %438 = vst.msk [vmem:[%s1246_s1 + $0x2c] sm:$0x1] %vm393_vm1, %v335_v6 }
  0xee   :  { %v344_v8 = vpop.xlane.xlu1 %343 }
  0xef   :  { %441 = vst.msk [vmem:[%s1246_s1 + $0x2f] sm:$0x1] %vm393_vm1, %v344_v8  ;;  %v341_v9 = vpop.xlane.xlu0 %340 }
  0xf0   :  { %440 = vst.msk [vmem:[%s1246_s1 + $0x2e] sm:$0x1] %vm393_vm1, %v341_v9 }
  0xf2   :  { %v350_v10 = vpop.xlane.xlu1 %349 }
  0xf3   :  { %443 = vst.msk [vmem:[%s1246_s1 + $0x31] sm:$0x1] %vm393_vm1, %v350_v10  ;;  %v347_v12 = vpop.xlane.xlu0 %346 }
  0xf4   :  { %442 = vst.msk [vmem:[%s1246_s1 + $0x30] sm:$0x1] %vm393_vm1, %v347_v12 }
  0xf6   :  { %v356_v13 = vpop.xlane.xlu1 %355 }
  0xf7   :  { %445 = vst.msk [vmem:[%s1246_s1 + $0x33] sm:$0x1] %vm393_vm1, %v356_v13  ;;  %v353_v16 = vpop.xlane.xlu0 %352 }
  0xf8   :  { %444 = vst.msk [vmem:[%s1246_s1 + $0x32] sm:$0x1] %vm393_vm1, %v353_v16 }
  0xfa   :  { %v362_v17 = vpop.xlane.xlu1 %361 }
  0xfb   :  { %447 = vst.msk [vmem:[%s1246_s1 + $0x35] sm:$0x1] %vm393_vm1, %v362_v17  ;;  %v359_v18 = vpop.xlane.xlu0 %358 }
  0xfc   :  { %446 = vst.msk [vmem:[%s1246_s1 + $0x34] sm:$0x1] %vm393_vm1, %v359_v18 }
  0xfe   :  { %v368_v19 = vpop.xlane.xlu1 %367 }
  0xff   :  { %449 = vst.msk [vmem:[%s1246_s1 + $0x37] sm:$0x1] %vm393_vm1, %v368_v19  ;;  %v365_v20 = vpop.xlane.xlu0 %364 }
 0x100   :  { %448 = vst.msk [vmem:[%s1246_s1 + $0x36] sm:$0x1] %vm393_vm1, %v365_v20 }
 0x102   :  { %v374_v22 = vpop.xlane.xlu1 %373 }
 0x103   :  { %451 = vst.msk [vmem:[%s1246_s1 + $0x39] sm:$0x1] %vm393_vm1, %v374_v22  ;;  %v371_v23 = vpop.xlane.xlu0 %370 }
 0x104   :  { %450 = vst.msk [vmem:[%s1246_s1 + $0x38] sm:$0x1] %vm393_vm1, %v371_v23 }
 0x106   :  { %v380_v25 = vpop.xlane.xlu1 %379 }
 0x107   :  { %453 = vst.msk [vmem:[%s1246_s1 + $0x3b] sm:$0x1] %vm393_vm1, %v380_v25  ;;  %v377_v26 = vpop.xlane.xlu0 %376 }
 0x108   :  { %452 = vst.msk [vmem:[%s1246_s1 + $0x3a] sm:$0x1] %vm393_vm1, %v377_v26 }
 0x10a   :  { %v386_v28 = vpop.xlane.xlu1 %385 }
 0x10b   :  { %455 = vst.msk [vmem:[%s1246_s1 + $0x3d] sm:$0x1] %vm393_vm1, %v386_v28  ;;  %v383_v29 = vpop.xlane.xlu0 %382 }
 0x10c   :  { %454 = vst.msk [vmem:[%s1246_s1 + $0x3c] sm:$0x1] %vm393_vm1, %v383_v29 }
 0x10e   :  { %v392_v32 = vpop.xlane.xlu1 %391 }
 0x10f   :  { %457 = vst.msk [vmem:[%s1246_s1 + $0x3f] sm:$0x1] %vm393_vm1, %v392_v32  ;;  %v389_v34 = vpop.xlane.xlu0 %388 }
 0x110   :  { %456 = vst.msk [vmem:[%s1246_s1 + $0x3e] sm:$0x1] %vm393_vm1, %v389_v34 }

// kernel: unet_forward.39
= control target key start
LH: loop header
LB: loop body
LE: loop exit
PB: predicated region body
PF: predicated region fallthrough
CT: control target
= control target key end

     0   :  { %v830_v1 = vmov 0   ;;  %vm289_vm0 = vcmask 261120   ;;  %vm432_vm1 = vcmask 15360   ;;  %s1177_s0 = inlined_call_operand.vmem [shape: bf16[288,2], index: 0, kind: input, shape index: {}]   ;;  %s1178_s1 = inlined_call_operand.vmem [shape: bf16[64,288], index: 1, kind: input, shape index: {}]   ;;  %s1179_s2 = inlined_call_operand.vmem [shape: f32[64,1], index: 2, kind: input, shape index: {}]   ;;  %s1180_s3 = inlined_call_operand.vmem [shape: f32[64,1], index: 3, kind: input, shape index: {}]   ;;  %s1181_s4 = inlined_call_operand.vmem [shape: f32[64,1], index: 4, kind: input, shape index: {}]   ;;  %s1182_s5 = inlined_call_operand.vmem [shape: f32[64,2], index: 5, kind: output, shape index: {}]  }
   0x1   :  { %v780_v0 = vld [vmem:[%s1177_s0 + $0x40] sm:$0xff]   ;;  %779 = vset.pattern.permute.xlu1 %v830_v1  ;;  %778 = vset.pattern.permute.xlu0 %v830_v1  ;;  %v782_v3 = vld [vmem:[%s1177_s0 + $0x48] sm:$0xff]   ;;  %v784_v5 = vld [vmem:[%s1177_s0 + $0x50] sm:$0xff]  }
   0x2   :  { %v781_v2 = vld [vmem:[%s1177_s0] sm:$0xff]   ;;  %703 = vmatprep.subr.bf16.mxu0 %v780_v0  ;;  %761 = vmatprep.subr.bf16.mxu1 %v780_v0  ;;  %v783_v4 = vld [vmem:[%s1177_s0 + $0x8] sm:$0xff]   ;;  %v785_v6 = vld [vmem:[%s1177_s0 + $0x10] sm:$0xff]  }
   0x3   :  { %704 = vmatpush3.bf16.msra.mxu0 %v781_v2  ;;  %769 = vmatpush3.bf16.msra.mxu1 %v781_v2  ;;  %v786_v7 = vld [vmem:[%s1177_s0 + $0x58] sm:$0xff]   ;;  %v788_v9 = vld [vmem:[%s1177_s0 + $0x60] sm:$0xff]   ;;  %v790_v11 = vld [vmem:[%s1177_s0 + $0x68] sm:$0xff]  }
   0x4   :  { %705 = vmatprep.subr.bf16.mxu0 %v782_v3  ;;  %762 = vmatprep.subr.bf16.mxu1 %v782_v3  ;;  %v787_v8 = vld [vmem:[%s1177_s0 + $0x18] sm:$0xff]   ;;  %v789_v10 = vld [vmem:[%s1177_s0 + $0x20] sm:$0xff]   ;;  %v791_v14 = vld [vmem:[%s1177_s0 + $0x28] sm:$0xff]  }
   0x5   :  { %v798_v12 = vld [vmem:[%s1178_s1 + $0x4] ss:$12 sps:$4 sm:$0xff]   ;;  %v801_v13 = vld [vmem:[%s1178_s1 + $0x4c] ss:$12 sps:$4 sm:$0xff]   ;;  %v799_v23 = vld [vmem:[%s1178_s1 + $0x48] ss:$12 sps:$4 sm:$0xff]  }
   0x6   :  { %v792_v15 = vld [vmem:[%s1177_s0 + $0x70] sm:$0xff]   ;;  %334 = vmatprep.mubr.bf16.mxu0 %v798_v12  ;;  %358 = vmatprep.mubr.bf16.mxu1 %v801_v13  ;;  %v794_v17 = vld [vmem:[%s1177_s0 + $0x78] sm:$0xff]   ;;  %v802_v20 = vld [vmem:[%s1177_s0 + $0x80] sm:$0xff]  }
   0x7   :  { %706 = vmatpush3.bf16.msra.mxu0 %v783_v4  ;;  %770 = vmatpush3.bf16.msra.mxu1 %v783_v4  ;;  %v793_v16 = vld [vmem:[%s1177_s0 + $0x30] sm:$0xff]   ;;  %v795_v18 = vld [vmem:[%s1177_s0 + $0x38] sm:$0xff]   ;;  %v73_v21 = vld [vmem:[%s1179_s2] sm:$0xff] }
   0x8   :  { %707 = vmatprep.subr.bf16.mxu0 %v784_v5  ;;  %763 = vmatprep.subr.bf16.mxu1 %v784_v5  ;;  %v75_v19 = vld [vmem:[%s1179_s2 + $0x10] sm:$0xff]  ;;  %v796_v22 = vld [vmem:[%s1178_s1] ss:$12 sps:$4 sm:$0xff]   ;;  %v76_v24 = vld [vmem:[%s1179_s2 + $0x18] sm:$0xff] }
   0x9   :  { %93 = vperm.xlu1 %779, %v75_v19   ;;  %83 = vperm.xlu0 %778, %v73_v21   ;;  %v74_v25 = vld [vmem:[%s1179_s2 + $0x8] sm:$0xff]  ;;  %v77_v30 = vld [vmem:[%s1179_s2 + $0x20] sm:$0xff]  ;;  %v80_v33 = vld [vmem:[%s1179_s2 + $0x38] sm:$0xff] }
   0xa   :  { %v804_v26 = vld [vmem:[%s1178_s1 + $0x1c] ss:$12 sps:$4 sm:$0xff]   ;;  %v807_v31 = vld [vmem:[%s1178_s1 + $0x18] ss:$12 sps:$4 sm:$0xff]   ;;  %v808_v32 = vld [vmem:[%s1178_s1 + $0x20] ss:$12 sps:$4 sm:$0xff]  }
   0xb   :  { %708 = vmatpush3.bf16.msra.mxu0 %v785_v6  ;;  %771 = vmatpush3.bf16.msra.mxu1 %v785_v6  ;;  %v803_v27 = vld [vmem:[%s1177_s0 + $0x88] sm:$0xff]   ;;  %v79_v34 = vld [vmem:[%s1179_s2 + $0x30] sm:$0xff]  ;;  %v811_v36 = vld [vmem:[%s1178_s1 + $0x38] ss:$12 sps:$4 sm:$0xff]  }
   0xc   :  { %709 = vmatprep.subr.bf16.mxu0 %v786_v7  ;;  %764 = vmatprep.subr.bf16.mxu1 %v786_v7  ;;  %v806_v28 = vld [vmem:[%s1178_s1 + $0x8] ss:$12 sps:$4 sm:$0xff]   ;;  %v537_v37 = vld [vmem:[%s1180_s3] sm:$0xff]  ;;  %v812_v39 = vld [vmem:[%s1178_s1 + $0x30] ss:$12 sps:$4 sm:$0xff]  }
   0xd   :  { %98 = vperm.xlu1 %779, %v76_v24   ;;  %88 = vperm.xlu0 %778, %v74_v25   ;;  %v78_v29 = vld [vmem:[%s1179_s2 + $0x28] sm:$0xff]  ;;  %v809_v35 = vld [vmem:[%s1178_s1 + $0x34] ss:$12 sps:$4 sm:$0xff]   ;;  %v813_v40 = vld [vmem:[%s1178_s1 + $0x50] ss:$12 sps:$4 sm:$0xff]  }
   0xe   :  { %v538_v38 = vld [vmem:[%s1180_s3 + $0x8] sm:$0xff]  ;;  %v539_v41 = vld [vmem:[%s1180_s3 + $0x10] sm:$0xff]  ;;  %v541_v42 = vld [vmem:[%s1180_s3 + $0x20] sm:$0xff] }
   0xf   :  { %710 = vmatpush3.bf16.msra.mxu0 %v787_v8  ;;  %772 = vmatpush3.bf16.msra.mxu1 %v787_v8  ;;  %v540_v43 = vld [vmem:[%s1180_s3 + $0x18] sm:$0xff]  ;;  %v542_v44 = vld [vmem:[%s1180_s3 + $0x28] sm:$0xff] }
  0x10   :  { %711 = vmatprep.subr.bf16.mxu0 %v788_v9  ;;  %765 = vmatprep.subr.bf16.mxu1 %v788_v9 }
  0x11   :  { %108 = vperm.xlu1 %779, %v78_v29   ;;  %103 = vperm.xlu0 %778, %v77_v30  }
  0x13   :  { %712 = vmatpush3.bf16.msra.mxu0 %v789_v10  ;;  %773 = vmatpush3.bf16.msra.mxu1 %v789_v10 }
  0x14   :  { %713 = vmatprep.subr.bf16.mxu0 %v790_v11  ;;  %766 = vmatprep.subr.bf16.mxu1 %v790_v11 }
  0x15   :  { %118 = vperm.xlu1 %779, %v80_v33   ;;  %113 = vperm.xlu0 %778, %v79_v34  }
  0x17   :  { %714 = vmatpush3.bf16.msra.mxu0 %v791_v14  ;;  %774 = vmatpush3.bf16.msra.mxu1 %v791_v14 }
  0x18   :  { %715 = vmatprep.subr.bf16.mxu0 %v792_v15  ;;  %767 = vmatprep.subr.bf16.mxu1 %v792_v15 }
  0x19   :  { %547 = vperm.xlu1 %779, %v537_v37   ;;  %552 = vperm.xlu0 %778, %v538_v38  }
  0x1b   :  { %716 = vmatpush3.bf16.msra.mxu0 %v793_v16  ;;  %775 = vmatpush3.bf16.msra.mxu1 %v793_v16 }
  0x1c   :  { %717 = vmatprep.subr.bf16.mxu0 %v794_v17  ;;  %768 = vmatprep.subr.bf16.mxu1 %v794_v17 }
  0x1d   :  { %557 = vperm.xlu1 %779, %v539_v41   ;;  %567 = vperm.xlu0 %778, %v541_v42  }
  0x1f   :  { %718 = vmatpush3.bf16.msra.mxu0 %v795_v18  ;;  %776 = vmatpush3.bf16.msra.mxu1 %v795_v18 }
  0x20   :  { %749 = vmatprep.subr.bf16.mxu1 %v802_v20 }
  0x21   :  { %562 = vperm.xlu1 %779, %v540_v43  }
  0x22   :  { %335 = vmatmul.mubr.bf16.vlgmr.msra.gmra.mrb[0].mxu0 %v796_v22  ;;  %359 = vmatmul.mubr.bf16.vlgmr.msra.gmra.mrb[0].mxu1 %v799_v23 }
  0x23   :  { %750 = vmatpush3.bf16.msra.mxu1 %v802_v20  ;;  %342 = vmatprep.mubr.bf16.mxu0 %v804_v26 }
  0x24   :  { %751 = vmatprep.subr.bf16.mxu1 %v803_v27  ;;  %753 = vmatprep.mubr.msk.bf16.mxu1 %vm289_vm0, %v806_v28 }
  0x25   :  { %572 = vperm.xlu1 %779, %v542_v44  }
  0x27   :  { %752 = vmatpush3.bf16.msra.mxu1 %v803_v27 }
  0x2a   :  { %343 = vmatmul.mubr.bf16.gmra.mrb[4].mxu0 %v807_v31  ;;  %754 = vmatmul.mubr.msk.bf16.vlgmr.msra.gmra.mrb[4].mxu1 %vm289_vm0, %v808_v32 }
  0x2b   :  { %350 = vmatprep.mubr.bf16.mxu0 %v809_v35  ;;  %757 = vmatprep.mubr.msk.bf16.mxu1 %vm289_vm0, %v811_v36 }
  0x32   :  { %351 = vmatmul.mubr.bf16.gmra.mrb[8].mxu0 %v812_v39  ;;  %758 = vmatmul.mubr.msk.bf16.gmra.mrb[8].mxu1 %vm289_vm0, %v813_v40 }
  0x88   :  { %v94_v45 = vpop.permute.xlu1 %93  ;;  %v84_v46 = vpop.permute.xlu0 %83 }
  0x8c   :  { %v99_v47 = vpop.permute.xlu1 %98  ;;  %v89_v48 = vpop.permute.xlu0 %88 }
  0x90   :  { %v109_v61 = vpop.permute.xlu1 %108  ;;  %v104_v62 = vpop.permute.xlu0 %103 }
  0x94   :  { %v114_v15 = vpop.permute.xlu0 %113  ;;  %v119_v19 = vpop.permute.xlu1 %118 }
  0xf5   :  { %v719_v49 = vpop.f32.mrb[0].mxu0  ;;  %v737_v50 = vpop.f32.mrb[0].mxu1 }
  0xf6   :  { %v720_v51 = vpop.f32.mrb[1].mxu0  ;;  %v738_v52 = vpop.f32.mrb[1].mxu1 }
  0xf7   :  { %v721_v53 = vadd.f32 %v720_v51, %v719_v49  ;;  %v739_v54 = vadd.f32 %v738_v52, %v737_v50  ;;  %v722_v55 = vpop.f32.mrb[2].mxu0  ;;  %v740_v56 = vpop.f32.mrb[2].mxu1  ;;  %v598_v49 = vld [vmem:[%s1181_s4 + $0x28] sm:$0xff]  ;;  %v593_v50 = vld [vmem:[%s1181_s4] sm:$0xff]  ;;  %v595_v51 = vld [vmem:[%s1181_s4 + $0x10] sm:$0xff] }
  0xf8   :  { %v723_v57 = vpop.f32.mrb[3].mxu0  ;;  %v741_v58 = vpop.f32.mrb[3].mxu1  ;;  %v597_v52 = vld [vmem:[%s1181_s4 + $0x20] sm:$0xff] }
  0xf9   :  { %v724_v59 = vadd.f32 %v723_v57, %v722_v55  ;;  %v742_v60 = vadd.f32 %v741_v58, %v740_v56  ;;  %v337_v1 = vadd.f32 %v721_v53, %v84_v46  ;;  %v361_v20 = vadd.f32 %v739_v54, %v114_v15  ;;  %v594_v46 = vld [vmem:[%s1181_s4 + $0x8] sm:$0xff]  ;;  %v1053_v53 = vpop.permute.xlu1 %547  ;;  %v1057_v55 = vpop.permute.xlu0 %552 }
  0xfb   :  { %v340_v8 = vadd.f32 %v724_v59, %v89_v48  ;;  %v364_v28 = vadd.f32 %v742_v60, %v119_v19  ;;  %v543_v48 = vld [vmem:[%s1180_s3 + $0x30] sm:$0xff] }
  0xfd   :  { %v725_v63 = vpop.f32.mrb[4].mxu0  ;;  %v755_v0 = vpop.f32.mrb[4].mxu1 }
  0xfe   :  { %v726_v2 = vpop.f32.mrb[5].mxu0  ;;  %v401_v3 = vpop.f32.mrb[5].mxu1 }
  0xff   :  { %v727_v4 = vadd.f32 %v726_v2, %v725_v63  ;;  %v997_v5 = vadd.f32 %v401_v3, %v337_v1  ;;  %v728_v6 = vpop.f32.mrb[6].mxu0  ;;  %v756_v7 = vpop.f32.mrb[6].mxu1 }
 0x100   :  { %v729_v9 = vpop.f32.mrb[7].mxu0  ;;  %v404_v10 = vpop.f32.mrb[7].mxu1 }
 0x101   :  { %v345_v11 = vadd.f32 %v727_v4, %v94_v45  ;;  %v730_v12 = vadd.f32 %v729_v9, %v728_v6  ;;  %v999_v13 = vadd.f32 %v404_v10, %v340_v8  ;;  %v433_v14 = vsel %vm432_vm1, %v997_v5, 0.0  ;;  %v544_v45 = vld [vmem:[%s1180_s3 + $0x38] sm:$0xff]  ;;  %v1055_v54 = vpop.permute.xlu1 %557  ;;  %v1061_v57 = vpop.permute.xlu0 %567 }
 0x102   :  { %434 = vadd.xlane.f32.xlu0 %v433_v14 }
 0x103   :  { %v348_v16 = vadd.f32 %v730_v12, %v99_v47  ;;  %v436_v17 = vsel %vm432_vm1, %v999_v13, 0.0  ;;  %v1005_v18 = vadd.f32 %v755_v0, %v345_v11  ;;  %v596_v47 = vld [vmem:[%s1181_s4 + $0x18] sm:$0xff] }
 0x104   :  { %437 = vadd.xlane.f32.xlu1 %v436_v17 }
 0x105   :  { %v731_v21 = vpop.f32.mrb[8].mxu0  ;;  %v759_v22 = vpop.f32.mrb[8].mxu1  ;;  %v439_v23 = vsel %vm432_vm1, %v1005_v18, 0.0  ;;  %v1009_v24 = vadd.f32 %v756_v7, %v348_v16 }
 0x106   :  { %v1011_v25 = vadd.f32 %v759_v22, %v361_v20  ;;  %v732_v26 = vpop.f32.mrb[9].mxu0  ;;  %v417_v27 = vpop.f32.mrb[9].mxu1  ;;  %440 = vadd.xlane.f32.xlu0 %v439_v23 }
 0x107   :  { %v733_v29 = vadd.f32 %v732_v26, %v731_v21  ;;  %v734_v30 = vpop.f32.mrb[10].mxu0  ;;  %v760_v31 = vpop.f32.mrb[10].mxu1  ;;  %v442_v38 = vsel %vm432_vm1, %v1009_v24, 0.0 }
 0x108   :  { %v1013_v32 = vadd.f32 %v760_v31, %v364_v28  ;;  %v735_v33 = vpop.f32.mrb[11].mxu0  ;;  %v420_v34 = vpop.f32.mrb[11].mxu1  ;;  %v451_v35 = vsel %vm432_vm1, %v1011_v25, 0.0 }
 0x109   :  { %v353_v36 = vadd.f32 %v733_v29, %v104_v62  ;;  %v736_v37 = vadd.f32 %v735_v33, %v734_v30  ;;  %452 = vadd.xlane.f32.xlu1 %v451_v35  ;;  %v1059_v56 = vpop.permute.xlu1 %562  ;;  %v600_v35 = vld [vmem:[%s1181_s4 + $0x38] sm:$0xff] }
 0x10a   :  { %443 = vadd.xlane.f32.xlu0 %v442_v38  ;;  %v454_v43 = vsel %vm432_vm1, %v1013_v32, 0.0 }
 0x10b   :  { %v1019_v39 = vadd.f32 %v417_v27, %v353_v36  ;;  %v356_v40 = vadd.f32 %v736_v37, %v109_v61  ;;  %v599_v36 = vld [vmem:[%s1181_s4 + $0x30] sm:$0xff] }
 0x10d   :  { %v1021_v41 = vadd.f32 %v420_v34, %v356_v40  ;;  %v445_v42 = vsel %vm432_vm1, %v1019_v39, 0.0  ;;  %v1063_v58 = vpop.permute.xlu1 %572 }
 0x10e   :  { %446 = vadd.xlane.f32.xlu1 %v445_v42  ;;  %455 = vadd.xlane.f32.xlu0 %v454_v43 }
 0x10f   :  { %v448_v44 = vsel %vm432_vm1, %v1021_v41, 0.0 }
 0x112   :  { %449 = vadd.xlane.f32.xlu0 %v448_v44 }
 0x11f   :  { %582 = vperm.xlu1 %779, %v544_v45  }
 0x123   :  { %608 = vperm.xlu1 %779, %v594_v46  }
 0x127   :  { %618 = vperm.xlu1 %779, %v596_v47  }
 0x128   :  { %577 = vperm.xlu0 %778, %v543_v48  }
 0x12b   :  { %628 = vperm.xlu1 %779, %v598_v49  }
 0x12c   :  { %603 = vperm.xlu0 %778, %v593_v50  }
 0x130   :  { %613 = vperm.xlu0 %778, %v595_v51  }
 0x134   :  { %623 = vperm.xlu0 %778, %v597_v52  }
 0x18f   :  { %v435_v59 = vpop.xlane.xlu0 %434 }
 0x190   :  { %v457_v60 = vmul.f32 0.5, %v435_v59 }
 0x191   :  { %v438_v61 = vpop.xlane.xlu1 %437 }
 0x192   :  { %v1066_v62 = vsub.f32 %v997_v5, %v457_v60  ;;  %v458_v63 = vmul.f32 0.5, %v438_v61 }
 0x193   :  { %v441_v0 = vpop.xlane.xlu0 %440 }
 0x194   :  { %v1069_v1 = vsub.f32 %v999_v13, %v458_v63  ;;  %v459_v2 = vmul.f32 0.5, %v441_v0  ;;  %v473_v3 = vmul.f32 %v1066_v62, %v1066_v62 }
 0x196   :  { %v1074_v4 = vsub.f32 %v1005_v18, %v459_v2  ;;  %v453_v6 = vpop.xlane.xlu1 %452  ;;  %v481_v7 = vsel %vm432_vm1, %v473_v3, 0.0  ;;  %v474_v8 = vmul.f32 %v1069_v1, %v1069_v1 }
 0x197   :  { %v463_v5 = vmul.f32 0.5, %v453_v6  ;;  %482 = vadd.xlane.f32.xlu1 %v481_v7  ;;  %v444_v9 = vpop.xlane.xlu0 %443 }
 0x198   :  { %v460_v10 = vmul.f32 0.5, %v444_v9  ;;  %v484_v11 = vsel %vm432_vm1, %v474_v8, 0.0  ;;  %v475_v12 = vmul.f32 %v1074_v4, %v1074_v4 }
 0x199   :  { %v1083_v13 = vsub.f32 %v1011_v25, %v463_v5  ;;  %485 = vadd.xlane.f32.xlu0 %v484_v11 }
 0x19a   :  { %v1086_v14 = vsub.f32 %v1009_v24, %v460_v10  ;;  %v487_v15 = vsel %vm432_vm1, %v475_v12, 0.0 }
 0x19b   :  { %v447_v16 = vpop.xlane.xlu1 %446  ;;  %488 = vadd.xlane.f32.xlu1 %v487_v15  ;;  %v456_v17 = vpop.xlane.xlu0 %455  ;;  %v479_v18 = vmul.f32 %v1083_v13, %v1083_v13 }
 0x19c   :  { %v461_v19 = vmul.f32 0.5, %v447_v16  ;;  %v464_v20 = vmul.f32 0.5, %v456_v17  ;;  %v476_v21 = vmul.f32 %v1086_v14, %v1086_v14 }
 0x19d   :  { %v499_v22 = vsel %vm432_vm1, %v479_v18, 0.0 }
 0x19e   :  { %v1095_v23 = vsub.f32 %v1019_v39, %v461_v19  ;;  %v1098_v24 = vsub.f32 %v1013_v32, %v464_v20  ;;  %v490_v25 = vsel %vm432_vm1, %v476_v21, 0.0 }
 0x19f   :  { %500 = vadd.xlane.f32.xlu1 %v499_v22  ;;  %491 = vadd.xlane.f32.xlu0 %v490_v25  ;;  %v450_v26 = vpop.xlane.xlu0 %449  ;;  %v1119_v37 = vpop.permute.xlu1 %582 }
 0x1a0   :  { %v462_v27 = vmul.f32 0.5, %v450_v26  ;;  %v477_v28 = vmul.f32 %v1095_v23, %v1095_v23  ;;  %v480_v29 = vmul.f32 %v1098_v24, %v1098_v24 }
 0x1a2   :  { %v1106_v30 = vsub.f32 %v1021_v41, %v462_v27  ;;  %v493_v31 = vsel %vm432_vm1, %v477_v28, 0.0  ;;  %v502_v32 = vsel %vm432_vm1, %v480_v29, 0.0 }
 0x1a3   :  { %494 = vadd.xlane.f32.xlu1 %v493_v31  ;;  %503 = vadd.xlane.f32.xlu0 %v502_v32  ;;  %v609_v39 = vpop.permute.xlu1 %608 }
 0x1a4   :  { %v478_v33 = vmul.f32 %v1106_v30, %v1106_v30 }
 0x1a6   :  { %v496_v34 = vsel %vm432_vm1, %v478_v33, 0.0 }
 0x1a7   :  { %497 = vadd.xlane.f32.xlu0 %v496_v34  ;;  %v578_v38 = vpop.permute.xlu0 %577  ;;  %v1121_v41 = vpop.permute.xlu1 %618 }
 0x1ab   :  { %v604_v40 = vpop.permute.xlu0 %603  ;;  %v1123_v43 = vpop.permute.xlu1 %628 }
 0x1af   :  { %v614_v42 = vpop.permute.xlu0 %613 }
 0x1b3   :  { %v1125_v44 = vpop.permute.xlu0 %623 }
 0x1b4   :  { %638 = vperm.xlu1 %779, %v600_v35  }
 0x1bd   :  { %633 = vperm.xlu0 %778, %v599_v36  }
 0x224   :  { %v483_v45 = vpop.xlane.xlu1 %482 }
 0x225   :  { %v505_v46 = vmul.f32 0.5, %v483_v45 }
 0x226   :  { %v486_v47 = vpop.xlane.xlu0 %485 }
 0x227   :  { %v513_v48 = vadd.f32 1e-05, %v505_v46  ;;  %v506_v49 = vmul.f32 0.5, %v486_v47 }
 0x228   :  { %v489_v50 = vpop.xlane.xlu1 %488 }
 0x229   :  { %814 = vrsqrt.f32 %v513_v48  ;;  %v514_v51 = vadd.f32 1e-05, %v506_v49  ;;  %v507_v52 = vmul.f32 0.5, %v489_v50 }
 0x22b   :  { %816 = vrsqrt.f32 %v514_v51  ;;  %v515_v59 = vadd.f32 1e-05, %v507_v52 }
 0x22c   :  { %v501_v60 = vpop.xlane.xlu1 %500  ;;  %v492_v61 = vpop.xlane.xlu0 %491 }
 0x22d   :  { %818 = vrsqrt.f32 %v515_v59  ;;  %v511_v63 = vmul.f32 0.5, %v501_v60  ;;  %v508_v0 = vmul.f32 0.5, %v492_v61 }
 0x22f   :  { %v519_v2 = vadd.f32 1e-05, %v511_v63  ;;  %v516_v3 = vadd.f32 1e-05, %v508_v0 }
 0x230   :  { %v495_v6 = vpop.xlane.xlu1 %494  ;;  %v504_v7 = vpop.xlane.xlu0 %503 }
 0x231   :  { %820 = vrsqrt.f32 %v519_v2  ;;  %v509_v8 = vmul.f32 0.5, %v495_v6  ;;  %v512_v5 = vmul.f32 0.5, %v504_v7 }
 0x232   :  { %822 = vrsqrt.f32 %v516_v3 }
 0x233   :  { %v815_v9 = vpop.eup %814  ;;  %v517_v10 = vadd.f32 1e-05, %v509_v8  ;;  %v520_v11 = vadd.f32 1e-05, %v512_v5 }
 0x234   :  { %v529_v12 = vmul.f32 %v815_v9, %v1066_v62  ;;  %v498_v15 = vpop.xlane.xlu0 %497  ;;  %v639_v48 = vpop.permute.xlu1 %638 }
 0x235   :  { %v817_v16 = vpop.eup %816  ;;  %824 = vrsqrt.f32 %v517_v10  ;;  %v510_v17 = vmul.f32 0.5, %v498_v15 }
 0x236   :  { %v585_v18 = vmul.f32 %v1053_v53, %v529_v12  ;;  %v530_v19 = vmul.f32 %v817_v16, %v1069_v1  ;;  %826 = vrsqrt.f32 %v520_v11 }
 0x237   :  { %v819_v20 = vpop.eup %818  ;;  %v518_v21 = vadd.f32 1e-05, %v510_v17 }
 0x238   :  { %v641_v22 = vadd.f32 %v604_v40, %v585_v18  ;;  %v586_v25 = vmul.f32 %v1057_v55, %v530_v19  ;;  %v531_v26 = vmul.f32 %v819_v20, %v1074_v4 }
 0x239   :  { %828 = vrsqrt.f32 %v518_v21 }
 0x23a   :  { %v649_v27 = vmax.f32 %v641_v22, 0.0  ;;  %v642_v28 = vadd.f32 %v609_v39, %v586_v25  ;;  %v587_v62 = vmul.f32 %v1055_v54, %v531_v26 }
 0x23b   :  { %v821_v29 = vpop.eup %820 }
 0x23c   :  { %v823_v31 = vpop.eup %822  ;;  %657 = vst.msk [vmem:[%s1182_s5] sm:$0xff] %vm432_vm1, %v649_v27  ;;  %v650_v53 = vmax.f32 %v642_v28, 0.0  ;;  %v643_v1 = vadd.f32 %v614_v42, %v587_v62  ;;  %v535_v32 = vmul.f32 %v821_v29, %v1083_v13  ;;  %v634_v35 = vpop.permute.xlu0 %633 }
 0x23d   :  { %v532_v55 = vmul.f32 %v823_v31, %v1086_v14 }
 0x23e   :  { %658 = vst.msk [vmem:[%s1182_s5 + $0x8] sm:$0xff] %vm432_vm1, %v650_v53  ;;  %v651_v4 = vmax.f32 %v643_v1, 0.0  ;;  %v591_v54 = vmul.f32 %v578_v38, %v535_v32 }
 0x23f   :  { %v825_v33 = vpop.eup %824  ;;  %v588_v34 = vmul.f32 %v1059_v56, %v532_v55 }
 0x240   :  { %v827_v36 = vpop.eup %826  ;;  %659 = vst.msk [vmem:[%s1182_s5 + $0x10] sm:$0xff] %vm432_vm1, %v651_v4  ;;  %v533_v13 = vmul.f32 %v825_v33, %v1095_v23  ;;  %v647_v14 = vadd.f32 %v634_v35, %v591_v54 }
 0x241   :  { %v644_v39 = vadd.f32 %v1121_v41, %v588_v34  ;;  %v536_v40 = vmul.f32 %v827_v36, %v1098_v24 }
 0x242   :  { %v589_v42 = vmul.f32 %v1061_v57, %v533_v13  ;;  %v655_v38 = vmax.f32 %v647_v14, 0.0 }
 0x243   :  { %v829_v45 = vpop.eup %828  ;;  %v652_v46 = vmax.f32 %v644_v39, 0.0  ;;  %v592_v56 = vmul.f32 %v1119_v37, %v536_v40 }
 0x244   :  { %v645_v47 = vadd.f32 %v1125_v44, %v589_v42  ;;  %v534_v49 = vmul.f32 %v829_v45, %v1106_v30  ;;  %663 = vst.msk [vmem:[%s1182_s5 + $0x30] sm:$0xff] %vm432_vm1, %v655_v38 }
 0x245   :  { %660 = vst.msk [vmem:[%s1182_s5 + $0x18] sm:$0xff] %vm432_vm1, %v652_v46  ;;  %v648_v57 = vadd.f32 %v639_v48, %v592_v56 }
 0x246   :  { %v653_v23 = vmax.f32 %v645_v47, 0.0  ;;  %v590_v24 = vmul.f32 %v1063_v58, %v534_v49 }
 0x247   :  { %v656_v37 = vmax.f32 %v648_v57, 0.0 }
 0x248   :  { %661 = vst.msk [vmem:[%s1182_s5 + $0x20] sm:$0xff] %vm432_vm1, %v653_v23  ;;  %v646_v30 = vadd.f32 %v1123_v43, %v590_v24 }
 0x249   :  { %664 = vst.msk [vmem:[%s1182_s5 + $0x38] sm:$0xff] %vm432_vm1, %v656_v37 }
 0x24a   :  { %v654_v41 = vmax.f32 %v646_v30, 0.0 }
 0x24c   :  { %662 = vst.msk [vmem:[%s1182_s5 + $0x28] sm:$0xff] %vm432_vm1, %v654_v41 }

// kernel: unet_forward.40
= control target key start
LH: loop header
LB: loop body
LE: loop exit
PB: predicated region body
PF: predicated region fallthrough
CT: control target
= control target key end

     0   :  { %v1181_v1 = vmov 0   ;;  %vm481_vm0 = vcmask 523264   ;;  %vm689_vm1 = vcmask 15360   ;;  %s1594_s0 = inlined_call_operand.vmem [shape: bf16[576,2], index: 0, kind: input, shape index: {}]   ;;  %s1595_s1 = inlined_call_operand.vmem [shape: bf16[64,576], index: 1, kind: input, shape index: {}]   ;;  %s1596_s2 = inlined_call_operand.vmem [shape: f32[64,1], index: 2, kind: input, shape index: {}]   ;;  %s1597_s3 = inlined_call_operand.vmem [shape: f32[64,1], index: 3, kind: input, shape index: {}]   ;;  %s1598_s4 = inlined_call_operand.vmem [shape: f32[64,1], index: 4, kind: input, shape index: {}]   ;;  %s1599_s5 = inlined_call_operand.vmem [shape: f32[64,2], index: 5, kind: output, shape index: {}]  }
   0x1   :  { %v1101_v0 = vld [vmem:[%s1594_s0 + $0x40] sm:$0xff]   ;;  %1100 = vset.pattern.permute.xlu1 %v1181_v1  ;;  %1099 = vset.pattern.permute.xlu0 %v1181_v1  ;;  %v1105_v5 = vld [vmem:[%s1594_s0 + $0x48] sm:$0xff]   ;;  %v1109_v9 = vld [vmem:[%s1594_s0 + $0x50] sm:$0xff]  }
   0x2   :  { %v1102_v2 = vld [vmem:[%s1594_s0 + $0xc0] sm:$0xff]   ;;  %986 = vmatprep.subr.bf16.mxu0 %v1101_v0  ;;  %v1106_v6 = vld [vmem:[%s1594_s0 + $0xc8] sm:$0xff]   ;;  %v1110_v10 = vld [vmem:[%s1594_s0 + $0xd0] sm:$0xff]  }
   0x3   :  { %v1103_v3 = vld [vmem:[%s1594_s0] sm:$0xff]   ;;  %1026 = vmatprep.subr.bf16.mxu1 %v1102_v2  ;;  %v1107_v7 = vld [vmem:[%s1594_s0 + $0x8] sm:$0xff]   ;;  %v1111_v11 = vld [vmem:[%s1594_s0 + $0x10] sm:$0xff]  }
   0x4   :  { %v1104_v4 = vld [vmem:[%s1594_s0 + $0x80] sm:$0xff]   ;;  %987 = vmatpush3.bf16.msra.mxu0 %v1103_v3  ;;  %v1108_v8 = vld [vmem:[%s1594_s0 + $0x88] sm:$0xff]   ;;  %v1112_v12 = vld [vmem:[%s1594_s0 + $0x90] sm:$0xff]  }
   0x5   :  { %1027 = vmatpush3.bf16.msra.mxu1 %v1104_v4  ;;  %988 = vmatprep.subr.bf16.mxu0 %v1105_v5  ;;  %v1113_v13 = vld [vmem:[%s1594_s0 + $0x58] sm:$0xff]   ;;  %v1117_v17 = vld [vmem:[%s1594_s0 + $0x60] sm:$0xff]   ;;  %v1121_v21 = vld [vmem:[%s1594_s0 + $0x68] sm:$0xff]  }
   0x6   :  { %1028 = vmatprep.subr.bf16.mxu1 %v1106_v6  ;;  %v1114_v14 = vld [vmem:[%s1594_s0 + $0xd8] sm:$0xff]   ;;  %v1118_v18 = vld [vmem:[%s1594_s0 + $0xe0] sm:$0xff]   ;;  %v1122_v22 = vld [vmem:[%s1594_s0 + $0xe8] sm:$0xff]  }
   0x7   :  { %v1115_v15 = vld [vmem:[%s1594_s0 + $0x18] sm:$0xff]   ;;  %v1119_v19 = vld [vmem:[%s1594_s0 + $0x20] sm:$0xff]   ;;  %v1123_v23 = vld [vmem:[%s1594_s0 + $0x28] sm:$0xff]  }
   0x8   :  { %989 = vmatpush3.bf16.msra.mxu0 %v1107_v7  ;;  %v1116_v16 = vld [vmem:[%s1594_s0 + $0x98] sm:$0xff]   ;;  %v1120_v20 = vld [vmem:[%s1594_s0 + $0xa0] sm:$0xff]   ;;  %v1124_v24 = vld [vmem:[%s1594_s0 + $0xa8] sm:$0xff]  }
   0x9   :  { %1029 = vmatpush3.bf16.msra.mxu1 %v1108_v8  ;;  %990 = vmatprep.subr.bf16.mxu0 %v1109_v9  ;;  %v1125_v25 = vld [vmem:[%s1594_s0 + $0x70] sm:$0xff]   ;;  %v1129_v29 = vld [vmem:[%s1594_s0 + $0x78] sm:$0xff]   ;;  %v1138_v36 = vld [vmem:[%s1595_s1 + $0xc] ss:$20 sps:$4 sm:$0xff]  }
   0xa   :  { %1030 = vmatprep.subr.bf16.mxu1 %v1110_v10  ;;  %v1126_v26 = vld [vmem:[%s1594_s0 + $0xf0] sm:$0xff]   ;;  %v1130_v30 = vld [vmem:[%s1594_s0 + $0xf8] sm:$0xff]   ;;  %v1139_v37 = vld [vmem:[%s1594_s0 + $0x100] sm:$0xff]   ;;  %591 = vmatprep.mubr.bf16.mxu1 %v1138_v36 }
   0xb   :  { %v1127_v27 = vld [vmem:[%s1594_s0 + $0x30] sm:$0xff]   ;;  %v1131_v31 = vld [vmem:[%s1594_s0 + $0x38] sm:$0xff]   ;;  %v1140_v38 = vld [vmem:[%s1595_s1 + $0x2c] ss:$20 sps:$4 sm:$0xff]  }
   0xc   :  { %991 = vmatpush3.bf16.msra.mxu0 %v1111_v11  ;;  %v1128_v28 = vld [vmem:[%s1594_s0 + $0xb0] sm:$0xff]   ;;  %v1132_v32 = vld [vmem:[%s1594_s0 + $0xb8] sm:$0xff]   ;;  %v1146_v40 = vld [vmem:[%s1594_s0 + $0x108] sm:$0xff]  }
   0xd   :  { %1031 = vmatpush3.bf16.msra.mxu1 %v1112_v12  ;;  %992 = vmatprep.subr.bf16.mxu0 %v1113_v13  ;;  %v1133_v33 = vld [vmem:[%s1595_s1] ss:$20 sps:$4 sm:$0xff]   ;;  %v1135_v34 = vld [vmem:[%s1595_s1 + $0x4] ss:$20 sps:$4 sm:$0xff]   ;;  %v1136_v35 = vld [vmem:[%s1595_s1 + $0x8] ss:$20 sps:$4 sm:$0xff]  }
   0xe   :  { %1032 = vmatprep.subr.bf16.mxu1 %v1114_v14  ;;  %526 = vmatprep.mubr.bf16.mxu0 %v1135_v34  ;;  %v1142_v39 = vld [vmem:[%s1595_s1 + $0x34] ss:$20 sps:$4 sm:$0xff]   ;;  %v1145_v42 = vld [vmem:[%s1595_s1 + $0x30] ss:$20 sps:$4 sm:$0xff]   ;;  %v1160_v46 = vld [vmem:[%s1594_s0 + $0x118] sm:$0xff]  }
   0xf   :  { %v1144_v41 = vld [vmem:[%s1595_s1 + $0x28] ss:$20 sps:$4 sm:$0xff]   ;;  %v1153_v45 = vld [vmem:[%s1594_s0 + $0x110] sm:$0xff]   ;;  %v1152_v48 = vld [vmem:[%s1595_s1 + $0x58] ss:$20 sps:$4 sm:$0xff]  }
  0x10   :  { %993 = vmatpush3.bf16.msra.mxu0 %v1115_v15  ;;  %v1147_v43 = vld [vmem:[%s1595_s1 + $0x54] ss:$20 sps:$4 sm:$0xff]   ;;  %v1149_v44 = vld [vmem:[%s1595_s1 + $0x5c] ss:$20 sps:$4 sm:$0xff]   ;;  %v1156_v50 = vld [vmem:[%s1595_s1 + $0x84] ss:$20 sps:$4 sm:$0xff]  }
  0x11   :  { %1033 = vmatpush3.bf16.msra.mxu1 %v1116_v16  ;;  %994 = vmatprep.subr.bf16.mxu0 %v1117_v17  ;;  %v1151_v47 = vld [vmem:[%s1595_s1 + $0x50] ss:$20 sps:$4 sm:$0xff]   ;;  %v120_v53 = vld [vmem:[%s1596_s2 + $0x18] sm:$0xff]  ;;  %v118_v55 = vld [vmem:[%s1596_s2 + $0x8] sm:$0xff] }
  0x12   :  { %1034 = vmatprep.subr.bf16.mxu1 %v1118_v18  ;;  %v1154_v49 = vld [vmem:[%s1595_s1 + $0x7c] ss:$20 sps:$4 sm:$0xff]   ;;  %v117_v52 = vld [vmem:[%s1596_s2] sm:$0xff]  ;;  %v1158_v54 = vld [vmem:[%s1595_s1 + $0x78] ss:$20 sps:$4 sm:$0xff]  }
  0x13   :  { %v119_v51 = vld [vmem:[%s1596_s2 + $0x10] sm:$0xff]  ;;  %127 = vperm.xlu0 %1099, %v117_v52   ;;  %v122_v58 = vld [vmem:[%s1596_s2 + $0x28] sm:$0xff]  ;;  %v121_v60 = vld [vmem:[%s1596_s2 + $0x20] sm:$0xff] }
  0x14   :  { %995 = vmatpush3.bf16.msra.mxu0 %v1119_v19  ;;  %137 = vperm.xlu1 %1100, %v119_v51   ;;  %v1159_v56 = vld [vmem:[%s1595_s1 + $0x80] ss:$20 sps:$4 sm:$0xff]   ;;  %v1161_v57 = vld [vmem:[%s1595_s1 + $0x10] ss:$20 sps:$4 sm:$0xff]   ;;  %v124_v61 = vld [vmem:[%s1596_s2 + $0x38] sm:$0xff] }
  0x15   :  { %1035 = vmatpush3.bf16.msra.mxu1 %v1120_v20  ;;  %996 = vmatprep.subr.bf16.mxu0 %v1121_v21  ;;  %v1162_v59 = vld [vmem:[%s1595_s1 + $0x60] ss:$20 sps:$4 sm:$0xff]   ;;  %v1163_v62 = vld [vmem:[%s1595_s1 + $0x38] ss:$20 sps:$4 sm:$0xff]   ;;  %v1164_v0 = vld [vmem:[%s1595_s1 + $0x88] ss:$20 sps:$4 sm:$0xff]  }
  0x16   :  { %1036 = vmatprep.subr.bf16.mxu1 %v1122_v22  ;;  %v123_v63 = vld [vmem:[%s1596_s2 + $0x30] sm:$0xff]  ;;  %v794_v1 = vld [vmem:[%s1597_s3] sm:$0xff]  ;;  %v795_v2 = vld [vmem:[%s1597_s3 + $0x8] sm:$0xff] }
  0x17   :  { %132 = vperm.xlu0 %1099, %v118_v55   ;;  %v796_v3 = vld [vmem:[%s1597_s3 + $0x10] sm:$0xff]  ;;  %v798_v4 = vld [vmem:[%s1597_s3 + $0x20] sm:$0xff]  ;;  %v797_v5 = vld [vmem:[%s1597_s3 + $0x18] sm:$0xff] }
  0x18   :  { %997 = vmatpush3.bf16.msra.mxu0 %v1123_v23  ;;  %142 = vperm.xlu1 %1100, %v120_v53   ;;  %v799_v6 = vld [vmem:[%s1597_s3 + $0x28] sm:$0xff] }
  0x19   :  { %1037 = vmatpush3.bf16.msra.mxu1 %v1124_v24  ;;  %998 = vmatprep.subr.bf16.mxu0 %v1125_v25 }
  0x1a   :  { %1038 = vmatprep.subr.bf16.mxu1 %v1126_v26 }
  0x1b   :  { %147 = vperm.xlu0 %1099, %v121_v60  }
  0x1c   :  { %999 = vmatpush3.bf16.msra.mxu0 %v1127_v27  ;;  %152 = vperm.xlu1 %1100, %v122_v58  }
  0x1d   :  { %1039 = vmatpush3.bf16.msra.mxu1 %v1128_v28  ;;  %1000 = vmatprep.subr.bf16.mxu0 %v1129_v29 }
  0x1e   :  { %1040 = vmatprep.subr.bf16.mxu1 %v1130_v30 }
  0x1f   :  { %157 = vperm.xlu0 %1099, %v123_v63  }
  0x20   :  { %1001 = vmatpush3.bf16.msra.mxu0 %v1131_v31  ;;  %162 = vperm.xlu1 %1100, %v124_v61  }
  0x21   :  { %1041 = vmatpush3.bf16.msra.mxu1 %v1132_v32  ;;  %1074 = vmatprep.subr.bf16.mxu0 %v1139_v37 }
  0x22   :  { %1090 = vmatprep.subr.bf16.mxu1 %v1139_v37 }
  0x23   :  { %527 = vmatmul.mubr.bf16.vlgmr.msra.gmra.mrb[0].mxu0 %v1133_v33  ;;  %809 = vperm.xlu0 %1099, %v795_v2  }
  0x24   :  { %592 = vmatmul.mubr.bf16.vlgmr.msra.gmra.mrb[0].mxu1 %v1136_v35  ;;  %1075 = vmatpush3.bf16.msra.mxu0 %v1139_v37 }
  0x25   :  { %534 = vmatprep.mubr.bf16.mxu0 %v1140_v38  ;;  %599 = vmatprep.mubr.bf16.mxu1 %v1142_v39 }
  0x26   :  { %1094 = vmatpush3.bf16.msra.mxu1 %v1139_v37  ;;  %1076 = vmatprep.subr.bf16.mxu0 %v1146_v40 }
  0x27   :  { %1091 = vmatprep.subr.bf16.mxu1 %v1146_v40  ;;  %804 = vperm.xlu1 %1100, %v794_v1  }
  0x28   :  { %1077 = vmatpush3.bf16.msra.mxu0 %v1146_v40  ;;  %824 = vperm.xlu0 %1099, %v798_v4  }
  0x29   :  { %1078 = vmatprep.subr.bf16.mxu0 %v1153_v45 }
  0x2a   :  { %1095 = vmatpush3.bf16.msra.mxu1 %v1146_v40 }
  0x2b   :  { %535 = vmatmul.mubr.bf16.gmra.mrb[4].mxu0 %v1144_v41  ;;  %1092 = vmatprep.subr.bf16.mxu1 %v1153_v45 }
  0x2c   :  { %600 = vmatmul.mubr.bf16.gmra.mrb[4].mxu1 %v1145_v42  ;;  %542 = vmatprep.mubr.bf16.mxu0 %v1147_v43 }
  0x2d   :  { %607 = vmatprep.mubr.bf16.mxu1 %v1149_v44  ;;  %1079 = vmatpush3.bf16.msra.mxu0 %v1153_v45 }
  0x2e   :  { %1080 = vmatprep.subr.bf16.mxu0 %v1160_v46  ;;  %1096 = vmatpush3.bf16.msra.mxu1 %v1153_v45 }
  0x2f   :  { %1093 = vmatprep.subr.bf16.mxu1 %v1160_v46  ;;  %814 = vperm.xlu1 %1100, %v796_v3  }
  0x31   :  { %1081 = vmatpush3.bf16.msra.mxu0 %v1160_v46 }
  0x32   :  { %1097 = vmatpush3.bf16.msra.mxu1 %v1160_v46 }
  0x33   :  { %543 = vmatmul.mubr.bf16.gmra.mrb[8].mxu0 %v1151_v47  ;;  %819 = vperm.xlu1 %1100, %v797_v5  }
  0x34   :  { %608 = vmatmul.mubr.bf16.gmra.mrb[8].mxu1 %v1152_v48  ;;  %550 = vmatprep.mubr.bf16.mxu0 %v1154_v49 }
  0x35   :  { %615 = vmatprep.mubr.bf16.mxu1 %v1156_v50 }
  0x37   :  { %829 = vperm.xlu1 %1100, %v799_v6  }
  0x3b   :  { %551 = vmatmul.mubr.bf16.gmra.mrb[12].mxu0 %v1158_v54 }
  0x3c   :  { %616 = vmatmul.mubr.bf16.gmra.mrb[12].mxu1 %v1159_v56  ;;  %1082 = vmatprep.mubr.msk.bf16.mxu0 %vm481_vm0, %v1161_v57 }
  0x3d   :  { %1086 = vmatprep.mubr.msk.bf16.mxu1 %vm481_vm0, %v1162_v59 }
  0x43   :  { %1083 = vmatmul.mubr.msk.bf16.vlgmr.msra.gmra.mrb[16].mxu0 %vm481_vm0, %v1163_v62 }
  0x44   :  { %1087 = vmatmul.mubr.msk.bf16.vlgmr.msra.gmra.mrb[16].mxu1 %vm481_vm0, %v1164_v0 }
  0x92   :  { %v128_v7 = vpop.permute.xlu0 %127 }
  0x93   :  { %v138_v24 = vpop.permute.xlu1 %137 }
  0x96   :  { %v133_v9 = vpop.permute.xlu0 %132 }
  0x97   :  { %v143_v38 = vpop.permute.xlu1 %142 }
  0x9a   :  { %v148_v42 = vpop.permute.xlu0 %147 }
  0x9b   :  { %v153_v56 = vpop.permute.xlu1 %152 }
  0x9e   :  { %v158_v60 = vpop.permute.xlu0 %157 }
  0xf6   :  { %v1002_v8 = vpop.f32.mrb[0].mxu0 }
  0xf7   :  { %v1003_v10 = vpop.f32.mrb[1].mxu0  ;;  %v1042_v11 = vpop.f32.mrb[0].mxu1 }
  0xf8   :  { %v1004_v12 = vadd.f32 %v1003_v10, %v1002_v8  ;;  %v1005_v13 = vpop.f32.mrb[2].mxu0  ;;  %v1043_v14 = vpop.f32.mrb[1].mxu1 }
  0xf9   :  { %v1006_v15 = vpop.f32.mrb[3].mxu0  ;;  %v1044_v16 = vadd.f32 %v1043_v14, %v1042_v11  ;;  %v1045_v17 = vpop.f32.mrb[2].mxu1 }
  0xfa   :  { %v529_v18 = vadd.f32 %v1004_v12, %v128_v7  ;;  %v1007_v19 = vadd.f32 %v1006_v15, %v1005_v13  ;;  %v1046_v20 = vpop.f32.mrb[3].mxu1  ;;  %v163_v10 = vpop.permute.xlu1 %162 }
  0xfb   :  { %v1047_v21 = vadd.f32 %v1046_v20, %v1045_v17 }
  0xfc   :  { %v532_v22 = vadd.f32 %v1007_v19, %v133_v9  ;;  %v594_v23 = vadd.f32 %v1044_v16, %v529_v18 }
  0xfe   :  { %v1008_v25 = vpop.f32.mrb[4].mxu0  ;;  %v1426_v26 = vadd.f32 %v1047_v21, %v532_v22 }
  0xff   :  { %v1009_v27 = vpop.f32.mrb[5].mxu0  ;;  %v1048_v28 = vpop.f32.mrb[4].mxu1 }
 0x100   :  { %v1010_v29 = vadd.f32 %v1009_v27, %v1008_v25  ;;  %v1011_v30 = vpop.f32.mrb[6].mxu0  ;;  %v1049_v31 = vpop.f32.mrb[5].mxu1 }
 0x101   :  { %v1012_v32 = vpop.f32.mrb[7].mxu0  ;;  %v1050_v33 = vadd.f32 %v1049_v31, %v1048_v28  ;;  %v1051_v34 = vpop.f32.mrb[6].mxu1 }
 0x102   :  { %v537_v35 = vadd.f32 %v1010_v29, %v138_v24  ;;  %v1013_v36 = vadd.f32 %v1012_v32, %v1011_v30  ;;  %v1052_v37 = vpop.f32.mrb[7].mxu1 }
 0x103   :  { %v1053_v39 = vadd.f32 %v1052_v37, %v1051_v34 }
 0x104   :  { %v540_v40 = vadd.f32 %v1013_v36, %v143_v38  ;;  %v602_v41 = vadd.f32 %v1050_v33, %v537_v35 }
 0x106   :  { %v1014_v43 = vpop.f32.mrb[8].mxu0  ;;  %v605_v44 = vadd.f32 %v1053_v39, %v540_v40  ;;  %v801_v39 = vld [vmem:[%s1597_s3 + $0x38] sm:$0xff]  ;;  %v851_v40 = vld [vmem:[%s1598_s4 + $0x8] sm:$0xff] }
 0x107   :  { %v1015_v45 = vpop.f32.mrb[9].mxu0  ;;  %v1054_v46 = vpop.f32.mrb[8].mxu1 }
 0x108   :  { %v1016_v47 = vadd.f32 %v1015_v45, %v1014_v43  ;;  %v1017_v48 = vpop.f32.mrb[10].mxu0  ;;  %v1055_v49 = vpop.f32.mrb[9].mxu1  ;;  %v800_v43 = vld [vmem:[%s1597_s3 + $0x30] sm:$0xff] }
 0x109   :  { %v1018_v50 = vpop.f32.mrb[11].mxu0  ;;  %v1056_v51 = vadd.f32 %v1055_v49, %v1054_v46  ;;  %v1057_v52 = vpop.f32.mrb[10].mxu1  ;;  %v852_v45 = vld [vmem:[%s1598_s4 + $0x10] sm:$0xff]  ;;  %v854_v46 = vld [vmem:[%s1598_s4 + $0x20] sm:$0xff] }
 0x10a   :  { %v545_v53 = vadd.f32 %v1016_v47, %v148_v42  ;;  %v1019_v54 = vadd.f32 %v1018_v50, %v1017_v48  ;;  %v1058_v55 = vpop.f32.mrb[11].mxu1  ;;  %v855_v42 = vld [vmem:[%s1598_s4 + $0x28] sm:$0xff]  ;;  %v1476_v47 = vpop.permute.xlu1 %804 }
 0x10b   :  { %v1059_v57 = vadd.f32 %v1058_v55, %v1057_v52  ;;  %v1480_v49 = vpop.permute.xlu0 %809 }
 0x10c   :  { %v548_v58 = vadd.f32 %v1019_v54, %v153_v56  ;;  %v610_v59 = vadd.f32 %v1056_v51, %v545_v53 }
 0x10e   :  { %v1020_v61 = vpop.f32.mrb[12].mxu0  ;;  %v613_v62 = vadd.f32 %v1059_v57, %v548_v58  ;;  %v1478_v48 = vpop.permute.xlu1 %814 }
 0x10f   :  { %v1021_v63 = vpop.f32.mrb[13].mxu0  ;;  %v1060_v0 = vpop.f32.mrb[12].mxu1 }
 0x110   :  { %v1022_v1 = vadd.f32 %v1021_v63, %v1020_v61  ;;  %v1023_v2 = vpop.f32.mrb[14].mxu0  ;;  %v1061_v3 = vpop.f32.mrb[13].mxu1 }
 0x111   :  { %v1024_v4 = vpop.f32.mrb[15].mxu0  ;;  %v1062_v5 = vadd.f32 %v1061_v3, %v1060_v0  ;;  %v1063_v6 = vpop.f32.mrb[14].mxu1 }
 0x112   :  { %v553_v7 = vadd.f32 %v1022_v1, %v158_v60  ;;  %v1025_v8 = vadd.f32 %v1024_v4, %v1023_v2  ;;  %v1064_v9 = vpop.f32.mrb[15].mxu1  ;;  %v1482_v50 = vpop.permute.xlu1 %819 }
 0x113   :  { %v1065_v11 = vadd.f32 %v1064_v9, %v1063_v6  ;;  %v1484_v51 = vpop.permute.xlu0 %824 }
 0x114   :  { %v556_v12 = vadd.f32 %v1025_v8, %v163_v10  ;;  %v618_v13 = vadd.f32 %v1062_v5, %v553_v7 }
 0x116   :  { %v1084_v14 = vpop.f32.mrb[16].mxu0  ;;  %v621_v15 = vadd.f32 %v1065_v11, %v556_v12  ;;  %v1486_v52 = vpop.permute.xlu1 %829 }
 0x117   :  { %v667_v16 = vadd.f32 %v1084_v14, %v602_v41  ;;  %v1088_v17 = vpop.f32.mrb[16].mxu1  ;;  %v658_v18 = vpop.f32.mrb[17].mxu0  ;;  %v853_v41 = vld [vmem:[%s1598_s4 + $0x18] sm:$0xff] }
 0x118   :  { %v683_v19 = vadd.f32 %v1088_v17, %v618_v13  ;;  %v659_v20 = vadd.f32 %v658_v18, %v594_v23  ;;  %v674_v21 = vpop.f32.mrb[17].mxu1  ;;  %v1085_v22 = vpop.f32.mrb[18].mxu0 }
 0x119   :  { %v1428_v24 = vadd.f32 %v674_v21, %v610_v59  ;;  %v1430_v25 = vadd.f32 %v1085_v22, %v605_v44  ;;  %v1089_v27 = vpop.f32.mrb[18].mxu1  ;;  %v661_v28 = vpop.f32.mrb[19].mxu0  ;;  %v696_v29 = vsel %vm689_vm1, %v667_v16, 0.0  ;;  %v850_v44 = vld [vmem:[%s1598_s4] sm:$0xff] }
 0x11a   :  { %v1433_v30 = vadd.f32 %v1089_v27, %v621_v15  ;;  %v1436_v31 = vadd.f32 %v661_v28, %v1426_v26  ;;  %v677_v32 = vpop.f32.mrb[19].mxu1  ;;  %v708_v33 = vsel %vm689_vm1, %v683_v19, 0.0  ;;  %697 = vadd.xlane.f32.xlu0 %v696_v29  ;;  %v690_v34 = vsel %vm689_vm1, %v659_v20, 0.0 }
 0x11b   :  { %v1439_v23 = vadd.f32 %v677_v32, %v613_v62  ;;  %709 = vadd.xlane.f32.xlu1 %v708_v33  ;;  %v702_v35 = vsel %vm689_vm1, %v1428_v24, 0.0  ;;  %v699_v36 = vsel %vm689_vm1, %v1430_v25, 0.0  ;;  %v856_v32 = vld [vmem:[%s1598_s4 + $0x30] sm:$0xff] }
 0x11c   :  { %v693_v26 = vsel %vm689_vm1, %v1436_v31, 0.0  ;;  %v711_v37 = vsel %vm689_vm1, %v1433_v30, 0.0 }
 0x11d   :  { %v705_v38 = vsel %vm689_vm1, %v1439_v23, 0.0 }
 0x11e   :  { %691 = vadd.xlane.f32.xlu0 %v690_v34 }
 0x11f   :  { %703 = vadd.xlane.f32.xlu1 %v702_v35 }
 0x122   :  { %700 = vadd.xlane.f32.xlu0 %v699_v36 }
 0x123   :  { %694 = vadd.xlane.f32.xlu1 %v693_v26 }
 0x126   :  { %712 = vadd.xlane.f32.xlu0 %v711_v37 }
 0x12a   :  { %706 = vadd.xlane.f32.xlu0 %v705_v38 }
 0x134   :  { %839 = vperm.xlu1 %1100, %v801_v39  }
 0x138   :  { %865 = vperm.xlu1 %1100, %v851_v40  }
 0x13c   :  { %875 = vperm.xlu1 %1100, %v853_v41  }
 0x140   :  { %885 = vperm.xlu1 %1100, %v855_v42   ;;  %834 = vperm.xlu0 %1099, %v800_v43  }
 0x144   :  { %860 = vperm.xlu0 %1099, %v850_v44  }
 0x148   :  { %870 = vperm.xlu0 %1099, %v852_v45  }
 0x14c   :  { %880 = vperm.xlu0 %1099, %v854_v46  }
 0x1a7   :  { %v698_v53 = vpop.xlane.xlu0 %697 }
 0x1a8   :  { %v710_v54 = vpop.xlane.xlu1 %709  ;;  %v716_v55 = vmul.f32 0.5, %v698_v53 }
 0x1a9   :  { %v720_v56 = vmul.f32 0.5, %v710_v54 }
 0x1aa   :  { %v1488_v57 = vsub.f32 %v667_v16, %v716_v55 }
 0x1ab   :  { %v1490_v58 = vsub.f32 %v683_v19, %v720_v56  ;;  %v692_v59 = vpop.xlane.xlu0 %691 }
 0x1ac   :  { %v704_v60 = vpop.xlane.xlu1 %703  ;;  %v714_v61 = vmul.f32 0.5, %v692_v59  ;;  %v732_v62 = vmul.f32 %v1488_v57, %v1488_v57 }
 0x1ad   :  { %v718_v63 = vmul.f32 0.5, %v704_v60  ;;  %v736_v2 = vmul.f32 %v1490_v58, %v1490_v58 }
 0x1ae   :  { %v1494_v0 = vsub.f32 %v659_v20, %v714_v61  ;;  %v744_v1 = vsel %vm689_vm1, %v732_v62, 0.0 }
 0x1af   :  { %745 = vadd.xlane.f32.xlu1 %v744_v1  ;;  %v701_v3 = vpop.xlane.xlu0 %700  ;;  %v1500_v6 = vsub.f32 %v1428_v24, %v718_v63  ;;  %v756_v9 = vsel %vm689_vm1, %v736_v2, 0.0 }
 0x1b0   :  { %v695_v4 = vpop.xlane.xlu1 %694  ;;  %v717_v5 = vmul.f32 0.5, %v701_v3  ;;  %v730_v10 = vmul.f32 %v1494_v0, %v1494_v0 }
 0x1b1   :  { %v715_v7 = vmul.f32 0.5, %v695_v4  ;;  %v734_v14 = vmul.f32 %v1500_v6, %v1500_v6 }
 0x1b2   :  { %v1503_v8 = vsub.f32 %v1430_v25, %v717_v5  ;;  %v738_v17 = vsel %vm689_vm1, %v730_v10, 0.0 }
 0x1b3   :  { %757 = vadd.xlane.f32.xlu1 %v756_v9  ;;  %v713_v11 = vpop.xlane.xlu0 %712  ;;  %v1513_v15 = vsub.f32 %v1436_v31, %v715_v7  ;;  %v750_v24 = vsel %vm689_vm1, %v734_v14, 0.0  ;;  %v857_v31 = vld [vmem:[%s1598_s4 + $0x38] sm:$0xff] }
 0x1b4   :  { %v721_v12 = vmul.f32 0.5, %v713_v11  ;;  %v733_v13 = vmul.f32 %v1503_v8, %v1503_v8  ;;  %v1539_v33 = vpop.permute.xlu1 %839 }
 0x1b5   :  { %v731_v27 = vmul.f32 %v1513_v15, %v1513_v15 }
 0x1b6   :  { %v1516_v16 = vsub.f32 %v1433_v30, %v721_v12  ;;  %v747_v18 = vsel %vm689_vm1, %v733_v13, 0.0 }
 0x1b7   :  { %739 = vadd.xlane.f32.xlu1 %v738_v17  ;;  %748 = vadd.xlane.f32.xlu0 %v747_v18  ;;  %v707_v19 = vpop.xlane.xlu0 %706  ;;  %v741_v28 = vsel %vm689_vm1, %v731_v27, 0.0 }
 0x1b8   :  { %v719_v20 = vmul.f32 0.5, %v707_v19  ;;  %v737_v21 = vmul.f32 %v1516_v16, %v1516_v16 }
 0x1ba   :  { %v1523_v22 = vsub.f32 %v1439_v23, %v719_v20  ;;  %v759_v25 = vsel %vm689_vm1, %v737_v21, 0.0  ;;  %v1541_v23 = vpop.permute.xlu1 %865 }
 0x1bb   :  { %751 = vadd.xlane.f32.xlu1 %v750_v24  ;;  %760 = vadd.xlane.f32.xlu0 %v759_v25 }
 0x1bc   :  { %v735_v29 = vmul.f32 %v1523_v22, %v1523_v22 }
 0x1be   :  { %v753_v30 = vsel %vm689_vm1, %v735_v29, 0.0  ;;  %v876_v35 = vpop.permute.xlu1 %875 }
 0x1bf   :  { %742 = vadd.xlane.f32.xlu0 %v741_v28  ;;  %v835_v34 = vpop.permute.xlu0 %834 }
 0x1c2   :  { %v1543_v26 = vpop.permute.xlu1 %885 }
 0x1c3   :  { %754 = vadd.xlane.f32.xlu0 %v753_v30  ;;  %v861_v36 = vpop.permute.xlu0 %860 }
 0x1c7   :  { %v871_v37 = vpop.permute.xlu0 %870 }
 0x1cb   :  { %v881_v41 = vpop.permute.xlu0 %880 }
 0x1cc   :  { %895 = vperm.xlu1 %1100, %v857_v31  }
 0x1d9   :  { %890 = vperm.xlu0 %1099, %v856_v32  }
 0x23c   :  { %v746_v38 = vpop.xlane.xlu1 %745 }
 0x23d   :  { %v764_v39 = vmul.f32 0.5, %v746_v38 }
 0x23f   :  { %v772_v40 = vadd.f32 1e-05, %v764_v39 }
 0x240   :  { %v758_v42 = vpop.xlane.xlu1 %757 }
 0x241   :  { %1165 = vrsqrt.f32 %v772_v40  ;;  %v768_v43 = vmul.f32 0.5, %v758_v42 }
 0x243   :  { %v776_v44 = vadd.f32 1e-05, %v768_v43 }
 0x244   :  { %v740_v45 = vpop.xlane.xlu1 %739  ;;  %v749_v46 = vpop.xlane.xlu0 %748 }
 0x245   :  { %v762_v53 = vmul.f32 0.5, %v740_v45  ;;  %v765_v54 = vmul.f32 0.5, %v749_v46  ;;  %1167 = vrsqrt.f32 %v776_v44 }
 0x247   :  { %v770_v55 = vadd.f32 1e-05, %v762_v53  ;;  %v773_v56 = vadd.f32 1e-05, %v765_v54 }
 0x248   :  { %v752_v59 = vpop.xlane.xlu1 %751  ;;  %v761_v60 = vpop.xlane.xlu0 %760 }
 0x249   :  { %1169 = vrsqrt.f32 %v770_v55  ;;  %v766_v61 = vmul.f32 0.5, %v752_v59  ;;  %v769_v62 = vmul.f32 0.5, %v761_v60 }
 0x24a   :  { %1171 = vrsqrt.f32 %v773_v56 }
 0x24b   :  { %v1166_v63 = vpop.eup %1165  ;;  %v774_v1 = vadd.f32 1e-05, %v766_v61  ;;  %v777_v2 = vadd.f32 1e-05, %v769_v62 }
 0x24c   :  { %v788_v3 = vmul.f32 %v1166_v63, %v1488_v57  ;;  %v743_v4 = vpop.xlane.xlu0 %742 }
 0x24d   :  { %1173 = vrsqrt.f32 %v774_v1  ;;  %v763_v5 = vmul.f32 0.5, %v743_v4 }
 0x24e   :  { %v844_v7 = vmul.f32 %v1478_v48, %v788_v3  ;;  %1175 = vrsqrt.f32 %v777_v2 }
 0x24f   :  { %v771_v9 = vadd.f32 1e-05, %v763_v5  ;;  %v1168_v10 = vpop.eup %1167 }
 0x250   :  { %v900_v11 = vadd.f32 %v871_v37, %v844_v7  ;;  %v755_v12 = vpop.xlane.xlu0 %754  ;;  %v792_v19 = vmul.f32 %v1168_v10, %v1490_v58 }
 0x251   :  { %1177 = vrsqrt.f32 %v771_v9  ;;  %v767_v13 = vmul.f32 0.5, %v755_v12 }
 0x252   :  { %v908_v14 = vmax.f32 %v900_v11, 0.0  ;;  %v848_v27 = vmul.f32 %v835_v34, %v792_v19 }
 0x253   :  { %v1170_v17 = vpop.eup %1169  ;;  %v775_v18 = vadd.f32 1e-05, %v767_v13 }
 0x254   :  { %v1172_v20 = vpop.eup %1171  ;;  %916 = vst.msk [vmem:[%s1599_s5 + $0x10] sm:$0xff] %vm689_vm1, %v908_v14  ;;  %v786_v48 = vmul.f32 %v1170_v17, %v1494_v0 }
 0x255   :  { %v789_v57 = vmul.f32 %v1172_v20, %v1503_v8  ;;  %1179 = vrsqrt.f32 %v775_v18 }
 0x256   :  { %v842_v21 = vmul.f32 %v1476_v47, %v786_v48 }
 0x257   :  { %v1174_v24 = vpop.eup %1173  ;;  %v845_v25 = vmul.f32 %v1482_v50, %v789_v57 }
 0x258   :  { %v1176_v28 = vpop.eup %1175  ;;  %v898_v29 = vadd.f32 %v861_v36, %v842_v21  ;;  %v790_v58 = vmul.f32 %v1174_v24, %v1500_v6  ;;  %v891_v30 = vpop.permute.xlu0 %890 }
 0x259   :  { %v901_v31 = vadd.f32 %v876_v35, %v845_v25  ;;  %v793_v32 = vmul.f32 %v1176_v28, %v1516_v16  ;;  %v904_v37 = vadd.f32 %v891_v30, %v848_v27  ;;  %v896_v6 = vpop.permute.xlu1 %895 }
 0x25a   :  { %v906_v38 = vmax.f32 %v898_v29, 0.0  ;;  %v846_v0 = vmul.f32 %v1484_v51, %v790_v58 }
 0x25b   :  { %v1178_v8 = vpop.eup %1177  ;;  %v909_v39 = vmax.f32 %v901_v31, 0.0  ;;  %v849_v47 = vmul.f32 %v1539_v33, %v793_v32  ;;  %v912_v40 = vmax.f32 %v904_v37, 0.0 }
 0x25c   :  { %914 = vst.msk [vmem:[%s1599_s5] sm:$0xff] %vm689_vm1, %v906_v38  ;;  %v902_v50 = vadd.f32 %v881_v41, %v846_v0  ;;  %v787_v34 = vmul.f32 %v1178_v8, %v1513_v15 }
 0x25d   :  { %917 = vst.msk [vmem:[%s1599_s5 + $0x18] sm:$0xff] %vm689_vm1, %v909_v39  ;;  %v905_v51 = vadd.f32 %v896_v6, %v849_v47  ;;  %920 = vst.msk [vmem:[%s1599_s5 + $0x30] sm:$0xff] %vm689_vm1, %v912_v40 }
 0x25e   :  { %v910_v16 = vmax.f32 %v902_v50, 0.0  ;;  %v843_v33 = vmul.f32 %v1480_v49, %v787_v34 }
 0x25f   :  { %v1180_v35 = vpop.eup %1179  ;;  %v913_v36 = vmax.f32 %v905_v51, 0.0 }
 0x260   :  { %918 = vst.msk [vmem:[%s1599_s5 + $0x20] sm:$0xff] %vm689_vm1, %v910_v16  ;;  %v899_v15 = vadd.f32 %v1541_v23, %v843_v33  ;;  %v791_v41 = vmul.f32 %v1180_v35, %v1523_v22 }
 0x261   :  { %921 = vst.msk [vmem:[%s1599_s5 + $0x38] sm:$0xff] %vm689_vm1, %v913_v36 }
 0x262   :  { %v907_v42 = vmax.f32 %v899_v15, 0.0  ;;  %v847_v43 = vmul.f32 %v1486_v52, %v791_v41 }
 0x264   :  { %915 = vst.msk [vmem:[%s1599_s5 + $0x8] sm:$0xff] %vm689_vm1, %v907_v42  ;;  %v903_v49 = vadd.f32 %v1543_v26, %v847_v43 }
 0x266   :  { %v911_v44 = vmax.f32 %v903_v49, 0.0 }
 0x268   :  { %919 = vst.msk [vmem:[%s1599_s5 + $0x28] sm:$0xff] %vm689_vm1, %v911_v44 }

// kernel: unet_forward.41
= control target key start
LH: loop header
LB: loop body
LE: loop exit
PB: predicated region body
PF: predicated region fallthrough
CT: control target
= control target key end

     0   :  { %v832_v3 = vmov 0   ;;  %vm71_vm0 = vcmask 523264   ;;  %vm127_vm1 = vcmask 15360   ;;  %s1213_s0 = inlined_call_operand.vmem [shape: f32[64,2], index: 0, kind: input, shape index: {}]   ;;  %s1214_s1 = inlined_call_operand.vmem [shape: bf16[4,32,64], index: 1, kind: input, shape index: {}]   ;;  %s1215_s2 = inlined_call_operand.vmem [shape: f32[32,1], index: 2, kind: input, shape index: {}]   ;;  %s1216_s4 = inlined_call_operand.vmem [shape: f32[32,1], index: 4, kind: input, shape index: {}]   ;;  %s1217_s3 = inlined_call_operand.vmem [shape: f32[32,1], index: 3, kind: input, shape index: {}]   ;;  %s1218_s5 = inlined_call_operand.vmem [shape: f32[4,32,2], index: 5, kind: output, shape index: {}]  }
   0x1   :  { %v21_v0 = vld [vmem:[%s1213_s0] sm:$0xff]  ;;  %v22_v1 = vld [vmem:[%s1213_s0 + $0x8] sm:$0xff]  ;;  %v23_v2 = vld [vmem:[%s1213_s0 + $0x10] sm:$0xff]  ;;  %815 = vset.pattern.permute.xlu1 %v832_v3  ;;  %814 = vset.pattern.permute.xlu0 %v832_v3 }
   0x2   :  { %v29_v4 = vpack.c.bf16 %v22_v1, %v21_v0  ;;  %v24_v5 = vld [vmem:[%s1213_s0 + $0x18] sm:$0xff]  ;;  %v25_v7 = vld [vmem:[%s1213_s0 + $0x20] sm:$0xff]  ;;  %v26_v8 = vld [vmem:[%s1213_s0 + $0x28] sm:$0xff] }
   0x3   :  { %v30_v6 = vpack.c.bf16 %v24_v5, %v23_v2  ;;  %v816_v9 = vld [vmem:[%s1214_s1] sm:$0xff]   ;;  %v817_v10 = vld [vmem:[%s1214_s1 + $0x10] sm:$0xff]   ;;  %v31_v11 = vpack.c.bf16 %v26_v8, %v25_v7  ;;  %v28_v13 = vld [vmem:[%s1213_s0 + $0x38] sm:$0xff] }
   0x4   :  { %765 = vmatprep.subr.bf16.mxu0 %v29_v4  ;;  %777 = vmatprep.subr.bf16.mxu1 %v29_v4  ;;  %v27_v12 = vld [vmem:[%s1213_s0 + $0x30] sm:$0xff]  ;;  %v37_v16 = vld [vmem:[%s1215_s2] sm:$0xff]  ;;  %v40_v17 = vld [vmem:[%s1215_s2 + $0x18] sm:$0xff] }
   0x5   :  { %766 = vmatpush3.bf16.msra.mxu0 %v29_v4  ;;  %778 = vmatpush3.bf16.msra.mxu1 %v29_v4  ;;  %v32_v14 = vpack.c.bf16 %v28_v13, %v27_v12  ;;  %v39_v15 = vld [vmem:[%s1215_s2 + $0x10] sm:$0xff]  ;;  %v818_v18 = vld [vmem:[%s1214_s1 + $0x8] sm:$0xff]   ;;  %v819_v19 = vld [vmem:[%s1214_s1 + $0x18] sm:$0xff]  }
   0x6   :  { %767 = vmatprep.subr.bf16.mxu0 %v30_v6  ;;  %779 = vmatprep.subr.bf16.mxu1 %v30_v6  ;;  %v38_v20 = vld [vmem:[%s1215_s2 + $0x8] sm:$0xff]  ;;  %v820_v21 = vld [vmem:[%s1214_s1 + $0x20] sm:$0xff]   ;;  %v821_v22 = vld [vmem:[%s1214_s1 + $0x30] sm:$0xff]  }
   0x7   :  { %773 = vmatprep.mubr.msk.bf16.mxu0 %vm71_vm0, %v816_v9  ;;  %785 = vmatprep.mubr.msk.bf16.mxu1 %vm71_vm0, %v817_v10  ;;  %v822_v23 = vld [vmem:[%s1214_s1 + $0x28] sm:$0xff]   ;;  %v823_v24 = vld [vmem:[%s1214_s1 + $0x38] sm:$0xff]  }
   0x8   :  { %53 = vperm.xlu1 %815, %v39_v15   ;;  %43 = vperm.xlu0 %814, %v37_v16  }
   0x9   :  { %768 = vmatpush3.bf16.msra.mxu0 %v30_v6  ;;  %780 = vmatpush3.bf16.msra.mxu1 %v30_v6 }
   0xa   :  { %769 = vmatprep.subr.bf16.mxu0 %v31_v11  ;;  %781 = vmatprep.subr.bf16.mxu1 %v31_v11 }
   0xc   :  { %58 = vperm.xlu1 %815, %v40_v17   ;;  %48 = vperm.xlu0 %814, %v38_v20  }
   0xd   :  { %770 = vmatpush3.bf16.msra.mxu0 %v31_v11  ;;  %782 = vmatpush3.bf16.msra.mxu1 %v31_v11 }
   0xe   :  { %771 = vmatprep.subr.bf16.mxu0 %v32_v14  ;;  %783 = vmatprep.subr.bf16.mxu1 %v32_v14 }
  0x11   :  { %772 = vmatpush3.bf16.msra.mxu0 %v32_v14  ;;  %784 = vmatpush3.bf16.msra.mxu1 %v32_v14 }
  0x12   :  { %789 = vmatprep.subr.bf16.mxu0 %v29_v4  ;;  %801 = vmatprep.subr.bf16.mxu1 %v29_v4 }
  0x14   :  { %774 = vmatmul.mubr.msk.bf16.vlgmr.msra.gmra.mrb[0].mxu0 %vm71_vm0, %v818_v18  ;;  %786 = vmatmul.mubr.msk.bf16.vlgmr.msra.gmra.mrb[0].mxu1 %vm71_vm0, %v819_v19 }
  0x15   :  { %790 = vmatpush3.bf16.msra.mxu0 %v29_v4  ;;  %802 = vmatpush3.bf16.msra.mxu1 %v29_v4 }
  0x16   :  { %791 = vmatprep.subr.bf16.mxu0 %v30_v6  ;;  %803 = vmatprep.subr.bf16.mxu1 %v30_v6 }
  0x17   :  { %797 = vmatprep.mubr.msk.bf16.mxu0 %vm71_vm0, %v820_v21  ;;  %809 = vmatprep.mubr.msk.bf16.mxu1 %vm71_vm0, %v821_v22 }
  0x19   :  { %792 = vmatpush3.bf16.msra.mxu0 %v30_v6  ;;  %804 = vmatpush3.bf16.msra.mxu1 %v30_v6 }
  0x1a   :  { %793 = vmatprep.subr.bf16.mxu0 %v31_v11  ;;  %805 = vmatprep.subr.bf16.mxu1 %v31_v11 }
  0x1d   :  { %794 = vmatpush3.bf16.msra.mxu0 %v31_v11  ;;  %806 = vmatpush3.bf16.msra.mxu1 %v31_v11 }
  0x1e   :  { %795 = vmatprep.subr.bf16.mxu0 %v32_v14  ;;  %807 = vmatprep.subr.bf16.mxu1 %v32_v14 }
  0x21   :  { %796 = vmatpush3.bf16.msra.mxu0 %v32_v14  ;;  %808 = vmatpush3.bf16.msra.mxu1 %v32_v14 }
  0x24   :  { %798 = vmatmul.mubr.msk.bf16.vlgmr.msra.gmra.mrb[4].mxu0 %vm71_vm0, %v822_v23  ;;  %810 = vmatmul.mubr.msk.bf16.vlgmr.msra.gmra.mrb[4].mxu1 %vm71_vm0, %v823_v24 }
  0x87   :  { %v54_v25 = vpop.permute.xlu1 %53  ;;  %v44_v26 = vpop.permute.xlu0 %43 }
  0x8b   :  { %v59_v41 = vpop.permute.xlu1 %58  ;;  %v49_v42 = vpop.permute.xlu0 %48 }
  0xe7   :  { %v775_v27 = vpop.f32.mrb[0].mxu0  ;;  %v787_v28 = vpop.f32.mrb[0].mxu1 }
  0xe8   :  { %v931_v29 = vadd.f32 %v775_v27, %v54_v25  ;;  %v933_v30 = vadd.f32 %v787_v28, %v54_v25  ;;  %v112_v31 = vpop.f32.mrb[1].mxu0  ;;  %v195_v32 = vpop.f32.mrb[1].mxu1 }
  0xe9   :  { %v776_v33 = vpop.f32.mrb[2].mxu0  ;;  %v935_v34 = vadd.f32 %v195_v32, %v44_v26  ;;  %v788_v35 = vpop.f32.mrb[2].mxu1  ;;  %v937_v36 = vadd.f32 %v112_v31, %v44_v26 }
  0xea   :  { %v115_v37 = vpop.f32.mrb[3].mxu0  ;;  %v216_v38 = vsel %vm127_vm1, %v933_v30, 0.0  ;;  %v198_v39 = vpop.f32.mrb[3].mxu1  ;;  %v134_v40 = vsel %vm127_vm1, %v931_v29, 0.0  ;;  %v945_v44 = vadd.f32 %v776_v33, %v59_v41  ;;  %v951_v47 = vadd.f32 %v788_v35, %v59_v41 }
  0xeb   :  { %217 = vadd.xlane.f32.xlu1 %v216_v38  ;;  %135 = vadd.xlane.f32.xlu0 %v134_v40  ;;  %v210_v43 = vsel %vm127_vm1, %v935_v34, 0.0  ;;  %v947_v45 = vadd.f32 %v115_v37, %v49_v42  ;;  %v128_v46 = vsel %vm127_vm1, %v937_v36, 0.0  ;;  %v957_v50 = vadd.f32 %v198_v39, %v49_v42 }
  0xec   :  { %v137_v49 = vsel %vm127_vm1, %v945_v44, 0.0  ;;  %v219_v51 = vsel %vm127_vm1, %v951_v47, 0.0 }
  0xed   :  { %v131_v48 = vsel %vm127_vm1, %v947_v45, 0.0  ;;  %v213_v0 = vsel %vm127_vm1, %v957_v50, 0.0 }
  0xef   :  { %211 = vadd.xlane.f32.xlu1 %v210_v43  ;;  %129 = vadd.xlane.f32.xlu0 %v128_v46 }
  0xf3   :  { %132 = vadd.xlane.f32.xlu1 %v131_v48  ;;  %138 = vadd.xlane.f32.xlu0 %v137_v49 }
  0xf7   :  { %v799_v52 = vpop.f32.mrb[4].mxu0  ;;  %v811_v53 = vpop.f32.mrb[4].mxu1  ;;  %220 = vadd.xlane.f32.xlu0 %v219_v51 }
  0xf8   :  { %v961_v54 = vadd.f32 %v799_v52, %v54_v25  ;;  %v281_v55 = vpop.f32.mrb[5].mxu0  ;;  %v367_v56 = vpop.f32.mrb[5].mxu1  ;;  %v979_v5 = vadd.f32 %v811_v53, %v54_v25 }
  0xf9   :  { %v800_v57 = vpop.f32.mrb[6].mxu0  ;;  %v812_v58 = vpop.f32.mrb[6].mxu1  ;;  %v963_v59 = vadd.f32 %v281_v55, %v44_v26  ;;  %v971_v1 = vadd.f32 %v367_v56, %v44_v26 }
  0xfa   :  { %v965_v60 = vadd.f32 %v800_v57, %v59_v41  ;;  %v284_v61 = vpop.f32.mrb[7].mxu0  ;;  %v370_v62 = vpop.f32.mrb[7].mxu1  ;;  %v302_v63 = vsel %vm127_vm1, %v961_v54, 0.0  ;;  %v987_v9 = vadd.f32 %v812_v58, %v59_v41  ;;  %v388_v10 = vsel %vm127_vm1, %v979_v5, 0.0 }
  0xfb   :  { %303 = vadd.xlane.f32.xlu1 %v302_v63  ;;  %214 = vadd.xlane.f32.xlu0 %v213_v0  ;;  %v973_v2 = vadd.f32 %v284_v61, %v49_v42  ;;  %v296_v3 = vsel %vm127_vm1, %v963_v59, 0.0  ;;  %v981_v6 = vadd.f32 %v370_v62, %v49_v42  ;;  %v382_v7 = vsel %vm127_vm1, %v971_v1, 0.0 }
  0xfc   :  { %v305_v4 = vsel %vm127_vm1, %v965_v60, 0.0  ;;  %v391_v12 = vsel %vm127_vm1, %v987_v9, 0.0 }
  0xfd   :  { %v299_v8 = vsel %vm127_vm1, %v973_v2, 0.0  ;;  %v385_v11 = vsel %vm127_vm1, %v981_v6, 0.0 }
  0xff   :  { %297 = vadd.xlane.f32.xlu1 %v296_v3  ;;  %306 = vadd.xlane.f32.xlu0 %v305_v4 }
 0x103   :  { %383 = vadd.xlane.f32.xlu1 %v382_v7  ;;  %300 = vadd.xlane.f32.xlu0 %v299_v8 }
 0x107   :  { %389 = vadd.xlane.f32.xlu1 %v388_v10  ;;  %386 = vadd.xlane.f32.xlu0 %v385_v11 }
 0x10b   :  { %392 = vadd.xlane.f32.xlu0 %v391_v12 }
 0x178   :  { %v218_v13 = vpop.xlane.xlu1 %217  ;;  %v136_v14 = vpop.xlane.xlu0 %135 }
 0x179   :  { %v224_v26 = vadd.f32 %v218_v13, %v136_v14 }
 0x17c   :  { %v130_v15 = vpop.xlane.xlu0 %129  ;;  %v212_v16 = vpop.xlane.xlu1 %211 }
 0x17d   :  { %v222_v28 = vadd.f32 %v212_v16, %v130_v15 }
 0x180   :  { %v139_v17 = vpop.xlane.xlu0 %138  ;;  %v133_v18 = vpop.xlane.xlu1 %132 }
 0x184   :  { %v221_v19 = vpop.xlane.xlu0 %220 }
 0x185   :  { %v225_v33 = vadd.f32 %v221_v19, %v139_v17 }
 0x188   :  { %v304_v20 = vpop.xlane.xlu1 %303  ;;  %v215_v21 = vpop.xlane.xlu0 %214 }
 0x189   :  { %v310_v27 = vadd.f32 %v304_v20, %v224_v26  ;;  %v223_v40 = vadd.f32 %v215_v21, %v133_v18 }
 0x18c   :  { %v298_v22 = vpop.xlane.xlu1 %297  ;;  %v307_v23 = vpop.xlane.xlu0 %306 }
 0x18d   :  { %v308_v37 = vadd.f32 %v298_v22, %v222_v28  ;;  %v311_v38 = vadd.f32 %v307_v23, %v225_v33  ;;  %v538_v33 = vld [vmem:[%s1216_s4] sm:$0xff] }
 0x190   :  { %v384_v24 = vpop.xlane.xlu1 %383  ;;  %v301_v25 = vpop.xlane.xlu0 %300 }
 0x191   :  { %v394_v41 = vadd.f32 %v384_v24, %v308_v37  ;;  %v309_v49 = vadd.f32 %v301_v25, %v223_v40 }
 0x193   :  { %v398_v53 = vmul.f32 0.125, %v394_v41 }
 0x194   :  { %v390_v31 = vpop.xlane.xlu1 %389  ;;  %v387_v32 = vpop.xlane.xlu0 %386 }
 0x195   :  { %v396_v35 = vadd.f32 %v390_v31, %v310_v27  ;;  %v395_v55 = vadd.f32 %v387_v32, %v309_v49  ;;  %v1020_v63 = vsub.f32 %v937_v36, %v398_v53  ;;  %v1032_v7 = vsub.f32 %v935_v34, %v398_v53  ;;  %v539_v32 = vld [vmem:[%s1216_s4 + $0x8] sm:$0xff] }
 0x196   :  { %v1044_v12 = vsub.f32 %v963_v59, %v398_v53  ;;  %v1056_v16 = vsub.f32 %v971_v1, %v398_v53 }
 0x197   :  { %v400_v39 = vmul.f32 0.125, %v396_v35  ;;  %v399_v62 = vmul.f32 0.125, %v395_v55  ;;  %v406_v4 = vmul.f32 %v1020_v63, %v1020_v63  ;;  %v1106_v35 = vld [vmem:[%s1216_s4 + $0x10] sm:$0xff] }
 0x198   :  { %v393_v42 = vpop.xlane.xlu0 %392  ;;  %v474_v20 = vmul.f32 %v1056_v16, %v1056_v16 }
 0x199   :  { %v397_v43 = vadd.f32 %v393_v42, %v311_v38  ;;  %v996_v46 = vsub.f32 %v931_v29, %v400_v39  ;;  %v999_v48 = vsub.f32 %v933_v30, %v400_v39  ;;  %v1004_v56 = vsub.f32 %v961_v54, %v400_v39 }
 0x19a   :  { %v1039_v11 = vsub.f32 %v947_v45, %v399_v62  ;;  %v410_v34 = vsel %vm127_vm1, %v406_v4, 0.0  ;;  %v1051_v15 = vsub.f32 %v957_v50, %v399_v62  ;;  %v450_v45 = vmul.f32 %v1044_v12, %v1044_v12 }
 0x19b   :  { %v401_v51 = vmul.f32 0.125, %v397_v43  ;;  %v408_v52 = vmul.f32 %v996_v46, %v996_v46  ;;  %v428_v58 = vmul.f32 %v999_v48, %v999_v48  ;;  %v452_v54 = vmul.f32 %v1004_v56, %v1004_v56 }
 0x19c   :  { %v407_v14 = vmul.f32 %v1039_v11, %v1039_v11  ;;  %v427_v18 = vmul.f32 %v1051_v15, %v1051_v15  ;;  %v1063_v19 = vsub.f32 %v973_v2, %v399_v62  ;;  %v454_v50 = vsel %vm127_vm1, %v450_v45, 0.0 }
 0x19d   :  { %v416_v57 = vsel %vm127_vm1, %v408_v52, 0.0  ;;  %v1010_v29 = vsub.f32 %v945_v44, %v401_v51  ;;  %v1013_v30 = vsub.f32 %v951_v47, %v401_v51  ;;  %v436_v0 = vsel %vm127_vm1, %v428_v58, 0.0 }
 0x19e   :  { %417 = vadd.xlane.f32.xlu1 %v416_v57  ;;  %v1027_v47 = vsub.f32 %v965_v60, %v401_v51  ;;  %v460_v36 = vsel %vm127_vm1, %v452_v54, 0.0  ;;  %v426_v60 = vmul.f32 %v1032_v7, %v1032_v7  ;;  %v413_v17 = vsel %vm127_vm1, %v407_v14, 0.0 }
 0x19f   :  { %v409_v61 = vmul.f32 %v1010_v29, %v1010_v29  ;;  %v429_v44 = vmul.f32 %v1013_v30, %v1013_v30  ;;  %v433_v1 = vsel %vm127_vm1, %v427_v18, 0.0  ;;  %v451_v21 = vmul.f32 %v1063_v19, %v1063_v19 }
 0x1a0   :  { %v453_v10 = vmul.f32 %v1027_v47, %v1027_v47  ;;  %v430_v59 = vsel %vm127_vm1, %v426_v60, 0.0  ;;  %v1072_v22 = vsub.f32 %v979_v5, %v400_v39  ;;  %v1075_v23 = vsub.f32 %v981_v6, %v399_v62 }
 0x1a1   :  { %v419_v3 = vsel %vm127_vm1, %v409_v61, 0.0  ;;  %v439_v8 = vsel %vm127_vm1, %v429_v44, 0.0  ;;  %v478_v2 = vsel %vm127_vm1, %v474_v20, 0.0  ;;  %v457_v24 = vsel %vm127_vm1, %v451_v21, 0.0 }
 0x1a2   :  { %437 = vadd.xlane.f32.xlu1 %v436_v0  ;;  %420 = vadd.xlane.f32.xlu0 %v419_v3  ;;  %v463_v13 = vsel %vm127_vm1, %v453_v10, 0.0  ;;  %v476_v25 = vmul.f32 %v1072_v22, %v1072_v22  ;;  %v475_v26 = vmul.f32 %v1075_v23, %v1075_v23  ;;  %v1084_v27 = vsub.f32 %v987_v9, %v401_v51  ;;  %v1097_v9 = vld [vmem:[%s1216_s4 + $0x18] sm:$0xff] }
 0x1a4   :  { %v484_v5 = vsel %vm127_vm1, %v476_v25, 0.0  ;;  %v481_v6 = vsel %vm127_vm1, %v475_v26, 0.0  ;;  %v477_v28 = vmul.f32 %v1084_v27, %v1084_v27 }
 0x1a6   :  { %461 = vadd.xlane.f32.xlu1 %v460_v36  ;;  %440 = vadd.xlane.f32.xlu0 %v439_v8  ;;  %v487_v31 = vsel %vm127_vm1, %v477_v28, 0.0 }
 0x1aa   :  { %411 = vadd.xlane.f32.xlu1 %v410_v34  ;;  %464 = vadd.xlane.f32.xlu0 %v463_v13 }
 0x1ae   :  { %431 = vadd.xlane.f32.xlu1 %v430_v59  ;;  %414 = vadd.xlane.f32.xlu0 %v413_v17 }
 0x1b2   :  { %455 = vadd.xlane.f32.xlu1 %v454_v50  ;;  %434 = vadd.xlane.f32.xlu0 %v433_v1 }
 0x1b6   :  { %479 = vadd.xlane.f32.xlu1 %v478_v2  ;;  %458 = vadd.xlane.f32.xlu0 %v457_v24  ;;  %v508_v2 = vld [vmem:[%s1217_s3 + $0x10] sm:$0xff]  ;;  %v507_v24 = vld [vmem:[%s1217_s3 + $0x8] sm:$0xff] }
 0x1ba   :  { %485 = vadd.xlane.f32.xlu1 %v484_v5  ;;  %482 = vadd.xlane.f32.xlu0 %v481_v6 }
 0x1be   :  { %488 = vadd.xlane.f32.xlu0 %v487_v31  ;;  %v506_v31 = vld [vmem:[%s1217_s3] sm:$0xff] }
 0x1cb   :  { %549 = vperm.xlu1 %815, %v539_v32  }
 0x1cf   :  { %559 = vperm.xlu1 %815, %v1097_v9  }
 0x1d3   :  { %589 = vperm.xlu1 %815, %v539_v32  }
 0x1d4   :  { %544 = vperm.xlu0 %814, %v538_v33  }
 0x1d7   :  { %599 = vperm.xlu1 %815, %v1097_v9  }
 0x1d8   :  { %554 = vperm.xlu0 %814, %v1106_v35  }
 0x1db   :  { %630 = vperm.xlu1 %815, %v539_v32  }
 0x1dc   :  { %584 = vperm.xlu0 %814, %v538_v33  }
 0x1df   :  { %640 = vperm.xlu1 %815, %v1097_v9  }
 0x1e0   :  { %594 = vperm.xlu0 %814, %v1106_v35  }
 0x1e3   :  { %671 = vperm.xlu1 %815, %v539_v32  }
 0x1e4   :  { %625 = vperm.xlu0 %814, %v538_v33  }
 0x1e8   :  { %635 = vperm.xlu0 %814, %v1106_v35  }
 0x1ec   :  { %666 = vperm.xlu0 %814, %v538_v33  }
 0x22b   :  { %v418_v37 = vpop.xlane.xlu1 %417 }
 0x22f   :  { %v438_v38 = vpop.xlane.xlu1 %437  ;;  %v421_v39 = vpop.xlane.xlu0 %420 }
 0x230   :  { %v444_v62 = vadd.f32 %v438_v38, %v418_v37  ;;  %v509_v37 = vld [vmem:[%s1217_s3 + $0x18] sm:$0xff] }
 0x233   :  { %v462_v40 = vpop.xlane.xlu1 %461  ;;  %v441_v41 = vpop.xlane.xlu0 %440 }
 0x234   :  { %v468_v3 = vadd.f32 %v462_v40, %v444_v62  ;;  %v445_v8 = vadd.f32 %v441_v41, %v421_v39 }
 0x237   :  { %v412_v42 = vpop.xlane.xlu1 %411  ;;  %v465_v43 = vpop.xlane.xlu0 %464 }
 0x238   :  { %v469_v13 = vadd.f32 %v465_v43, %v445_v8 }
 0x23b   :  { %v432_v49 = vpop.xlane.xlu1 %431  ;;  %v415_v51 = vpop.xlane.xlu0 %414 }
 0x23c   :  { %v442_v55 = vadd.f32 %v432_v49, %v412_v42 }
 0x23f   :  { %v456_v52 = vpop.xlane.xlu1 %455  ;;  %v435_v53 = vpop.xlane.xlu0 %434 }
 0x240   :  { %v466_v57 = vadd.f32 %v456_v52, %v442_v55  ;;  %v443_v54 = vadd.f32 %v435_v53, %v415_v51 }
 0x243   :  { %v480_v58 = vpop.xlane.xlu1 %479  ;;  %v459_v61 = vpop.xlane.xlu0 %458 }
 0x244   :  { %v490_v0 = vadd.f32 %v480_v58, %v466_v57  ;;  %v467_v44 = vadd.f32 %v459_v61, %v443_v54 }
 0x246   :  { %v494_v10 = vmul.f32 0.125, %v490_v0 }
 0x247   :  { %v486_v4 = vpop.xlane.xlu1 %485  ;;  %v483_v36 = vpop.xlane.xlu0 %482 }
 0x248   :  { %v492_v60 = vadd.f32 %v486_v4, %v468_v3  ;;  %v491_v34 = vadd.f32 %v483_v36, %v467_v44  ;;  %v498_v17 = vadd.f32 1e-05, %v494_v10 }
 0x24a   :  { %v496_v14 = vmul.f32 0.125, %v492_v60  ;;  %v495_v45 = vmul.f32 0.125, %v491_v34 }
 0x24b   :  { %v489_v59 = vpop.xlane.xlu0 %488  ;;  %v550_v39 = vpop.permute.xlu1 %549 }
 0x24c   :  { %v500_v18 = vadd.f32 1e-05, %v496_v14  ;;  %v499_v50 = vadd.f32 1e-05, %v495_v45  ;;  %v493_v20 = vadd.f32 %v489_v59, %v469_v13 }
 0x24e   :  { %824 = vrsqrt.f32 %v500_v18  ;;  %v497_v1 = vmul.f32 0.125, %v493_v20 }
 0x24f   :  { %826 = vrsqrt.f32 %v499_v50  ;;  %v1127_v41 = vpop.permute.xlu1 %559 }
 0x250   :  { %828 = vrsqrt.f32 %v498_v17  ;;  %v501_v21 = vadd.f32 1e-05, %v497_v1 }
 0x252   :  { %830 = vrsqrt.f32 %v501_v21 }
 0x253   :  { %v545_v40 = vpop.permute.xlu0 %544  ;;  %v590_v43 = vpop.permute.xlu1 %589 }
 0x257   :  { %v555_v42 = vpop.permute.xlu0 %554  ;;  %v1129_v51 = vpop.permute.xlu1 %599 }
 0x258   :  { %v825_v25 = vpop.eup %824 }
 0x259   :  { %v827_v26 = vpop.eup %826  ;;  %v512_v5 = vmul.f32 %v825_v25, %v508_v2 }
 0x25a   :  { %v829_v6 = vpop.eup %828  ;;  %v511_v28 = vmul.f32 %v827_v26, %v507_v24 }
 0x25b   :  { %526 = vperm.xlu1 %815, %v512_v5   ;;  %v510_v32 = vmul.f32 %v829_v6, %v506_v31  ;;  %v585_v49 = vpop.permute.xlu0 %584  ;;  %v631_v53 = vpop.permute.xlu1 %630 }
 0x25c   :  { %521 = vperm.xlu0 %814, %v511_v28   ;;  %v831_v33 = vpop.eup %830 }
 0x25d   :  { %v513_v38 = vmul.f32 %v831_v33, %v509_v37 }
 0x25f   :  { %516 = vperm.xlu1 %815, %v510_v32   ;;  %v595_v52 = vpop.permute.xlu0 %594  ;;  %v641_v57 = vpop.permute.xlu1 %640 }
 0x260   :  { %676 = vperm.xlu0 %814, %v1106_v35  }
 0x263   :  { %531 = vperm.xlu1 %815, %v513_v38   ;;  %v626_v55 = vpop.permute.xlu0 %625  ;;  %v672_v61 = vpop.permute.xlu1 %671 }
 0x267   :  { %681 = vperm.xlu1 %815, %v1097_v9   ;;  %v636_v58 = vpop.permute.xlu0 %635 }
 0x26b   :  { %v667_v35 = vpop.permute.xlu0 %666 }
 0x2da   :  { %v527_v62 = vpop.permute.xlu1 %526 }
 0x2db   :  { %v536_v54 = vmul.f32 %v527_v62, %v996_v46  ;;  %v576_v9 = vmul.f32 %v527_v62, %v999_v48  ;;  %v617_v0 = vmul.f32 %v527_v62, %v1004_v56  ;;  %v522_v3 = vpop.permute.xlu0 %521  ;;  %v658_v13 = vmul.f32 %v527_v62, %v1072_v22 }
 0x2dc   :  { %v535_v44 = vmul.f32 %v522_v3, %v1039_v11  ;;  %v575_v4 = vmul.f32 %v522_v3, %v1051_v15  ;;  %v616_v36 = vmul.f32 %v522_v3, %v1063_v19  ;;  %v657_v8 = vmul.f32 %v522_v3, %v1075_v23 }
 0x2dd   :  { %v564_v10 = vadd.f32 %v555_v42, %v536_v54  ;;  %v604_v60 = vadd.f32 %v595_v52, %v576_v9  ;;  %v645_v34 = vadd.f32 %v636_v58, %v617_v0 }
 0x2de   :  { %v563_v14 = vadd.f32 %v550_v39, %v535_v44  ;;  %v603_v46 = vadd.f32 %v590_v43, %v575_v4  ;;  %v644_v45 = vadd.f32 %v631_v53, %v616_v36  ;;  %v685_v48 = vadd.f32 %v672_v61, %v657_v8  ;;  %v517_v59 = vpop.permute.xlu1 %516 }
 0x2df   :  { %v568_v56 = vmax.f32 %v564_v10, 0.0  ;;  %v608_v17 = vmax.f32 %v604_v60, 0.0  ;;  %v649_v18 = vmax.f32 %v645_v34, 0.0  ;;  %v534_v11 = vmul.f32 %v517_v59, %v1020_v63  ;;  %v677_v15 = vpop.permute.xlu0 %676 }
 0x2e0   :  { %v567_v50 = vmax.f32 %v563_v14, 0.0  ;;  %v607_v19 = vmax.f32 %v603_v46, 0.0  ;;  %v648_v20 = vmax.f32 %v644_v45, 0.0  ;;  %v689_v23 = vmax.f32 %v685_v48, 0.0 }
 0x2e1   :  { %572 = vst.msk [vmem:[%s1218_s5 + $0x10] sm:$0xff] %vm127_vm1, %v568_v56  ;;  %731 = vst.msk [vmem:[%s1218_s5 + $0x30] sm:$0xff] %vm127_vm1, %v608_v17  ;;  %v562_v63 = vadd.f32 %v545_v40, %v534_v11  ;;  %v574_v22 = vmul.f32 %v517_v59, %v1032_v7  ;;  %v615_v1 = vmul.f32 %v517_v59, %v1044_v12 }
 0x2e2   :  { %735 = vst.msk [vmem:[%s1218_s5 + $0x50] sm:$0xff] %vm127_vm1, %v649_v18  ;;  %v656_v21 = vmul.f32 %v517_v59, %v1056_v16  ;;  %571 = vst.msk [vmem:[%s1218_s5 + $0x8] sm:$0xff] %vm127_vm1, %v567_v50  ;;  %v686_v7 = vadd.f32 %v677_v15, %v658_v13  ;;  %v532_v12 = vpop.permute.xlu1 %531 }
 0x2e3   :  { %730 = vst.msk [vmem:[%s1218_s5 + $0x28] sm:$0xff] %vm127_vm1, %v607_v19  ;;  %734 = vst.msk [vmem:[%s1218_s5 + $0x48] sm:$0xff] %vm127_vm1, %v648_v20  ;;  %v566_v16 = vmax.f32 %v562_v63, 0.0  ;;  %v602_v2 = vadd.f32 %v585_v49, %v574_v22  ;;  %v643_v24 = vadd.f32 %v626_v55, %v615_v1  ;;  %v537_v5 = vmul.f32 %v532_v12, %v1010_v29 }
 0x2e4   :  { %738 = vst.msk [vmem:[%s1218_s5 + $0x68] sm:$0xff] %vm127_vm1, %v689_v23  ;;  %v684_v25 = vadd.f32 %v667_v35, %v656_v21  ;;  %v690_v26 = vmax.f32 %v686_v7, 0.0  ;;  %v577_v6 = vmul.f32 %v532_v12, %v1013_v30  ;;  %v618_v28 = vmul.f32 %v532_v12, %v1027_v47 }
 0x2e5   :  { %570 = vst.msk [vmem:[%s1218_s5] sm:$0xff] %vm127_vm1, %v566_v16  ;;  %v606_v31 = vmax.f32 %v602_v2, 0.0  ;;  %v647_v32 = vmax.f32 %v643_v24, 0.0  ;;  %v659_v37 = vmul.f32 %v532_v12, %v1084_v27  ;;  %v565_v29 = vadd.f32 %v1127_v41, %v537_v5 }
 0x2e6   :  { %v688_v33 = vmax.f32 %v684_v25, 0.0  ;;  %739 = vst.msk [vmem:[%s1218_s5 + $0x70] sm:$0xff] %vm127_vm1, %v690_v26  ;;  %v605_v30 = vadd.f32 %v1129_v51, %v577_v6  ;;  %v646_v47 = vadd.f32 %v641_v57, %v618_v28  ;;  %v682_v38 = vpop.permute.xlu1 %681 }
 0x2e7   :  { %729 = vst.msk [vmem:[%s1218_s5 + $0x20] sm:$0xff] %vm127_vm1, %v606_v31  ;;  %733 = vst.msk [vmem:[%s1218_s5 + $0x40] sm:$0xff] %vm127_vm1, %v647_v32  ;;  %v687_v27 = vadd.f32 %v682_v38, %v659_v37  ;;  %v569_v39 = vmax.f32 %v565_v29, 0.0 }
 0x2e8   :  { %737 = vst.msk [vmem:[%s1218_s5 + $0x60] sm:$0xff] %vm127_vm1, %v688_v33  ;;  %v609_v40 = vmax.f32 %v605_v30, 0.0  ;;  %v650_v41 = vmax.f32 %v646_v47, 0.0 }
 0x2e9   :  { %v691_v42 = vmax.f32 %v687_v27, 0.0  ;;  %573 = vst.msk [vmem:[%s1218_s5 + $0x18] sm:$0xff] %vm127_vm1, %v569_v39 }
 0x2ea   :  { %732 = vst.msk [vmem:[%s1218_s5 + $0x38] sm:$0xff] %vm127_vm1, %v609_v40  ;;  %736 = vst.msk [vmem:[%s1218_s5 + $0x58] sm:$0xff] %vm127_vm1, %v650_v41 }
 0x2eb   :  { %740 = vst.msk [vmem:[%s1218_s5 + $0x78] sm:$0xff] %vm127_vm1, %v691_v42 }

// kernel: unet_forward.42
= control target key start
LH: loop header
LB: loop body
LE: loop exit
PB: predicated region body
PF: predicated region fallthrough
CT: control target
= control target key end

     0   :  { %v853_v1 = vmov 0   ;;  %vm395_vm0 = vcmask 523264   ;;  %vm549_vm1 = vcmask 64512   ;;  %s1084_s0 = inlined_call_operand.vmem [shape: bf16[576,8], index: 0, kind: input, shape index: {}]   ;;  %s1085_s1 = inlined_call_operand.vmem [shape: bf16[32,576], index: 1, kind: input, shape index: {}]   ;;  %s1086_s2 = inlined_call_operand.vmem [shape: f32[32,1], index: 2, kind: input, shape index: {}]   ;;  %s1087_s3 = inlined_call_operand.vmem [shape: f32[32,1], index: 3, kind: input, shape index: {}]   ;;  %s1088_s4 = inlined_call_operand.vmem [shape: f32[32,1], index: 4, kind: input, shape index: {}]   ;;  %s1089_s5 = inlined_call_operand.vmem [shape: f32[32,8], index: 5, kind: output, shape index: {}]  }
   0x1   :  { %v795_v0 = vld [vmem:[%s1084_s0 + $0x40] sm:$0xff]   ;;  %793 = vset.pattern.permute.xlu0 %v853_v1  ;;  %794 = vset.pattern.permute.xlu1 %v853_v1  ;;  %v799_v5 = vld [vmem:[%s1084_s0 + $0x48] sm:$0xff]   ;;  %v803_v9 = vld [vmem:[%s1084_s0 + $0x50] sm:$0xff]  }
   0x2   :  { %v796_v2 = vld [vmem:[%s1084_s0] sm:$0xff]   ;;  %718 = vmatprep.subr.bf16.mxu0 %v795_v0  ;;  %v800_v6 = vld [vmem:[%s1084_s0 + $0x8] sm:$0xff]   ;;  %v804_v10 = vld [vmem:[%s1084_s0 + $0x10] sm:$0xff]  }
   0x3   :  { %v797_v3 = vld [vmem:[%s1084_s0 + $0xc0] sm:$0xff]   ;;  %719 = vmatpush3.bf16.msra.mxu0 %v796_v2  ;;  %v801_v7 = vld [vmem:[%s1084_s0 + $0xc8] sm:$0xff]   ;;  %v805_v11 = vld [vmem:[%s1084_s0 + $0xd0] sm:$0xff]  }
   0x4   :  { %v798_v4 = vld [vmem:[%s1084_s0 + $0x80] sm:$0xff]   ;;  %746 = vmatprep.subr.bf16.mxu1 %v797_v3  ;;  %720 = vmatprep.subr.bf16.mxu0 %v799_v5  ;;  %v802_v8 = vld [vmem:[%s1084_s0 + $0x88] sm:$0xff]   ;;  %v806_v12 = vld [vmem:[%s1084_s0 + $0x90] sm:$0xff]  }
   0x5   :  { %747 = vmatpush3.bf16.msra.mxu1 %v798_v4  ;;  %v807_v13 = vld [vmem:[%s1084_s0 + $0x58] sm:$0xff]   ;;  %v811_v17 = vld [vmem:[%s1084_s0 + $0x60] sm:$0xff]   ;;  %v815_v21 = vld [vmem:[%s1084_s0 + $0x68] sm:$0xff]  }
   0x6   :  { %748 = vmatprep.subr.bf16.mxu1 %v801_v7  ;;  %v808_v14 = vld [vmem:[%s1084_s0 + $0x18] sm:$0xff]   ;;  %v812_v18 = vld [vmem:[%s1084_s0 + $0x20] sm:$0xff]   ;;  %v816_v22 = vld [vmem:[%s1084_s0 + $0x28] sm:$0xff]  }
   0x7   :  { %721 = vmatpush3.bf16.msra.mxu0 %v800_v6  ;;  %v809_v15 = vld [vmem:[%s1084_s0 + $0xd8] sm:$0xff]   ;;  %v813_v19 = vld [vmem:[%s1084_s0 + $0xe0] sm:$0xff]   ;;  %v817_v23 = vld [vmem:[%s1084_s0 + $0xe8] sm:$0xff]  }
   0x8   :  { %722 = vmatprep.subr.bf16.mxu0 %v803_v9  ;;  %v810_v16 = vld [vmem:[%s1084_s0 + $0x98] sm:$0xff]   ;;  %v814_v20 = vld [vmem:[%s1084_s0 + $0xa0] sm:$0xff]   ;;  %v818_v24 = vld [vmem:[%s1084_s0 + $0xa8] sm:$0xff]  }
   0x9   :  { %749 = vmatpush3.bf16.msra.mxu1 %v802_v8  ;;  %v819_v25 = vld [vmem:[%s1084_s0 + $0x70] sm:$0xff]   ;;  %v823_v29 = vld [vmem:[%s1084_s0 + $0x78] sm:$0xff]   ;;  %v832_v36 = vld [vmem:[%s1085_s1 + $0xc] ss:$20 sps:$4 sm:$0xff]  }
   0xa   :  { %750 = vmatprep.subr.bf16.mxu1 %v805_v11  ;;  %v820_v26 = vld [vmem:[%s1084_s0 + $0x30] sm:$0xff]   ;;  %v824_v30 = vld [vmem:[%s1084_s0 + $0x38] sm:$0xff]   ;;  %v833_v37 = vld [vmem:[%s1084_s0 + $0x100] sm:$0xff]   ;;  %483 = vmatprep.mubr.bf16.mxu1 %v832_v36 }
   0xb   :  { %723 = vmatpush3.bf16.msra.mxu0 %v804_v10  ;;  %v821_v27 = vld [vmem:[%s1084_s0 + $0xf0] sm:$0xff]   ;;  %v825_v31 = vld [vmem:[%s1084_s0 + $0xf8] sm:$0xff]   ;;  %v834_v38 = vld [vmem:[%s1084_s0 + $0x108] sm:$0xff]  }
   0xc   :  { %724 = vmatprep.subr.bf16.mxu0 %v807_v13  ;;  %v822_v28 = vld [vmem:[%s1084_s0 + $0xb0] sm:$0xff]   ;;  %v826_v32 = vld [vmem:[%s1084_s0 + $0xb8] sm:$0xff]   ;;  %v835_v39 = vld [vmem:[%s1085_s1 + $0x2c] ss:$20 sps:$4 sm:$0xff]  }
   0xd   :  { %751 = vmatpush3.bf16.msra.mxu1 %v806_v12  ;;  %v827_v33 = vld [vmem:[%s1085_s1] ss:$20 sps:$4 sm:$0xff]   ;;  %v829_v34 = vld [vmem:[%s1085_s1 + $0x4] ss:$20 sps:$4 sm:$0xff]   ;;  %v830_v35 = vld [vmem:[%s1085_s1 + $0x8] ss:$20 sps:$4 sm:$0xff]  }
   0xe   :  { %752 = vmatprep.subr.bf16.mxu1 %v809_v15  ;;  %434 = vmatprep.mubr.bf16.mxu0 %v829_v34  ;;  %v838_v40 = vld [vmem:[%s1085_s1 + $0x34] ss:$20 sps:$4 sm:$0xff]   ;;  %v841_v43 = vld [vmem:[%s1085_s1 + $0x30] ss:$20 sps:$4 sm:$0xff]   ;;  %v842_v45 = vld [vmem:[%s1084_s0 + $0x118] sm:$0xff]  }
   0xf   :  { %725 = vmatpush3.bf16.msra.mxu0 %v808_v14  ;;  %v840_v41 = vld [vmem:[%s1084_s0 + $0x110] sm:$0xff]   ;;  %v837_v42 = vld [vmem:[%s1085_s1 + $0x28] ss:$20 sps:$4 sm:$0xff]   ;;  %v105_v46 = vld [vmem:[%s1086_s2] sm:$0xff] }
  0x10   :  { %726 = vmatprep.subr.bf16.mxu0 %v811_v17  ;;  %v843_v44 = vld [vmem:[%s1085_s1 + $0x10] ss:$20 sps:$4 sm:$0xff]   ;;  %111 = vperm.xlu0 %793, %v105_v46   ;;  %v106_v48 = vld [vmem:[%s1086_s2 + $0x8] sm:$0xff]  ;;  %v108_v49 = vld [vmem:[%s1086_s2 + $0x18] sm:$0xff] }
  0x11   :  { %753 = vmatpush3.bf16.msra.mxu1 %v810_v16  ;;  %v107_v47 = vld [vmem:[%s1086_s2 + $0x10] sm:$0xff]  ;;  %v844_v50 = vld [vmem:[%s1085_s1 + $0x38] ss:$20 sps:$4 sm:$0xff]  }
  0x12   :  { %754 = vmatprep.subr.bf16.mxu1 %v813_v19  ;;  %121 = vperm.xlu1 %794, %v107_v47   ;;  %v604_v36 = vld [vmem:[%s1087_s3 + $0x10] sm:$0xff] }
  0x13   :  { %727 = vmatpush3.bf16.msra.mxu0 %v812_v18 }
  0x14   :  { %728 = vmatprep.subr.bf16.mxu0 %v815_v21  ;;  %116 = vperm.xlu0 %793, %v106_v48  }
  0x15   :  { %755 = vmatpush3.bf16.msra.mxu1 %v814_v20 }
  0x16   :  { %756 = vmatprep.subr.bf16.mxu1 %v817_v23  ;;  %126 = vperm.xlu1 %794, %v108_v49  }
  0x17   :  { %729 = vmatpush3.bf16.msra.mxu0 %v816_v22 }
  0x18   :  { %730 = vmatprep.subr.bf16.mxu0 %v819_v25 }
  0x19   :  { %757 = vmatpush3.bf16.msra.mxu1 %v818_v24 }
  0x1a   :  { %758 = vmatprep.subr.bf16.mxu1 %v821_v27 }
  0x1b   :  { %731 = vmatpush3.bf16.msra.mxu0 %v820_v26 }
  0x1c   :  { %732 = vmatprep.subr.bf16.mxu0 %v823_v29 }
  0x1d   :  { %759 = vmatpush3.bf16.msra.mxu1 %v822_v28 }
  0x1e   :  { %760 = vmatprep.subr.bf16.mxu1 %v825_v31 }
  0x1f   :  { %733 = vmatpush3.bf16.msra.mxu0 %v824_v30 }
  0x20   :  { %780 = vmatprep.subr.bf16.mxu0 %v833_v37 }
  0x21   :  { %761 = vmatpush3.bf16.msra.mxu1 %v826_v32 }
  0x22   :  { %435 = vmatmul.mubr.bf16.vlgmr.msra.gmra.mrb[0].mxu0 %v827_v33 }
  0x23   :  { %781 = vmatpush3.bf16.msra.mxu0 %v833_v37  ;;  %442 = vmatprep.mubr.bf16.mxu0 %v835_v39  ;;  %v605_v37 = vld [vmem:[%s1087_s3 + $0x18] sm:$0xff]  ;;  %v631_v39 = vld [vmem:[%s1088_s4 + $0x8] sm:$0xff] }
  0x24   :  { %484 = vmatmul.mubr.bf16.vlgmr.msra.gmra.mrb[0].mxu1 %v830_v35  ;;  %782 = vmatprep.subr.bf16.mxu0 %v834_v38  ;;  %v602_v35 = vld [vmem:[%s1087_s3] sm:$0xff] }
  0x25   :  { %491 = vmatprep.mubr.bf16.mxu1 %v838_v40  ;;  %v630_v40 = vld [vmem:[%s1088_s4] sm:$0xff] }
  0x27   :  { %783 = vmatpush3.bf16.msra.mxu0 %v834_v38  ;;  %v603_v38 = vld [vmem:[%s1087_s3 + $0x8] sm:$0xff] }
  0x28   :  { %784 = vmatprep.subr.bf16.mxu0 %v840_v41 }
  0x2a   :  { %443 = vmatmul.mubr.bf16.gmra.mrb[4].mxu0 %v837_v42 }
  0x2b   :  { %788 = vmatprep.mubr.msk.bf16.mxu0 %vm395_vm0, %v843_v44  ;;  %785 = vmatpush3.bf16.msra.mxu0 %v840_v41 }
  0x2c   :  { %492 = vmatmul.mubr.bf16.gmra.mrb[4].mxu1 %v841_v43  ;;  %786 = vmatprep.subr.bf16.mxu0 %v842_v45 }
  0x2f   :  { %787 = vmatpush3.bf16.msra.mxu0 %v842_v45 }
  0x32   :  { %789 = vmatmul.mubr.msk.bf16.vlgmr.msra.gmra.mrb[8].mxu0 %vm395_vm0, %v844_v50 }
  0x8f   :  { %v112_v51 = vpop.permute.xlu0 %111 }
  0x91   :  { %v122_v52 = vpop.permute.xlu1 %121 }
  0x93   :  { %v117_v54 = vpop.permute.xlu0 %116 }
  0x95   :  { %v127_v6 = vpop.permute.xlu1 %126 }
  0xf5   :  { %v734_v53 = vpop.f32.mrb[0].mxu0 }
  0xf6   :  { %v735_v55 = vpop.f32.mrb[1].mxu0 }
  0xf7   :  { %v762_v56 = vpop.f32.mrb[0].mxu1  ;;  %v736_v57 = vadd.f32 %v735_v55, %v734_v53  ;;  %v737_v58 = vpop.f32.mrb[2].mxu0 }
  0xf8   :  { %v763_v59 = vpop.f32.mrb[1].mxu1  ;;  %v738_v61 = vpop.f32.mrb[3].mxu0 }
  0xf9   :  { %v764_v60 = vadd.f32 %v763_v59, %v762_v56  ;;  %v765_v62 = vpop.f32.mrb[2].mxu1  ;;  %v437_v63 = vadd.f32 %v736_v57, %v112_v51  ;;  %v739_v0 = vadd.f32 %v738_v61, %v737_v58  ;;  %v633_v61 = vld [vmem:[%s1088_s4 + $0x18] sm:$0xff] }
  0xfa   :  { %v766_v1 = vpop.f32.mrb[3].mxu1 }
  0xfb   :  { %v767_v2 = vadd.f32 %v766_v1, %v765_v62  ;;  %v440_v3 = vadd.f32 %v739_v0, %v117_v54  ;;  %v486_v4 = vadd.f32 %v764_v60, %v437_v63  ;;  %v632_v62 = vld [vmem:[%s1088_s4 + $0x10] sm:$0xff] }
  0xfd   :  { %v740_v5 = vpop.f32.mrb[4].mxu0  ;;  %v489_v7 = vadd.f32 %v767_v2, %v440_v3 }
  0xfe   :  { %v741_v8 = vpop.f32.mrb[5].mxu0 }
  0xff   :  { %v768_v9 = vpop.f32.mrb[4].mxu1  ;;  %v742_v10 = vadd.f32 %v741_v8, %v740_v5  ;;  %v743_v11 = vpop.f32.mrb[6].mxu0 }
 0x100   :  { %v769_v12 = vpop.f32.mrb[5].mxu1  ;;  %v744_v14 = vpop.f32.mrb[7].mxu0 }
 0x101   :  { %v770_v13 = vadd.f32 %v769_v12, %v768_v9  ;;  %v771_v15 = vpop.f32.mrb[6].mxu1  ;;  %v445_v16 = vadd.f32 %v742_v10, %v122_v52  ;;  %v745_v17 = vadd.f32 %v744_v14, %v743_v11 }
 0x102   :  { %v772_v18 = vpop.f32.mrb[7].mxu1 }
 0x103   :  { %v773_v19 = vadd.f32 %v772_v18, %v771_v15  ;;  %v448_v20 = vadd.f32 %v745_v17, %v127_v6  ;;  %v494_v21 = vadd.f32 %v770_v13, %v445_v16 }
 0x105   :  { %v497_v22 = vadd.f32 %v773_v19, %v448_v20  ;;  %v790_v23 = vpop.f32.mrb[8].mxu0 }
 0x106   :  { %v543_v24 = vadd.f32 %v790_v23, %v494_v21  ;;  %v534_v25 = vpop.f32.mrb[9].mxu0 }
 0x107   :  { %v535_v26 = vadd.f32 %v534_v25, %v486_v4  ;;  %v791_v27 = vpop.f32.mrb[10].mxu0 }
 0x108   :  { %v546_v28 = vadd.f32 %v791_v27, %v497_v22  ;;  %v537_v29 = vpop.f32.mrb[11].mxu0  ;;  %v556_v30 = vsel %vm549_vm1, %v543_v24, 0.0 }
 0x109   :  { %v538_v31 = vadd.f32 %v537_v29, %v489_v7  ;;  %557 = vadd.xlane.f32.xlu0 %v556_v30  ;;  %v550_v33 = vsel %vm549_vm1, %v535_v26, 0.0 }
 0x10a   :  { %v559_v34 = vsel %vm549_vm1, %v546_v28, 0.0 }
 0x10b   :  { %v553_v32 = vsel %vm549_vm1, %v538_v31, 0.0 }
 0x10c   :  { %554 = vadd.xlane.f32.xlu1 %v553_v32 }
 0x10d   :  { %551 = vadd.xlane.f32.xlu0 %v550_v33 }
 0x111   :  { %560 = vadd.xlane.f32.xlu0 %v559_v34 }
 0x11d   :  { %608 = vperm.xlu1 %794, %v602_v35  }
 0x121   :  { %618 = vperm.xlu1 %794, %v604_v36  }
 0x125   :  { %623 = vperm.xlu1 %794, %v605_v37  }
 0x127   :  { %613 = vperm.xlu0 %793, %v603_v38  }
 0x129   :  { %641 = vperm.xlu1 %794, %v631_v39  }
 0x12b   :  { %636 = vperm.xlu0 %793, %v630_v40  }
 0x196   :  { %v558_v41 = vpop.xlane.xlu0 %557 }
 0x197   :  { %v564_v42 = vmul.f32 0.125, %v558_v41 }
 0x199   :  { %v568_v43 = vsub.f32 %v543_v24, %v564_v42  ;;  %v555_v44 = vpop.xlane.xlu1 %554 }
 0x19a   :  { %v552_v45 = vpop.xlane.xlu0 %551  ;;  %v563_v48 = vmul.f32 0.125, %v555_v44 }
 0x19b   :  { %v562_v46 = vmul.f32 0.125, %v552_v45  ;;  %v572_v47 = vmul.f32 %v568_v43, %v568_v43 }
 0x19c   :  { %v567_v54 = vsub.f32 %v538_v31, %v563_v48 }
 0x19d   :  { %v566_v49 = vsub.f32 %v535_v26, %v562_v46  ;;  %v580_v50 = vsel %vm549_vm1, %v572_v47, 0.0  ;;  %v609_v63 = vpop.permute.xlu1 %608 }
 0x19e   :  { %581 = vadd.xlane.f32.xlu1 %v580_v50  ;;  %v561_v51 = vpop.xlane.xlu0 %560  ;;  %v571_v59 = vmul.f32 %v567_v54, %v567_v54 }
 0x19f   :  { %v565_v52 = vmul.f32 0.125, %v561_v51  ;;  %v570_v53 = vmul.f32 %v566_v49, %v566_v49 }
 0x1a0   :  { %v577_v60 = vsel %vm549_vm1, %v571_v59, 0.0 }
 0x1a1   :  { %v569_v55 = vsub.f32 %v546_v28, %v565_v52  ;;  %v574_v56 = vsel %vm549_vm1, %v570_v53, 0.0  ;;  %v619_v0 = vpop.permute.xlu1 %618 }
 0x1a2   :  { %575 = vadd.xlane.f32.xlu1 %v574_v56 }
 0x1a3   :  { %v573_v57 = vmul.f32 %v569_v55, %v569_v55 }
 0x1a5   :  { %v583_v58 = vsel %vm549_vm1, %v573_v57, 0.0  ;;  %v624_v1 = vpop.permute.xlu1 %623 }
 0x1a6   :  { %584 = vadd.xlane.f32.xlu0 %v583_v58  ;;  %v614_v3 = vpop.permute.xlu0 %613 }
 0x1a9   :  { %v642_v2 = vpop.permute.xlu1 %641 }
 0x1aa   :  { %578 = vadd.xlane.f32.xlu0 %v577_v60  ;;  %v637_v7 = vpop.permute.xlu0 %636 }
 0x1b3   :  { %651 = vperm.xlu1 %794, %v633_v61  }
 0x1c0   :  { %646 = vperm.xlu0 %793, %v632_v62  }
 0x22b   :  { %v582_v4 = vpop.xlane.xlu1 %581 }
 0x22c   :  { %v588_v5 = vmul.f32 0.125, %v582_v4 }
 0x22e   :  { %v592_v6 = vadd.f32 1e-05, %v588_v5 }
 0x22f   :  { %v576_v8 = vpop.xlane.xlu1 %575 }
 0x230   :  { %845 = vrsqrt.f32 %v592_v6  ;;  %v586_v9 = vmul.f32 0.125, %v576_v8 }
 0x232   :  { %v590_v10 = vadd.f32 1e-05, %v586_v9 }
 0x233   :  { %v585_v11 = vpop.xlane.xlu0 %584  ;;  %v652_v32 = vpop.permute.xlu1 %651 }
 0x234   :  { %847 = vrsqrt.f32 %v590_v10  ;;  %v589_v12 = vmul.f32 0.125, %v585_v11 }
 0x236   :  { %v593_v13 = vadd.f32 1e-05, %v589_v12 }
 0x237   :  { %v579_v14 = vpop.xlane.xlu0 %578 }
 0x238   :  { %849 = vrsqrt.f32 %v593_v13  ;;  %v587_v15 = vmul.f32 0.125, %v579_v14 }
 0x23a   :  { %v846_v16 = vpop.eup %845  ;;  %v591_v17 = vadd.f32 1e-05, %v587_v15 }
 0x23b   :  { %v600_v18 = vmul.f32 %v846_v16, %v568_v43 }
 0x23c   :  { %851 = vrsqrt.f32 %v591_v17 }
 0x23d   :  { %v628_v19 = vmul.f32 %v619_v0, %v600_v18 }
 0x23e   :  { %v848_v20 = vpop.eup %847 }
 0x23f   :  { %v598_v21 = vmul.f32 %v848_v20, %v566_v49  ;;  %v647_v22 = vpop.permute.xlu0 %646 }
 0x240   :  { %v656_v23 = vadd.f32 %v647_v22, %v628_v19 }
 0x241   :  { %v626_v24 = vmul.f32 %v609_v63, %v598_v21 }
 0x242   :  { %v850_v25 = vpop.eup %849  ;;  %v660_v26 = vmax.f32 %v656_v23, 0.0 }
 0x243   :  { %v654_v27 = vadd.f32 %v637_v7, %v626_v24  ;;  %v601_v28 = vmul.f32 %v850_v25, %v569_v55 }
 0x244   :  { %664 = vst.msk [vmem:[%s1089_s5 + $0x10] sm:$0xff] %vm549_vm1, %v660_v26 }
 0x245   :  { %v658_v29 = vmax.f32 %v654_v27, 0.0  ;;  %v629_v30 = vmul.f32 %v624_v1, %v601_v28 }
 0x246   :  { %v852_v31 = vpop.eup %851 }
 0x247   :  { %v657_v33 = vadd.f32 %v652_v32, %v629_v30  ;;  %v599_v34 = vmul.f32 %v852_v31, %v567_v54  ;;  %662 = vst.msk [vmem:[%s1089_s5] sm:$0xff] %vm549_vm1, %v658_v29 }
 0x249   :  { %v661_v35 = vmax.f32 %v657_v33, 0.0  ;;  %v627_v36 = vmul.f32 %v614_v3, %v599_v34 }
 0x24b   :  { %v655_v37 = vadd.f32 %v642_v2, %v627_v36  ;;  %665 = vst.msk [vmem:[%s1089_s5 + $0x18] sm:$0xff] %vm549_vm1, %v661_v35 }
 0x24d   :  { %v659_v38 = vmax.f32 %v655_v37, 0.0 }
 0x24f   :  { %663 = vst.msk [vmem:[%s1089_s5 + $0x8] sm:$0xff] %vm549_vm1, %v659_v38 }

// kernel: unet_forward.44
= control target key start
LH: loop header
LB: loop body
LE: loop exit
PB: predicated region body
PF: predicated region fallthrough
CT: control target
= control target key end

     0   :  { %v510_v0 = vmov 0.0   ;;  %vm511_vm0 = vmmov 0   ;;  %v512_v6 = vmov 0   ;;  %vm46_vm1 = vcmask 261120   ;;  %s681_s0 = inlined_call_operand.vmem [shape: f32[32,8], index: 0, kind: input, shape index: {}]   ;;  %s682_s1 = inlined_call_operand.vmem [shape: bf16[4,16,32], index: 1, kind: input, shape index: {}]   ;;  %s683_s2 = inlined_call_operand.vmem [shape: f32[16,1], index: 2, kind: input, shape index: {}]   ;;  %s684_s4 = inlined_call_operand.vmem [shape: f32[16,1], index: 4, kind: input, shape index: {}]   ;;  %s685_s3 = inlined_call_operand.vmem [shape: f32[16,1], index: 3, kind: input, shape index: {}]   ;;  %s686_s5 = inlined_call_operand.vmem [shape: f32[4,16,8], index: 5, kind: output, shape index: {}]  }
   0x1   :  { %465 = vmatprep.subr.bf16.mxu0 %v510_v0  ;;  %473 = vmatprep.subr.bf16.mxu1 %v510_v0  ;;  %v21_v1 = vld [vmem:[%s681_s0] sm:$0xff]  ;;  %v22_v2 = vld [vmem:[%s681_s0 + $0x8] sm:$0xff]  ;;  %v23_v3 = vld [vmem:[%s681_s0 + $0x10] sm:$0xff]  ;;  %vm91_vm2 = vcmask 64512  }
   0x2   :  { %v25_v4 = vpack.c.bf16 %v22_v2, %v21_v1  ;;  %v24_v5 = vld [vmem:[%s681_s0 + $0x18] sm:$0xff]  ;;  %469 = vmatprep.mubr.msk.bf16.mxu0 %vm511_vm0, %v510_v0  ;;  %477 = vmatprep.mubr.msk.bf16.mxu1 %vm511_vm0, %v510_v0  ;;  %v29_v8 = vld [vmem:[%s683_s2] sm:$0xff]  ;;  %v503_v10 = vld [vmem:[%s682_s1 + $0x8] sm:$0xff]  }
   0x3   :  { %500 = vset.pattern.permute.xlu0 %v512_v6  ;;  %501 = vset.pattern.permute.xlu1 %v512_v6  ;;  %v26_v7 = vpack.c.bf16 %v24_v5, %v23_v3  ;;  %v502_v9 = vld [vmem:[%s682_s1] sm:$0xff]   ;;  %v30_v11 = vld [vmem:[%s683_s2 + $0x8] sm:$0xff]  ;;  %v504_v12 = vld [vmem:[%s682_s1 + $0x10] sm:$0xff]  }
   0x4   :  { %466 = vmatpush3.bf16.msra.mxu0 %v25_v4  ;;  %474 = vmatpush3.bf16.msra.mxu1 %v25_v4  ;;  %v505_v13 = vld [vmem:[%s682_s1 + $0x18] sm:$0xff]  }
   0x5   :  { %467 = vmatprep.subr.bf16.mxu0 %v510_v0  ;;  %475 = vmatprep.subr.bf16.mxu1 %v510_v0 }
   0x6   :  { %33 = vperm.xlu0 %500, %v29_v8  }
   0x8   :  { %468 = vmatpush3.bf16.msra.mxu0 %v26_v7  ;;  %476 = vmatpush3.bf16.msra.mxu1 %v26_v7 }
   0x9   :  { %481 = vmatprep.subr.bf16.mxu0 %v510_v0  ;;  %489 = vmatprep.subr.bf16.mxu1 %v510_v0 }
   0xa   :  { %38 = vperm.xlu0 %500, %v30_v11  }
   0xb   :  { %470 = vmatmul.mubr.msk.bf16.vlgmr.msra.gmra.mrb[0].mxu0 %vm46_vm1, %v502_v9  ;;  %478 = vmatmul.mubr.msk.bf16.vlgmr.msra.gmra.mrb[0].mxu1 %vm46_vm1, %v503_v10 }
   0xc   :  { %482 = vmatpush3.bf16.msra.mxu0 %v25_v4  ;;  %490 = vmatpush3.bf16.msra.mxu1 %v25_v4 }
   0xd   :  { %483 = vmatprep.subr.bf16.mxu0 %v510_v0  ;;  %491 = vmatprep.subr.bf16.mxu1 %v510_v0 }
   0xe   :  { %485 = vmatprep.mubr.msk.bf16.mxu0 %vm511_vm0, %v510_v0  ;;  %493 = vmatprep.mubr.msk.bf16.mxu1 %vm511_vm0, %v510_v0 }
  0x10   :  { %484 = vmatpush3.bf16.msra.mxu0 %v26_v7  ;;  %492 = vmatpush3.bf16.msra.mxu1 %v26_v7 }
  0x13   :  { %486 = vmatmul.mubr.msk.bf16.vlgmr.msra.gmra.mrb[4].mxu0 %vm46_vm1, %v504_v12  ;;  %494 = vmatmul.mubr.msk.bf16.vlgmr.msra.gmra.mrb[4].mxu1 %vm46_vm1, %v505_v13 }
  0x85   :  { %v34_v14 = vpop.permute.xlu0 %33 }
  0x89   :  { %v39_v15 = vpop.permute.xlu0 %38 }
  0xde   :  { %v84_v16 = vpop.f32.mrb[0].mxu0  ;;  %v143_v17 = vpop.f32.mrb[0].mxu1 }
  0xdf   :  { %v85_v18 = vadd.f32 %v84_v16, %v34_v14  ;;  %v144_v19 = vadd.f32 %v143_v17, %v34_v14  ;;  %v471_v20 = vpop.f32.mrb[1].mxu0  ;;  %v479_v21 = vpop.f32.mrb[1].mxu1 }
  0xe0   :  { %v87_v22 = vpop.f32.mrb[2].mxu0  ;;  %v146_v23 = vpop.f32.mrb[2].mxu1 }
  0xe1   :  { %v88_v24 = vadd.f32 %v87_v22, %v39_v15  ;;  %v472_v25 = vpop.f32.mrb[3].mxu0  ;;  %v150_v26 = vsel %vm91_vm2, %v144_v19, 0.0  ;;  %v92_v27 = vsel %vm91_vm2, %v85_v18, 0.0  ;;  %v480_v28 = vpop.f32.mrb[3].mxu1  ;;  %v147_v29 = vadd.f32 %v146_v23, %v39_v15 }
  0xe2   :  { %151 = vadd.xlane.f32.xlu0 %v150_v26  ;;  %93 = vadd.xlane.f32.xlu1 %v92_v27  ;;  %v349_v25 = vld [vmem:[%s684_s4 + $0x8] sm:$0xff] }
  0xe3   :  { %v95_v30 = vsel %vm91_vm2, %v88_v24, 0.0  ;;  %v153_v38 = vsel %vm91_vm2, %v147_v29, 0.0 }
  0xe6   :  { %v263_v31 = vpop.f32.mrb[4].mxu1  ;;  %96 = vadd.xlane.f32.xlu1 %v95_v30  ;;  %v203_v32 = vpop.f32.mrb[4].mxu0 }
  0xe7   :  { %v487_v33 = vpop.f32.mrb[5].mxu0  ;;  %v495_v34 = vpop.f32.mrb[5].mxu1  ;;  %v204_v37 = vadd.f32 %v203_v32, %v34_v14  ;;  %v264_v41 = vadd.f32 %v263_v31, %v34_v14 }
  0xe8   :  { %v206_v35 = vpop.f32.mrb[6].mxu0  ;;  %v266_v36 = vpop.f32.mrb[6].mxu1 }
  0xe9   :  { %v488_v39 = vpop.f32.mrb[7].mxu0  ;;  %v496_v40 = vpop.f32.mrb[7].mxu1  ;;  %v210_v42 = vsel %vm91_vm2, %v204_v37, 0.0  ;;  %v207_v43 = vadd.f32 %v206_v35, %v39_v15  ;;  %v270_v44 = vsel %vm91_vm2, %v264_v41, 0.0  ;;  %v267_v45 = vadd.f32 %v266_v36, %v39_v15 }
  0xea   :  { %154 = vadd.xlane.f32.xlu1 %v153_v38 }
  0xeb   :  { %v213_v46 = vsel %vm91_vm2, %v207_v43, 0.0  ;;  %v273_v47 = vsel %vm91_vm2, %v267_v45, 0.0 }
  0xee   :  { %211 = vadd.xlane.f32.xlu1 %v210_v42 }
  0xf2   :  { %271 = vadd.xlane.f32.xlu1 %v270_v44  ;;  %v333_v44 = vld [vmem:[%s685_s3 + $0x8] sm:$0xff] }
  0xf6   :  { %214 = vadd.xlane.f32.xlu1 %v213_v46 }
  0xfa   :  { %274 = vadd.xlane.f32.xlu1 %v273_v47 }
 0x16f   :  { %v94_v48 = vpop.xlane.xlu1 %93  ;;  %v152_v51 = vpop.xlane.xlu0 %151 }
 0x170   :  { %v156_v53 = vadd.f32 %v152_v51, %v94_v48 }
 0x173   :  { %v97_v49 = vpop.xlane.xlu1 %96 }
 0x177   :  { %v155_v50 = vpop.xlane.xlu1 %154 }
 0x178   :  { %v157_v59 = vadd.f32 %v155_v50, %v97_v49 }
 0x17b   :  { %v212_v52 = vpop.xlane.xlu1 %211 }
 0x17c   :  { %v216_v54 = vadd.f32 %v212_v52, %v156_v53 }
 0x17f   :  { %v272_v55 = vpop.xlane.xlu1 %271 }
 0x180   :  { %v276_v56 = vadd.f32 %v272_v55, %v216_v54 }
 0x182   :  { %v278_v57 = vmul.f32 0.03125, %v276_v56 }
 0x183   :  { %v215_v58 = vpop.xlane.xlu1 %214 }
 0x184   :  { %v589_v60 = vsub.f32 %v85_v18, %v278_v57  ;;  %v591_v61 = vsub.f32 %v144_v19, %v278_v57  ;;  %v217_v62 = vadd.f32 %v215_v58, %v157_v59  ;;  %v595_v1 = vsub.f32 %v204_v37, %v278_v57 }
 0x185   :  { %v612_v13 = vsub.f32 %v264_v41, %v278_v57 }
 0x186   :  { %v282_v63 = vmul.f32 %v589_v60, %v589_v60  ;;  %v292_v4 = vmul.f32 %v591_v61, %v591_v61  ;;  %v304_v6 = vmul.f32 %v595_v1, %v595_v1 }
 0x187   :  { %v275_v0 = vpop.xlane.xlu1 %274  ;;  %v316_v21 = vmul.f32 %v612_v13, %v612_v13 }
 0x188   :  { %v277_v2 = vadd.f32 %v275_v0, %v217_v62  ;;  %v284_v3 = vsel %vm91_vm2, %v282_v63, 0.0  ;;  %v294_v7 = vsel %vm91_vm2, %v292_v4, 0.0  ;;  %v306_v12 = vsel %vm91_vm2, %v304_v6, 0.0 }
 0x189   :  { %285 = vadd.xlane.f32.xlu1 %v284_v3  ;;  %v318_v23 = vsel %vm91_vm2, %v316_v21, 0.0 }
 0x18a   :  { %v279_v5 = vmul.f32 0.03125, %v277_v2 }
 0x18c   :  { %v603_v8 = vsub.f32 %v147_v29, %v279_v5  ;;  %v605_v9 = vsub.f32 %v207_v43, %v279_v5  ;;  %v607_v10 = vsub.f32 %v88_v24, %v279_v5  ;;  %v619_v17 = vsub.f32 %v267_v45, %v279_v5  ;;  %v368_v24 = vld [vmem:[%s684_s4] sm:$0xff] }
 0x18d   :  { %295 = vadd.xlane.f32.xlu1 %v294_v7  ;;  %v332_v45 = vld [vmem:[%s685_s3] sm:$0xff] }
 0x18e   :  { %v293_v11 = vmul.f32 %v603_v8, %v603_v8  ;;  %v305_v15 = vmul.f32 %v605_v9, %v605_v9  ;;  %v283_v16 = vmul.f32 %v607_v10, %v607_v10  ;;  %v317_v20 = vmul.f32 %v619_v17, %v619_v17 }
 0x190   :  { %v297_v14 = vsel %vm91_vm2, %v293_v11, 0.0  ;;  %v309_v18 = vsel %vm91_vm2, %v305_v15, 0.0  ;;  %v287_v19 = vsel %vm91_vm2, %v283_v16, 0.0  ;;  %v321_v22 = vsel %vm91_vm2, %v317_v20, 0.0 }
 0x191   :  { %307 = vadd.xlane.f32.xlu1 %v306_v12  ;;  %298 = vadd.xlane.f32.xlu0 %v297_v14 }
 0x195   :  { %310 = vadd.xlane.f32.xlu0 %v309_v18  ;;  %288 = vadd.xlane.f32.xlu1 %v287_v19 }
 0x199   :  { %322 = vadd.xlane.f32.xlu0 %v321_v22  ;;  %319 = vadd.xlane.f32.xlu1 %v318_v23 }
 0x1aa   :  { %352 = vperm.xlu1 %501, %v368_v24  }
 0x1ae   :  { %357 = vperm.xlu1 %501, %v349_v25  }
 0x1af   :  { %372 = vperm.xlu0 %500, %v368_v24  }
 0x1b2   :  { %377 = vperm.xlu1 %501, %v349_v25  }
 0x1b3   :  { %393 = vperm.xlu0 %500, %v368_v24  }
 0x1b6   :  { %398 = vperm.xlu1 %501, %v349_v25  }
 0x216   :  { %v286_v26 = vpop.xlane.xlu1 %285 }
 0x21a   :  { %v296_v27 = vpop.xlane.xlu1 %295 }
 0x21b   :  { %v300_v32 = vadd.f32 %v296_v27, %v286_v26 }
 0x21e   :  { %v299_v28 = vpop.xlane.xlu0 %298  ;;  %v308_v29 = vpop.xlane.xlu1 %307 }
 0x21f   :  { %v312_v34 = vadd.f32 %v308_v29, %v300_v32 }
 0x222   :  { %v311_v30 = vpop.xlane.xlu0 %310  ;;  %v289_v31 = vpop.xlane.xlu1 %288 }
 0x223   :  { %v301_v33 = vadd.f32 %v299_v28, %v289_v31 }
 0x225   :  { %v313_v35 = vadd.f32 %v311_v30, %v301_v33 }
 0x226   :  { %v323_v36 = vpop.xlane.xlu0 %322  ;;  %v320_v37 = vpop.xlane.xlu1 %319 }
 0x227   :  { %v325_v38 = vadd.f32 %v323_v36, %v313_v35  ;;  %v324_v39 = vadd.f32 %v320_v37, %v312_v34 }
 0x229   :  { %v327_v40 = vmul.f32 0.03125, %v325_v38  ;;  %v326_v41 = vmul.f32 0.03125, %v324_v39 }
 0x22a   :  { %v353_v50 = vpop.permute.xlu1 %352 }
 0x22b   :  { %v329_v42 = vadd.f32 1e-05, %v327_v40  ;;  %v328_v43 = vadd.f32 1e-05, %v326_v41 }
 0x22d   :  { %506 = vrsqrt.f32 %v329_v42 }
 0x22e   :  { %508 = vrsqrt.f32 %v328_v43  ;;  %v358_v51 = vpop.permute.xlu1 %357  ;;  %v373_v52 = vpop.permute.xlu0 %372 }
 0x232   :  { %v378_v53 = vpop.permute.xlu1 %377  ;;  %v394_v54 = vpop.permute.xlu0 %393 }
 0x236   :  { %v399_v55 = vpop.permute.xlu1 %398 }
 0x237   :  { %v507_v46 = vpop.eup %506 }
 0x238   :  { %v509_v47 = vpop.eup %508  ;;  %v335_v48 = vmul.f32 %v507_v46, %v333_v44 }
 0x239   :  { %v334_v49 = vmul.f32 %v509_v47, %v332_v45 }
 0x23a   :  { %343 = vperm.xlu0 %500, %v335_v48  }
 0x23b   :  { %338 = vperm.xlu1 %501, %v334_v49  }
 0x23e   :  { %414 = vperm.xlu0 %500, %v368_v24  }
 0x23f   :  { %419 = vperm.xlu1 %501, %v349_v25  }
 0x2b9   :  { %v344_v56 = vpop.permute.xlu0 %343 }
 0x2ba   :  { %v347_v57 = vmul.f32 %v344_v56, %v607_v10  ;;  %v367_v58 = vmul.f32 %v344_v56, %v603_v8  ;;  %v388_v59 = vmul.f32 %v344_v56, %v605_v9  ;;  %v339_v62 = vpop.permute.xlu1 %338  ;;  %v409_v8 = vmul.f32 %v344_v56, %v619_v17 }
 0x2bb   :  { %v346_v63 = vmul.f32 %v339_v62, %v589_v60  ;;  %v366_v0 = vmul.f32 %v339_v62, %v591_v61  ;;  %v387_v2 = vmul.f32 %v339_v62, %v595_v1  ;;  %v408_v6 = vmul.f32 %v339_v62, %v612_v13 }
 0x2bc   :  { %v361_v3 = vadd.f32 %v358_v51, %v347_v57  ;;  %v381_v4 = vadd.f32 %v378_v53, %v367_v58  ;;  %v402_v5 = vadd.f32 %v399_v55, %v388_v59 }
 0x2bd   :  { %v360_v7 = vadd.f32 %v353_v50, %v346_v63  ;;  %v380_v11 = vadd.f32 %v373_v52, %v366_v0  ;;  %v401_v12 = vadd.f32 %v394_v54, %v387_v2  ;;  %v415_v10 = vpop.permute.xlu0 %414 }
 0x2be   :  { %v363_v14 = vmax.f32 %v361_v3, 0.0  ;;  %v383_v9 = vmax.f32 %v381_v4, 0.0  ;;  %v404_v15 = vmax.f32 %v402_v5, 0.0  ;;  %v422_v16 = vadd.f32 %v415_v10, %v408_v6  ;;  %v420_v60 = vpop.permute.xlu1 %419 }
 0x2bf   :  { %v362_v18 = vmax.f32 %v360_v7, 0.0  ;;  %v382_v61 = vmax.f32 %v380_v11, 0.0  ;;  %v403_v19 = vmax.f32 %v401_v12, 0.0  ;;  %v423_v1 = vadd.f32 %v420_v60, %v409_v8 }
 0x2c0   :  { %365 = vst.msk [vmem:[%s686_s5 + $0x8] sm:$0xff] %vm91_vm2, %v363_v14  ;;  %448 = vst.msk [vmem:[%s686_s5 + $0x18] sm:$0xff] %vm91_vm2, %v383_v9  ;;  %v424_v13 = vmax.f32 %v422_v16, 0.0 }
 0x2c1   :  { %450 = vst.msk [vmem:[%s686_s5 + $0x28] sm:$0xff] %vm91_vm2, %v404_v15  ;;  %364 = vst.msk [vmem:[%s686_s5] sm:$0xff] %vm91_vm2, %v362_v18  ;;  %v425_v17 = vmax.f32 %v423_v1, 0.0 }
 0x2c2   :  { %447 = vst.msk [vmem:[%s686_s5 + $0x10] sm:$0xff] %vm91_vm2, %v382_v61  ;;  %449 = vst.msk [vmem:[%s686_s5 + $0x20] sm:$0xff] %vm91_vm2, %v403_v19 }
 0x2c3   :  { %451 = vst.msk [vmem:[%s686_s5 + $0x30] sm:$0xff] %vm91_vm2, %v424_v13  ;;  %452 = vst.msk [vmem:[%s686_s5 + $0x38] sm:$0xff] %vm91_vm2, %v425_v17 }

// kernel: unet_forward.45
= control target key start
LH: loop header
LB: loop body
LE: loop exit
PB: predicated region body
PF: predicated region fallthrough
CT: control target
= control target key end

     0   :  { %v430_v1 = vmov 0.0   ;;  %vm431_vm0 = vmmov 0   ;;  %v432_v3 = vmov 0   ;;  %vm196_vm1 = vcmask 261120   ;;  %s557_s0 = inlined_call_operand.vmem [shape: bf16[288,32], index: 0, kind: input, shape index: {}]   ;;  %s558_s1 = inlined_call_operand.vmem [shape: bf16[16,288], index: 1, kind: input, shape index: {}]   ;;  %s559_s2 = inlined_call_operand.vmem [shape: f32[16,1], index: 2, kind: input, shape index: {}]   ;;  %s560_s3 = inlined_call_operand.vmem [shape: f32[16,1], index: 3, kind: input, shape index: {}]   ;;  %s561_s4 = inlined_call_operand.vmem [shape: f32[16,1], index: 4, kind: input, shape index: {}]   ;;  %s562_s5 = inlined_call_operand.vmem [shape: f32[16,32], index: 5, kind: output, shape index: {}]  }
   0x1   :  { %v404_v0 = vld [vmem:[%s557_s0 + $0x40] sm:$0xff]   ;;  %391 = vmatprep.subr.bf16.mxu1 %v430_v1  ;;  %395 = vmatprep.mubr.msk.bf16.mxu1 %vm431_vm0, %v430_v1  ;;  %v406_v4 = vld [vmem:[%s557_s0 + $0x48] sm:$0xff]   ;;  %v408_v6 = vld [vmem:[%s557_s0 + $0x50] sm:$0xff]  }
   0x2   :  { %v405_v2 = vld [vmem:[%s557_s0] sm:$0xff]   ;;  %402 = vset.pattern.permute.xlu0 %v432_v3  ;;  %403 = vset.pattern.permute.xlu1 %v432_v3  ;;  %v407_v5 = vld [vmem:[%s557_s0 + $0x8] sm:$0xff]   ;;  %v409_v7 = vld [vmem:[%s557_s0 + $0x10] sm:$0xff]  }
   0x3   :  { %366 = vmatprep.subr.bf16.mxu0 %v404_v0  ;;  %v410_v8 = vld [vmem:[%s557_s0 + $0x58] sm:$0xff]   ;;  %v412_v10 = vld [vmem:[%s557_s0 + $0x60] sm:$0xff]   ;;  %v414_v13 = vld [vmem:[%s557_s0 + $0x68] sm:$0xff]  }
   0x4   :  { %367 = vmatpush3.bf16.msra.mxu0 %v405_v2  ;;  %v411_v9 = vld [vmem:[%s557_s0 + $0x18] sm:$0xff]   ;;  %v418_v11 = vld [vmem:[%s557_s0 + $0x80] sm:$0xff]   ;;  %v415_v14 = vld [vmem:[%s557_s0 + $0x28] sm:$0xff]  }
   0x5   :  { %368 = vmatprep.subr.bf16.mxu0 %v406_v4  ;;  %v413_v12 = vld [vmem:[%s557_s0 + $0x20] sm:$0xff]   ;;  %392 = vmatpush3.bf16.msra.mxu1 %v418_v11  ;;  %v424_v16 = vld [vmem:[%s557_s0 + $0x88] sm:$0xff]   ;;  %v416_v17 = vld [vmem:[%s557_s0 + $0x70] sm:$0xff]  }
   0x6   :  { %393 = vmatprep.subr.bf16.mxu1 %v430_v1  ;;  %v423_v15 = vld [vmem:[%s558_s1 + $0x4] ss:$12 sps:$4 sm:$0xff]   ;;  %v425_v18 = vld [vmem:[%s558_s1 + $0x8] ss:$12 sps:$4 sm:$0xff]   ;;  %v419_v22 = vld [vmem:[%s557_s0 + $0x78] sm:$0xff]  }
   0x7   :  { %232 = vmatprep.mubr.bf16.mxu0 %v423_v15  ;;  %v61_v19 = vld [vmem:[%s559_s2] sm:$0xff]  ;;  %v62_v20 = vld [vmem:[%s559_s2 + $0x8] sm:$0xff]  ;;  %v417_v21 = vld [vmem:[%s557_s0 + $0x30] sm:$0xff]  }
   0x8   :  { %369 = vmatpush3.bf16.msra.mxu0 %v407_v5  ;;  %65 = vperm.xlu0 %402, %v61_v19   ;;  %v420_v23 = vld [vmem:[%s557_s0 + $0x38] sm:$0xff]   ;;  %v421_v24 = vld [vmem:[%s558_s1] ss:$12 sps:$4 sm:$0xff]  }
   0x9   :  { %370 = vmatprep.subr.bf16.mxu0 %v408_v6  ;;  %394 = vmatpush3.bf16.msra.mxu1 %v424_v16  ;;  %v308_v43 = vld [vmem:[%s560_s3] sm:$0xff]  ;;  %v309_v44 = vld [vmem:[%s560_s3 + $0x8] sm:$0xff] }
   0xa   :  { %v322_v45 = vld [vmem:[%s561_s4] sm:$0xff]  ;;  %v323_v56 = vld [vmem:[%s561_s4 + $0x8] sm:$0xff] }
   0xc   :  { %371 = vmatpush3.bf16.msra.mxu0 %v409_v7  ;;  %396 = vmatmul.mubr.msk.bf16.vlgmr.msra.gmra.mrb[0].mxu1 %vm196_vm1, %v425_v18 }
   0xd   :  { %372 = vmatprep.subr.bf16.mxu0 %v410_v8  ;;  %70 = vperm.xlu0 %402, %v62_v20  }
  0x10   :  { %373 = vmatpush3.bf16.msra.mxu0 %v411_v9 }
  0x11   :  { %374 = vmatprep.subr.bf16.mxu0 %v412_v10 }
  0x14   :  { %375 = vmatpush3.bf16.msra.mxu0 %v413_v12 }
  0x15   :  { %376 = vmatprep.subr.bf16.mxu0 %v414_v13 }
  0x18   :  { %377 = vmatpush3.bf16.msra.mxu0 %v415_v14 }
  0x19   :  { %378 = vmatprep.subr.bf16.mxu0 %v416_v17 }
  0x1c   :  { %379 = vmatpush3.bf16.msra.mxu0 %v417_v21 }
  0x1d   :  { %380 = vmatprep.subr.bf16.mxu0 %v419_v22 }
  0x20   :  { %381 = vmatpush3.bf16.msra.mxu0 %v420_v23 }
  0x23   :  { %233 = vmatmul.mubr.bf16.vlgmr.msra.gmra.mrb[0].mxu0 %v421_v24 }
  0x87   :  { %v66_v29 = vpop.permute.xlu0 %65 }
  0x8c   :  { %v71_v37 = vpop.permute.xlu0 %70 }
  0xdf   :  { %v275_v25 = vpop.f32.mrb[0].mxu1 }
  0xe0   :  { %v397_v26 = vpop.f32.mrb[1].mxu1 }
  0xe1   :  { %v278_v27 = vpop.f32.mrb[2].mxu1 }
  0xe2   :  { %v398_v28 = vpop.f32.mrb[3].mxu1 }
  0xf6   :  { %v382_v30 = vpop.f32.mrb[0].mxu0 }
  0xf7   :  { %v383_v31 = vpop.f32.mrb[1].mxu0 }
  0xf8   :  { %v384_v32 = vadd.f32 %v383_v31, %v382_v30  ;;  %v385_v33 = vpop.f32.mrb[2].mxu0 }
  0xf9   :  { %v386_v34 = vpop.f32.mrb[3].mxu0 }
  0xfa   :  { %v235_v35 = vadd.f32 %v384_v32, %v66_v29  ;;  %v387_v36 = vadd.f32 %v386_v34, %v385_v33 }
  0xfc   :  { %v276_v38 = vadd.f32 %v275_v25, %v235_v35  ;;  %v238_v39 = vadd.f32 %v387_v36, %v71_v37 }
  0xfe   :  { %v279_v40 = vadd.f32 %v278_v27, %v238_v39  ;;  %v282_v41 = vsel %vm196_vm1, %v276_v38, 0.0 }
  0xff   :  { %283 = vadd.xlane.f32.xlu1 %v282_v41 }
 0x100   :  { %v285_v42 = vsel %vm196_vm1, %v279_v40, 0.0 }
 0x103   :  { %286 = vadd.xlane.f32.xlu1 %v285_v42 }
 0x114   :  { %312 = vperm.xlu1 %403, %v308_v43  }
 0x118   :  { %317 = vperm.xlu1 %403, %v309_v44  }
 0x11c   :  { %326 = vperm.xlu1 %403, %v322_v45  }
 0x18c   :  { %v284_v46 = vpop.xlane.xlu1 %283 }
 0x18d   :  { %v288_v47 = vmul.f32 0.03125, %v284_v46 }
 0x18f   :  { %v290_v48 = vsub.f32 %v276_v38, %v288_v47 }
 0x190   :  { %v287_v49 = vpop.xlane.xlu1 %286 }
 0x191   :  { %v289_v50 = vmul.f32 0.03125, %v287_v49  ;;  %v292_v51 = vmul.f32 %v290_v48, %v290_v48 }
 0x193   :  { %v291_v52 = vsub.f32 %v279_v40, %v289_v50  ;;  %v294_v53 = vsel %vm196_vm1, %v292_v51, 0.0 }
 0x194   :  { %295 = vadd.xlane.f32.xlu0 %v294_v53  ;;  %v313_v57 = vpop.permute.xlu1 %312 }
 0x195   :  { %v293_v54 = vmul.f32 %v291_v52, %v291_v52 }
 0x197   :  { %v297_v55 = vsel %vm196_vm1, %v293_v54, 0.0 }
 0x198   :  { %298 = vadd.xlane.f32.xlu1 %v297_v55  ;;  %v318_v58 = vpop.permute.xlu1 %317 }
 0x19c   :  { %v327_v59 = vpop.permute.xlu1 %326 }
 0x1a9   :  { %331 = vperm.xlu1 %403, %v323_v56  }
 0x221   :  { %v296_v60 = vpop.xlane.xlu0 %295 }
 0x222   :  { %v300_v61 = vmul.f32 0.03125, %v296_v60 }
 0x224   :  { %v302_v62 = vadd.f32 1e-05, %v300_v61 }
 0x225   :  { %v299_v63 = vpop.xlane.xlu1 %298 }
 0x226   :  { %426 = vrsqrt.f32 %v302_v62  ;;  %v301_v0 = vmul.f32 0.03125, %v299_v63 }
 0x228   :  { %v303_v1 = vadd.f32 1e-05, %v301_v0 }
 0x229   :  { %v332_v10 = vpop.permute.xlu1 %331 }
 0x22a   :  { %428 = vrsqrt.f32 %v303_v1 }
 0x230   :  { %v427_v2 = vpop.eup %426 }
 0x231   :  { %v306_v3 = vmul.f32 %v427_v2, %v290_v48 }
 0x233   :  { %v320_v4 = vmul.f32 %v313_v57, %v306_v3 }
 0x234   :  { %v429_v5 = vpop.eup %428 }
 0x235   :  { %v307_v6 = vmul.f32 %v429_v5, %v291_v52  ;;  %v334_v7 = vadd.f32 %v327_v59, %v320_v4 }
 0x237   :  { %v321_v8 = vmul.f32 %v318_v58, %v307_v6  ;;  %v336_v9 = vmax.f32 %v334_v7, 0.0 }
 0x239   :  { %338 = vst.msk [vmem:[%s562_s5] sm:$0xff] %vm196_vm1, %v336_v9  ;;  %v335_v11 = vadd.f32 %v332_v10, %v321_v8 }
 0x23b   :  { %v337_v12 = vmax.f32 %v335_v11, 0.0 }
 0x23d   :  { %339 = vst.msk [vmem:[%s562_s5 + $0x8] sm:$0xff] %vm196_vm1, %v337_v12 }

// kernel: unet_forward.47
= control target key start
LH: loop header
LB: loop body
LE: loop exit
PB: predicated region body
PF: predicated region fallthrough
CT: control target
= control target key end

     0   :  { %v356_v0 = vmov 0.0   ;;  %vm357_vm0 = vmmov 0   ;;  %v358_v4 = vmov 0   ;;  %vm31_vm1 = vcmask 130048   ;;  %s444_s0 = inlined_call_operand.vmem [shape: f32[16,32], index: 0, kind: input, shape index: {}]   ;;  %s445_s2 = inlined_call_operand.vmem [shape: f32[8,1], index: 2, kind: input, shape index: {}]   ;;  %s446_s1 = inlined_call_operand.vmem [shape: bf16[4,8,16], index: 1, kind: input, shape index: {}]   ;;  %s447_s4 = inlined_call_operand.vmem [shape: f32[8,1], index: 4, kind: input, shape index: {}]   ;;  %s448_s3 = inlined_call_operand.vmem [shape: f32[8,1], index: 3, kind: input, shape index: {}]   ;;  %s449_s5 = inlined_call_operand.vmem [shape: f32[4,8,32], index: 5, kind: output, shape index: {}]  }
   0x1   :  { %325 = vmatprep.subr.bf16.mxu0 %v356_v0  ;;  %331 = vmatprep.subr.bf16.mxu1 %v356_v0  ;;  %v21_v1 = vld [vmem:[%s444_s0] sm:$0xff]  ;;  %v22_v2 = vld [vmem:[%s444_s0 + $0x8] sm:$0xff]  ;;  %vm75_vm2 = vcmask 261120  }
   0x2   :  { %v23_v3 = vpack.c.bf16 %v22_v2, %v21_v1  ;;  %327 = vmatprep.mubr.msk.bf16.mxu0 %vm357_vm0, %v356_v0  ;;  %333 = vmatprep.mubr.msk.bf16.mxu1 %vm357_vm0, %v356_v0  ;;  %v25_v5 = vld [vmem:[%s445_s2] sm:$0xff]  ;;  %v310_v8 = vld [vmem:[%s446_s1 + $0x8] sm:$0xf]  ;;  %v312_v9 = vld [vmem:[%s446_s1 + $0xc] sm:$0xf] }
   0x3   :  { %352 = vset.pattern.permute.xlu0 %v358_v4  ;;  %353 = vset.pattern.permute.xlu1 %v358_v4  ;;  %v24_v6 = vld [vmem:[%s446_s1] sm:$0xf]  ;;  %v308_v7 = vld [vmem:[%s446_s1 + $0x4] sm:$0xf] }
   0x4   :  { %326 = vmatpush3.bf16.msra.mxu0 %v23_v3  ;;  %332 = vmatpush3.bf16.msra.mxu1 %v23_v3  ;;  %v261_v35 = vld [vmem:[%s447_s4] sm:$0xff] }
   0x5   :  { %337 = vmatprep.subr.bf16.mxu0 %v356_v0  ;;  %343 = vmatprep.subr.bf16.mxu1 %v356_v0  ;;  %v253_v1 = vld [vmem:[%s448_s3] sm:$0xff] }
   0x6   :  { %28 = vperm.xlu0 %352, %v25_v5  }
   0x7   :  { %328 = vmatmul.mubr.msk.bf16.vlgmr.msra.gmra.mrb[0].mxu0 %vm31_vm1, %v24_v6  ;;  %334 = vmatmul.mubr.msk.bf16.vlgmr.msra.gmra.mrb[0].mxu1 %vm31_vm1, %v308_v7 }
   0x8   :  { %338 = vmatpush3.bf16.msra.mxu0 %v23_v3  ;;  %344 = vmatpush3.bf16.msra.mxu1 %v23_v3 }
   0x9   :  { %339 = vmatprep.mubr.msk.bf16.mxu0 %vm357_vm0, %v356_v0  ;;  %345 = vmatprep.mubr.msk.bf16.mxu1 %vm357_vm0, %v356_v0 }
   0xf   :  { %340 = vmatmul.mubr.msk.bf16.vlgmr.msra.gmra.mrb[4].mxu0 %vm31_vm1, %v310_v8  ;;  %346 = vmatmul.mubr.msk.bf16.vlgmr.msra.gmra.mrb[4].mxu1 %vm31_vm1, %v312_v9 }
  0x85   :  { %v29_v10 = vpop.permute.xlu0 %28 }
  0xda   :  { %v69_v11 = vpop.f32.mrb[0].mxu0  ;;  %v118_v12 = vpop.f32.mrb[0].mxu1 }
  0xdb   :  { %v70_v13 = vadd.f32 %v69_v11, %v29_v10  ;;  %v329_v14 = vpop.f32.mrb[1].mxu0  ;;  %v119_v15 = vadd.f32 %v118_v12, %v29_v10  ;;  %v335_v16 = vpop.f32.mrb[1].mxu1 }
  0xdc   :  { %v72_v17 = vpop.f32.mrb[2].mxu0  ;;  %v121_v18 = vpop.f32.mrb[2].mxu1 }
  0xdd   :  { %v330_v19 = vpop.f32.mrb[3].mxu0  ;;  %v76_v20 = vsel %vm75_vm2, %v70_v13, 0.0  ;;  %v124_v21 = vsel %vm75_vm2, %v119_v15, 0.0  ;;  %v336_v22 = vpop.f32.mrb[3].mxu1 }
  0xde   :  { %77 = vadd.xlane.f32.xlu0 %v76_v20  ;;  %125 = vadd.xlane.f32.xlu1 %v124_v21 }
  0xe2   :  { %v167_v23 = vpop.f32.mrb[4].mxu0  ;;  %v216_v24 = vpop.f32.mrb[4].mxu1 }
  0xe3   :  { %v168_v25 = vadd.f32 %v167_v23, %v29_v10  ;;  %v341_v26 = vpop.f32.mrb[5].mxu0  ;;  %v347_v27 = vpop.f32.mrb[5].mxu1  ;;  %v217_v30 = vadd.f32 %v216_v24, %v29_v10 }
  0xe4   :  { %v170_v28 = vpop.f32.mrb[6].mxu0  ;;  %v219_v29 = vpop.f32.mrb[6].mxu1 }
  0xe5   :  { %v342_v31 = vpop.f32.mrb[7].mxu0  ;;  %v173_v32 = vsel %vm75_vm2, %v168_v25, 0.0  ;;  %v348_v33 = vpop.f32.mrb[7].mxu1  ;;  %v222_v34 = vsel %vm75_vm2, %v217_v30, 0.0 }
  0xe6   :  { %174 = vadd.xlane.f32.xlu1 %v173_v32 }
  0xea   :  { %223 = vadd.xlane.f32.xlu1 %v222_v34 }
  0xf4   :  { %264 = vperm.xlu0 %352, %v261_v35  }
 0x16b   :  { %v126_v36 = vpop.xlane.xlu1 %125  ;;  %v78_v37 = vpop.xlane.xlu0 %77 }
 0x16c   :  { %v127_v39 = vadd.f32 %v126_v36, %v78_v37 }
 0x173   :  { %v175_v38 = vpop.xlane.xlu1 %174  ;;  %v265_v10 = vpop.permute.xlu0 %264 }
 0x174   :  { %v176_v40 = vadd.f32 %v175_v38, %v127_v39 }
 0x177   :  { %v224_v41 = vpop.xlane.xlu1 %223 }
 0x178   :  { %v225_v42 = vadd.f32 %v224_v41, %v176_v40 }
 0x17a   :  { %v226_v43 = vmul.f32 0.0078125, %v225_v42 }
 0x17c   :  { %v227_v44 = vsub.f32 %v70_v13, %v226_v43  ;;  %v232_v45 = vsub.f32 %v119_v15, %v226_v43  ;;  %v238_v49 = vsub.f32 %v168_v25, %v226_v43  ;;  %v244_v52 = vsub.f32 %v217_v30, %v226_v43 }
 0x17e   :  { %v228_v46 = vmul.f32 %v227_v44, %v227_v44  ;;  %v233_v48 = vmul.f32 %v232_v45, %v232_v45  ;;  %v239_v51 = vmul.f32 %v238_v49, %v238_v49  ;;  %v245_v54 = vmul.f32 %v244_v52, %v244_v52 }
 0x180   :  { %v229_v47 = vsel %vm75_vm2, %v228_v46, 0.0  ;;  %v234_v50 = vsel %vm75_vm2, %v233_v48, 0.0  ;;  %v240_v53 = vsel %vm75_vm2, %v239_v51, 0.0  ;;  %v246_v55 = vsel %vm75_vm2, %v245_v54, 0.0 }
 0x181   :  { %230 = vadd.xlane.f32.xlu1 %v229_v47 }
 0x185   :  { %235 = vadd.xlane.f32.xlu1 %v234_v50 }
 0x189   :  { %241 = vadd.xlane.f32.xlu1 %v240_v53 }
 0x18d   :  { %247 = vadd.xlane.f32.xlu1 %v246_v55 }
 0x19e   :  { %274 = vperm.xlu1 %353, %v261_v35  }
 0x1a2   :  { %285 = vperm.xlu1 %353, %v261_v35  }
 0x20e   :  { %v231_v56 = vpop.xlane.xlu1 %230 }
 0x212   :  { %v236_v57 = vpop.xlane.xlu1 %235 }
 0x213   :  { %v237_v59 = vadd.f32 %v236_v57, %v231_v56 }
 0x216   :  { %v242_v58 = vpop.xlane.xlu1 %241 }
 0x217   :  { %v243_v60 = vadd.f32 %v242_v58, %v237_v59 }
 0x21a   :  { %v248_v61 = vpop.xlane.xlu1 %247 }
 0x21b   :  { %v249_v62 = vadd.f32 %v248_v61, %v243_v60 }
 0x21d   :  { %v250_v63 = vmul.f32 0.0078125, %v249_v62 }
 0x21e   :  { %v275_v4 = vpop.permute.xlu1 %274 }
 0x21f   :  { %v251_v0 = vadd.f32 1e-05, %v250_v63 }
 0x221   :  { %354 = vrsqrt.f32 %v251_v0 }
 0x222   :  { %v286_v5 = vpop.permute.xlu1 %285 }
 0x22b   :  { %v355_v2 = vpop.eup %354 }
 0x22c   :  { %v254_v3 = vmul.f32 %v355_v2, %v253_v1 }
 0x22e   :  { %257 = vperm.xlu1 %353, %v254_v3  }
 0x232   :  { %296 = vperm.xlu1 %353, %v261_v35  }
 0x2ad   :  { %v258_v6 = vpop.permute.xlu1 %257 }
 0x2ae   :  { %v260_v7 = vmul.f32 %v258_v6, %v227_v44  ;;  %v270_v8 = vmul.f32 %v258_v6, %v232_v45  ;;  %v281_v9 = vmul.f32 %v258_v6, %v238_v49  ;;  %v292_v14 = vmul.f32 %v258_v6, %v244_v52 }
 0x2b0   :  { %v267_v11 = vadd.f32 %v265_v10, %v260_v7  ;;  %v277_v12 = vadd.f32 %v275_v4, %v270_v8  ;;  %v288_v13 = vadd.f32 %v286_v5, %v281_v9 }
 0x2b1   :  { %v297_v15 = vpop.permute.xlu1 %296 }
 0x2b2   :  { %v268_v16 = vmax.f32 %v267_v11, 0.0  ;;  %v278_v17 = vmax.f32 %v277_v12, 0.0  ;;  %v289_v18 = vmax.f32 %v288_v13, 0.0  ;;  %v299_v19 = vadd.f32 %v297_v15, %v292_v14 }
 0x2b4   :  { %269 = vst.msk [vmem:[%s449_s5] sm:$0xff] %vm75_vm2, %v268_v16  ;;  %314 = vst.msk [vmem:[%s449_s5 + $0x8] sm:$0xff] %vm75_vm2, %v278_v17  ;;  %v300_v20 = vmax.f32 %v299_v19, 0.0 }
 0x2b5   :  { %315 = vst.msk [vmem:[%s449_s5 + $0x10] sm:$0xff] %vm75_vm2, %v289_v18 }
 0x2b6   :  { %316 = vst.msk [vmem:[%s449_s5 + $0x18] sm:$0xff] %vm75_vm2, %v300_v20 }

// kernel: unet_forward.48
= control target key start
LH: loop header
LB: loop body
LE: loop exit
PB: predicated region body
PF: predicated region fallthrough
CT: control target
= control target key end

     0   :  { %v209_v0 = vmov 0   ;;  %vm106_vm0 = vcmask 130048   ;;  %s282_s0 = inlined_call_operand.vmem [shape: bf16[144,128], index: 0, kind: input, shape index: {}]   ;;  %s283_s1 = inlined_call_operand.vmem [shape: bf16[8,144], index: 1, kind: input, shape index: {}]   ;;  %s284_s2 = inlined_call_operand.vmem [shape: f32[8,1], index: 2, kind: input, shape index: {}]   ;;  %s285_s3 = inlined_call_operand.vmem [shape: f32[8,1], index: 3, kind: input, shape index: {}]   ;;  %s286_s4 = inlined_call_operand.vmem [shape: f32[8,1], index: 4, kind: input, shape index: {}]   ;;  %s287_s5 = inlined_call_operand.vmem [shape: f32[8,128], index: 5, kind: output, shape index: {}]  }
   0x1   :  { %110 = vmatprep.subr.bf16.mxu0 %v209_v0  ;;  %v196_v1 = vld [vmem:[%s282_s0] sm:$0xff]   ;;  %194 = vset.pattern.permute.xlu0 %v209_v0  ;;  %v197_v2 = vld [vmem:[%s282_s0 + $0x8] sm:$0xff]   ;;  %v198_v3 = vld [vmem:[%s282_s0 + $0x10] sm:$0xff]  }
   0x2   :  { %195 = vset.pattern.permute.xlu1 %v209_v0  ;;  %111 = vmatpush1.bf16.msra.mxu0 %v196_v1  ;;  %v21_v4 = vld [vmem:[%s283_s1] sm:$0xff]  ;;  %v199_v6 = vld [vmem:[%s282_s0 + $0x18] sm:$0xff]   ;;  %v201_v9 = vld [vmem:[%s282_s0 + $0x28] sm:$0xff]  }
   0x3   :  { %112 = vmatprep.subr.bf16.mxu0 %v209_v0  ;;  %v40_v5 = vld [vmem:[%s284_s2] sm:$0xff]  ;;  %v182_v7 = vcombine.high %v21_v4, %v21_v4  ;;  %v202_v10 = vld [vmem:[%s282_s0 + $0x30] sm:$0xff]   ;;  %v203_v11 = vld [vmem:[%s282_s0 + $0x38] sm:$0xff]   ;;  %v181_v13 = vcombine.low %v21_v4, %v21_v4 }
   0x4   :  { %43 = vperm.xlu0 %194, %v40_v5   ;;  %v200_v8 = vld [vmem:[%s282_s0 + $0x20] sm:$0xff]  }
   0x5   :  { %192 = vmatprep.mubr.msk.bf16.mxu0 %vm106_vm0, %v182_v7  ;;  %v204_v12 = vld [vmem:[%s282_s0 + $0x40] sm:$0xff]  }
   0x6   :  { %113 = vmatpush1.bf16.msra.mxu0 %v197_v2  ;;  %v161_v14 = vld [vmem:[%s285_s3] sm:$0xff] }
   0x7   :  { %114 = vmatprep.subr.bf16.mxu0 %v209_v0  ;;  %164 = vperm.xlu1 %195, %v161_v14   ;;  %v168_v25 = vld [vmem:[%s286_s4] sm:$0xff] }
   0xa   :  { %115 = vmatpush1.bf16.msra.mxu0 %v198_v3 }
   0xb   :  { %116 = vmatprep.subr.bf16.mxu0 %v209_v0 }
   0xe   :  { %117 = vmatpush1.bf16.msra.mxu0 %v199_v6 }
   0xf   :  { %118 = vmatprep.subr.bf16.mxu0 %v209_v0 }
  0x12   :  { %119 = vmatpush1.bf16.msra.mxu0 %v200_v8 }
  0x13   :  { %120 = vmatprep.subr.bf16.mxu0 %v209_v0 }
  0x16   :  { %121 = vmatpush1.bf16.msra.mxu0 %v201_v9 }
  0x17   :  { %122 = vmatprep.subr.bf16.mxu0 %v209_v0 }
  0x1a   :  { %123 = vmatpush1.bf16.msra.mxu0 %v202_v10 }
  0x1b   :  { %124 = vmatprep.subr.bf16.mxu0 %v209_v0 }
  0x1e   :  { %125 = vmatpush1.bf16.msra.mxu0 %v203_v11 }
  0x1f   :  { %126 = vmatprep.subr.bf16.mxu0 %v209_v0 }
  0x22   :  { %127 = vmatpush1.bf16.msra.mxu0 %v204_v12 }
  0x25   :  { %143 = vmatmul.mubr.bf16.vlgmr.msra.gmra.mrb[0].mxu0 %v181_v13 }
  0x83   :  { %v44_v15 = vpop.permute.xlu0 %43 }
  0x86   :  { %v165_v26 = vpop.permute.xlu1 %164 }
  0xf8   :  { %v144_v16 = vpop.f32.mrb[0].mxu0 }
  0xf9   :  { %v145_v17 = vadd.f32 %v144_v16, %v44_v15  ;;  %v146_v18 = vpop.f32.mrb[1].mxu0 }
  0xfa   :  { %v147_v19 = vpop.f32.mrb[2].mxu0 }
  0xfb   :  { %v148_v20 = vpop.f32.mrb[3].mxu0  ;;  %150 = vadd.xlane.f32.xlu0 %v145_v17 }
 0x188   :  { %v151_v21 = vpop.xlane.xlu0 %150 }
 0x189   :  { %v152_v22 = vmul.f32 0.0078125, %v151_v21 }
 0x18b   :  { %v153_v23 = vsub.f32 %v145_v17, %v152_v22 }
 0x18d   :  { %v154_v24 = vmul.f32 %v153_v23, %v153_v23 }
 0x18f   :  { %155 = vadd.xlane.f32.xlu1 %v154_v24 }
 0x1a0   :  { %171 = vperm.xlu1 %195, %v168_v25  }
 0x21c   :  { %v156_v27 = vpop.xlane.xlu1 %155 }
 0x21d   :  { %v157_v28 = vmul.f32 0.0078125, %v156_v27 }
 0x21f   :  { %v158_v29 = vadd.f32 1e-05, %v157_v28 }
 0x220   :  { %v172_v33 = vpop.permute.xlu1 %171 }
 0x221   :  { %207 = vrsqrt.f32 %v158_v29 }
 0x22b   :  { %v208_v30 = vpop.eup %207 }
 0x22c   :  { %v160_v31 = vmul.f32 %v208_v30, %v153_v23 }
 0x22e   :  { %v167_v32 = vmul.f32 %v165_v26, %v160_v31 }
 0x230   :  { %v174_v34 = vadd.f32 %v172_v33, %v167_v32 }
 0x232   :  { %v175_v35 = vmax.f32 %v174_v34, 0.0 }
 0x234   :  { %176 = vst [vmem:[%s287_s5] sm:$0xff] %v175_v35 }

// kernel: unet_forward.50
= control target key start
LH: loop header
LB: loop body
LE: loop exit
PB: predicated region body
PF: predicated region fallthrough
CT: control target
= control target key end

     0   :  { %v358_v0 = vmov 0.0   ;;  %vm34_vm0 = vcmask 1043456   ;;  %vm359_vm1 = vmmov 0   ;;  %v360_v4 = vmov 0   ;;  %s449_s0 = inlined_call_operand.vmem [shape: f32[8,128], index: 0, kind: input, shape index: {}]   ;;  %s450_s2 = inlined_call_operand.vmem [shape: f32[4,1], index: 2, kind: input, shape index: {}]   ;;  %s451_s1 = inlined_call_operand.vmem [shape: bf16[4,4,8], index: 1, kind: input, shape index: {}]   ;;  %s452_s4 = inlined_call_operand.vmem [shape: f32[4,1], index: 4, kind: input, shape index: {}]   ;;  %s453_s3 = inlined_call_operand.vmem [shape: f32[4,1], index: 3, kind: input, shape index: {}]   ;;  %s454_s5 = inlined_call_operand.vmem [shape: f32[4,4,128], index: 5, kind: output, shape index: {}]  }
   0x1   :  { %327 = vmatprep.subr.bf16.mxu0 %v358_v0  ;;  %333 = vmatprep.subr.bf16.mxu1 %v358_v0  ;;  %v21_v1 = vld [vmem:[%s449_s0] sm:$0xff]  ;;  %vm30_vm2 = vcmask 64512  }
   0x2   :  { %v22_v2 = vpack.c.bf16 %v21_v1, %v21_v1  ;;  %329 = vmatprep.mubr.msk.bf16.mxu0 %vm359_vm1, %v358_v0  ;;  %335 = vmatprep.mubr.msk.bf16.mxu1 %vm359_vm1, %v358_v0  ;;  %v24_v3 = vld [vmem:[%s450_s2] sm:$0xf]  ;;  %v312_v8 = vld [vmem:[%s451_s1 + $0x4] sm:$0x3]  ;;  %v314_v9 = vld [vmem:[%s451_s1 + $0x6] sm:$0x3] }
   0x3   :  { %354 = vset.pattern.permute.xlu0 %v360_v4  ;;  %355 = vset.pattern.permute.xlu1 %v360_v4  ;;  %v23_v6 = vld [vmem:[%s451_s1] sm:$0x3]  ;;  %v310_v7 = vld [vmem:[%s451_s1 + $0x2] sm:$0x3] }
   0x4   :  { %v36_v5 = vsel %vm34_vm0, %v22_v2, 0  ;;  %27 = vperm.xlu0 %354, %v24_v3   ;;  %v263_v35 = vld [vmem:[%s452_s4] sm:$0xf] }
   0x5   :  { %328 = vmatpush3.bf16.msra.mxu0 %v36_v5  ;;  %334 = vmatpush3.bf16.msra.mxu1 %v36_v5  ;;  %v273_v56 = vld [vmem:[%s452_s4] sm:$0xf] }
   0x6   :  { %339 = vmatprep.subr.bf16.mxu0 %v358_v0  ;;  %345 = vmatprep.subr.bf16.mxu1 %v358_v0  ;;  %v284_v57 = vld [vmem:[%s452_s4] sm:$0xf] }
   0x7   :  { %v255_v3 = vld [vmem:[%s453_s3] sm:$0xf] }
   0x8   :  { %330 = vmatmul.mubr.msk.bf16.vlgmr.msra.gmra.mrb[0].mxu0 %vm30_vm2, %v23_v6  ;;  %336 = vmatmul.mubr.msk.bf16.vlgmr.msra.gmra.mrb[0].mxu1 %vm30_vm2, %v310_v7  ;;  %v295_v6 = vld [vmem:[%s452_s4] sm:$0xf] }
   0x9   :  { %340 = vmatpush3.bf16.msra.mxu0 %v36_v5  ;;  %346 = vmatpush3.bf16.msra.mxu1 %v36_v5 }
   0xa   :  { %341 = vmatprep.mubr.msk.bf16.mxu0 %vm359_vm1, %v358_v0  ;;  %347 = vmatprep.mubr.msk.bf16.mxu1 %vm359_vm1, %v358_v0 }
  0x10   :  { %342 = vmatmul.mubr.msk.bf16.vlgmr.msra.gmra.mrb[4].mxu0 %vm30_vm2, %v312_v8  ;;  %348 = vmatmul.mubr.msk.bf16.vlgmr.msra.gmra.mrb[4].mxu1 %vm30_vm2, %v314_v9 }
  0x83   :  { %v28_v10 = vpop.permute.xlu0 %27 }
  0xdb   :  { %v72_v11 = vpop.f32.mrb[0].mxu0  ;;  %v120_v12 = vpop.f32.mrb[0].mxu1 }
  0xdc   :  { %v73_v13 = vadd.f32 %v72_v11, %v28_v10  ;;  %v331_v14 = vpop.f32.mrb[1].mxu0  ;;  %v121_v15 = vadd.f32 %v120_v12, %v28_v10  ;;  %v337_v16 = vpop.f32.mrb[1].mxu1 }
  0xdd   :  { %v75_v17 = vpop.f32.mrb[2].mxu0  ;;  %v123_v18 = vpop.f32.mrb[2].mxu1 }
  0xde   :  { %v332_v19 = vpop.f32.mrb[3].mxu0  ;;  %v78_v20 = vsel %vm34_vm0, %v73_v13, 0.0  ;;  %v126_v21 = vsel %vm34_vm0, %v121_v15, 0.0  ;;  %v338_v22 = vpop.f32.mrb[3].mxu1 }
  0xdf   :  { %79 = vadd.xlane.f32.xlu0 %v78_v20  ;;  %127 = vadd.xlane.f32.xlu1 %v126_v21 }
  0xe3   :  { %v169_v23 = vpop.f32.mrb[4].mxu0  ;;  %v218_v24 = vpop.f32.mrb[4].mxu1 }
  0xe4   :  { %v170_v25 = vadd.f32 %v169_v23, %v28_v10  ;;  %v343_v26 = vpop.f32.mrb[5].mxu0  ;;  %v349_v27 = vpop.f32.mrb[5].mxu1  ;;  %v219_v30 = vadd.f32 %v218_v24, %v28_v10 }
  0xe5   :  { %v172_v28 = vpop.f32.mrb[6].mxu0  ;;  %v221_v29 = vpop.f32.mrb[6].mxu1 }
  0xe6   :  { %v344_v31 = vpop.f32.mrb[7].mxu0  ;;  %v175_v32 = vsel %vm34_vm0, %v170_v25, 0.0  ;;  %v350_v33 = vpop.f32.mrb[7].mxu1  ;;  %v224_v34 = vsel %vm34_vm0, %v219_v30, 0.0 }
  0xe7   :  { %176 = vadd.xlane.f32.xlu1 %v175_v32 }
  0xeb   :  { %225 = vadd.xlane.f32.xlu1 %v224_v34 }
  0xf5   :  { %266 = vperm.xlu0 %354, %v263_v35  }
 0x16c   :  { %v128_v36 = vpop.xlane.xlu1 %127  ;;  %v80_v37 = vpop.xlane.xlu0 %79 }
 0x16d   :  { %v129_v39 = vadd.f32 %v128_v36, %v80_v37 }
 0x174   :  { %v177_v38 = vpop.xlane.xlu1 %176 }
 0x175   :  { %v178_v40 = vadd.f32 %v177_v38, %v129_v39 }
 0x178   :  { %v226_v41 = vpop.xlane.xlu1 %225 }
 0x179   :  { %v227_v42 = vadd.f32 %v226_v41, %v178_v40 }
 0x17b   :  { %v228_v43 = vmul.f32 0.001953125, %v227_v42 }
 0x17d   :  { %v229_v44 = vsub.f32 %v73_v13, %v228_v43  ;;  %v234_v45 = vsub.f32 %v121_v15, %v228_v43  ;;  %v240_v49 = vsub.f32 %v170_v25, %v228_v43  ;;  %v246_v52 = vsub.f32 %v219_v30, %v228_v43  ;;  %v267_v13 = vpop.permute.xlu0 %266 }
 0x17f   :  { %v230_v46 = vmul.f32 %v229_v44, %v229_v44  ;;  %v235_v48 = vmul.f32 %v234_v45, %v234_v45  ;;  %v241_v51 = vmul.f32 %v240_v49, %v240_v49  ;;  %v247_v54 = vmul.f32 %v246_v52, %v246_v52 }
 0x181   :  { %v231_v47 = vsel %vm34_vm0, %v230_v46, 0.0  ;;  %v236_v50 = vsel %vm34_vm0, %v235_v48, 0.0  ;;  %v242_v53 = vsel %vm34_vm0, %v241_v51, 0.0  ;;  %v248_v55 = vsel %vm34_vm0, %v247_v54, 0.0 }
 0x182   :  { %232 = vadd.xlane.f32.xlu1 %v231_v47 }
 0x186   :  { %237 = vadd.xlane.f32.xlu1 %v236_v50 }
 0x18a   :  { %243 = vadd.xlane.f32.xlu1 %v242_v53 }
 0x18e   :  { %249 = vadd.xlane.f32.xlu1 %v248_v55 }
 0x19f   :  { %276 = vperm.xlu1 %355, %v273_v56  }
 0x1a3   :  { %287 = vperm.xlu1 %355, %v284_v57  }
 0x20f   :  { %v233_v58 = vpop.xlane.xlu1 %232 }
 0x213   :  { %v238_v59 = vpop.xlane.xlu1 %237 }
 0x214   :  { %v239_v61 = vadd.f32 %v238_v59, %v233_v58 }
 0x217   :  { %v244_v60 = vpop.xlane.xlu1 %243 }
 0x218   :  { %v245_v62 = vadd.f32 %v244_v60, %v239_v61 }
 0x21b   :  { %v250_v63 = vpop.xlane.xlu1 %249 }
 0x21c   :  { %v251_v0 = vadd.f32 %v250_v63, %v245_v62 }
 0x21e   :  { %v252_v1 = vmul.f32 0.001953125, %v251_v0 }
 0x21f   :  { %v277_v7 = vpop.permute.xlu1 %276 }
 0x220   :  { %v253_v2 = vadd.f32 1e-05, %v252_v1 }
 0x222   :  { %356 = vrsqrt.f32 %v253_v2 }
 0x223   :  { %v288_v8 = vpop.permute.xlu1 %287 }
 0x22c   :  { %v357_v4 = vpop.eup %356 }
 0x22d   :  { %v256_v5 = vmul.f32 %v357_v4, %v255_v3 }
 0x22f   :  { %259 = vperm.xlu1 %355, %v256_v5  }
 0x233   :  { %298 = vperm.xlu1 %355, %v295_v6  }
 0x2ae   :  { %v260_v9 = vpop.permute.xlu1 %259 }
 0x2af   :  { %v262_v10 = vmul.f32 %v260_v9, %v229_v44  ;;  %v272_v11 = vmul.f32 %v260_v9, %v234_v45  ;;  %v283_v12 = vmul.f32 %v260_v9, %v240_v49  ;;  %v294_v17 = vmul.f32 %v260_v9, %v246_v52 }
 0x2b1   :  { %v269_v14 = vadd.f32 %v267_v13, %v262_v10  ;;  %v279_v15 = vadd.f32 %v277_v7, %v272_v11  ;;  %v290_v16 = vadd.f32 %v288_v8, %v283_v12 }
 0x2b2   :  { %v299_v18 = vpop.permute.xlu1 %298 }
 0x2b3   :  { %v270_v19 = vmax.f32 %v269_v14, 0.0  ;;  %v280_v20 = vmax.f32 %v279_v15, 0.0  ;;  %v291_v21 = vmax.f32 %v290_v16, 0.0  ;;  %v301_v22 = vadd.f32 %v299_v18, %v294_v17 }
 0x2b5   :  { %271 = vst [vmem:[%s454_s5] sm:$0xf] %v270_v19  ;;  %316 = vst [vmem:[%s454_s5 + $0x4] sm:$0xf] %v280_v20  ;;  %v302_v23 = vmax.f32 %v301_v22, 0.0 }
 0x2b6   :  { %317 = vst [vmem:[%s454_s5 + $0x8] sm:$0xf] %v291_v21 }
 0x2b7   :  { %318 = vst [vmem:[%s454_s5 + $0xc] sm:$0xf] %v302_v23 }

// kernel: unet_forward.53
= control target key start
LH: loop header
LB: loop body
LE: loop exit
PB: predicated region body
PF: predicated region fallthrough
CT: control target
= control target key end

     0   :  { %vm38_vm0 = vcmask 1041408   ;;  %v155_v2 = vmov 0   ;;  %vm34_vm1 = vcmask 31744   ;;  %s198_s0 = inlined_call_operand.vmem [shape: f32[4,512], index: 0, kind: input, shape index: {}]   ;;  %s199_s2 = inlined_call_operand.vmem [shape: f32[3,1], index: 2, kind: input, shape index: {}]   ;;  %s200_s1 = inlined_call_operand.vmem [shape: bf16[3,4], index: 1, kind: input, shape index: {}]   ;;  %s201_s3 = inlined_call_operand.vmem [shape: f32[3,512], index: 3, kind: output, shape index: {}]  }
   0x1   :  { %v15_v0 = vld [vmem:[%s198_s0] sm:$0xff]  ;;  %v16_v1 = vld [vmem:[%s198_s0 + $0x8] sm:$0xff]  ;;  %83 = vmatprep.mubr.bf16.mxu0 %v155_v2  ;;  %124 = vmatprep.mubr.bf16.mxu1 %v155_v2 }
   0x2   :  { %v19_v3 = vcombine.high %v15_v0, %v15_v0  ;;  %v20_v4 = vcombine.high %v16_v1, %v16_v1  ;;  %v23_v5 = vpack.c.bf16 %v15_v0, %v15_v0  ;;  %v25_v6 = vpack.c.bf16 %v16_v1, %v16_v1  ;;  %152 = vset.pattern.permute.xlu0 %v155_v2  ;;  %v28_v7 = vld [vmem:[%s199_s2] sm:$0x7] }
   0x3   :  { %31 = vperm.xlu0 %152, %v28_v7   ;;  %v27_v12 = vld [vmem:[%s200_s1] sm:$0x3] }
   0x4   :  { %v24_v8 = vpack.c.bf16 %v19_v3, %v19_v3  ;;  %v26_v9 = vpack.c.bf16 %v20_v4, %v20_v4  ;;  %v40_v10 = vsel %vm38_vm0, %v23_v5, 0  ;;  %v46_v11 = vsel %vm38_vm0, %v25_v6, 0 }
   0x6   :  { %147 = vmatprep.subr.msk.bf16.mxu0 %vm38_vm0, %v24_v8  ;;  %149 = vmatprep.subr.msk.bf16.mxu1 %vm38_vm0, %v26_v9 }
   0x7   :  { %52 = vmatpush1.bf16.msra.mxu0 %v40_v10  ;;  %93 = vmatpush1.bf16.msra.mxu1 %v46_v11 }
   0xa   :  { %148 = vmatmul.mubr.msk.bf16.vlgmr.msra.gmra.mrb[0].mxu0 %vm34_vm1, %v27_v12  ;;  %150 = vmatmul.mubr.msk.bf16.vlgmr.msra.gmra.mrb[0].mxu1 %vm34_vm1, %v27_v12 }
  0x82   :  { %v32_v13 = vpop.permute.xlu0 %31 }
  0xdd   :  { %v85_v14 = vpop.f32.mrb[0].mxu0  ;;  %v126_v15 = vpop.f32.mrb[0].mxu1 }
  0xde   :  { %v86_v16 = vadd.f32 %v85_v14, %v32_v13  ;;  %v127_v17 = vadd.f32 %v126_v15, %v32_v13  ;;  %v87_v18 = vpop.f32.mrb[1].mxu0  ;;  %v128_v19 = vpop.f32.mrb[1].mxu1 }
  0xdf   :  { %v88_v20 = vadd.f32 %v87_v18, %v32_v13  ;;  %v129_v21 = vadd.f32 %v128_v19, %v32_v13  ;;  %v89_v22 = vpop.f32.mrb[2].mxu0  ;;  %v130_v23 = vpop.f32.mrb[2].mxu1 }
  0xe0   :  { %v90_v24 = vpop.f32.mrb[3].mxu0  ;;  %v131_v25 = vpop.f32.mrb[3].mxu1 }
  0xe1   :  { %v137_v26 = vcombine.low %v86_v16, %v88_v20  ;;  %v138_v27 = vcombine.low %v127_v17, %v129_v21 }
  0xe3   :  { %141 = vst [vmem:[%s201_s3] sm:$0x77] %v137_v26  ;;  %142 = vst [vmem:[%s201_s3 + $0x8] sm:$0x77] %v138_v27 }

// kernel: unet_forward.51
= control target key start
LH: loop header
LB: loop body
LE: loop exit
PB: predicated region body
PF: predicated region fallthrough
CT: control target
= control target key end

     0   :  { %v364_v1 = vmov 0   ;;  %vm140_vm0 = vcmask 1043456   ;;  %vm136_vm1 = vcmask 588800   ;;  %s479_s0 = inlined_call_operand.vmem [shape: bf16[72,512], index: 0, kind: input, shape index: {}]   ;;  %s480_s2 = inlined_call_operand.vmem [shape: f32[4,1], index: 2, kind: input, shape index: {}]   ;;  %s481_s1 = inlined_call_operand.vmem [shape: bf16[4,72], index: 1, kind: input, shape index: {}]   ;;  %s482_s3 = inlined_call_operand.vmem [shape: f32[4,1], index: 3, kind: input, shape index: {}]   ;;  %s483_s4 = inlined_call_operand.vmem [shape: f32[4,1], index: 4, kind: input, shape index: {}]   ;;  %s484_s5 = inlined_call_operand.vmem [shape: f32[4,512], index: 5, kind: output, shape index: {}]  }
   0x1   :  { %v334_v0 = vld [vmem:[%s479_s0 + $0x4] ss:$16 sps:$4 sm:$0xff]   ;;  %185 = vmatprep.mubr.bf16.mxu0 %v364_v1  ;;  %226 = vmatprep.mubr.bf16.mxu1 %v364_v1  ;;  %v336_v2 = vld [vmem:[%s479_s0 + $0xc] ss:$16 sps:$4 sm:$0xff]   ;;  %v338_v3 = vld [vmem:[%s479_s0] ss:$16 sps:$4 sm:$0xff]  }
   0x2   :  { %332 = vset.pattern.permute.xlu0 %v364_v1  ;;  %333 = vset.pattern.permute.xlu1 %v364_v1  ;;  %v339_v4 = vld [vmem:[%s479_s0 + $0x8] ss:$16 sps:$4 sm:$0xff]   ;;  %v340_v5 = vld [vmem:[%s479_s0 + $0x24] ss:$16 sps:$4 sm:$0xff]   ;;  %v342_v6 = vld [vmem:[%s479_s0 + $0x2c] ss:$16 sps:$4 sm:$0xff]  }
   0x3   :  { %153 = vmatprep.subr.bf16.mxu0 %v334_v0  ;;  %194 = vmatprep.subr.bf16.mxu1 %v336_v2  ;;  %v344_v7 = vld [vmem:[%s479_s0 + $0x20] ss:$16 sps:$4 sm:$0xff]   ;;  %v345_v8 = vld [vmem:[%s479_s0 + $0x28] ss:$16 sps:$4 sm:$0xff]   ;;  %v346_v9 = vld [vmem:[%s479_s0 + $0x44] ss:$16 sps:$4 sm:$0xff]  }
   0x4   :  { %154 = vmatpush1.bf16.msra.mxu0 %v338_v3  ;;  %195 = vmatpush1.bf16.msra.mxu1 %v339_v4  ;;  %v348_v10 = vld [vmem:[%s479_s0 + $0x4c] ss:$16 sps:$4 sm:$0xff]   ;;  %v350_v11 = vld [vmem:[%s479_s0 + $0x40] ss:$16 sps:$4 sm:$0xff]   ;;  %v351_v12 = vld [vmem:[%s479_s0 + $0x48] ss:$16 sps:$4 sm:$0xff]  }
   0x5   :  { %155 = vmatprep.subr.bf16.mxu0 %v340_v5  ;;  %196 = vmatprep.subr.bf16.mxu1 %v342_v6  ;;  %v352_v13 = vld [vmem:[%s479_s0 + $0x64] ss:$16 sps:$4 sm:$0xff]   ;;  %v354_v14 = vld [vmem:[%s479_s0 + $0x6c] ss:$16 sps:$4 sm:$0xff]   ;;  %v40_v17 = vld [vmem:[%s480_s2] sm:$0xf] }
   0x6   :  { %v38_v15 = vld [vmem:[%s479_s0 + $0x80] sm:$0xff]  ;;  %v39_v16 = vld [vmem:[%s479_s0 + $0x88] sm:$0xff]  ;;  %43 = vperm.xlu0 %332, %v40_v17  }
   0x7   :  { %v356_v18 = vld [vmem:[%s479_s0 + $0x60] ss:$16 sps:$4 sm:$0xff]   ;;  %v357_v19 = vld [vmem:[%s479_s0 + $0x68] ss:$16 sps:$4 sm:$0xff]   ;;  %v324_v20 = vcombine.high %v38_v15, %v38_v15  ;;  %v326_v21 = vcombine.high %v39_v16, %v39_v16  ;;  %v323_v22 = vcombine.low %v38_v15, %v38_v15  ;;  %v325_v23 = vcombine.low %v39_v16, %v39_v16 }
   0x8   :  { %156 = vmatpush1.bf16.msra.mxu0 %v344_v7  ;;  %197 = vmatpush1.bf16.msra.mxu1 %v345_v8  ;;  %v21_v26 = vld [vmem:[%s481_s1] sm:$0x3] }
   0x9   :  { %157 = vmatprep.subr.bf16.mxu0 %v346_v9  ;;  %198 = vmatprep.subr.bf16.mxu1 %v348_v10  ;;  %v142_v24 = vsel %vm140_vm0, %v323_v22, 0  ;;  %v148_v25 = vsel %vm140_vm0, %v325_v23, 0  ;;  %v269_v27 = vld [vmem:[%s482_s3] sm:$0xf] }
   0xa   :  { %272 = vperm.xlu1 %333, %v269_v27   ;;  %v279_v1 = vld [vmem:[%s483_s4] sm:$0xf] }
   0xc   :  { %158 = vmatpush1.bf16.msra.mxu0 %v350_v11  ;;  %199 = vmatpush1.bf16.msra.mxu1 %v351_v12 }
   0xd   :  { %159 = vmatprep.subr.bf16.mxu0 %v352_v13  ;;  %200 = vmatprep.subr.bf16.mxu1 %v354_v14 }
  0x10   :  { %160 = vmatpush1.bf16.msra.mxu0 %v356_v18  ;;  %201 = vmatpush1.bf16.msra.mxu1 %v357_v19 }
  0x11   :  { %327 = vmatprep.subr.msk.bf16.mxu0 %vm140_vm0, %v324_v20  ;;  %329 = vmatprep.subr.msk.bf16.mxu1 %vm140_vm0, %v326_v21 }
  0x14   :  { %162 = vmatpush1.bf16.msra.mxu0 %v142_v24  ;;  %203 = vmatpush1.bf16.msra.mxu1 %v148_v25 }
  0x17   :  { %328 = vmatmul.mubr.msk.bf16.vlgmr.msra.gmra.mrb[0].mxu0 %vm136_vm1, %v21_v26  ;;  %330 = vmatmul.mubr.msk.bf16.vlgmr.msra.gmra.mrb[0].mxu1 %vm136_vm1, %v21_v26 }
  0x85   :  { %v44_v28 = vpop.permute.xlu0 %43 }
  0x89   :  { %v273_v2 = vpop.permute.xlu1 %272 }
  0xea   :  { %v187_v29 = vpop.f32.mrb[0].mxu0  ;;  %v228_v30 = vpop.f32.mrb[0].mxu1 }
  0xeb   :  { %v188_v31 = vadd.f32 %v187_v29, %v44_v28  ;;  %v189_v32 = vpop.f32.mrb[1].mxu0  ;;  %v230_v33 = vpop.f32.mrb[1].mxu1  ;;  %v229_v34 = vadd.f32 %v228_v30, %v44_v28 }
  0xec   :  { %v190_v35 = vadd.f32 %v189_v32, %v44_v28  ;;  %v191_v36 = vpop.f32.mrb[2].mxu0  ;;  %v232_v37 = vpop.f32.mrb[2].mxu1  ;;  %v231_v42 = vadd.f32 %v230_v33, %v44_v28 }
  0xed   :  { %v235_v38 = vsel %vm140_vm0, %v188_v31, 0.0  ;;  %v192_v39 = vpop.f32.mrb[3].mxu0  ;;  %v233_v40 = vpop.f32.mrb[3].mxu1  ;;  %v238_v44 = vsel %vm140_vm0, %v229_v34, 0.0 }
  0xee   :  { %v236_v41 = vsel %vm140_vm0, %v190_v35, 0.0  ;;  %v240_v46 = vsel %vm140_vm0, %v231_v42, 0.0 }
  0xef   :  { %v237_v43 = vadd.f32 %v236_v41, %v235_v38 }
  0xf1   :  { %v239_v45 = vadd.f32 %v238_v44, %v237_v43 }
  0xf3   :  { %v241_v47 = vadd.f32 %v240_v46, %v239_v45 }
  0xf5   :  { %242 = vadd.xlane.f32.xlu0 %v241_v47 }
 0x182   :  { %v243_v48 = vpop.xlane.xlu0 %242 }
 0x183   :  { %v244_v49 = vmul.f32 0.001953125, %v243_v48 }
 0x185   :  { %v245_v50 = vsub.f32 %v188_v31, %v244_v49  ;;  %v246_v51 = vsub.f32 %v190_v35, %v244_v49  ;;  %v247_v52 = vsub.f32 %v229_v34, %v244_v49  ;;  %v248_v53 = vsub.f32 %v231_v42, %v244_v49 }
 0x187   :  { %v249_v54 = vmul.f32 %v245_v50, %v245_v50  ;;  %v250_v55 = vmul.f32 %v246_v51, %v246_v51  ;;  %v251_v56 = vmul.f32 %v247_v52, %v247_v52  ;;  %v252_v57 = vmul.f32 %v248_v53, %v248_v53 }
 0x189   :  { %v253_v58 = vsel %vm140_vm0, %v249_v54, 0.0  ;;  %v254_v59 = vsel %vm140_vm0, %v250_v55, 0.0  ;;  %v256_v61 = vsel %vm140_vm0, %v251_v56, 0.0  ;;  %v258_v63 = vsel %vm140_vm0, %v252_v57, 0.0 }
 0x18a   :  { %v255_v60 = vadd.f32 %v254_v59, %v253_v58 }
 0x18c   :  { %v257_v62 = vadd.f32 %v256_v61, %v255_v60 }
 0x18e   :  { %v259_v0 = vadd.f32 %v258_v63, %v257_v62 }
 0x190   :  { %260 = vadd.xlane.f32.xlu1 %v259_v0 }
 0x1a1   :  { %282 = vperm.xlu1 %333, %v279_v1  }
 0x21d   :  { %v261_v3 = vpop.xlane.xlu1 %260 }
 0x21e   :  { %v262_v4 = vmul.f32 0.001953125, %v261_v3 }
 0x220   :  { %v263_v5 = vadd.f32 1e-05, %v262_v4 }
 0x221   :  { %v283_v15 = vpop.permute.xlu1 %282 }
 0x222   :  { %362 = vrsqrt.f32 %v263_v5 }
 0x22c   :  { %v363_v6 = vpop.eup %362 }
 0x22d   :  { %v265_v7 = vmul.f32 %v363_v6, %v245_v50  ;;  %v266_v8 = vmul.f32 %v363_v6, %v246_v51  ;;  %v267_v9 = vmul.f32 %v363_v6, %v247_v52  ;;  %v268_v10 = vmul.f32 %v363_v6, %v248_v53 }
 0x22f   :  { %v275_v11 = vmul.f32 %v273_v2, %v265_v7  ;;  %v276_v12 = vmul.f32 %v273_v2, %v266_v8  ;;  %v277_v13 = vmul.f32 %v273_v2, %v267_v9  ;;  %v278_v14 = vmul.f32 %v273_v2, %v268_v10 }
 0x231   :  { %v285_v16 = vadd.f32 %v283_v15, %v275_v11  ;;  %v286_v17 = vadd.f32 %v283_v15, %v276_v12  ;;  %v287_v18 = vadd.f32 %v283_v15, %v277_v13  ;;  %v288_v19 = vadd.f32 %v283_v15, %v278_v14 }
 0x233   :  { %v289_v20 = vmax.f32 %v285_v16, 0.0  ;;  %v290_v21 = vmax.f32 %v286_v17, 0.0  ;;  %v291_v22 = vmax.f32 %v287_v18, 0.0  ;;  %v292_v23 = vmax.f32 %v288_v19, 0.0 }
 0x235   :  { %v297_v24 = vcombine.low %v289_v20, %v290_v21  ;;  %v298_v25 = vcombine.low %v291_v22, %v292_v23 }
 0x237   :  { %301 = vst [vmem:[%s484_s5] sm:$0xff] %v297_v24  ;;  %302 = vst [vmem:[%s484_s5 + $0x8] sm:$0xff] %v298_v25 }

</bundles_post_ra>
